<compile_context>
chip_gen: v7x
topology: tpu7x:2x2x1
jax: 0.10.0
libtpu: 0.0.40
codegen_flags: <defaults>
</compile_context>

<pallas_src>
import jax
import jax.numpy as jnp
from jax.experimental import pallas as pl
from jax.experimental.pallas import tpu as pltpu

EPS = 1e-5  # nn.BatchNorm2d default eps


# --------------------------------------------------------------------------- #
# Kernels
# --------------------------------------------------------------------------- #
def make_conv_stats_kernel(TH, W):
    """Phase 1: 3x3 conv (as 3 shifted matmuls) + per-tile BN partial sums."""
    rows = TH * W  # output rows of this tile

    def kernel(x_ref, w_ref, y_ref, s_ref):
        # x_ref: ((TH+2)*W, 3*Cin)  bf16  -- width-im2col'd, H-halo'd activation tile
        # w_ref: (3, 3*Cin, Cout)   bf16  -- one (3*Cin, Cout) matrix per kh tap
        # y_ref: (TH*W, Cout)       f32   -- raw conv output (bias-free, see header)
        # s_ref: (2, Cout)          f32   -- per-tile [sum, sum_of_squares]
        y_ref[...] = jnp.dot(x_ref[0:rows, :], w_ref[0],
                             preferred_element_type=jnp.float32)
        for kh in (1, 2):
            y_ref[...] += jnp.dot(x_ref[kh * W:kh * W + rows, :], w_ref[kh],
                                  preferred_element_type=jnp.float32)
        y = y_ref[...]
        s_ref[0:1, :] = jnp.sum(y, axis=0, keepdims=True)
        s_ref[1:2, :] = jnp.sum(y * y, axis=0, keepdims=True)

    return kernel


def _bn_relu_kernel(y_ref, scale_ref, shift_ref, o_ref):
    # y_ref/o_ref: (TH*W, Cout) f32 ; scale/shift: (1, Cout) f32
    o_ref[...] = jnp.maximum(y_ref[...] * scale_ref[...] + shift_ref[...], 0.0)


def make_bn_relu_maxh_kernel(TH, W):
    """Phase 2 for the last layer: BN + ReLU + running max over H (flattening)."""

    def kernel(y_ref, scale_ref, shift_ref, o_ref):
        # y_ref: (TH*W, Cout) f32 ; o_ref: (W, Cout) f32 (resident across hb axis)
        y = jnp.maximum(y_ref[...] * scale_ref[...] + shift_ref[...], 0.0)
        m = y[0:W, :]
        for t in range(1, TH):                   # static unrolled within-tile H max
            m = jnp.maximum(m, y[t * W:(t + 1) * W, :])

        @pl.when(pl.program_id(1) == 0)
        def _init():
            o_ref[...] = m

        @pl.when(pl.program_id(1) > 0)
        def _acc():
            o_ref[...] = jnp.maximum(o_ref[...], m)

    return kernel


# --------------------------------------------------------------------------- #
# Per-layer wrapper
# --------------------------------------------------------------------------- #
def _pick_th(H, W, target_rows=1024):
    """Largest divisor TH of H with TH*W <= target rows (sublane-aligned)."""
    cands = [th for th in range(1, H + 1)
             if H % th == 0 and th * W <= target_rows
             and (th == H or (th * W) % 8 == 0)]
    return max(cands) if cands else H


def conv_bn_relu_layer(x_nhwc, w, gamma, beta, *, reduce_h=False):
    """Conv2d(3x3, stride 1, pad 1) + BatchNorm2d(train stats) + ReLU.

    x_nhwc: (N, H, W, Cin) f32 ;  w: (3, 3, Cin, Cout)
    Returns (N, H, W, Cout) f32, or (N, W, Cout) if reduce_h (max over H fused).
    """
    N, H, W, Cin = x_nhwc.shape
    Cout = w.shape[-1]
    K = 3 * Cin
    TH = _pick_th(H, W)
    nHB = H // TH
    R_in = (TH + 2) * W          # rows per input tile (incl. 1-row halo each side)
    R_out = TH * W               # rows per output tile

    # ---- glue (plain JAX): width-only im2col (3x, lane-dense K) + H halo blocks ----
    xw = jnp.pad(x_nhwc, ((0, 0), (0, 0), (1, 1), (0, 0)))
    colw = jnp.concatenate([xw[:, :, kw:kw + W, :] for kw in range(3)], axis=-1)
    colwp = jnp.pad(colw, ((0, 0), (1, 1), (0, 0), (0, 0)))          # (N, H+2, W, K)
    blocks = jnp.stack([colwp[:, i * TH:i * TH + TH + 2] for i in range(nHB)], axis=1)
    x_blk = blocks.reshape(N, nHB, R_in, K).astype(jnp.bfloat16)
    w_k = w.reshape(3, K, Cout).astype(jnp.bfloat16)                 # [kh, kw*Cin+ci, co]

    # ---- phase 1: conv (MXU, bf16 operands / f32 accum) + per-tile BN partials ----
    y_conv, part = pl.pallas_call(
        make_conv_stats_kernel(TH, W),
        grid=(N, nHB),
        in_specs=[
            pl.BlockSpec((None, None, R_in, K), lambda n, hb: (n, hb, 0, 0)),
            pl.BlockSpec((3, K, Cout), lambda n, hb: (0, 0, 0)),     # resident weights
        ],
        out_specs=[
            pl.BlockSpec((None, R_out, Cout), lambda n, hb: (n, hb, 0)),
            pl.BlockSpec((None, None, 2, Cout), lambda n, hb: (n, hb, 0, 0)),
        ],
        out_shape=[
            jax.ShapeDtypeStruct((N, H * W, Cout), jnp.float32),
            jax.ShapeDtypeStruct((N, nHB, 2, Cout), jnp.float32),
        ],
        compiler_params=pltpu.CompilerParams(
            dimension_semantics=("parallel", "parallel")),
        cost_estimate=pl.CostEstimate(
            flops=2 * N * H * W * 9 * Cin * Cout,
            transcendentals=0,
            bytes_accessed=(N * nHB * R_in * K * 2 + 3 * K * Cout * 2
                            + N * H * W * Cout * 4 + N * nHB * 2 * Cout * 4)),
    )(x_blk, w_k)

    # ---- tiny glue: fold (2, Cout) partials into BN scale/shift (f32) ----
    s = jnp.sum(part, axis=(0, 1))                      # (2, Cout)
    m_tot = float(N * H * W)
    mean = s[0] / m_tot
    var = jnp.maximum(s[1] / m_tot - mean * mean, 0.0)  # biased var; guard cancellation
    inv = jax.lax.rsqrt(var + EPS)
    scale = (gamma * inv).astype(jnp.float32).reshape(1, Cout)
    shift = (beta - mean * gamma * inv).astype(jnp.float32).reshape(1, Cout)

    y_spec = pl.BlockSpec((None, R_out, Cout), lambda n, hb: (n, hb, 0))
    p_spec = pl.BlockSpec((1, Cout), lambda n, hb: (0, 0))

    if not reduce_h:
        out = pl.pallas_call(
            _bn_relu_kernel,
            grid=(N, nHB),
            in_specs=[y_spec, p_spec, p_spec],
            out_specs=y_spec,
            out_shape=jax.ShapeDtypeStruct((N, H * W, Cout), jnp.float32),
            compiler_params=pltpu.CompilerParams(
                dimension_semantics=("parallel", "parallel")),
        )(y_conv, scale, shift)
        return out.reshape(N, H, W, Cout)

    # last layer: fuse BN + ReLU + max over H into one epilogue kernel
    out = pl.pallas_call(
        make_bn_relu_maxh_kernel(TH, W),
        grid=(N, nHB),
        in_specs=[y_spec, p_spec, p_spec],
        out_specs=pl.BlockSpec((None, W, Cout), lambda n, hb: (n, 0, 0)),
        out_shape=jax.ShapeDtypeStruct((N, W, Cout), jnp.float32),
        compiler_params=pltpu.CompilerParams(
            dimension_semantics=("parallel", "arbitrary")),
    )(y_conv, scale, shift)
    return out  # (N, W, Cout)


# --------------------------------------------------------------------------- #
# Model forward + params
# --------------------------------------------------------------------------- #
def init_params(key):
    """Conv2d-style uniform init; BN weight=1, bias=0 (fresh-module defaults)."""
    chans = [(4, 64), (64, 128), (128, 256)]
    params = []
    for i, (cin, cout) in enumerate(chans):
        kw_, kb_ = jax.random.split(jax.random.fold_in(key, i))
        bound = 1.0 / float(jnp.sqrt(cin * 9))
        w = jax.random.uniform(kw_, (3, 3, cin, cout), jnp.float32, -bound, bound)
        # Conv bias is created for parameter parity with nn.Conv2d but is NOT used:
        # a per-channel constant before training-mode BatchNorm is exactly cancelled
        # by the mean subtraction, so dropping it leaves the forward output unchanged.
        b = jax.random.uniform(kb_, (cout,), jnp.float32, -bound, bound)
        gamma = jnp.ones((cout,), jnp.float32)
        beta = jnp.zeros((cout,), jnp.float32)
        params.append((w, b, gamma, beta))
    return params


def vae_cnn_forward(x_nchw, params, flattening="maxpool"):
    """Matches VAE_CNN.forward. x: (N, 4, H, W) f32 -> (N, 256, 1, W) for maxpool."""
    y = jnp.transpose(x_nchw, (0, 2, 3, 1)).astype(jnp.float32)   # NCHW -> NHWC
    n_layers = len(params)
    for li, (w, _b, gamma, beta) in enumerate(params):
        last = li == n_layers - 1
        if last and flattening == "maxpool":
            y = conv_bn_relu_layer(y, w, gamma, beta, reduce_h=True)   # (N, W, C)
            return jnp.transpose(y, (0, 2, 1))[:, :, None, :]          # (N, C, 1, W)
        y = conv_bn_relu_layer(y, w, gamma, beta, reduce_h=False)      # (N, H, W, C)
    y = jnp.transpose(y, (0, 3, 1, 2))                                 # NCHW
    if flattening == "concat":
        y = y.reshape(y.shape[0], -1, 1, y.shape[3])
    return y


if __name__ == "__main__":
    key = jax.random.PRNGKey(0)
    kx, kp = jax.random.split(key)
    # Small shapes consistent with the module: batch=2, in_channels=4, spatial 16x16.
    x = jax.random.normal(kx, (2, 4, 16, 16), jnp.float32)
    params = init_params(kp)

    fwd = jax.jit(vae_cnn_forward, static_argnames="flattening")
    out = fwd(x, params, flattening="maxpool")
    out = jax.block_until_ready(out)
    assert out.shape == (2, 256, 1, 16), out.shape
    assert bool(jnp.all(jnp.isfinite(out)))
    print("KERNEL_OK")
</pallas_src>

<mosaic_0001>
module attributes {stable_mosaic.version = 11 : i64} {
  func.func @kernel(%arg0: i32, %arg1: i32, %arg2: memref<1x1x288x12xbf16, #tpu.memory_space<vmem>>, %arg3: memref<3x12x64xbf16, #tpu.memory_space<vmem>>, %arg4: memref<1x256x64xf32, #tpu.memory_space<vmem>>, %arg5: memref<1x1x2x64xf32, #tpu.memory_space<vmem>>) attributes {dimension_semantics = [#tpu.dimension_semantics<parallel>, #tpu.dimension_semantics<parallel>], iteration_bounds = array<i64: 2, 1>, scalar_prefetch = 0 : i64, scratch_operands = 0 : i64, tpu.core_type = #tpu.core_type<tc>, window_params = [{transform_indices = @transform_0, window_bounds = array<i64: 1, 1, 288, 12>}, {pipeline_mode = #tpu.pipeline_mode<synchronous>, transform_indices = @transform_1, window_bounds = array<i64: 3, 12, 64>}, {transform_indices = @transform_2, window_bounds = array<i64: 1, 256, 64>}, {transform_indices = @transform_3, window_bounds = array<i64: 1, 1, 2, 64>}]} {
    %c0 = arith.constant 0 : index
    %c0_0 = arith.constant 0 : index
    %c0_1 = arith.constant 0 : index
    %c0_2 = arith.constant 0 : index
    %0 = vector.load %arg2[%c0, %c0_0, %c0_1, %c0_2] : memref<1x1x288x12xbf16, #tpu.memory_space<vmem>>, vector<1x1x256x12xbf16>
    %1 = vector.shape_cast %0 : vector<1x1x256x12xbf16> to vector<256x12xbf16>
    %c0_3 = arith.constant 0 : index
    %c0_4 = arith.constant 0 : index
    %c0_5 = arith.constant 0 : index
    %2 = vector.load %arg3[%c0_3, %c0_4, %c0_5] : memref<3x12x64xbf16, #tpu.memory_space<vmem>>, vector<1x12x64xbf16>
    %3 = vector.shape_cast %2 : vector<1x12x64xbf16> to vector<12x64xbf16>
    %cst = arith.constant dense<0.000000e+00> : vector<256x64xf32>
    %4 = tpu.matmul %1, %3, %cst {dimension_numbers = #tpu.dot_dimension_numbers<[1], [0], [0], [1], [0, 0, 1, 1], [], []>} : vector<256x12xbf16>, vector<12x64xbf16>, vector<256x64xf32> -> vector<256x64xf32>
    %c0_6 = arith.constant 0 : index
    %c0_7 = arith.constant 0 : index
    %c0_8 = arith.constant 0 : index
    %5 = vector.load %arg4[%c0_6, %c0_7, %c0_8] : memref<1x256x64xf32, #tpu.memory_space<vmem>>, vector<1x256x64xf32>
    %6 = vector.shape_cast %5 : vector<1x256x64xf32> to vector<256x64xf32>
    %7 = vector.shape_cast %4 : vector<256x64xf32> to vector<1x256x64xf32>
    tpu.vector_store %arg4[%c0_6, %c0_7, %c0_8], %7 {strides = array<i32>} : memref<1x256x64xf32, #tpu.memory_space<vmem>>, vector<1x256x64xf32>,
    %c0_9 = arith.constant 0 : index
    %c0_10 = arith.constant 0 : index
    %c0_11 = arith.constant 0 : index
    %8 = vector.load %arg4[%c0_9, %c0_10, %c0_11] : memref<1x256x64xf32, #tpu.memory_space<vmem>>, vector<1x256x64xf32>
    %9 = vector.shape_cast %8 : vector<1x256x64xf32> to vector<256x64xf32>
    %c0_12 = arith.constant 0 : index
    %c0_13 = arith.constant 0 : index
    %c16 = arith.constant 16 : index
    %c0_14 = arith.constant 0 : index
    %10 = vector.load %arg2[%c0_12, %c0_13, %c16, %c0_14] : memref<1x1x288x12xbf16, #tpu.memory_space<vmem>>, vector<1x1x256x12xbf16>
    %11 = vector.shape_cast %10 : vector<1x1x256x12xbf16> to vector<256x12xbf16>
    %c1 = arith.constant 1 : index
    %c0_15 = arith.constant 0 : index
    %c0_16 = arith.constant 0 : index
    %12 = vector.load %arg3[%c1, %c0_15, %c0_16] : memref<3x12x64xbf16, #tpu.memory_space<vmem>>, vector<1x12x64xbf16>
    %13 = vector.shape_cast %12 : vector<1x12x64xbf16> to vector<12x64xbf16>
    %cst_17 = arith.constant dense<0.000000e+00> : vector<256x64xf32>
    %14 = tpu.matmul %11, %13, %cst_17 {dimension_numbers = #tpu.dot_dimension_numbers<[1], [0], [0], [1], [0, 0, 1, 1], [], []>} : vector<256x12xbf16>, vector<12x64xbf16>, vector<256x64xf32> -> vector<256x64xf32>
    %15 = arith.addf %9, %14 : vector<256x64xf32>
    %c0_18 = arith.constant 0 : index
    %c0_19 = arith.constant 0 : index
    %c0_20 = arith.constant 0 : index
    %16 = vector.load %arg4[%c0_18, %c0_19, %c0_20] : memref<1x256x64xf32, #tpu.memory_space<vmem>>, vector<1x256x64xf32>
    %17 = vector.shape_cast %16 : vector<1x256x64xf32> to vector<256x64xf32>
    %18 = vector.shape_cast %15 : vector<256x64xf32> to vector<1x256x64xf32>
    tpu.vector_store %arg4[%c0_18, %c0_19, %c0_20], %18 {strides = array<i32>} : memref<1x256x64xf32, #tpu.memory_space<vmem>>, vector<1x256x64xf32>,
    %c0_21 = arith.constant 0 : index
    %c0_22 = arith.constant 0 : index
    %c0_23 = arith.constant 0 : index
    %19 = vector.load %arg4[%c0_21, %c0_22, %c0_23] : memref<1x256x64xf32, #tpu.memory_space<vmem>>, vector<1x256x64xf32>
    %20 = vector.shape_cast %19 : vector<1x256x64xf32> to vector<256x64xf32>
    %c0_24 = arith.constant 0 : index
    %c0_25 = arith.constant 0 : index
    %c32 = arith.constant 32 : index
    %c0_26 = arith.constant 0 : index
    %21 = vector.load %arg2[%c0_24, %c0_25, %c32, %c0_26] : memref<1x1x288x12xbf16, #tpu.memory_space<vmem>>, vector<1x1x256x12xbf16>
    %22 = vector.shape_cast %21 : vector<1x1x256x12xbf16> to vector<256x12xbf16>
    %c2 = arith.constant 2 : index
    %c0_27 = arith.constant 0 : index
    %c0_28 = arith.constant 0 : index
    %23 = vector.load %arg3[%c2, %c0_27, %c0_28] : memref<3x12x64xbf16, #tpu.memory_space<vmem>>, vector<1x12x64xbf16>
    %24 = vector.shape_cast %23 : vector<1x12x64xbf16> to vector<12x64xbf16>
    %cst_29 = arith.constant dense<0.000000e+00> : vector<256x64xf32>
    %25 = tpu.matmul %22, %24, %cst_29 {dimension_numbers = #tpu.dot_dimension_numbers<[1], [0], [0], [1], [0, 0, 1, 1], [], []>} : vector<256x12xbf16>, vector<12x64xbf16>, vector<256x64xf32> -> vector<256x64xf32>
    %26 = arith.addf %20, %25 : vector<256x64xf32>
    %c0_30 = arith.constant 0 : index
    %c0_31 = arith.constant 0 : index
    %c0_32 = arith.constant 0 : index
    %27 = vector.load %arg4[%c0_30, %c0_31, %c0_32] : memref<1x256x64xf32, #tpu.memory_space<vmem>>, vector<1x256x64xf32>
    %28 = vector.shape_cast %27 : vector<1x256x64xf32> to vector<256x64xf32>
    %29 = vector.shape_cast %26 : vector<256x64xf32> to vector<1x256x64xf32>
    tpu.vector_store %arg4[%c0_30, %c0_31, %c0_32], %29 {strides = array<i32>} : memref<1x256x64xf32, #tpu.memory_space<vmem>>, vector<1x256x64xf32>,
    %c0_33 = arith.constant 0 : index
    %c0_34 = arith.constant 0 : index
    %c0_35 = arith.constant 0 : index
    %30 = vector.load %arg4[%c0_33, %c0_34, %c0_35] : memref<1x256x64xf32, #tpu.memory_space<vmem>>, vector<1x256x64xf32>
    %31 = vector.shape_cast %30 : vector<1x256x64xf32> to vector<256x64xf32>
    %cst_36 = arith.constant dense<0.000000e+00> : vector<64xf32>
    %32 = vector.multi_reduction <add>, %31, %cst_36 [0] : vector<256x64xf32> to vector<64xf32>
    %33 = vector.shape_cast %32 : vector<64xf32> to vector<1x64xf32>
    %c0_37 = arith.constant 0 : index
    %c0_38 = arith.constant 0 : index
    %c0_39 = arith.constant 0 : index
    %c0_40 = arith.constant 0 : index
    %34 = vector.load %arg5[%c0_37, %c0_38, %c0_39, %c0_40] : memref<1x1x2x64xf32, #tpu.memory_space<vmem>>, vector<1x1x1x64xf32>
    %35 = vector.shape_cast %34 : vector<1x1x1x64xf32> to vector<1x64xf32>
    %36 = vector.shape_cast %33 : vector<1x64xf32> to vector<1x1x1x64xf32>
    tpu.vector_store %arg5[%c0_37, %c0_38, %c0_39, %c0_40], %36 {strides = array<i32>} : memref<1x1x2x64xf32, #tpu.memory_space<vmem>>, vector<1x1x1x64xf32>,
    %37 = arith.mulf %31, %31 : vector<256x64xf32>
    %cst_41 = arith.constant dense<0.000000e+00> : vector<64xf32>
    %38 = vector.multi_reduction <add>, %37, %cst_41 [0] : vector<256x64xf32> to vector<64xf32>
    %39 = vector.shape_cast %38 : vector<64xf32> to vector<1x64xf32>
    %c0_42 = arith.constant 0 : index
    %c0_43 = arith.constant 0 : index
    %c1_44 = arith.constant 1 : index
    %c0_45 = arith.constant 0 : index
    %40 = vector.load %arg5[%c0_42, %c0_43, %c1_44, %c0_45] : memref<1x1x2x64xf32, #tpu.memory_space<vmem>>, vector<1x1x1x64xf32>
    %41 = vector.shape_cast %40 : vector<1x1x1x64xf32> to vector<1x64xf32>
    %42 = vector.shape_cast %39 : vector<1x64xf32> to vector<1x1x1x64xf32>
    tpu.vector_store %arg5[%c0_42, %c0_43, %c1_44, %c0_45], %42 {strides = array<i32>} : memref<1x1x2x64xf32, #tpu.memory_space<vmem>>, vector<1x1x1x64xf32>,
    return
  }
  func.func @transform_0(%arg0: i32, %arg1: i32) -> (i32, i32, i32, i32) {
    %c0_i32 = arith.constant 0 : i32
    %c0_i32_0 = arith.constant 0 : i32
    %c0_i32_1 = arith.constant 0 : i32
    return %arg0, %arg1, %c0_i32, %c0_i32_0 : i32, i32, i32, i32
  }
  func.func @transform_1(%arg0: i32, %arg1: i32) -> (i32, i32, i32) {
    %c0_i32 = arith.constant 0 : i32
    %c0_i32_0 = arith.constant 0 : i32
    %c0_i32_1 = arith.constant 0 : i32
    %c0_i32_2 = arith.constant 0 : i32
    return %c0_i32, %c0_i32_0, %c0_i32_1 : i32, i32, i32
  }
  func.func @transform_2(%arg0: i32, %arg1: i32) -> (i32, i32, i32) {
    %c0_i32 = arith.constant 0 : i32
    %c0_i32_0 = arith.constant 0 : i32
    return %arg0, %arg1, %c0_i32 : i32, i32, i32
  }
  func.func @transform_3(%arg0: i32, %arg1: i32) -> (i32, i32, i32, i32) {
    %c0_i32 = arith.constant 0 : i32
    %c0_i32_0 = arith.constant 0 : i32
    %c0_i32_1 = arith.constant 0 : i32
    return %arg0, %arg1, %c0_i32, %c0_i32_0 : i32, i32, i32, i32
  }
}

module attributes {stable_mosaic.version = 11 : i64} {
  func.func @_bn_relu_kernel(%arg0: i32, %arg1: i32, %arg2: memref<1x256x64xf32, #tpu.memory_space<vmem>>, %arg3: memref<1x64xf32, #tpu.memory_space<vmem>>, %arg4: memref<1x64xf32, #tpu.memory_space<vmem>>, %arg5: memref<1x256x64xf32, #tpu.memory_space<vmem>>) attributes {dimension_semantics = [#tpu.dimension_semantics<parallel>, #tpu.dimension_semantics<parallel>], iteration_bounds = array<i64: 2, 1>, scalar_prefetch = 0 : i64, scratch_operands = 0 : i64, tpu.core_type = #tpu.core_type<tc>, window_params = [{transform_indices = @transform_0, window_bounds = array<i64: 1, 256, 64>}, {pipeline_mode = #tpu.pipeline_mode<synchronous>, transform_indices = @transform_1, window_bounds = array<i64: 1, 64>}, {pipeline_mode = #tpu.pipeline_mode<synchronous>, transform_indices = @transform_2, window_bounds = array<i64: 1, 64>}, {transform_indices = @transform_3, window_bounds = array<i64: 1, 256, 64>}]} {
    %c0 = arith.constant 0 : index
    %c0_0 = arith.constant 0 : index
    %c0_1 = arith.constant 0 : index
    %0 = vector.load %arg2[%c0, %c0_0, %c0_1] : memref<1x256x64xf32, #tpu.memory_space<vmem>>, vector<1x256x64xf32>
    %1 = vector.shape_cast %0 : vector<1x256x64xf32> to vector<256x64xf32>
    %c0_2 = arith.constant 0 : index
    %c0_3 = arith.constant 0 : index
    %2 = vector.load %arg3[%c0_2, %c0_3] : memref<1x64xf32, #tpu.memory_space<vmem>>, vector<1x64xf32>
    %3 = vector.broadcast %2 : vector<1x64xf32> to vector<256x64xf32>
    %4 = arith.mulf %1, %3 : vector<256x64xf32>
    %c0_4 = arith.constant 0 : index
    %c0_5 = arith.constant 0 : index
    %5 = vector.load %arg4[%c0_4, %c0_5] : memref<1x64xf32, #tpu.memory_space<vmem>>, vector<1x64xf32>
    %6 = vector.broadcast %5 : vector<1x64xf32> to vector<256x64xf32>
    %7 = arith.addf %4, %6 : vector<256x64xf32>
    %cst = arith.constant 0.000000e+00 : f32
    %8 = vector.broadcast %cst : f32 to vector<256x64xf32>
    %9 = arith.maximumf %7, %8 : vector<256x64xf32>
    %c0_6 = arith.constant 0 : index
    %c0_7 = arith.constant 0 : index
    %c0_8 = arith.constant 0 : index
    %10 = vector.load %arg5[%c0_6, %c0_7, %c0_8] : memref<1x256x64xf32, #tpu.memory_space<vmem>>, vector<1x256x64xf32>
    %11 = vector.shape_cast %10 : vector<1x256x64xf32> to vector<256x64xf32>
    %12 = vector.shape_cast %9 : vector<256x64xf32> to vector<1x256x64xf32>
    tpu.vector_store %arg5[%c0_6, %c0_7, %c0_8], %12 {strides = array<i32>} : memref<1x256x64xf32, #tpu.memory_space<vmem>>, vector<1x256x64xf32>,
    return
  }
  func.func @transform_0(%arg0: i32, %arg1: i32) -> (i32, i32, i32) {
    %c0_i32 = arith.constant 0 : i32
    %c0_i32_0 = arith.constant 0 : i32
    return %arg0, %arg1, %c0_i32 : i32, i32, i32
  }
  func.func @transform_1(%arg0: i32, %arg1: i32) -> (i32, i32) {
    %c0_i32 = arith.constant 0 : i32
    %c0_i32_0 = arith.constant 0 : i32
    %c0_i32_1 = arith.constant 0 : i32
    return %c0_i32, %c0_i32_0 : i32, i32
  }
  func.func @transform_2(%arg0: i32, %arg1: i32) -> (i32, i32) {
    %c0_i32 = arith.constant 0 : i32
    %c0_i32_0 = arith.constant 0 : i32
    %c0_i32_1 = arith.constant 0 : i32
    return %c0_i32, %c0_i32_0 : i32, i32
  }
  func.func @transform_3(%arg0: i32, %arg1: i32) -> (i32, i32, i32) {
    %c0_i32 = arith.constant 0 : i32
    %c0_i32_0 = arith.constant 0 : i32
    return %arg0, %arg1, %c0_i32 : i32, i32, i32
  }
}

module attributes {stable_mosaic.version = 11 : i64} {
  func.func @kernel(%arg0: i32, %arg1: i32, %arg2: memref<1x1x288x192xbf16, #tpu.memory_space<vmem>>, %arg3: memref<3x192x128xbf16, #tpu.memory_space<vmem>>, %arg4: memref<1x256x128xf32, #tpu.memory_space<vmem>>, %arg5: memref<1x1x2x128xf32, #tpu.memory_space<vmem>>) attributes {dimension_semantics = [#tpu.dimension_semantics<parallel>, #tpu.dimension_semantics<parallel>], iteration_bounds = array<i64: 2, 1>, scalar_prefetch = 0 : i64, scratch_operands = 0 : i64, tpu.core_type = #tpu.core_type<tc>, window_params = [{transform_indices = @transform_0, window_bounds = array<i64: 1, 1, 288, 192>}, {pipeline_mode = #tpu.pipeline_mode<synchronous>, transform_indices = @transform_1, window_bounds = array<i64: 3, 192, 128>}, {transform_indices = @transform_2, window_bounds = array<i64: 1, 256, 128>}, {transform_indices = @transform_3, window_bounds = array<i64: 1, 1, 2, 128>}]} {
    %c0 = arith.constant 0 : index
    %c0_0 = arith.constant 0 : index
    %c0_1 = arith.constant 0 : index
    %c0_2 = arith.constant 0 : index
    %0 = vector.load %arg2[%c0, %c0_0, %c0_1, %c0_2] : memref<1x1x288x192xbf16, #tpu.memory_space<vmem>>, vector<1x1x256x192xbf16>
    %1 = vector.shape_cast %0 : vector<1x1x256x192xbf16> to vector<256x192xbf16>
    %c0_3 = arith.constant 0 : index
    %c0_4 = arith.constant 0 : index
    %c0_5 = arith.constant 0 : index
    %2 = vector.load %arg3[%c0_3, %c0_4, %c0_5] : memref<3x192x128xbf16, #tpu.memory_space<vmem>>, vector<1x192x128xbf16>
    %3 = vector.shape_cast %2 : vector<1x192x128xbf16> to vector<192x128xbf16>
    %cst = arith.constant dense<0.000000e+00> : vector<256x128xf32>
    %4 = tpu.matmul %1, %3, %cst {dimension_numbers = #tpu.dot_dimension_numbers<[1], [0], [0], [1], [0, 0, 1, 1], [], []>} : vector<256x192xbf16>, vector<192x128xbf16>, vector<256x128xf32> -> vector<256x128xf32>
    %c0_6 = arith.constant 0 : index
    %c0_7 = arith.constant 0 : index
    %c0_8 = arith.constant 0 : index
    %5 = vector.load %arg4[%c0_6, %c0_7, %c0_8] : memref<1x256x128xf32, #tpu.memory_space<vmem>>, vector<1x256x128xf32>
    %6 = vector.shape_cast %5 : vector<1x256x128xf32> to vector<256x128xf32>
    %7 = vector.shape_cast %4 : vector<256x128xf32> to vector<1x256x128xf32>
    tpu.vector_store %arg4[%c0_6, %c0_7, %c0_8], %7 {strides = array<i32>} : memref<1x256x128xf32, #tpu.memory_space<vmem>>, vector<1x256x128xf32>,
    %c0_9 = arith.constant 0 : index
    %c0_10 = arith.constant 0 : index
    %c0_11 = arith.constant 0 : index
    %8 = vector.load %arg4[%c0_9, %c0_10, %c0_11] : memref<1x256x128xf32, #tpu.memory_space<vmem>>, vector<1x256x128xf32>
    %9 = vector.shape_cast %8 : vector<1x256x128xf32> to vector<256x128xf32>
    %c0_12 = arith.constant 0 : index
    %c0_13 = arith.constant 0 : index
    %c16 = arith.constant 16 : index
    %c0_14 = arith.constant 0 : index
    %10 = vector.load %arg2[%c0_12, %c0_13, %c16, %c0_14] : memref<1x1x288x192xbf16, #tpu.memory_space<vmem>>, vector<1x1x256x192xbf16>
    %11 = vector.shape_cast %10 : vector<1x1x256x192xbf16> to vector<256x192xbf16>
    %c1 = arith.constant 1 : index
    %c0_15 = arith.constant 0 : index
    %c0_16 = arith.constant 0 : index
    %12 = vector.load %arg3[%c1, %c0_15, %c0_16] : memref<3x192x128xbf16, #tpu.memory_space<vmem>>, vector<1x192x128xbf16>
    %13 = vector.shape_cast %12 : vector<1x192x128xbf16> to vector<192x128xbf16>
    %cst_17 = arith.constant dense<0.000000e+00> : vector<256x128xf32>
    %14 = tpu.matmul %11, %13, %cst_17 {dimension_numbers = #tpu.dot_dimension_numbers<[1], [0], [0], [1], [0, 0, 1, 1], [], []>} : vector<256x192xbf16>, vector<192x128xbf16>, vector<256x128xf32> -> vector<256x128xf32>
    %15 = arith.addf %9, %14 : vector<256x128xf32>
    %c0_18 = arith.constant 0 : index
    %c0_19 = arith.constant 0 : index
    %c0_20 = arith.constant 0 : index
    %16 = vector.load %arg4[%c0_18, %c0_19, %c0_20] : memref<1x256x128xf32, #tpu.memory_space<vmem>>, vector<1x256x128xf32>
    %17 = vector.shape_cast %16 : vector<1x256x128xf32> to vector<256x128xf32>
    %18 = vector.shape_cast %15 : vector<256x128xf32> to vector<1x256x128xf32>
    tpu.vector_store %arg4[%c0_18, %c0_19, %c0_20], %18 {strides = array<i32>} : memref<1x256x128xf32, #tpu.memory_space<vmem>>, vector<1x256x128xf32>,
    %c0_21 = arith.constant 0 : index
    %c0_22 = arith.constant 0 : index
    %c0_23 = arith.constant 0 : index
    %19 = vector.load %arg4[%c0_21, %c0_22, %c0_23] : memref<1x256x128xf32, #tpu.memory_space<vmem>>, vector<1x256x128xf32>
    %20 = vector.shape_cast %19 : vector<1x256x128xf32> to vector<256x128xf32>
    %c0_24 = arith.constant 0 : index
    %c0_25 = arith.constant 0 : index
    %c32 = arith.constant 32 : index
    %c0_26 = arith.constant 0 : index
    %21 = vector.load %arg2[%c0_24, %c0_25, %c32, %c0_26] : memref<1x1x288x192xbf16, #tpu.memory_space<vmem>>, vector<1x1x256x192xbf16>
    %22 = vector.shape_cast %21 : vector<1x1x256x192xbf16> to vector<256x192xbf16>
    %c2 = arith.constant 2 : index
    %c0_27 = arith.constant 0 : index
    %c0_28 = arith.constant 0 : index
    %23 = vector.load %arg3[%c2, %c0_27, %c0_28] : memref<3x192x128xbf16, #tpu.memory_space<vmem>>, vector<1x192x128xbf16>
    %24 = vector.shape_cast %23 : vector<1x192x128xbf16> to vector<192x128xbf16>
    %cst_29 = arith.constant dense<0.000000e+00> : vector<256x128xf32>
    %25 = tpu.matmul %22, %24, %cst_29 {dimension_numbers = #tpu.dot_dimension_numbers<[1], [0], [0], [1], [0, 0, 1, 1], [], []>} : vector<256x192xbf16>, vector<192x128xbf16>, vector<256x128xf32> -> vector<256x128xf32>
    %26 = arith.addf %20, %25 : vector<256x128xf32>
    %c0_30 = arith.constant 0 : index
    %c0_31 = arith.constant 0 : index
    %c0_32 = arith.constant 0 : index
    %27 = vector.load %arg4[%c0_30, %c0_31, %c0_32] : memref<1x256x128xf32, #tpu.memory_space<vmem>>, vector<1x256x128xf32>
    %28 = vector.shape_cast %27 : vector<1x256x128xf32> to vector<256x128xf32>
    %29 = vector.shape_cast %26 : vector<256x128xf32> to vector<1x256x128xf32>
    tpu.vector_store %arg4[%c0_30, %c0_31, %c0_32], %29 {strides = array<i32>} : memref<1x256x128xf32, #tpu.memory_space<vmem>>, vector<1x256x128xf32>,
    %c0_33 = arith.constant 0 : index
    %c0_34 = arith.constant 0 : index
    %c0_35 = arith.constant 0 : index
    %30 = vector.load %arg4[%c0_33, %c0_34, %c0_35] : memref<1x256x128xf32, #tpu.memory_space<vmem>>, vector<1x256x128xf32>
    %31 = vector.shape_cast %30 : vector<1x256x128xf32> to vector<256x128xf32>
    %cst_36 = arith.constant dense<0.000000e+00> : vector<128xf32>
    %32 = vector.multi_reduction <add>, %31, %cst_36 [0] : vector<256x128xf32> to vector<128xf32>
    %33 = vector.shape_cast %32 : vector<128xf32> to vector<1x128xf32>
    %c0_37 = arith.constant 0 : index
    %c0_38 = arith.constant 0 : index
    %c0_39 = arith.constant 0 : index
    %c0_40 = arith.constant 0 : index
    %34 = vector.load %arg5[%c0_37, %c0_38, %c0_39, %c0_40] : memref<1x1x2x128xf32, #tpu.memory_space<vmem>>, vector<1x1x1x128xf32>
    %35 = vector.shape_cast %34 : vector<1x1x1x128xf32> to vector<1x128xf32>
    %36 = vector.shape_cast %33 : vector<1x128xf32> to vector<1x1x1x128xf32>
    tpu.vector_store %arg5[%c0_37, %c0_38, %c0_39, %c0_40], %36 {strides = array<i32>} : memref<1x1x2x128xf32, #tpu.memory_space<vmem>>, vector<1x1x1x128xf32>,
    %37 = arith.mulf %31, %31 : vector<256x128xf32>
    %cst_41 = arith.constant dense<0.000000e+00> : vector<128xf32>
    %38 = vector.multi_reduction <add>, %37, %cst_41 [0] : vector<256x128xf32> to vector<128xf32>
    %39 = vector.shape_cast %38 : vector<128xf32> to vector<1x128xf32>
    %c0_42 = arith.constant 0 : index
    %c0_43 = arith.constant 0 : index
    %c1_44 = arith.constant 1 : index
    %c0_45 = arith.constant 0 : index
    %40 = vector.load %arg5[%c0_42, %c0_43, %c1_44, %c0_45] : memref<1x1x2x128xf32, #tpu.memory_space<vmem>>, vector<1x1x1x128xf32>
    %41 = vector.shape_cast %40 : vector<1x1x1x128xf32> to vector<1x128xf32>
    %42 = vector.shape_cast %39 : vector<1x128xf32> to vector<1x1x1x128xf32>
    tpu.vector_store %arg5[%c0_42, %c0_43, %c1_44, %c0_45], %42 {strides = array<i32>} : memref<1x1x2x128xf32, #tpu.memory_space<vmem>>, vector<1x1x1x128xf32>,
    return
  }
  func.func @transform_0(%arg0: i32, %arg1: i32) -> (i32, i32, i32, i32) {
    %c0_i32 = arith.constant 0 : i32
    %c0_i32_0 = arith.constant 0 : i32
    %c0_i32_1 = arith.constant 0 : i32
    return %arg0, %arg1, %c0_i32, %c0_i32_0 : i32, i32, i32, i32
  }
  func.func @transform_1(%arg0: i32, %arg1: i32) -> (i32, i32, i32) {
    %c0_i32 = arith.constant 0 : i32
    %c0_i32_0 = arith.constant 0 : i32
    %c0_i32_1 = arith.constant 0 : i32
    %c0_i32_2 = arith.constant 0 : i32
    return %c0_i32, %c0_i32_0, %c0_i32_1 : i32, i32, i32
  }
  func.func @transform_2(%arg0: i32, %arg1: i32) -> (i32, i32, i32) {
    %c0_i32 = arith.constant 0 : i32
    %c0_i32_0 = arith.constant 0 : i32
    return %arg0, %arg1, %c0_i32 : i32, i32, i32
  }
  func.func @transform_3(%arg0: i32, %arg1: i32) -> (i32, i32, i32, i32) {
    %c0_i32 = arith.constant 0 : i32
    %c0_i32_0 = arith.constant 0 : i32
    %c0_i32_1 = arith.constant 0 : i32
    return %arg0, %arg1, %c0_i32, %c0_i32_0 : i32, i32, i32, i32
  }
}

module attributes {stable_mosaic.version = 11 : i64} {
  func.func @_bn_relu_kernel(%arg0: i32, %arg1: i32, %arg2: memref<1x256x128xf32, #tpu.memory_space<vmem>>, %arg3: memref<1x128xf32, #tpu.memory_space<vmem>>, %arg4: memref<1x128xf32, #tpu.memory_space<vmem>>, %arg5: memref<1x256x128xf32, #tpu.memory_space<vmem>>) attributes {dimension_semantics = [#tpu.dimension_semantics<parallel>, #tpu.dimension_semantics<parallel>], iteration_bounds = array<i64: 2, 1>, scalar_prefetch = 0 : i64, scratch_operands = 0 : i64, tpu.core_type = #tpu.core_type<tc>, window_params = [{transform_indices = @transform_0, window_bounds = array<i64: 1, 256, 128>}, {pipeline_mode = #tpu.pipeline_mode<synchronous>, transform_indices = @transform_1, window_bounds = array<i64: 1, 128>}, {pipeline_mode = #tpu.pipeline_mode<synchronous>, transform_indices = @transform_2, window_bounds = array<i64: 1, 128>}, {transform_indices = @transform_3, window_bounds = array<i64: 1, 256, 128>}]} {
    %c0 = arith.constant 0 : index
    %c0_0 = arith.constant 0 : index
    %c0_1 = arith.constant 0 : index
    %0 = vector.load %arg2[%c0, %c0_0, %c0_1] : memref<1x256x128xf32, #tpu.memory_space<vmem>>, vector<1x256x128xf32>
    %1 = vector.shape_cast %0 : vector<1x256x128xf32> to vector<256x128xf32>
    %c0_2 = arith.constant 0 : index
    %c0_3 = arith.constant 0 : index
    %2 = vector.load %arg3[%c0_2, %c0_3] : memref<1x128xf32, #tpu.memory_space<vmem>>, vector<1x128xf32>
    %3 = vector.broadcast %2 : vector<1x128xf32> to vector<256x128xf32>
    %4 = arith.mulf %1, %3 : vector<256x128xf32>
    %c0_4 = arith.constant 0 : index
    %c0_5 = arith.constant 0 : index
    %5 = vector.load %arg4[%c0_4, %c0_5] : memref<1x128xf32, #tpu.memory_space<vmem>>, vector<1x128xf32>
    %6 = vector.broadcast %5 : vector<1x128xf32> to vector<256x128xf32>
    %7 = arith.addf %4, %6 : vector<256x128xf32>
    %cst = arith.constant 0.000000e+00 : f32
    %8 = vector.broadcast %cst : f32 to vector<256x128xf32>
    %9 = arith.maximumf %7, %8 : vector<256x128xf32>
    %c0_6 = arith.constant 0 : index
    %c0_7 = arith.constant 0 : index
    %c0_8 = arith.constant 0 : index
    %10 = vector.load %arg5[%c0_6, %c0_7, %c0_8] : memref<1x256x128xf32, #tpu.memory_space<vmem>>, vector<1x256x128xf32>
    %11 = vector.shape_cast %10 : vector<1x256x128xf32> to vector<256x128xf32>
    %12 = vector.shape_cast %9 : vector<256x128xf32> to vector<1x256x128xf32>
    tpu.vector_store %arg5[%c0_6, %c0_7, %c0_8], %12 {strides = array<i32>} : memref<1x256x128xf32, #tpu.memory_space<vmem>>, vector<1x256x128xf32>,
    return
  }
  func.func @transform_0(%arg0: i32, %arg1: i32) -> (i32, i32, i32) {
    %c0_i32 = arith.constant 0 : i32
    %c0_i32_0 = arith.constant 0 : i32
    return %arg0, %arg1, %c0_i32 : i32, i32, i32
  }
  func.func @transform_1(%arg0: i32, %arg1: i32) -> (i32, i32) {
    %c0_i32 = arith.constant 0 : i32
    %c0_i32_0 = arith.constant 0 : i32
    %c0_i32_1 = arith.constant 0 : i32
    return %c0_i32, %c0_i32_0 : i32, i32
  }
  func.func @transform_2(%arg0: i32, %arg1: i32) -> (i32, i32) {
    %c0_i32 = arith.constant 0 : i32
    %c0_i32_0 = arith.constant 0 : i32
    %c0_i32_1 = arith.constant 0 : i32
    return %c0_i32, %c0_i32_0 : i32, i32
  }
  func.func @transform_3(%arg0: i32, %arg1: i32) -> (i32, i32, i32) {
    %c0_i32 = arith.constant 0 : i32
    %c0_i32_0 = arith.constant 0 : i32
    return %arg0, %arg1, %c0_i32 : i32, i32, i32
  }
}

module attributes {stable_mosaic.version = 11 : i64} {
  func.func @kernel(%arg0: i32, %arg1: i32, %arg2: memref<1x1x288x384xbf16, #tpu.memory_space<vmem>>, %arg3: memref<3x384x256xbf16, #tpu.memory_space<vmem>>, %arg4: memref<1x256x256xf32, #tpu.memory_space<vmem>>, %arg5: memref<1x1x2x256xf32, #tpu.memory_space<vmem>>) attributes {dimension_semantics = [#tpu.dimension_semantics<parallel>, #tpu.dimension_semantics<parallel>], iteration_bounds = array<i64: 2, 1>, scalar_prefetch = 0 : i64, scratch_operands = 0 : i64, tpu.core_type = #tpu.core_type<tc>, window_params = [{transform_indices = @transform_0, window_bounds = array<i64: 1, 1, 288, 384>}, {pipeline_mode = #tpu.pipeline_mode<synchronous>, transform_indices = @transform_1, window_bounds = array<i64: 3, 384, 256>}, {transform_indices = @transform_2, window_bounds = array<i64: 1, 256, 256>}, {transform_indices = @transform_3, window_bounds = array<i64: 1, 1, 2, 256>}]} {
    %c0 = arith.constant 0 : index
    %c0_0 = arith.constant 0 : index
    %c0_1 = arith.constant 0 : index
    %c0_2 = arith.constant 0 : index
    %0 = vector.load %arg2[%c0, %c0_0, %c0_1, %c0_2] : memref<1x1x288x384xbf16, #tpu.memory_space<vmem>>, vector<1x1x256x384xbf16>
    %1 = vector.shape_cast %0 : vector<1x1x256x384xbf16> to vector<256x384xbf16>
    %c0_3 = arith.constant 0 : index
    %c0_4 = arith.constant 0 : index
    %c0_5 = arith.constant 0 : index
    %2 = vector.load %arg3[%c0_3, %c0_4, %c0_5] : memref<3x384x256xbf16, #tpu.memory_space<vmem>>, vector<1x384x256xbf16>
    %3 = vector.shape_cast %2 : vector<1x384x256xbf16> to vector<384x256xbf16>
    %cst = arith.constant dense<0.000000e+00> : vector<256x256xf32>
    %4 = tpu.matmul %1, %3, %cst {dimension_numbers = #tpu.dot_dimension_numbers<[1], [0], [0], [1], [0, 0, 1, 1], [], []>} : vector<256x384xbf16>, vector<384x256xbf16>, vector<256x256xf32> -> vector<256x256xf32>
    %c0_6 = arith.constant 0 : index
    %c0_7 = arith.constant 0 : index
    %c0_8 = arith.constant 0 : index
    %5 = vector.load %arg4[%c0_6, %c0_7, %c0_8] : memref<1x256x256xf32, #tpu.memory_space<vmem>>, vector<1x256x256xf32>
    %6 = vector.shape_cast %5 : vector<1x256x256xf32> to vector<256x256xf32>
    %7 = vector.shape_cast %4 : vector<256x256xf32> to vector<1x256x256xf32>
    tpu.vector_store %arg4[%c0_6, %c0_7, %c0_8], %7 {strides = array<i32>} : memref<1x256x256xf32, #tpu.memory_space<vmem>>, vector<1x256x256xf32>,
    %c0_9 = arith.constant 0 : index
    %c0_10 = arith.constant 0 : index
    %c0_11 = arith.constant 0 : index
    %8 = vector.load %arg4[%c0_9, %c0_10, %c0_11] : memref<1x256x256xf32, #tpu.memory_space<vmem>>, vector<1x256x256xf32>
    %9 = vector.shape_cast %8 : vector<1x256x256xf32> to vector<256x256xf32>
    %c0_12 = arith.constant 0 : index
    %c0_13 = arith.constant 0 : index
    %c16 = arith.constant 16 : index
    %c0_14 = arith.constant 0 : index
    %10 = vector.load %arg2[%c0_12, %c0_13, %c16, %c0_14] : memref<1x1x288x384xbf16, #tpu.memory_space<vmem>>, vector<1x1x256x384xbf16>
    %11 = vector.shape_cast %10 : vector<1x1x256x384xbf16> to vector<256x384xbf16>
    %c1 = arith.constant 1 : index
    %c0_15 = arith.constant 0 : index
    %c0_16 = arith.constant 0 : index
    %12 = vector.load %arg3[%c1, %c0_15, %c0_16] : memref<3x384x256xbf16, #tpu.memory_space<vmem>>, vector<1x384x256xbf16>
    %13 = vector.shape_cast %12 : vector<1x384x256xbf16> to vector<384x256xbf16>
    %cst_17 = arith.constant dense<0.000000e+00> : vector<256x256xf32>
    %14 = tpu.matmul %11, %13, %cst_17 {dimension_numbers = #tpu.dot_dimension_numbers<[1], [0], [0], [1], [0, 0, 1, 1], [], []>} : vector<256x384xbf16>, vector<384x256xbf16>, vector<256x256xf32> -> vector<256x256xf32>
    %15 = arith.addf %9, %14 : vector<256x256xf32>
    %c0_18 = arith.constant 0 : index
    %c0_19 = arith.constant 0 : index
    %c0_20 = arith.constant 0 : index
    %16 = vector.load %arg4[%c0_18, %c0_19, %c0_20] : memref<1x256x256xf32, #tpu.memory_space<vmem>>, vector<1x256x256xf32>
    %17 = vector.shape_cast %16 : vector<1x256x256xf32> to vector<256x256xf32>
    %18 = vector.shape_cast %15 : vector<256x256xf32> to vector<1x256x256xf32>
    tpu.vector_store %arg4[%c0_18, %c0_19, %c0_20], %18 {strides = array<i32>} : memref<1x256x256xf32, #tpu.memory_space<vmem>>, vector<1x256x256xf32>,
    %c0_21 = arith.constant 0 : index
    %c0_22 = arith.constant 0 : index
    %c0_23 = arith.constant 0 : index
    %19 = vector.load %arg4[%c0_21, %c0_22, %c0_23] : memref<1x256x256xf32, #tpu.memory_space<vmem>>, vector<1x256x256xf32>
    %20 = vector.shape_cast %19 : vector<1x256x256xf32> to vector<256x256xf32>
    %c0_24 = arith.constant 0 : index
    %c0_25 = arith.constant 0 : index
    %c32 = arith.constant 32 : index
    %c0_26 = arith.constant 0 : index
    %21 = vector.load %arg2[%c0_24, %c0_25, %c32, %c0_26] : memref<1x1x288x384xbf16, #tpu.memory_space<vmem>>, vector<1x1x256x384xbf16>
    %22 = vector.shape_cast %21 : vector<1x1x256x384xbf16> to vector<256x384xbf16>
    %c2 = arith.constant 2 : index
    %c0_27 = arith.constant 0 : index
    %c0_28 = arith.constant 0 : index
    %23 = vector.load %arg3[%c2, %c0_27, %c0_28] : memref<3x384x256xbf16, #tpu.memory_space<vmem>>, vector<1x384x256xbf16>
    %24 = vector.shape_cast %23 : vector<1x384x256xbf16> to vector<384x256xbf16>
    %cst_29 = arith.constant dense<0.000000e+00> : vector<256x256xf32>
    %25 = tpu.matmul %22, %24, %cst_29 {dimension_numbers = #tpu.dot_dimension_numbers<[1], [0], [0], [1], [0, 0, 1, 1], [], []>} : vector<256x384xbf16>, vector<384x256xbf16>, vector<256x256xf32> -> vector<256x256xf32>
    %26 = arith.addf %20, %25 : vector<256x256xf32>
    %c0_30 = arith.constant 0 : index
    %c0_31 = arith.constant 0 : index
    %c0_32 = arith.constant 0 : index
    %27 = vector.load %arg4[%c0_30, %c0_31, %c0_32] : memref<1x256x256xf32, #tpu.memory_space<vmem>>, vector<1x256x256xf32>
    %28 = vector.shape_cast %27 : vector<1x256x256xf32> to vector<256x256xf32>
    %29 = vector.shape_cast %26 : vector<256x256xf32> to vector<1x256x256xf32>
    tpu.vector_store %arg4[%c0_30, %c0_31, %c0_32], %29 {strides = array<i32>} : memref<1x256x256xf32, #tpu.memory_space<vmem>>, vector<1x256x256xf32>,
    %c0_33 = arith.constant 0 : index
    %c0_34 = arith.constant 0 : index
    %c0_35 = arith.constant 0 : index
    %30 = vector.load %arg4[%c0_33, %c0_34, %c0_35] : memref<1x256x256xf32, #tpu.memory_space<vmem>>, vector<1x256x256xf32>
    %31 = vector.shape_cast %30 : vector<1x256x256xf32> to vector<256x256xf32>
    %cst_36 = arith.constant dense<0.000000e+00> : vector<256xf32>
    %32 = vector.multi_reduction <add>, %31, %cst_36 [0] : vector<256x256xf32> to vector<256xf32>
    %33 = vector.shape_cast %32 : vector<256xf32> to vector<1x256xf32>
    %c0_37 = arith.constant 0 : index
    %c0_38 = arith.constant 0 : index
    %c0_39 = arith.constant 0 : index
    %c0_40 = arith.constant 0 : index
    %34 = vector.load %arg5[%c0_37, %c0_38, %c0_39, %c0_40] : memref<1x1x2x256xf32, #tpu.memory_space<vmem>>, vector<1x1x1x256xf32>
    %35 = vector.shape_cast %34 : vector<1x1x1x256xf32> to vector<1x256xf32>
    %36 = vector.shape_cast %33 : vector<1x256xf32> to vector<1x1x1x256xf32>
    tpu.vector_store %arg5[%c0_37, %c0_38, %c0_39, %c0_40], %36 {strides = array<i32>} : memref<1x1x2x256xf32, #tpu.memory_space<vmem>>, vector<1x1x1x256xf32>,
    %37 = arith.mulf %31, %31 : vector<256x256xf32>
    %cst_41 = arith.constant dense<0.000000e+00> : vector<256xf32>
    %38 = vector.multi_reduction <add>, %37, %cst_41 [0] : vector<256x256xf32> to vector<256xf32>
    %39 = vector.shape_cast %38 : vector<256xf32> to vector<1x256xf32>
    %c0_42 = arith.constant 0 : index
    %c0_43 = arith.constant 0 : index
    %c1_44 = arith.constant 1 : index
    %c0_45 = arith.constant 0 : index
    %40 = vector.load %arg5[%c0_42, %c0_43, %c1_44, %c0_45] : memref<1x1x2x256xf32, #tpu.memory_space<vmem>>, vector<1x1x1x256xf32>
    %41 = vector.shape_cast %40 : vector<1x1x1x256xf32> to vector<1x256xf32>
    %42 = vector.shape_cast %39 : vector<1x256xf32> to vector<1x1x1x256xf32>
    tpu.vector_store %arg5[%c0_42, %c0_43, %c1_44, %c0_45], %42 {strides = array<i32>} : memref<1x1x2x256xf32, #tpu.memory_space<vmem>>, vector<1x1x1x256xf32>,
    return
  }
  func.func @transform_0(%arg0: i32, %arg1: i32) -> (i32, i32, i32, i32) {
    %c0_i32 = arith.constant 0 : i32
    %c0_i32_0 = arith.constant 0 : i32
    %c0_i32_1 = arith.constant 0 : i32
    return %arg0, %arg1, %c0_i32, %c0_i32_0 : i32, i32, i32, i32
  }
  func.func @transform_1(%arg0: i32, %arg1: i32) -> (i32, i32, i32) {
    %c0_i32 = arith.constant 0 : i32
    %c0_i32_0 = arith.constant 0 : i32
    %c0_i32_1 = arith.constant 0 : i32
    %c0_i32_2 = arith.constant 0 : i32
    return %c0_i32, %c0_i32_0, %c0_i32_1 : i32, i32, i32
  }
  func.func @transform_2(%arg0: i32, %arg1: i32) -> (i32, i32, i32) {
    %c0_i32 = arith.constant 0 : i32
    %c0_i32_0 = arith.constant 0 : i32
    return %arg0, %arg1, %c0_i32 : i32, i32, i32
  }
  func.func @transform_3(%arg0: i32, %arg1: i32) -> (i32, i32, i32, i32) {
    %c0_i32 = arith.constant 0 : i32
    %c0_i32_0 = arith.constant 0 : i32
    %c0_i32_1 = arith.constant 0 : i32
    return %arg0, %arg1, %c0_i32, %c0_i32_0 : i32, i32, i32, i32
  }
}

module attributes {stable_mosaic.version = 11 : i64} {
  func.func @kernel(%arg0: i32, %arg1: i32, %arg2: memref<1x256x256xf32, #tpu.memory_space<vmem>>, %arg3: memref<1x256xf32, #tpu.memory_space<vmem>>, %arg4: memref<1x256xf32, #tpu.memory_space<vmem>>, %arg5: memref<1x16x256xf32, #tpu.memory_space<vmem>>) attributes {dimension_semantics = [#tpu.dimension_semantics<parallel>, #tpu.dimension_semantics<arbitrary>], iteration_bounds = array<i64: 2, 1>, scalar_prefetch = 0 : i64, scratch_operands = 0 : i64, tpu.core_type = #tpu.core_type<tc>, window_params = [{transform_indices = @transform_0, window_bounds = array<i64: 1, 256, 256>}, {pipeline_mode = #tpu.pipeline_mode<synchronous>, transform_indices = @transform_1, window_bounds = array<i64: 1, 256>}, {pipeline_mode = #tpu.pipeline_mode<synchronous>, transform_indices = @transform_2, window_bounds = array<i64: 1, 256>}, {transform_indices = @transform_3, window_bounds = array<i64: 1, 16, 256>}]} {
    %c0 = arith.constant 0 : index
    %c0_0 = arith.constant 0 : index
    %c0_1 = arith.constant 0 : index
    %0 = vector.load %arg2[%c0, %c0_0, %c0_1] : memref<1x256x256xf32, #tpu.memory_space<vmem>>, vector<1x256x256xf32>
    %1 = vector.shape_cast %0 : vector<1x256x256xf32> to vector<256x256xf32>
    %c0_2 = arith.constant 0 : index
    %c0_3 = arith.constant 0 : index
    %2 = vector.load %arg3[%c0_2, %c0_3] : memref<1x256xf32, #tpu.memory_space<vmem>>, vector<1x256xf32>
    %3 = vector.broadcast %2 : vector<1x256xf32> to vector<256x256xf32>
    %4 = arith.mulf %1, %3 : vector<256x256xf32>
    %c0_4 = arith.constant 0 : index
    %c0_5 = arith.constant 0 : index
    %5 = vector.load %arg4[%c0_4, %c0_5] : memref<1x256xf32, #tpu.memory_space<vmem>>, vector<1x256xf32>
    %6 = vector.broadcast %5 : vector<1x256xf32> to vector<256x256xf32>
    %7 = arith.addf %4, %6 : vector<256x256xf32>
    %cst = arith.constant 0.000000e+00 : f32
    %8 = vector.broadcast %cst : f32 to vector<256x256xf32>
    %9 = arith.maximumf %7, %8 : vector<256x256xf32>
    %10 = vector.extract_strided_slice %9 {offsets = [0, 0], sizes = [16, 256], strides = [1, 1]} : vector<256x256xf32> to vector<16x256xf32>
    %11 = vector.extract_strided_slice %9 {offsets = [16, 0], sizes = [16, 256], strides = [1, 1]} : vector<256x256xf32> to vector<16x256xf32>
    %12 = arith.maximumf %10, %11 : vector<16x256xf32>
    %13 = vector.extract_strided_slice %9 {offsets = [32, 0], sizes = [16, 256], strides = [1, 1]} : vector<256x256xf32> to vector<16x256xf32>
    %14 = arith.maximumf %12, %13 : vector<16x256xf32>
    %15 = vector.extract_strided_slice %9 {offsets = [48, 0], sizes = [16, 256], strides = [1, 1]} : vector<256x256xf32> to vector<16x256xf32>
    %16 = arith.maximumf %14, %15 : vector<16x256xf32>
    %17 = vector.extract_strided_slice %9 {offsets = [64, 0], sizes = [16, 256], strides = [1, 1]} : vector<256x256xf32> to vector<16x256xf32>
    %18 = arith.maximumf %16, %17 : vector<16x256xf32>
    %19 = vector.extract_strided_slice %9 {offsets = [80, 0], sizes = [16, 256], strides = [1, 1]} : vector<256x256xf32> to vector<16x256xf32>
    %20 = arith.maximumf %18, %19 : vector<16x256xf32>
    %21 = vector.extract_strided_slice %9 {offsets = [96, 0], sizes = [16, 256], strides = [1, 1]} : vector<256x256xf32> to vector<16x256xf32>
    %22 = arith.maximumf %20, %21 : vector<16x256xf32>
    %23 = vector.extract_strided_slice %9 {offsets = [112, 0], sizes = [16, 256], strides = [1, 1]} : vector<256x256xf32> to vector<16x256xf32>
    %24 = arith.maximumf %22, %23 : vector<16x256xf32>
    %25 = vector.extract_strided_slice %9 {offsets = [128, 0], sizes = [16, 256], strides = [1, 1]} : vector<256x256xf32> to vector<16x256xf32>
    %26 = arith.maximumf %24, %25 : vector<16x256xf32>
    %27 = vector.extract_strided_slice %9 {offsets = [144, 0], sizes = [16, 256], strides = [1, 1]} : vector<256x256xf32> to vector<16x256xf32>
    %28 = arith.maximumf %26, %27 : vector<16x256xf32>
    %29 = vector.extract_strided_slice %9 {offsets = [160, 0], sizes = [16, 256], strides = [1, 1]} : vector<256x256xf32> to vector<16x256xf32>
    %30 = arith.maximumf %28, %29 : vector<16x256xf32>
    %31 = vector.extract_strided_slice %9 {offsets = [176, 0], sizes = [16, 256], strides = [1, 1]} : vector<256x256xf32> to vector<16x256xf32>
    %32 = arith.maximumf %30, %31 : vector<16x256xf32>
    %33 = vector.extract_strided_slice %9 {offsets = [192, 0], sizes = [16, 256], strides = [1, 1]} : vector<256x256xf32> to vector<16x256xf32>
    %34 = arith.maximumf %32, %33 : vector<16x256xf32>
    %35 = vector.extract_strided_slice %9 {offsets = [208, 0], sizes = [16, 256], strides = [1, 1]} : vector<256x256xf32> to vector<16x256xf32>
    %36 = arith.maximumf %34, %35 : vector<16x256xf32>
    %37 = vector.extract_strided_slice %9 {offsets = [224, 0], sizes = [16, 256], strides = [1, 1]} : vector<256x256xf32> to vector<16x256xf32>
    %38 = arith.maximumf %36, %37 : vector<16x256xf32>
    %39 = vector.extract_strided_slice %9 {offsets = [240, 0], sizes = [16, 256], strides = [1, 1]} : vector<256x256xf32> to vector<16x256xf32>
    %40 = arith.maximumf %38, %39 : vector<16x256xf32>
    %c0_i32 = arith.constant 0 : i32
    %41 = arith.cmpi eq, %arg1, %c0_i32 : i32
    %42 = arith.extui %41 : i1 to i32
    %c0_i32_6 = arith.constant 0 : i32
    %43 = arith.cmpi ne, %42, %c0_i32_6 : i32
    scf.if %43 {
      %c0_9 = arith.constant 0 : index
      %c0_10 = arith.constant 0 : index
      %c0_11 = arith.constant 0 : index
      %47 = vector.load %arg5[%c0_9, %c0_10, %c0_11] : memref<1x16x256xf32, #tpu.memory_space<vmem>>, vector<1x16x256xf32>
      %48 = vector.shape_cast %47 : vector<1x16x256xf32> to vector<16x256xf32>
      %49 = vector.shape_cast %40 : vector<16x256xf32> to vector<1x16x256xf32>
      tpu.vector_store %arg5[%c0_9, %c0_10, %c0_11], %49 {strides = array<i32>} : memref<1x16x256xf32, #tpu.memory_space<vmem>>, vector<1x16x256xf32>,
    } else {
    }
    %c0_i32_7 = arith.constant 0 : i32
    %44 = arith.cmpi sgt, %arg1, %c0_i32_7 : i32
    %45 = arith.extui %44 : i1 to i32
    %c0_i32_8 = arith.constant 0 : i32
    %46 = arith.cmpi ne, %45, %c0_i32_8 : i32
    scf.if %46 {
      %c0_9 = arith.constant 0 : index
      %c0_10 = arith.constant 0 : index
      %c0_11 = arith.constant 0 : index
      %47 = vector.load %arg5[%c0_9, %c0_10, %c0_11] : memref<1x16x256xf32, #tpu.memory_space<vmem>>, vector<1x16x256xf32>
      %48 = vector.shape_cast %47 : vector<1x16x256xf32> to vector<16x256xf32>
      %49 = arith.maximumf %48, %40 : vector<16x256xf32>
      %c0_12 = arith.constant 0 : index
      %c0_13 = arith.constant 0 : index
      %c0_14 = arith.constant 0 : index
      %50 = vector.load %arg5[%c0_12, %c0_13, %c0_14] : memref<1x16x256xf32, #tpu.memory_space<vmem>>, vector<1x16x256xf32>
      %51 = vector.shape_cast %50 : vector<1x16x256xf32> to vector<16x256xf32>
      %52 = vector.shape_cast %49 : vector<16x256xf32> to vector<1x16x256xf32>
      tpu.vector_store %arg5[%c0_12, %c0_13, %c0_14], %52 {strides = array<i32>} : memref<1x16x256xf32, #tpu.memory_space<vmem>>, vector<1x16x256xf32>,
    } else {
    }
    return
  }
  func.func @transform_0(%arg0: i32, %arg1: i32) -> (i32, i32, i32) {
    %c0_i32 = arith.constant 0 : i32
    %c0_i32_0 = arith.constant 0 : i32
    return %arg0, %arg1, %c0_i32 : i32, i32, i32
  }
  func.func @transform_1(%arg0: i32, %arg1: i32) -> (i32, i32) {
    %c0_i32 = arith.constant 0 : i32
    %c0_i32_0 = arith.constant 0 : i32
    %c0_i32_1 = arith.constant 0 : i32
    return %c0_i32, %c0_i32_0 : i32, i32
  }
  func.func @transform_2(%arg0: i32, %arg1: i32) -> (i32, i32) {
    %c0_i32 = arith.constant 0 : i32
    %c0_i32_0 = arith.constant 0 : i32
    %c0_i32_1 = arith.constant 0 : i32
    return %c0_i32, %c0_i32_0 : i32, i32
  }
  func.func @transform_3(%arg0: i32, %arg1: i32) -> (i32, i32, i32) {
    %c0_i32 = arith.constant 0 : i32
    %c0_i32_0 = arith.constant 0 : i32
    %c0_i32_1 = arith.constant 0 : i32
    return %arg0, %c0_i32, %c0_i32_0 : i32, i32, i32
  }
}

</mosaic_0001>

<bundles_post_ra>
// kernel: vae_cnn_forward.7
= control target key start
LH: loop header
LB: loop body
LE: loop exit
PB: predicated region body
PF: predicated region fallthrough
CT: control target
= control target key end

     0   :  { %s555_s12 = smov 0   ;;  %s557_s13 = smov 0   ;;  %s762_s0 = inlined_call_operand.vmem [shape: f32[2,256,64], index: 0, kind: input, shape index: {}]   ;;  %s763_s1 = inlined_call_operand.vmem [shape: f32[1,64], index: 1, kind: input, shape index: {}]   ;;  %s764_s2 = inlined_call_operand.vmem [shape: f32[1,64], index: 2, kind: input, shape index: {}]   ;;  %s765_s3 = inlined_call_operand.vmem [shape: f32[2,256,64], index: 3, kind: output, shape index: {}]  }
   0x1   :  { %s559_s14 = smov 0  }
   0x2 LB: > { %s25_s15 = sadd.s32 1, %s529_s13  ;;  %p476_p0 = scmp.ge.s32.totalorder %s533_s14, 1  ;;  %s533_s14 = sphi %s559_s14, %s13_s14   ;;  %s529_s13 = sphi %s557_s13, %s767_s13   ;;  %s525_s12 = sphi %s555_s12, %s766_s12  }
   0x3   : > { %p27_p1 = scmp.ge.s32.totalorder %s25_s15, 2  ;;  %p158_p2 = scmp.lt.s32.totalorder %s533_s14, 3 }
   0x5   : > { %s769_s15 = smov (%p27_p1, %s25_s15), 0  ;;  %p159_p3 = pnand %p476_p0, %p158_p2 }
   0x6   : > { %p191_p4 = scmp.lt.s32.totalorder (!%p159_p3), %s525_s12, 1  ;;  %v576_v0 = vld [vmem:[%s763_s1] ss:$0 sm:$0xff] (!%p159_p3)  ;;  %vm352_vm0 = vcmask (!%p159_p3), 523264  }
   0x7   : > { %162 = sbr.rel (%p159_p3) target bundleno = 47 (0x2f), region = 32  ;;  %v586_v1 = vld [vmem:[%s764_s2] ss:$0 sm:$0xff] (!%p159_p3) }
   0xe   : > { %s771_s12 = smov (!%p191_p4, %s525_s12), 1 }
   0xf   : > { %s485_s16 = sshll.u32 %s771_s12, 8 }
  0x10   : > { %s581_s21 = scalar_lea.vmem %s762_s0, %s485_s16  ;;  %s609_s26 = scalar_lea.vmem %s765_s3, %s485_s16 }
  0x11   : > { %v210_v2 = vld [vmem:[%s581_s21] sm:$0xff]  ;;  %v211_v3 = vld [vmem:[%s581_s21 + $0x8] sm:$0xff]  ;;  %v212_v4 = vld [vmem:[%s581_s21 + $0x10] sm:$0xff] }
  0x12   : > { %v249_v5 = vmul.f32 %v576_v0, %v210_v2  ;;  %v250_v6 = vmul.f32 %v576_v0, %v211_v3  ;;  %v251_v7 = vmul.f32 %v576_v0, %v212_v4  ;;  %v213_v8 = vld [vmem:[%s581_s21 + $0x18] sm:$0xff]  ;;  %v214_v9 = vld [vmem:[%s581_s21 + $0x20] sm:$0xff]  ;;  %v215_v10 = vld [vmem:[%s581_s21 + $0x28] sm:$0xff] }
  0x13   : > { %v252_v11 = vmul.f32 %v576_v0, %v213_v8  ;;  %v253_v12 = vmul.f32 %v576_v0, %v214_v9  ;;  %v254_v13 = vmul.f32 %v576_v0, %v215_v10  ;;  %v216_v14 = vld [vmem:[%s581_s21 + $0x30] sm:$0xff]  ;;  %v217_v15 = vld [vmem:[%s581_s21 + $0x38] sm:$0xff]  ;;  %v218_v24 = vld [vmem:[%s581_s21 + $0x40] sm:$0xff] }
  0x14   : > { %v288_v16 = vadd.f32 %v586_v1, %v249_v5  ;;  %v289_v17 = vadd.f32 %v586_v1, %v250_v6  ;;  %v290_v18 = vadd.f32 %v586_v1, %v251_v7  ;;  %v255_v19 = vmul.f32 %v576_v0, %v216_v14  ;;  %v219_v25 = vld [vmem:[%s581_s21 + $0x48] sm:$0xff]  ;;  %v220_v26 = vld [vmem:[%s581_s21 + $0x50] sm:$0xff]  ;;  %v221_v31 = vld [vmem:[%s581_s21 + $0x58] sm:$0xff] }
  0x15   : > { %v291_v20 = vadd.f32 %v586_v1, %v252_v11  ;;  %v292_v21 = vadd.f32 %v586_v1, %v253_v12  ;;  %v293_v22 = vadd.f32 %v586_v1, %v254_v13  ;;  %v256_v23 = vmul.f32 %v576_v0, %v217_v15  ;;  %v222_v32 = vld [vmem:[%s581_s21 + $0x60] sm:$0xff]  ;;  %v223_v33 = vld [vmem:[%s581_s21 + $0x68] sm:$0xff]  ;;  %v224_v38 = vld [vmem:[%s581_s21 + $0x70] sm:$0xff] }
  0x16   : > { %v320_v27 = vmax.f32 %v288_v16, 0.0  ;;  %v321_v28 = vmax.f32 %v289_v17, 0.0  ;;  %v322_v29 = vmax.f32 %v290_v18, 0.0  ;;  %v294_v30 = vadd.f32 %v586_v1, %v255_v19  ;;  %v225_v43 = vld [vmem:[%s581_s21 + $0x78] sm:$0xff]  ;;  %v226_v56 = vld [vmem:[%s581_s21 + $0x80] sm:$0xff]  ;;  %v227_v57 = vld [vmem:[%s581_s21 + $0x88] sm:$0xff] }
  0x17   : > { %v323_v34 = vmax.f32 %v291_v20, 0.0  ;;  %v324_v35 = vmax.f32 %v292_v21, 0.0  ;;  %v325_v36 = vmax.f32 %v293_v22, 0.0  ;;  %v295_v37 = vadd.f32 %v586_v1, %v256_v23  ;;  %v228_v58 = vld [vmem:[%s581_s21 + $0x90] sm:$0xff]  ;;  %v229_v63 = vld [vmem:[%s581_s21 + $0x98] sm:$0xff]  ;;  %v230_v2 = vld [vmem:[%s581_s21 + $0xa0] sm:$0xff] }
  0x18   : > { %353 = vst.msk [vmem:[%s609_s26] sm:$0xff] %vm352_vm0, %v320_v27  ;;  %354 = vst.msk [vmem:[%s609_s26 + $0x8] sm:$0xff] %vm352_vm0, %v321_v28  ;;  %v326_v39 = vmax.f32 %v294_v30, 0.0  ;;  %v257_v40 = vmul.f32 %v576_v0, %v218_v24  ;;  %v258_v41 = vmul.f32 %v576_v0, %v219_v25  ;;  %v259_v42 = vmul.f32 %v576_v0, %v220_v26  ;;  %v231_v3 = vld [vmem:[%s581_s21 + $0xa8] sm:$0xff]  ;;  %v232_v8 = vld [vmem:[%s581_s21 + $0xb0] sm:$0xff] }
  0x19   : > { %355 = vst.msk [vmem:[%s609_s26 + $0x10] sm:$0xff] %vm352_vm0, %v322_v29  ;;  %356 = vst.msk [vmem:[%s609_s26 + $0x18] sm:$0xff] %vm352_vm0, %v323_v34  ;;  %v327_v44 = vmax.f32 %v295_v37, 0.0  ;;  %v260_v45 = vmul.f32 %v576_v0, %v221_v31  ;;  %v261_v46 = vmul.f32 %v576_v0, %v222_v32  ;;  %v262_v47 = vmul.f32 %v576_v0, %v223_v33  ;;  %v233_v13 = vld [vmem:[%s581_s21 + $0xb8] sm:$0xff]  ;;  %v234_v26 = vld [vmem:[%s581_s21 + $0xc0] sm:$0xff] }
  0x1a   : > { %357 = vst.msk [vmem:[%s609_s26 + $0x20] sm:$0xff] %vm352_vm0, %v324_v35  ;;  %358 = vst.msk [vmem:[%s609_s26 + $0x28] sm:$0xff] %vm352_vm0, %v325_v36  ;;  %v296_v48 = vadd.f32 %v586_v1, %v257_v40  ;;  %v297_v49 = vadd.f32 %v586_v1, %v258_v41  ;;  %v298_v50 = vadd.f32 %v586_v1, %v259_v42  ;;  %v235_v27 = vld [vmem:[%s581_s21 + $0xc8] sm:$0xff]  ;;  %v236_v28 = vld [vmem:[%s581_s21 + $0xd0] sm:$0xff] }
  0x1b   : > { %359 = vst.msk [vmem:[%s609_s26 + $0x30] sm:$0xff] %vm352_vm0, %v326_v39  ;;  %v263_v51 = vmul.f32 %v576_v0, %v224_v38  ;;  %360 = vst.msk [vmem:[%s609_s26 + $0x38] sm:$0xff] %vm352_vm0, %v327_v44  ;;  %v299_v52 = vadd.f32 %v586_v1, %v260_v45  ;;  %v300_v53 = vadd.f32 %v586_v1, %v261_v46  ;;  %v237_v33 = vld [vmem:[%s581_s21 + $0xd8] sm:$0xff]  ;;  %v238_v34 = vld [vmem:[%s581_s21 + $0xe0] sm:$0xff] }
  0x1c   : > { %v301_v54 = vadd.f32 %v586_v1, %v262_v47  ;;  %v264_v55 = vmul.f32 %v576_v0, %v225_v43  ;;  %v328_v59 = vmax.f32 %v296_v48, 0.0  ;;  %v329_v60 = vmax.f32 %v297_v49, 0.0  ;;  %v239_v35 = vld [vmem:[%s581_s21 + $0xe8] sm:$0xff]  ;;  %v240_v40 = vld [vmem:[%s581_s21 + $0xf0] sm:$0xff]  ;;  %v241_v45 = vld [vmem:[%s581_s21 + $0xf8] sm:$0xff] }
  0x1d   : > { %v330_v61 = vmax.f32 %v298_v50, 0.0  ;;  %v302_v62 = vadd.f32 %v586_v1, %v263_v51  ;;  %v331_v4 = vmax.f32 %v299_v52, 0.0  ;;  %v332_v5 = vmax.f32 %v300_v53, 0.0 }
  0x1e   : > { %v333_v6 = vmax.f32 %v301_v54, 0.0  ;;  %v303_v7 = vadd.f32 %v586_v1, %v264_v55  ;;  %361 = vst.msk [vmem:[%s609_s26 + $0x40] sm:$0xff] %vm352_vm0, %v328_v59  ;;  %362 = vst.msk [vmem:[%s609_s26 + $0x48] sm:$0xff] %vm352_vm0, %v329_v60  ;;  %v265_v10 = vmul.f32 %v576_v0, %v226_v56  ;;  %v266_v11 = vmul.f32 %v576_v0, %v227_v57 }
  0x1f   : > { %363 = vst.msk [vmem:[%s609_s26 + $0x50] sm:$0xff] %vm352_vm0, %v330_v61  ;;  %v334_v9 = vmax.f32 %v302_v62, 0.0  ;;  %v267_v12 = vmul.f32 %v576_v0, %v228_v58  ;;  %364 = vst.msk [vmem:[%s609_s26 + $0x58] sm:$0xff] %vm352_vm0, %v331_v4  ;;  %v268_v15 = vmul.f32 %v576_v0, %v229_v63  ;;  %v269_v16 = vmul.f32 %v576_v0, %v230_v2 }
  0x20   : > { %365 = vst.msk [vmem:[%s609_s26 + $0x60] sm:$0xff] %vm352_vm0, %v332_v5  ;;  %366 = vst.msk [vmem:[%s609_s26 + $0x68] sm:$0xff] %vm352_vm0, %v333_v6  ;;  %v335_v14 = vmax.f32 %v303_v7, 0.0  ;;  %v270_v17 = vmul.f32 %v576_v0, %v231_v3  ;;  %v304_v18 = vadd.f32 %v586_v1, %v265_v10  ;;  %v305_v19 = vadd.f32 %v586_v1, %v266_v11 }
  0x21   : > { %367 = vst.msk [vmem:[%s609_s26 + $0x70] sm:$0xff] %vm352_vm0, %v334_v9  ;;  %v306_v20 = vadd.f32 %v586_v1, %v267_v12  ;;  %v271_v21 = vmul.f32 %v576_v0, %v232_v8  ;;  %v307_v22 = vadd.f32 %v586_v1, %v268_v15  ;;  %v308_v23 = vadd.f32 %v586_v1, %v269_v16 }
  0x22   : > { %368 = vst.msk [vmem:[%s609_s26 + $0x78] sm:$0xff] %vm352_vm0, %v335_v14  ;;  %v309_v24 = vadd.f32 %v586_v1, %v270_v17  ;;  %v272_v25 = vmul.f32 %v576_v0, %v233_v13  ;;  %v336_v29 = vmax.f32 %v304_v18, 0.0  ;;  %v337_v30 = vmax.f32 %v305_v19, 0.0 }
  0x23   : > { %v338_v31 = vmax.f32 %v306_v20, 0.0  ;;  %v310_v32 = vadd.f32 %v586_v1, %v271_v21  ;;  %v339_v36 = vmax.f32 %v307_v22, 0.0  ;;  %v340_v37 = vmax.f32 %v308_v23, 0.0 }
  0x24   : > { %v341_v38 = vmax.f32 %v309_v24, 0.0  ;;  %v311_v39 = vadd.f32 %v586_v1, %v272_v25  ;;  %369 = vst.msk [vmem:[%s609_s26 + $0x80] sm:$0xff] %vm352_vm0, %v336_v29  ;;  %370 = vst.msk [vmem:[%s609_s26 + $0x88] sm:$0xff] %vm352_vm0, %v337_v30  ;;  %v273_v42 = vmul.f32 %v576_v0, %v234_v26  ;;  %v274_v43 = vmul.f32 %v576_v0, %v235_v27 }
  0x25   : > { %371 = vst.msk [vmem:[%s609_s26 + $0x90] sm:$0xff] %vm352_vm0, %v338_v31  ;;  %v342_v41 = vmax.f32 %v310_v32, 0.0  ;;  %v275_v44 = vmul.f32 %v576_v0, %v236_v28  ;;  %372 = vst.msk [vmem:[%s609_s26 + $0x98] sm:$0xff] %vm352_vm0, %v339_v36  ;;  %v276_v47 = vmul.f32 %v576_v0, %v237_v33  ;;  %v277_v48 = vmul.f32 %v576_v0, %v238_v34 }
  0x26   : > { %373 = vst.msk [vmem:[%s609_s26 + $0xa0] sm:$0xff] %vm352_vm0, %v340_v37  ;;  %374 = vst.msk [vmem:[%s609_s26 + $0xa8] sm:$0xff] %vm352_vm0, %v341_v38  ;;  %v343_v46 = vmax.f32 %v311_v39, 0.0  ;;  %v278_v49 = vmul.f32 %v576_v0, %v239_v35  ;;  %v312_v50 = vadd.f32 %v586_v1, %v273_v42  ;;  %v313_v51 = vadd.f32 %v586_v1, %v274_v43 }
  0x27   : > { %375 = vst.msk [vmem:[%s609_s26 + $0xb0] sm:$0xff] %vm352_vm0, %v342_v41  ;;  %v314_v52 = vadd.f32 %v586_v1, %v275_v44  ;;  %v279_v53 = vmul.f32 %v576_v0, %v240_v40  ;;  %v315_v54 = vadd.f32 %v586_v1, %v276_v47  ;;  %v316_v55 = vadd.f32 %v586_v1, %v277_v48 }
  0x28   : > { %376 = vst.msk [vmem:[%s609_s26 + $0xb8] sm:$0xff] %vm352_vm0, %v343_v46  ;;  %v317_v56 = vadd.f32 %v586_v1, %v278_v49  ;;  %v280_v57 = vmul.f32 %v576_v0, %v241_v45  ;;  %v344_v58 = vmax.f32 %v312_v50, 0.0  ;;  %v345_v59 = vmax.f32 %v313_v51, 0.0 }
  0x29   : > { %v346_v60 = vmax.f32 %v314_v52, 0.0  ;;  %v318_v61 = vadd.f32 %v586_v1, %v279_v53  ;;  %v347_v62 = vmax.f32 %v315_v54, 0.0  ;;  %v348_v63 = vmax.f32 %v316_v55, 0.0 }
  0x2a   : > { %v349_v2 = vmax.f32 %v317_v56, 0.0  ;;  %v319_v3 = vadd.f32 %v586_v1, %v280_v57  ;;  %377 = vst.msk [vmem:[%s609_s26 + $0xc0] sm:$0xff] %vm352_vm0, %v344_v58  ;;  %378 = vst.msk [vmem:[%s609_s26 + $0xc8] sm:$0xff] %vm352_vm0, %v345_v59 }
  0x2b   : > { %379 = vst.msk [vmem:[%s609_s26 + $0xd0] sm:$0xff] %vm352_vm0, %v346_v60  ;;  %v350_v4 = vmax.f32 %v318_v61, 0.0  ;;  %380 = vst.msk [vmem:[%s609_s26 + $0xd8] sm:$0xff] %vm352_vm0, %v347_v62 }
  0x2c   : > { %381 = vst.msk [vmem:[%s609_s26 + $0xe0] sm:$0xff] %vm352_vm0, %v348_v63  ;;  %382 = vst.msk [vmem:[%s609_s26 + $0xe8] sm:$0xff] %vm352_vm0, %v349_v2  ;;  %v351_v0 = vmax.f32 %v319_v3, 0.0 }
  0x2d   : > { %383 = vst.msk [vmem:[%s609_s26 + $0xf0] sm:$0xff] %vm352_vm0, %v350_v4 }
  0x2e   : > { %384 = vst.msk [vmem:[%s609_s26 + $0xf8] sm:$0xff] %vm352_vm0, %v351_v0 }
  0x2f PF: > { %s13_s14 = sadd.s32 1, %s533_s14   ;;  %s766_s12 = smov %s529_s13 }
  0x30   : > { %p10_p5 = scmp.ge.s32.totalorder %s13_s14, 4   ;;  %s767_s13 = smov %s769_s15 }
  0x32   :  { %12 = sbr.rel (!%p10_p5) target bundleno = 2 (0x2), region = 62 }

// kernel: vae_cnn_forward.6
= control target key start
LH: loop header
LB: loop body
LE: loop exit
PB: predicated region body
PF: predicated region fallthrough
CT: control target
= control target key end

     0   :  { %s2180_s12 = smov 0   ;;  %s2182_s13 = smov 0   ;;  %s2701_s0 = inlined_call_operand.vmem [shape: bf16[2,1,288,12], index: 0, kind: input, shape index: {}]   ;;  %s2702_s1 = inlined_call_operand.vmem [shape: bf16[3,12,64], index: 1, kind: input, shape index: {}]   ;;  %s2703_s2 = inlined_call_operand.vmem [shape: f32[2,256,64], index: 2, kind: output, shape index: {0}]   ;;  %s2704_s3 = inlined_call_operand.vmem [shape: f32[2,1,2,64], index: 3, kind: output, shape index: {1}]  }
   0x1   :  { %s2184_s14 = smov 0  }
   0x2 LB: > { %s26_s15 = sadd.s32 1, %s2154_s13  ;;  %p1790_p0 = scmp.ge.s32.totalorder %s2158_s14, 1  ;;  %s2158_s14 = sphi %s2184_s14, %s14_s14   ;;  %s2154_s13 = sphi %s2182_s13, %s2706_s13   ;;  %s2150_s12 = sphi %s2180_s12, %s2705_s12  }
   0x3   : > { %p28_p1 = scmp.ge.s32.totalorder %s26_s15, 2  ;;  %p162_p2 = scmp.lt.s32.totalorder %s2158_s14, 3 }
   0x5   : > { %s2708_s15 = smov (%p28_p1, %s26_s15), 0  ;;  %p163_p3 = pnand %p1790_p0, %p162_p2 }
   0x6   : > { %v2085_v0 = vld [vmem:[%s2702_s1] sm:$0x3f] (!%p163_p3)   ;;  %vm396_vm0 = vcmask (!%p163_p3), 1045504   ;;  %p201_p4 = scmp.lt.s32.totalorder (!%p163_p3), %s2150_s12, 1  ;;  %v2087_v2 = vld [vmem:[%s2702_s1 + $0x8] sm:$0x3f] (!%p163_p3)  }
   0x7   : > { %166 = sbr.rel (%p163_p3) target bundleno = 365 (0x16d), region = 28  ;;  %2057 = vmatprep.subr.msk.bf16.mxu1 (!%p163_p3), %vm396_vm0, %v2085_v0  ;;  %v398_v1 = vsel (!%p163_p3), %vm396_vm0, %v2085_v0, 0  ;;  %2056 = vmatprep.subr.msk.bf16.mxu0 (!%p163_p3), %vm396_vm0, %v2085_v0  ;;  %v2093_v3 = vld [vmem:[%s2702_s1 + $0x10] sm:$0x3f] (!%p163_p3)   ;;  %vm347_vm1 = vcmask (!%p163_p3), 97280   ;;  %v795_v6 = vsel (!%p163_p3), %vm396_vm0, %v2087_v2, 0 }
   0x8   : > { %2055 = vmatpush3.bf16.msra.mxu1 (!%p163_p3), %v398_v1  ;;  %1953 = vmatpush3.bf16.msra.mxu0 (!%p163_p3), %v398_v1  ;;  %v1223_v9 = vsel (!%p163_p3), %vm396_vm0, %v2093_v3, 0  ;;  %vm561_vm2 = vcmask (!%p163_p3), 523264   ;;  %vm1551_vm3 = vcmask (!%p163_p3), 516096  }
   0x9   : > { %2058 = vmatprep.subr.msk.bf16.mxu1 (!%p163_p3), %vm396_vm0, %v2087_v2  ;;  %2059 = vmatprep.subr.msk.bf16.mxu0 (!%p163_p3), %vm396_vm0, %v2093_v3 }
   0xe   : > { %s2710_s12 = smov (!%p201_p4, %s2150_s12), 1 }
   0xf   : > { %s2060_s22 = smul.u32 144, %s2710_s12  ;;  %s1900_s26 = sshll.u32 %s2710_s12, 8 }
  0x10   : > { %s2322_s29 = scalar_lea.vmem %s2703_s2, %s1900_s26  ;;  %s1794_s30 = sshll.u32 %s2710_s12, 1 }
  0x11   : > { %s2218_s25 = scalar_lea.vmem %s2701_s0, %s2060_s22  ;;  %s226_s6 = scalar_lea.vmem %s2704_s3, %s1794_s30 }
  0x12   : > { %v2086_v4 = vld [vmem:[%s2218_s25 + $0x40] sm:$0xff]   ;;  %v2088_v5 = vld [vmem:[%s2218_s25 + $0x48] sm:$0xff]   ;;  %v2091_v10 = vld [vmem:[%s2218_s25 + $0x50] sm:$0xff]  }
  0x13   : > { %1970 = vmatprep.mubr.msk.bf16.mxu1 %vm347_vm1, %v2086_v4  ;;  %v2089_v7 = vld [vmem:[%s2218_s25] sm:$0xff]   ;;  %v2090_v8 = vld [vmem:[%s2218_s25 + $0x8] sm:$0xff]   ;;  %v2094_v11 = vld [vmem:[%s2218_s25 + $0x10] sm:$0xff]  }
  0x14   : > { %1971 = vmatmul.mubr.msk.bf16.vlgmr.msra.gmra.mrb[0].mxu1 %vm347_vm1, %v2088_v5  ;;  %1954 = vmatprep.mubr.msk.bf16.mxu0 %vm347_vm1, %v2089_v7  ;;  %v2092_v12 = vld [vmem:[%s2218_s25 + $0x58] sm:$0xff]   ;;  %v2096_v13 = vld [vmem:[%s2218_s25 + $0x60] sm:$0xff]   ;;  %v2097_v16 = vld [vmem:[%s2218_s25 + $0x68] sm:$0xff]  }
  0x15   : > { %1987 = vmatpush3.bf16.msra.mxu1 %v795_v6  ;;  %1955 = vmatmul.mubr.msk.bf16.vlgmr.msra.gmra.mrb[0].mxu0 %vm347_vm1, %v2090_v8  ;;  %v2095_v14 = vld [vmem:[%s2218_s25 + $0x18] sm:$0xff]   ;;  %v2098_v15 = vld [vmem:[%s2218_s25 + $0x20] sm:$0xff]   ;;  %v2100_v17 = vld [vmem:[%s2218_s25 + $0x70] sm:$0xff]  }
  0x16   : > { %1974 = vmatprep.mubr.msk.bf16.mxu1 %vm347_vm1, %v2091_v10  ;;  %2021 = vmatpush3.bf16.msra.mxu0 %v1223_v9  ;;  %v2099_v18 = vld [vmem:[%s2218_s25 + $0x28] sm:$0xff]   ;;  %v2102_v19 = vld [vmem:[%s2218_s25 + $0x30] sm:$0xff]   ;;  %v2101_v20 = vld [vmem:[%s2218_s25 + $0x78] sm:$0xff]  }
  0x17   : > { %1958 = vmatprep.mubr.msk.bf16.mxu0 %vm347_vm1, %v2094_v11  ;;  %v2104_v21 = vld [vmem:[%s2218_s25 + $0x8] sm:$0xff]   ;;  %v2103_v22 = vld [vmem:[%s2218_s25 + $0x38] sm:$0xff]   ;;  %v2106_v23 = vld [vmem:[%s2218_s25 + $0x10] sm:$0xff]  }
  0x18   : > { %v2105_v24 = vld [vmem:[%s2218_s25 + $0x10] sm:$0xff]   ;;  %v2107_v25 = vld [vmem:[%s2218_s25 + $0x18] sm:$0xff]   ;;  %v2110_v27 = vld [vmem:[%s2218_s25 + $0x20] sm:$0xff]  }
  0x19   : > { %v2108_v26 = vld [vmem:[%s2218_s25 + $0x18] sm:$0xff]   ;;  %v2109_v28 = vld [vmem:[%s2218_s25 + $0x20] sm:$0xff]   ;;  %v2111_v29 = vld [vmem:[%s2218_s25 + $0x28] sm:$0xff]  }
  0x1a   : > { %v2112_v30 = vld [vmem:[%s2218_s25 + $0x28] sm:$0xff]   ;;  %v2114_v31 = vld [vmem:[%s2218_s25 + $0x30] sm:$0xff]   ;;  %v2115_v33 = vld [vmem:[%s2218_s25 + $0x38] sm:$0xff]  }
  0x1b   : > { %v2113_v32 = vld [vmem:[%s2218_s25 + $0x30] sm:$0xff]   ;;  %v2116_v34 = vld [vmem:[%s2218_s25 + $0x38] sm:$0xff]   ;;  %v2118_v35 = vld [vmem:[%s2218_s25 + $0x40] sm:$0xff]  }
  0x1c   : > { %1975 = vmatmul.mubr.msk.bf16.gmra.mrb[4].mxu1 %vm347_vm1, %v2092_v12  ;;  %v2117_v36 = vld [vmem:[%s2218_s25 + $0x40] sm:$0xff]   ;;  %v2119_v37 = vld [vmem:[%s2218_s25 + $0x48] sm:$0xff]   ;;  %v2122_v39 = vld [vmem:[%s2218_s25 + $0x50] sm:$0xff]  }
  0x1d   : > { %1978 = vmatprep.mubr.msk.bf16.mxu1 %vm347_vm1, %v2096_v13  ;;  %1959 = vmatmul.mubr.msk.bf16.gmra.mrb[4].mxu0 %vm347_vm1, %v2095_v14  ;;  %v2120_v38 = vld [vmem:[%s2218_s25 + $0x48] sm:$0xff]   ;;  %v2121_v40 = vld [vmem:[%s2218_s25 + $0x50] sm:$0xff]   ;;  %v2123_v41 = vld [vmem:[%s2218_s25 + $0x58] sm:$0xff]  }
  0x1e   : > { %1962 = vmatprep.mubr.msk.bf16.mxu0 %vm347_vm1, %v2098_v15  ;;  %v2124_v42 = vld [vmem:[%s2218_s25 + $0x58] sm:$0xff]   ;;  %v2126_v43 = vld [vmem:[%s2218_s25 + $0x60] sm:$0xff]   ;;  %v2127_v45 = vld [vmem:[%s2218_s25 + $0x68] sm:$0xff]  }
  0x1f   : > { %v2125_v44 = vld [vmem:[%s2218_s25 + $0x60] sm:$0xff]   ;;  %v2128_v46 = vld [vmem:[%s2218_s25 + $0x68] sm:$0xff]   ;;  %v2130_v47 = vld [vmem:[%s2218_s25 + $0x70] sm:$0xff]  }
  0x20   : > { %v2129_v48 = vld [vmem:[%s2218_s25 + $0x70] sm:$0xff]   ;;  %v2131_v49 = vld [vmem:[%s2218_s25 + $0x78] sm:$0xff]   ;;  %v2134_v51 = vld [vmem:[%s2218_s25 + $0x80] sm:$0xff]  }
  0x21   : > { %v2132_v50 = vld [vmem:[%s2218_s25 + $0x78] sm:$0xff]   ;;  %v2133_v52 = vld [vmem:[%s2218_s25 + $0x80] sm:$0xff]   ;;  %v2135_v53 = vld [vmem:[%s2218_s25 + $0x88] sm:$0xff]  }
  0x24   : > { %1979 = vmatmul.mubr.msk.bf16.gmra.mrb[8].mxu1 %vm347_vm1, %v2097_v16 }
  0x25   : > { %1982 = vmatprep.mubr.msk.bf16.mxu1 %vm347_vm1, %v2100_v17  ;;  %1963 = vmatmul.mubr.msk.bf16.gmra.mrb[8].mxu0 %vm347_vm1, %v2099_v18 }
  0x26   : > { %1966 = vmatprep.mubr.msk.bf16.mxu0 %vm347_vm1, %v2102_v19 }
  0x2c   : > { %1983 = vmatmul.mubr.msk.bf16.gmra.mrb[12].mxu1 %vm347_vm1, %v2101_v20 }
  0x2d   : > { %1988 = vmatprep.mubr.msk.bf16.mxu1 %vm347_vm1, %v2104_v21  ;;  %1967 = vmatmul.mubr.msk.bf16.gmra.mrb[12].mxu0 %vm347_vm1, %v2103_v22 }
  0x2e   : > { %2022 = vmatprep.mubr.msk.bf16.mxu0 %vm347_vm1, %v2106_v23 }
  0x34   : > { %1989 = vmatmul.mubr.msk.bf16.vlgmr.msra.gmra.mrb[16].mxu1 %vm347_vm1, %v2105_v24 }
  0x35   : > { %1992 = vmatprep.mubr.msk.bf16.mxu1 %vm347_vm1, %v2107_v25  ;;  %2023 = vmatmul.mubr.msk.bf16.vlgmr.msra.gmra.mrb[16].mxu0 %vm347_vm1, %v2108_v26 }
  0x36   : > { %2026 = vmatprep.mubr.msk.bf16.mxu0 %vm347_vm1, %v2110_v27 }
  0x3c   : > { %1993 = vmatmul.mubr.msk.bf16.gmra.mrb[20].mxu1 %vm347_vm1, %v2109_v28 }
  0x3d   : > { %1996 = vmatprep.mubr.msk.bf16.mxu1 %vm347_vm1, %v2111_v29  ;;  %2027 = vmatmul.mubr.msk.bf16.gmra.mrb[20].mxu0 %vm347_vm1, %v2112_v30 }
  0x3e   : > { %2030 = vmatprep.mubr.msk.bf16.mxu0 %vm347_vm1, %v2114_v31 }
  0x44   : > { %1997 = vmatmul.mubr.msk.bf16.gmra.mrb[24].mxu1 %vm347_vm1, %v2113_v32 }
  0x45   : > { %2000 = vmatprep.mubr.msk.bf16.mxu1 %vm347_vm1, %v2115_v33  ;;  %2031 = vmatmul.mubr.msk.bf16.gmra.mrb[24].mxu0 %vm347_vm1, %v2116_v34 }
  0x46   : > { %2034 = vmatprep.mubr.msk.bf16.mxu0 %vm347_vm1, %v2118_v35 }
  0x4c   : > { %2001 = vmatmul.mubr.msk.bf16.gmra.mrb[28].mxu1 %vm347_vm1, %v2117_v36 }
  0x4d   : > { %2004 = vmatprep.mubr.msk.bf16.mxu1 %vm347_vm1, %v2119_v37  ;;  %2035 = vmatmul.mubr.msk.bf16.gmra.mrb[28].mxu0 %vm347_vm1, %v2120_v38 }
  0x4e   : > { %2038 = vmatprep.mubr.msk.bf16.mxu0 %vm347_vm1, %v2122_v39 }
  0x54   : > { %2005 = vmatmul.mubr.msk.bf16.gmra.mrb[32].mxu1 %vm347_vm1, %v2121_v40 }
  0x55   : > { %2008 = vmatprep.mubr.msk.bf16.mxu1 %vm347_vm1, %v2123_v41  ;;  %2039 = vmatmul.mubr.msk.bf16.gmra.mrb[32].mxu0 %vm347_vm1, %v2124_v42 }
  0x56   : > { %2042 = vmatprep.mubr.msk.bf16.mxu0 %vm347_vm1, %v2126_v43 }
  0x5c   : > { %2009 = vmatmul.mubr.msk.bf16.gmra.mrb[36].mxu1 %vm347_vm1, %v2125_v44 }
  0x5d   : > { %2012 = vmatprep.mubr.msk.bf16.mxu1 %vm347_vm1, %v2127_v45  ;;  %2043 = vmatmul.mubr.msk.bf16.gmra.mrb[36].mxu0 %vm347_vm1, %v2128_v46 }
  0x5e   : > { %2046 = vmatprep.mubr.msk.bf16.mxu0 %vm347_vm1, %v2130_v47 }
  0x64   : > { %2013 = vmatmul.mubr.msk.bf16.gmra.mrb[40].mxu1 %vm347_vm1, %v2129_v48 }
  0x65   : > { %2016 = vmatprep.mubr.msk.bf16.mxu1 %vm347_vm1, %v2131_v49  ;;  %2047 = vmatmul.mubr.msk.bf16.gmra.mrb[40].mxu0 %vm347_vm1, %v2132_v50 }
  0x66   : > { %2050 = vmatprep.mubr.msk.bf16.mxu0 %vm347_vm1, %v2134_v51 }
  0x6c   : > { %2017 = vmatmul.mubr.msk.bf16.gmra.mrb[44].mxu1 %vm347_vm1, %v2133_v52 }
  0x6d   : > { %2051 = vmatmul.mubr.msk.bf16.gmra.mrb[44].mxu0 %vm347_vm1, %v2135_v53 }
  0xe7   : > { %v1972_v54 = vpop.f32.mrb[0].mxu1 }
  0xe8   : > { %580 = vst.msk [vmem:[%s2322_s29 + $0x90] sm:$0xff] %vm561_vm2, %v1972_v54  ;;  %v498_v55 = vpop.f32.mrb[1].mxu1  ;;  %v1956_v57 = vpop.f32.mrb[0].mxu0 }
  0xe9   : > { %578 = vst.msk [vmem:[%s2322_s29 + $0x80] sm:$0xff] %vm561_vm2, %v498_v55  ;;  %v1973_v56 = vpop.f32.mrb[2].mxu1  ;;  %564 = vst.msk [vmem:[%s2322_s29 + $0x10] sm:$0xff] %vm561_vm2, %v1956_v57  ;;  %v434_v59 = vpop.f32.mrb[1].mxu0 }
  0xea   : > { %581 = vst.msk [vmem:[%s2322_s29 + $0x98] sm:$0xff] %vm561_vm2, %v1973_v56  ;;  %v501_v58 = vpop.f32.mrb[3].mxu1  ;;  %562 = vst.msk [vmem:[%s2322_s29] sm:$0xff] %vm561_vm2, %v434_v59  ;;  %v1957_v60 = vpop.f32.mrb[2].mxu0 }
  0xeb   : > { %579 = vst.msk [vmem:[%s2322_s29 + $0x88] sm:$0xff] %vm561_vm2, %v501_v58  ;;  %565 = vst.msk [vmem:[%s2322_s29 + $0x18] sm:$0xff] %vm561_vm2, %v1957_v60  ;;  %v437_v61 = vpop.f32.mrb[3].mxu0 }
  0xec   : > { %563 = vst.msk [vmem:[%s2322_s29 + $0x8] sm:$0xff] %vm561_vm2, %v437_v61 }
  0xef   : > { %v1976_v62 = vpop.f32.mrb[4].mxu1 }
  0xf0   : > { %584 = vst.msk [vmem:[%s2322_s29 + $0xb0] sm:$0xff] %vm561_vm2, %v1976_v62  ;;  %v514_v63 = vpop.f32.mrb[5].mxu1  ;;  %v1960_v1 = vpop.f32.mrb[4].mxu0  ;;  %v596_v22 = vld [vmem:[%s2322_s29 + $0x10] sm:$0xff] }
  0xf1   : > { %582 = vst.msk [vmem:[%s2322_s29 + $0xa0] sm:$0xff] %vm561_vm2, %v514_v63  ;;  %v1977_v0 = vpop.f32.mrb[6].mxu1  ;;  %568 = vst.msk [vmem:[%s2322_s29 + $0x30] sm:$0xff] %vm561_vm2, %v1960_v1  ;;  %v450_v3 = vpop.f32.mrb[5].mxu0  ;;  %v594_v25 = vld [vmem:[%s2322_s29] sm:$0xff] }
  0xf2   : > { %585 = vst.msk [vmem:[%s2322_s29 + $0xb8] sm:$0xff] %vm561_vm2, %v1977_v0  ;;  %v517_v2 = vpop.f32.mrb[7].mxu1  ;;  %566 = vst.msk [vmem:[%s2322_s29 + $0x20] sm:$0xff] %vm561_vm2, %v450_v3  ;;  %v1961_v4 = vpop.f32.mrb[6].mxu0  ;;  %v597_v28 = vld [vmem:[%s2322_s29 + $0x18] sm:$0xff] }
  0xf3   : > { %583 = vst.msk [vmem:[%s2322_s29 + $0xa8] sm:$0xff] %vm561_vm2, %v517_v2  ;;  %569 = vst.msk [vmem:[%s2322_s29 + $0x38] sm:$0xff] %vm561_vm2, %v1961_v4  ;;  %v453_v5 = vpop.f32.mrb[7].mxu0  ;;  %v595_v32 = vld [vmem:[%s2322_s29 + $0x8] sm:$0xff] }
  0xf4   : > { %567 = vst.msk [vmem:[%s2322_s29 + $0x28] sm:$0xff] %vm561_vm2, %v453_v5 }
  0xf7   : > { %v1980_v6 = vpop.f32.mrb[8].mxu1 }
  0xf8   : > { %588 = vst.msk [vmem:[%s2322_s29 + $0xd0] sm:$0xff] %vm561_vm2, %v1980_v6  ;;  %v530_v7 = vpop.f32.mrb[9].mxu1  ;;  %v1964_v9 = vpop.f32.mrb[8].mxu0  ;;  %v600_v38 = vld [vmem:[%s2322_s29 + $0x30] sm:$0xff] }
  0xf9   : > { %586 = vst.msk [vmem:[%s2322_s29 + $0xc0] sm:$0xff] %vm561_vm2, %v530_v7  ;;  %v1981_v8 = vpop.f32.mrb[10].mxu1  ;;  %572 = vst.msk [vmem:[%s2322_s29 + $0x50] sm:$0xff] %vm561_vm2, %v1964_v9  ;;  %v466_v11 = vpop.f32.mrb[9].mxu0  ;;  %v598_v41 = vld [vmem:[%s2322_s29 + $0x20] sm:$0xff] }
  0xfa   : > { %589 = vst.msk [vmem:[%s2322_s29 + $0xd8] sm:$0xff] %vm561_vm2, %v1981_v8  ;;  %v533_v10 = vpop.f32.mrb[11].mxu1  ;;  %570 = vst.msk [vmem:[%s2322_s29 + $0x40] sm:$0xff] %vm561_vm2, %v466_v11  ;;  %v1965_v12 = vpop.f32.mrb[10].mxu0  ;;  %v601_v45 = vld [vmem:[%s2322_s29 + $0x38] sm:$0xff] }
  0xfb   : > { %587 = vst.msk [vmem:[%s2322_s29 + $0xc8] sm:$0xff] %vm561_vm2, %v533_v10  ;;  %573 = vst.msk [vmem:[%s2322_s29 + $0x58] sm:$0xff] %vm561_vm2, %v1965_v12  ;;  %v469_v13 = vpop.f32.mrb[11].mxu0  ;;  %v599_v51 = vld [vmem:[%s2322_s29 + $0x28] sm:$0xff] }
  0xfc   : > { %571 = vst.msk [vmem:[%s2322_s29 + $0x48] sm:$0xff] %vm561_vm2, %v469_v13 }
  0xff   : > { %v1984_v14 = vpop.f32.mrb[12].mxu1 }
 0x100   : > { %592 = vst.msk [vmem:[%s2322_s29 + $0xf0] sm:$0xff] %vm561_vm2, %v1984_v14  ;;  %v546_v15 = vpop.f32.mrb[13].mxu1  ;;  %v1968_v17 = vpop.f32.mrb[12].mxu0  ;;  %v604_v62 = vld [vmem:[%s2322_s29 + $0x50] sm:$0xff] }
 0x101   : > { %590 = vst.msk [vmem:[%s2322_s29 + $0xe0] sm:$0xff] %vm561_vm2, %v546_v15  ;;  %v1985_v16 = vpop.f32.mrb[14].mxu1  ;;  %576 = vst.msk [vmem:[%s2322_s29 + $0x70] sm:$0xff] %vm561_vm2, %v1968_v17  ;;  %v482_v19 = vpop.f32.mrb[13].mxu0  ;;  %v602_v1 = vld [vmem:[%s2322_s29 + $0x40] sm:$0xff] }
 0x102   : > { %593 = vst.msk [vmem:[%s2322_s29 + $0xf8] sm:$0xff] %vm561_vm2, %v1985_v16  ;;  %v549_v18 = vpop.f32.mrb[15].mxu1  ;;  %574 = vst.msk [vmem:[%s2322_s29 + $0x60] sm:$0xff] %vm561_vm2, %v482_v19  ;;  %v1969_v20 = vpop.f32.mrb[14].mxu0  ;;  %v605_v5 = vld [vmem:[%s2322_s29 + $0x58] sm:$0xff] }
 0x103   : > { %591 = vst.msk [vmem:[%s2322_s29 + $0xe8] sm:$0xff] %vm561_vm2, %v549_v18  ;;  %577 = vst.msk [vmem:[%s2322_s29 + $0x78] sm:$0xff] %vm561_vm2, %v1969_v20  ;;  %v485_v21 = vpop.f32.mrb[15].mxu0  ;;  %v603_v11 = vld [vmem:[%s2322_s29 + $0x48] sm:$0xff] }
 0x104   : > { %575 = vst.msk [vmem:[%s2322_s29 + $0x68] sm:$0xff] %vm561_vm2, %v485_v21 }
 0x107   : > { %v1990_v23 = vpop.f32.mrb[16].mxu1 }
 0x108   : > { %v960_v24 = vadd.f32 %v1990_v23, %v596_v22  ;;  %v831_v26 = vpop.f32.mrb[17].mxu1  ;;  %v2024_v30 = vpop.f32.mrb[16].mxu0 }
 0x109   : > { %v958_v27 = vadd.f32 %v831_v26, %v594_v25  ;;  %v1991_v29 = vpop.f32.mrb[18].mxu1  ;;  %v1259_v34 = vpop.f32.mrb[17].mxu0 }
 0x10a   : > { %992 = vst.msk [vmem:[%s2322_s29 + $0x10] sm:$0xff] %vm561_vm2, %v960_v24  ;;  %v961_v31 = vadd.f32 %v1991_v29, %v597_v28  ;;  %v834_v33 = vpop.f32.mrb[19].mxu1  ;;  %v2025_v36 = vpop.f32.mrb[18].mxu0 }
 0x10b   : > { %990 = vst.msk [vmem:[%s2322_s29] sm:$0xff] %vm561_vm2, %v958_v27  ;;  %v959_v35 = vadd.f32 %v834_v33, %v595_v32  ;;  %v1262_v37 = vpop.f32.mrb[19].mxu0 }
 0x10c   : > { %993 = vst.msk [vmem:[%s2322_s29 + $0x18] sm:$0xff] %vm561_vm2, %v961_v31  ;;  %v608_v31 = vld [vmem:[%s2322_s29 + $0x70] sm:$0xff] }
 0x10d   : > { %991 = vst.msk [vmem:[%s2322_s29 + $0x8] sm:$0xff] %vm561_vm2, %v959_v35 }
 0x10f   : > { %v1994_v39 = vpop.f32.mrb[20].mxu1 }
 0x110   : > { %v964_v40 = vadd.f32 %v1994_v39, %v600_v38  ;;  %v847_v42 = vpop.f32.mrb[21].mxu1  ;;  %v2028_v47 = vpop.f32.mrb[20].mxu0  ;;  %v609_v38 = vld [vmem:[%s2322_s29 + $0x78] sm:$0xff] }
 0x111   : > { %v1024_v43 = vld [vmem:[%s2322_s29 + $0x10] sm:$0xff]  ;;  %v962_v44 = vadd.f32 %v847_v42, %v598_v41  ;;  %v1995_v46 = vpop.f32.mrb[22].mxu1  ;;  %v1275_v53 = vpop.f32.mrb[21].mxu0 }
 0x112   : > { %v1388_v48 = vadd.f32 %v2024_v30, %v1024_v43  ;;  %996 = vst.msk [vmem:[%s2322_s29 + $0x30] sm:$0xff] %vm561_vm2, %v964_v40  ;;  %v1022_v49 = vld [vmem:[%s2322_s29] sm:$0xff]  ;;  %v965_v50 = vadd.f32 %v1995_v46, %v601_v45  ;;  %v850_v52 = vpop.f32.mrb[23].mxu1  ;;  %v2029_v57 = vpop.f32.mrb[22].mxu0 }
 0x113   : > { %v1386_v54 = vadd.f32 %v1259_v34, %v1022_v49  ;;  %994 = vst.msk [vmem:[%s2322_s29 + $0x20] sm:$0xff] %vm561_vm2, %v962_v44  ;;  %v1025_v55 = vld [vmem:[%s2322_s29 + $0x18] sm:$0xff]  ;;  %v963_v56 = vadd.f32 %v850_v52, %v599_v51  ;;  %v1278_v60 = vpop.f32.mrb[23].mxu0  ;;  %v607_v51 = vld [vmem:[%s2322_s29 + $0x68] sm:$0xff] }
 0x114   : > { %1420 = vst.msk [vmem:[%s2322_s29 + $0x10] sm:$0xff] %vm561_vm2, %v1388_v48  ;;  %v1389_v58 = vadd.f32 %v2025_v36, %v1025_v55  ;;  %997 = vst.msk [vmem:[%s2322_s29 + $0x38] sm:$0xff] %vm561_vm2, %v965_v50  ;;  %v1023_v59 = vld [vmem:[%s2322_s29 + $0x8] sm:$0xff]  ;;  %v606_v36 = vld [vmem:[%s2322_s29 + $0x60] sm:$0xff] }
 0x115   : > { %1418 = vst.msk [vmem:[%s2322_s29] sm:$0xff] %vm561_vm2, %v1386_v54  ;;  %v1387_v61 = vadd.f32 %v1262_v37, %v1023_v59  ;;  %995 = vst.msk [vmem:[%s2322_s29 + $0x28] sm:$0xff] %vm561_vm2, %v963_v56 }
 0x116   : > { %1421 = vst.msk [vmem:[%s2322_s29 + $0x18] sm:$0xff] %vm561_vm2, %v1389_v58 }
 0x117   : > { %1419 = vst.msk [vmem:[%s2322_s29 + $0x8] sm:$0xff] %vm561_vm2, %v1387_v61  ;;  %v1998_v63 = vpop.f32.mrb[24].mxu1 }
 0x118   : > { %v968_v0 = vadd.f32 %v1998_v63, %v604_v62  ;;  %v863_v2 = vpop.f32.mrb[25].mxu1  ;;  %v2032_v7 = vpop.f32.mrb[24].mxu0 }
 0x119   : > { %v1028_v3 = vld [vmem:[%s2322_s29 + $0x30] sm:$0xff]  ;;  %v966_v4 = vadd.f32 %v863_v2, %v602_v1  ;;  %v1999_v6 = vpop.f32.mrb[26].mxu1  ;;  %v1291_v13 = vpop.f32.mrb[25].mxu0 }
 0x11a   : > { %v1392_v8 = vadd.f32 %v2028_v47, %v1028_v3  ;;  %1000 = vst.msk [vmem:[%s2322_s29 + $0x50] sm:$0xff] %vm561_vm2, %v968_v0  ;;  %v1026_v9 = vld [vmem:[%s2322_s29 + $0x20] sm:$0xff]  ;;  %v969_v10 = vadd.f32 %v1999_v6, %v605_v5  ;;  %v866_v12 = vpop.f32.mrb[27].mxu1  ;;  %v2435_v17 = vpop.f32.mrb[26].mxu0 }
 0x11b   : > { %v1390_v14 = vadd.f32 %v1275_v53, %v1026_v9  ;;  %998 = vst.msk [vmem:[%s2322_s29 + $0x40] sm:$0xff] %vm561_vm2, %v966_v4  ;;  %v1029_v15 = vld [vmem:[%s2322_s29 + $0x38] sm:$0xff]  ;;  %v967_v16 = vadd.f32 %v866_v12, %v603_v11  ;;  %v1452_v18 = vld [vmem:[%s2322_s29 + $0x10] sm:$0xff]  ;;  %v1294_v22 = vpop.f32.mrb[27].mxu0 }
 0x11c   : > { %v1450_v19 = vld [vmem:[%s2322_s29] sm:$0xff]  ;;  %1424 = vst.msk [vmem:[%s2322_s29 + $0x30] sm:$0xff] %vm561_vm2, %v1392_v8  ;;  %v1393_v20 = vadd.f32 %v2029_v57, %v1029_v15  ;;  %1001 = vst.msk [vmem:[%s2322_s29 + $0x58] sm:$0xff] %vm561_vm2, %v969_v10  ;;  %v1027_v21 = vld [vmem:[%s2322_s29 + $0x28] sm:$0xff]  ;;  %v1555_v27 = vmul.f32 %v1452_v18, %v1452_v18  ;;  %v1485_v39 = vsel %vm561_vm2, %v1452_v18, 0.0 }
 0x11d   : > { %v1553_v23 = vmul.f32 %v1450_v19, %v1450_v19  ;;  %v1453_v24 = vld [vmem:[%s2322_s29 + $0x18] sm:$0xff]  ;;  %1422 = vst.msk [vmem:[%s2322_s29 + $0x20] sm:$0xff] %vm561_vm2, %v1390_v14  ;;  %v1391_v25 = vadd.f32 %v1278_v60, %v1027_v21  ;;  %999 = vst.msk [vmem:[%s2322_s29 + $0x48] sm:$0xff] %vm561_vm2, %v967_v16  ;;  %v1482_v28 = vsel %vm561_vm2, %v1450_v19, 0.0  ;;  %v612_v15 = vld [vmem:[%s2322_s29 + $0x90] sm:$0xff] }
 0x11e   : > { %v1451_v26 = vld [vmem:[%s2322_s29 + $0x8] sm:$0xff]  ;;  %1425 = vst.msk [vmem:[%s2322_s29 + $0x38] sm:$0xff] %vm561_vm2, %v1393_v20  ;;  %v1556_v33 = vmul.f32 %v1453_v24, %v1453_v24  ;;  %v1588_v54 = vsel %vm561_vm2, %v1555_v27, 0.0  ;;  %v1487_v55 = vsel %vm561_vm2, %v1453_v24, 0.0  ;;  %v610_v21 = vld [vmem:[%s2322_s29 + $0x80] sm:$0xff]  ;;  %v613_v27 = vld [vmem:[%s2322_s29 + $0x98] sm:$0xff] }
 0x11f   : > { %v1483_v29 = vsel %vm561_vm2, %v1451_v26, 0.0  ;;  %v1554_v30 = vmul.f32 %v1451_v26, %v1451_v26  ;;  %1423 = vst.msk [vmem:[%s2322_s29 + $0x28] sm:$0xff] %vm561_vm2, %v1391_v25  ;;  %v2002_v32 = vpop.f32.mrb[28].mxu1  ;;  %v1585_v40 = vsel %vm561_vm2, %v1553_v23, 0.0 }
 0x120   : > { %v1484_v34 = vadd.f32 %v1483_v29, %v1482_v28  ;;  %v972_v35 = vadd.f32 %v2002_v32, %v608_v31  ;;  %v879_v37 = vpop.f32.mrb[29].mxu1  ;;  %v2036_v45 = vpop.f32.mrb[28].mxu0  ;;  %v1590_v60 = vsel %vm561_vm2, %v1556_v33, 0.0 }
 0x121   : > { %v1586_v41 = vsel %vm561_vm2, %v1554_v30, 0.0  ;;  %v1032_v42 = vld [vmem:[%s2322_s29 + $0x50] sm:$0xff]  ;;  %v970_v43 = vadd.f32 %v879_v37, %v606_v36  ;;  %v2003_v44 = vpop.f32.mrb[30].mxu1  ;;  %v1307_v53 = vpop.f32.mrb[29].mxu0 }
 0x122   : > { %v1486_v46 = vadd.f32 %v1485_v39, %v1484_v34  ;;  %v1587_v47 = vadd.f32 %v1586_v41, %v1585_v40  ;;  %v1396_v48 = vadd.f32 %v2032_v7, %v1032_v42  ;;  %1004 = vst.msk [vmem:[%s2322_s29 + $0x70] sm:$0xff] %vm561_vm2, %v972_v35  ;;  %v1030_v49 = vld [vmem:[%s2322_s29 + $0x40] sm:$0xff]  ;;  %v973_v50 = vadd.f32 %v2003_v44, %v609_v38  ;;  %v882_v52 = vpop.f32.mrb[31].mxu1  ;;  %v2472_v59 = vpop.f32.mrb[30].mxu0  ;;  %v611_v35 = vld [vmem:[%s2322_s29 + $0x88] sm:$0xff] }
 0x123   : > { %v1394_v56 = vadd.f32 %v1291_v13, %v1030_v49  ;;  %1002 = vst.msk [vmem:[%s2322_s29 + $0x60] sm:$0xff] %vm561_vm2, %v970_v43  ;;  %v1033_v57 = vld [vmem:[%s2322_s29 + $0x58] sm:$0xff]  ;;  %v971_v58 = vadd.f32 %v882_v52, %v607_v51  ;;  %v1456_v62 = vld [vmem:[%s2322_s29 + $0x30] sm:$0xff]  ;;  %v1310_v2 = vpop.f32.mrb[31].mxu0 }
 0x124   : > { %v1589_v61 = vadd.f32 %v1588_v54, %v1587_v47  ;;  %v1454_v63 = vld [vmem:[%s2322_s29 + $0x20] sm:$0xff]  ;;  %v1488_v0 = vadd.f32 %v1487_v55, %v1486_v46  ;;  %1428 = vst.msk [vmem:[%s2322_s29 + $0x50] sm:$0xff] %vm561_vm2, %v1396_v48  ;;  %1005 = vst.msk [vmem:[%s2322_s29 + $0x78] sm:$0xff] %vm561_vm2, %v973_v50  ;;  %v1031_v1 = vld [vmem:[%s2322_s29 + $0x48] sm:$0xff]  ;;  %v1397_v6 = vadd.f32 %v2435_v17, %v1033_v57  ;;  %v1493_v23 = vsel %vm561_vm2, %v1456_v62, 0.0 }
 0x125   : > { %v1489_v3 = vsel %vm561_vm2, %v1454_v63, 0.0  ;;  %v1557_v4 = vmul.f32 %v1454_v63, %v1454_v63  ;;  %v1457_v5 = vld [vmem:[%s2322_s29 + $0x38] sm:$0xff]  ;;  %1426 = vst.msk [vmem:[%s2322_s29 + $0x40] sm:$0xff] %vm561_vm2, %v1394_v56  ;;  %v1395_v7 = vadd.f32 %v1294_v22, %v1031_v1  ;;  %1003 = vst.msk [vmem:[%s2322_s29 + $0x68] sm:$0xff] %vm561_vm2, %v971_v58  ;;  %v1559_v11 = vmul.f32 %v1456_v62, %v1456_v62 }
 0x126   : > { %v1490_v8 = vadd.f32 %v1489_v3, %v1488_v0  ;;  %v1591_v9 = vadd.f32 %v1590_v60, %v1589_v61  ;;  %v1455_v10 = vld [vmem:[%s2322_s29 + $0x28] sm:$0xff]  ;;  %1429 = vst.msk [vmem:[%s2322_s29 + $0x58] sm:$0xff] %vm561_vm2, %v1397_v6  ;;  %v1560_v18 = vmul.f32 %v1457_v5, %v1457_v5  ;;  %v1495_v39 = vsel %vm561_vm2, %v1457_v5, 0.0 }
 0x127   : > { %v1592_v12 = vsel %vm561_vm2, %v1557_v4, 0.0  ;;  %v1491_v13 = vsel %vm561_vm2, %v1455_v10, 0.0  ;;  %v1558_v14 = vmul.f32 %v1455_v10, %v1455_v10  ;;  %1427 = vst.msk [vmem:[%s2322_s29 + $0x48] sm:$0xff] %vm561_vm2, %v1395_v7  ;;  %v2006_v16 = vpop.f32.mrb[32].mxu1  ;;  %v1596_v38 = vsel %vm561_vm2, %v1559_v11, 0.0  ;;  %v614_v4 = vld [vmem:[%s2322_s29 + $0xa0] sm:$0xff] }
 0x128   : > { %v1593_v17 = vadd.f32 %v1592_v12, %v1591_v9  ;;  %v1492_v19 = vadd.f32 %v1491_v13, %v1490_v8  ;;  %v976_v20 = vadd.f32 %v2006_v16, %v612_v15  ;;  %v895_v22 = vpop.f32.mrb[33].mxu1  ;;  %v2040_v29 = vpop.f32.mrb[32].mxu0  ;;  %v1598_v44 = vsel %vm561_vm2, %v1560_v18, 0.0  ;;  %v617_v10 = vld [vmem:[%s2322_s29 + $0xb8] sm:$0xff]  ;;  %v615_v18 = vld [vmem:[%s2322_s29 + $0xa8] sm:$0xff] }
 0x129   : > { %v1594_v24 = vsel %vm561_vm2, %v1558_v14, 0.0  ;;  %v1036_v25 = vld [vmem:[%s2322_s29 + $0x70] sm:$0xff]  ;;  %v974_v26 = vadd.f32 %v895_v22, %v610_v21  ;;  %v2007_v28 = vpop.f32.mrb[34].mxu1  ;;  %v1323_v37 = vpop.f32.mrb[33].mxu0 }
 0x12a   : > { %v1494_v30 = vadd.f32 %v1493_v23, %v1492_v19  ;;  %v1595_v31 = vadd.f32 %v1594_v24, %v1593_v17  ;;  %v1400_v32 = vadd.f32 %v2036_v45, %v1036_v25  ;;  %1008 = vst.msk [vmem:[%s2322_s29 + $0x90] sm:$0xff] %vm561_vm2, %v976_v20  ;;  %v1034_v33 = vld [vmem:[%s2322_s29 + $0x60] sm:$0xff]  ;;  %v977_v34 = vadd.f32 %v2007_v28, %v613_v27  ;;  %v898_v36 = vpop.f32.mrb[35].mxu1  ;;  %v2041_v43 = vpop.f32.mrb[34].mxu0 }
 0x12b   : > { %v1398_v40 = vadd.f32 %v1307_v53, %v1034_v33  ;;  %1006 = vst.msk [vmem:[%s2322_s29 + $0x80] sm:$0xff] %vm561_vm2, %v974_v26  ;;  %v1037_v41 = vld [vmem:[%s2322_s29 + $0x78] sm:$0xff]  ;;  %v975_v42 = vadd.f32 %v898_v36, %v611_v35  ;;  %v1460_v46 = vld [vmem:[%s2322_s29 + $0x50] sm:$0xff]  ;;  %v1326_v50 = vpop.f32.mrb[35].mxu0 }
 0x12c   : > { %v1597_v45 = vadd.f32 %v1596_v38, %v1595_v31  ;;  %v1458_v47 = vld [vmem:[%s2322_s29 + $0x40] sm:$0xff]  ;;  %v1496_v48 = vadd.f32 %v1495_v39, %v1494_v30  ;;  %1432 = vst.msk [vmem:[%s2322_s29 + $0x70] sm:$0xff] %vm561_vm2, %v1400_v32  ;;  %1009 = vst.msk [vmem:[%s2322_s29 + $0x98] sm:$0xff] %vm561_vm2, %v977_v34  ;;  %v1035_v49 = vld [vmem:[%s2322_s29 + $0x68] sm:$0xff]  ;;  %v1401_v53 = vadd.f32 %v2472_v59, %v1037_v41  ;;  %v1501_v6 = vsel %vm561_vm2, %v1460_v46, 0.0 }
 0x12d   : > { %v1497_v51 = vsel %vm561_vm2, %v1458_v47, 0.0  ;;  %v1561_v52 = vmul.f32 %v1458_v47, %v1458_v47  ;;  %1430 = vst.msk [vmem:[%s2322_s29 + $0x60] sm:$0xff] %vm561_vm2, %v1398_v40  ;;  %v1399_v54 = vadd.f32 %v1310_v2, %v1035_v49  ;;  %1007 = vst.msk [vmem:[%s2322_s29 + $0x88] sm:$0xff] %vm561_vm2, %v975_v42  ;;  %v1461_v57 = vld [vmem:[%s2322_s29 + $0x58] sm:$0xff]  ;;  %v1563_v60 = vmul.f32 %v1460_v46, %v1460_v46  ;;  %v616_v59 = vld [vmem:[%s2322_s29 + $0xb0] sm:$0xff] }
 0x12e   : > { %v1498_v55 = vadd.f32 %v1497_v51, %v1496_v48  ;;  %v1599_v56 = vadd.f32 %v1598_v44, %v1597_v45  ;;  %v1459_v58 = vld [vmem:[%s2322_s29 + $0x48] sm:$0xff]  ;;  %1433 = vst.msk [vmem:[%s2322_s29 + $0x78] sm:$0xff] %vm561_vm2, %v1401_v53  ;;  %v1564_v7 = vmul.f32 %v1461_v57, %v1461_v57  ;;  %v1503_v21 = vsel %vm561_vm2, %v1461_v57, 0.0  ;;  %v620_v44 = vld [vmem:[%s2322_s29 + $0xd0] sm:$0xff]  ;;  %v621_v57 = vld [vmem:[%s2322_s29 + $0xd8] sm:$0xff] }
 0x12f   : > { %v1600_v61 = vsel %vm561_vm2, %v1561_v52, 0.0  ;;  %v1499_v62 = vsel %vm561_vm2, %v1459_v58, 0.0  ;;  %1431 = vst.msk [vmem:[%s2322_s29 + $0x68] sm:$0xff] %vm561_vm2, %v1399_v54  ;;  %v2010_v63 = vpop.f32.mrb[36].mxu1  ;;  %v1562_v2 = vmul.f32 %v1459_v58, %v1459_v58  ;;  %v1604_v27 = vsel %vm561_vm2, %v1563_v60, 0.0 }
 0x130   : > { %v1601_v0 = vadd.f32 %v1600_v61, %v1599_v56  ;;  %v1500_v1 = vadd.f32 %v1499_v62, %v1498_v55  ;;  %v980_v3 = vadd.f32 %v2010_v63, %v616_v59  ;;  %v911_v5 = vpop.f32.mrb[37].mxu1  ;;  %v2044_v12 = vpop.f32.mrb[36].mxu0  ;;  %v1606_v38 = vsel %vm561_vm2, %v1564_v7, 0.0 }
 0x131   : > { %v1040_v8 = vld [vmem:[%s2322_s29 + $0x90] sm:$0xff]  ;;  %v978_v9 = vadd.f32 %v911_v5, %v614_v4  ;;  %v2011_v11 = vpop.f32.mrb[38].mxu1  ;;  %v1602_v14 = vsel %vm561_vm2, %v1562_v2, 0.0  ;;  %v1339_v20 = vpop.f32.mrb[37].mxu0 }
 0x132   : > { %v1502_v13 = vadd.f32 %v1501_v6, %v1500_v1  ;;  %v1404_v15 = vadd.f32 %v2040_v29, %v1040_v8  ;;  %1012 = vst.msk [vmem:[%s2322_s29 + $0xb0] sm:$0xff] %vm561_vm2, %v980_v3  ;;  %v1038_v16 = vld [vmem:[%s2322_s29 + $0x80] sm:$0xff]  ;;  %v981_v17 = vadd.f32 %v2011_v11, %v617_v10  ;;  %v914_v19 = vpop.f32.mrb[39].mxu1  ;;  %v1603_v22 = vadd.f32 %v1602_v14, %v1601_v0  ;;  %v2045_v26 = vpop.f32.mrb[38].mxu0  ;;  %v619_v1 = vld [vmem:[%s2322_s29 + $0xc8] sm:$0xff] }
 0x133   : > { %v1402_v23 = vadd.f32 %v1323_v37, %v1038_v16  ;;  %1010 = vst.msk [vmem:[%s2322_s29 + $0xa0] sm:$0xff] %vm561_vm2, %v978_v9  ;;  %v1041_v24 = vld [vmem:[%s2322_s29 + $0x98] sm:$0xff]  ;;  %v979_v25 = vadd.f32 %v914_v19, %v615_v18  ;;  %v2554_v32 = vpop.f32.mrb[39].mxu0  ;;  %v1464_v34 = vld [vmem:[%s2322_s29 + $0x70] sm:$0xff] }
 0x134   : > { %v1462_v28 = vld [vmem:[%s2322_s29 + $0x60] sm:$0xff]  ;;  %v1504_v29 = vadd.f32 %v1503_v21, %v1502_v13  ;;  %1436 = vst.msk [vmem:[%s2322_s29 + $0x90] sm:$0xff] %vm561_vm2, %v1404_v15  ;;  %v1405_v30 = vadd.f32 %v2041_v43, %v1041_v24  ;;  %1013 = vst.msk [vmem:[%s2322_s29 + $0xb8] sm:$0xff] %vm561_vm2, %v981_v17  ;;  %v1039_v31 = vld [vmem:[%s2322_s29 + $0x88] sm:$0xff]  ;;  %v1605_v33 = vadd.f32 %v1604_v27, %v1603_v22  ;;  %v1509_v52 = vsel %vm561_vm2, %v1464_v34, 0.0 }
 0x135   : > { %v1505_v35 = vsel %vm561_vm2, %v1462_v28, 0.0  ;;  %v1565_v36 = vmul.f32 %v1462_v28, %v1462_v28  ;;  %1434 = vst.msk [vmem:[%s2322_s29 + $0x80] sm:$0xff] %vm561_vm2, %v1402_v23  ;;  %v1403_v37 = vadd.f32 %v1326_v50, %v1039_v31  ;;  %1011 = vst.msk [vmem:[%s2322_s29 + $0xa8] sm:$0xff] %vm561_vm2, %v979_v25  ;;  %v1465_v43 = vld [vmem:[%s2322_s29 + $0x78] sm:$0xff]  ;;  %v1567_v46 = vmul.f32 %v1464_v34, %v1464_v34  ;;  %v618_v50 = vld [vmem:[%s2322_s29 + $0xc0] sm:$0xff] }
 0x136   : > { %v1506_v39 = vadd.f32 %v1505_v35, %v1504_v29  ;;  %v1463_v40 = vld [vmem:[%s2322_s29 + $0x68] sm:$0xff]  ;;  %1437 = vst.msk [vmem:[%s2322_s29 + $0x98] sm:$0xff] %vm561_vm2, %v1405_v30  ;;  %v1607_v41 = vadd.f32 %v1606_v38, %v1605_v33  ;;  %v1568_v61 = vmul.f32 %v1465_v43, %v1465_v43  ;;  %v1511_v11 = vsel %vm561_vm2, %v1465_v43, 0.0  ;;  %v624_v29 = vld [vmem:[%s2322_s29 + $0xf0] sm:$0xff]  ;;  %v622_v35 = vld [vmem:[%s2322_s29 + $0xe0] sm:$0xff] }
 0x137   : > { %v1608_v42 = vsel %vm561_vm2, %v1565_v36, 0.0  ;;  %1435 = vst.msk [vmem:[%s2322_s29 + $0x88] sm:$0xff] %vm561_vm2, %v1403_v37  ;;  %v2014_v45 = vpop.f32.mrb[40].mxu1  ;;  %v1507_v47 = vsel %vm561_vm2, %v1463_v40, 0.0  ;;  %v1566_v48 = vmul.f32 %v1463_v40, %v1463_v40  ;;  %v1612_v10 = vsel %vm561_vm2, %v1567_v46, 0.0 }
 0x138   : > { %v984_v49 = vadd.f32 %v2014_v45, %v620_v44  ;;  %v927_v51 = vpop.f32.mrb[41].mxu1  ;;  %v1609_v53 = vadd.f32 %v1608_v42, %v1607_v41  ;;  %v1508_v54 = vadd.f32 %v1507_v47, %v1506_v39  ;;  %v2048_v60 = vpop.f32.mrb[40].mxu0  ;;  %v1614_v21 = vsel %vm561_vm2, %v1568_v61, 0.0  ;;  %v625_v41 = vld [vmem:[%s2322_s29 + $0xf8] sm:$0xff] }
 0x139   : > { %v1044_v55 = vld [vmem:[%s2322_s29 + $0xb0] sm:$0xff]  ;;  %v982_v56 = vadd.f32 %v927_v51, %v618_v50  ;;  %v2015_v58 = vpop.f32.mrb[42].mxu1  ;;  %v1610_v62 = vsel %vm561_vm2, %v1566_v48, 0.0  ;;  %v1355_v3 = vpop.f32.mrb[41].mxu0 }
 0x13a   : > { %v1408_v59 = vadd.f32 %v2044_v12, %v1044_v55  ;;  %1016 = vst.msk [vmem:[%s2322_s29 + $0xd0] sm:$0xff] %vm561_vm2, %v984_v49  ;;  %v1042_v63 = vld [vmem:[%s2322_s29 + $0xa0] sm:$0xff]  ;;  %v985_v0 = vadd.f32 %v2015_v58, %v621_v57  ;;  %v930_v2 = vpop.f32.mrb[43].mxu1  ;;  %v1510_v4 = vadd.f32 %v1509_v52, %v1508_v54  ;;  %v1611_v5 = vadd.f32 %v1610_v62, %v1609_v53  ;;  %v2049_v9 = vpop.f32.mrb[42].mxu0  ;;  %v623_v49 = vld [vmem:[%s2322_s29 + $0xe8] sm:$0xff] }
 0x13b   : > { %v1406_v6 = vadd.f32 %v1339_v20, %v1042_v63  ;;  %1014 = vst.msk [vmem:[%s2322_s29 + $0xc0] sm:$0xff] %vm561_vm2, %v982_v56  ;;  %v1045_v7 = vld [vmem:[%s2322_s29 + $0xb8] sm:$0xff]  ;;  %v983_v8 = vadd.f32 %v930_v2, %v619_v1  ;;  %v2592_v15 = vpop.f32.mrb[43].mxu0  ;;  %v1468_v17 = vld [vmem:[%s2322_s29 + $0x90] sm:$0xff] }
 0x13c   : > { %v1466_v12 = vld [vmem:[%s2322_s29 + $0x80] sm:$0xff]  ;;  %1440 = vst.msk [vmem:[%s2322_s29 + $0xb0] sm:$0xff] %vm561_vm2, %v1408_v59  ;;  %v1409_v13 = vadd.f32 %v2045_v26, %v1045_v7  ;;  %1017 = vst.msk [vmem:[%s2322_s29 + $0xd8] sm:$0xff] %vm561_vm2, %v985_v0  ;;  %v1043_v14 = vld [vmem:[%s2322_s29 + $0xa8] sm:$0xff]  ;;  %v1613_v16 = vadd.f32 %v1612_v10, %v1611_v5  ;;  %v1512_v18 = vadd.f32 %v1511_v11, %v1510_v4  ;;  %v1517_v36 = vsel %vm561_vm2, %v1468_v17, 0.0 }
 0x13d   : > { %v1513_v19 = vsel %vm561_vm2, %v1466_v12, 0.0  ;;  %v1569_v20 = vmul.f32 %v1466_v12, %v1466_v12  ;;  %1438 = vst.msk [vmem:[%s2322_s29 + $0xa0] sm:$0xff] %vm561_vm2, %v1406_v6  ;;  %1015 = vst.msk [vmem:[%s2322_s29 + $0xc8] sm:$0xff] %vm561_vm2, %v983_v8  ;;  %v1407_v23 = vadd.f32 %v2554_v32, %v1043_v14  ;;  %v1469_v27 = vld [vmem:[%s2322_s29 + $0x98] sm:$0xff]  ;;  %v1571_v31 = vmul.f32 %v1468_v17, %v1468_v17 }
 0x13e   : > { %v1467_v22 = vld [vmem:[%s2322_s29 + $0x88] sm:$0xff]  ;;  %1441 = vst.msk [vmem:[%s2322_s29 + $0xb8] sm:$0xff] %vm561_vm2, %v1409_v13  ;;  %v1514_v24 = vadd.f32 %v1513_v19, %v1512_v18  ;;  %v1615_v25 = vadd.f32 %v1614_v21, %v1613_v16  ;;  %v1572_v44 = vmul.f32 %v1469_v27, %v1469_v27 }
 0x13f   : > { %v1616_v26 = vsel %vm561_vm2, %v1569_v20, 0.0  ;;  %v1515_v28 = vsel %vm561_vm2, %v1467_v22, 0.0  ;;  %v2018_v30 = vpop.f32.mrb[44].mxu1  ;;  %v1570_v33 = vmul.f32 %v1467_v22, %v1467_v22  ;;  %1439 = vst.msk [vmem:[%s2322_s29 + $0xa8] sm:$0xff] %vm561_vm2, %v1407_v23  ;;  %v1620_v58 = vsel %vm561_vm2, %v1571_v31, 0.0 }
 0x140   : > { %v988_v34 = vadd.f32 %v2018_v30, %v624_v29  ;;  %v943_v32 = vpop.f32.mrb[45].mxu1  ;;  %v1617_v37 = vadd.f32 %v1616_v26, %v1615_v25  ;;  %v1516_v38 = vadd.f32 %v1515_v28, %v1514_v24  ;;  %v2052_v43 = vpop.f32.mrb[44].mxu0  ;;  %v1622_v5 = vsel %vm561_vm2, %v1572_v44, 0.0 }
 0x141   : > { %v1048_v39 = vld [vmem:[%s2322_s29 + $0xd0] sm:$0xff]  ;;  %v986_v40 = vadd.f32 %v943_v32, %v622_v35  ;;  %v2019_v42 = vpop.f32.mrb[46].mxu1  ;;  %v1618_v45 = vsel %vm561_vm2, %v1570_v33, 0.0  ;;  %v1371_v51 = vpop.f32.mrb[45].mxu0 }
 0x142   : > { %v1412_v46 = vadd.f32 %v2048_v60, %v1048_v39  ;;  %1020 = vst.msk [vmem:[%s2322_s29 + $0xf0] sm:$0xff] %vm561_vm2, %v988_v34  ;;  %v1046_v47 = vld [vmem:[%s2322_s29 + $0xc0] sm:$0xff]  ;;  %v989_v48 = vadd.f32 %v2019_v42, %v625_v41  ;;  %v946_v50 = vpop.f32.mrb[47].mxu1  ;;  %v1518_v52 = vadd.f32 %v1517_v36, %v1516_v38  ;;  %v1619_v53 = vadd.f32 %v1618_v45, %v1617_v37  ;;  %v2053_v57 = vpop.f32.mrb[46].mxu0 }
 0x143   : > { %v1410_v54 = vadd.f32 %v1355_v3, %v1046_v47  ;;  %1018 = vst.msk [vmem:[%s2322_s29 + $0xe0] sm:$0xff] %vm561_vm2, %v986_v40  ;;  %v1049_v55 = vld [vmem:[%s2322_s29 + $0xd8] sm:$0xff]  ;;  %v987_v56 = vadd.f32 %v946_v50, %v623_v49  ;;  %v1519_v60 = vsel %vm561_vm2, %v1469_v27, 0.0  ;;  %v1374_v63 = vpop.f32.mrb[47].mxu0  ;;  %v1472_v1 = vld [vmem:[%s2322_s29 + $0xb0] sm:$0xff] }
 0x144   : > { %v1470_v61 = vld [vmem:[%s2322_s29 + $0xa0] sm:$0xff]  ;;  %1444 = vst.msk [vmem:[%s2322_s29 + $0xd0] sm:$0xff] %vm561_vm2, %v1412_v46  ;;  %v1413_v62 = vadd.f32 %v2049_v9, %v1049_v55  ;;  %1021 = vst.msk [vmem:[%s2322_s29 + $0xf8] sm:$0xff] %vm561_vm2, %v989_v48  ;;  %v1047_v59 = vld [vmem:[%s2322_s29 + $0xc8] sm:$0xff]  ;;  %v1621_v0 = vadd.f32 %v1620_v58, %v1619_v53  ;;  %v1520_v2 = vadd.f32 %v1519_v60, %v1518_v52  ;;  %v1525_v18 = vsel %vm561_vm2, %v1472_v1, 0.0 }
 0x145   : > { %v1521_v3 = vsel %vm561_vm2, %v1470_v61, 0.0  ;;  %v1573_v4 = vmul.f32 %v1470_v61, %v1470_v61  ;;  %1442 = vst.msk [vmem:[%s2322_s29 + $0xc0] sm:$0xff] %vm561_vm2, %v1410_v54  ;;  %1019 = vst.msk [vmem:[%s2322_s29 + $0xe8] sm:$0xff] %vm561_vm2, %v987_v56  ;;  %v1411_v6 = vadd.f32 %v2592_v15, %v1047_v59  ;;  %v1473_v10 = vld [vmem:[%s2322_s29 + $0xb8] sm:$0xff]  ;;  %v1575_v12 = vmul.f32 %v1472_v1, %v1472_v1 }
 0x146   : > { %1445 = vst.msk [vmem:[%s2322_s29 + $0xd8] sm:$0xff] %vm561_vm2, %v1413_v62  ;;  %v1522_v7 = vadd.f32 %v1521_v3, %v1520_v2  ;;  %v1623_v8 = vadd.f32 %v1622_v5, %v1621_v0  ;;  %v1471_v11 = vld [vmem:[%s2322_s29 + $0xa8] sm:$0xff]  ;;  %v1576_v19 = vmul.f32 %v1473_v10, %v1473_v10  ;;  %v1527_v28 = vsel %vm561_vm2, %v1473_v10, 0.0 }
 0x147   : > { %v1624_v9 = vsel %vm561_vm2, %v1573_v4, 0.0  ;;  %v1523_v13 = vsel %vm561_vm2, %v1471_v11, 0.0  ;;  %v1574_v14 = vmul.f32 %v1471_v11, %v1471_v11  ;;  %1443 = vst.msk [vmem:[%s2322_s29 + $0xc8] sm:$0xff] %vm561_vm2, %v1411_v6  ;;  %v1628_v27 = vsel %vm561_vm2, %v1575_v12, 0.0 }
 0x148   : > { %v1625_v16 = vadd.f32 %v1624_v9, %v1623_v8  ;;  %v1524_v17 = vadd.f32 %v1523_v13, %v1522_v7  ;;  %v1630_v37 = vsel %vm561_vm2, %v1576_v19, 0.0 }
 0x149   : > { %v1052_v15 = vld [vmem:[%s2322_s29 + $0xf0] sm:$0xff]  ;;  %v1626_v20 = vsel %vm561_vm2, %v1574_v14, 0.0 }
 0x14a   : > { %v1416_v21 = vadd.f32 %v2052_v43, %v1052_v15  ;;  %v1050_v22 = vld [vmem:[%s2322_s29 + $0xe0] sm:$0xff]  ;;  %v1526_v23 = vadd.f32 %v1525_v18, %v1524_v17  ;;  %v1627_v24 = vadd.f32 %v1626_v20, %v1625_v16 }
 0x14b   : > { %v1414_v25 = vadd.f32 %v1371_v51, %v1050_v22  ;;  %v1053_v26 = vld [vmem:[%s2322_s29 + $0xf8] sm:$0xff]  ;;  %v1476_v34 = vld [vmem:[%s2322_s29 + $0xd0] sm:$0xff] }
 0x14c   : > { %v1474_v29 = vld [vmem:[%s2322_s29 + $0xc0] sm:$0xff]  ;;  %1448 = vst.msk [vmem:[%s2322_s29 + $0xf0] sm:$0xff] %vm561_vm2, %v1416_v21  ;;  %v1417_v30 = vadd.f32 %v2053_v57, %v1053_v26  ;;  %v1051_v31 = vld [vmem:[%s2322_s29 + $0xe8] sm:$0xff]  ;;  %v1629_v33 = vadd.f32 %v1628_v27, %v1627_v24  ;;  %v1528_v35 = vadd.f32 %v1527_v28, %v1526_v23  ;;  %v1579_v44 = vmul.f32 %v1476_v34, %v1476_v34 }
 0x14d   : > { %v1529_v32 = vsel %vm561_vm2, %v1474_v29, 0.0  ;;  %v1577_v36 = vmul.f32 %v1474_v29, %v1474_v29  ;;  %1446 = vst.msk [vmem:[%s2322_s29 + $0xe0] sm:$0xff] %vm561_vm2, %v1414_v25  ;;  %v1415_v38 = vadd.f32 %v1374_v63, %v1051_v31  ;;  %v1477_v42 = vld [vmem:[%s2322_s29 + $0xd8] sm:$0xff]  ;;  %v1533_v49 = vsel %vm561_vm2, %v1476_v34, 0.0 }
 0x14e   : > { %1449 = vst.msk [vmem:[%s2322_s29 + $0xf8] sm:$0xff] %vm561_vm2, %v1417_v30  ;;  %v1530_v39 = vadd.f32 %v1529_v32, %v1528_v35  ;;  %v1631_v40 = vadd.f32 %v1630_v37, %v1629_v33  ;;  %v1475_v43 = vld [vmem:[%s2322_s29 + $0xc8] sm:$0xff]  ;;  %v1580_v50 = vmul.f32 %v1477_v42, %v1477_v42  ;;  %v1636_v54 = vsel %vm561_vm2, %v1579_v44, 0.0 }
 0x14f   : > { %v1632_v41 = vsel %vm561_vm2, %v1577_v36, 0.0  ;;  %v1531_v45 = vsel %vm561_vm2, %v1475_v43, 0.0  ;;  %v1578_v46 = vmul.f32 %v1475_v43, %v1475_v43  ;;  %1447 = vst.msk [vmem:[%s2322_s29 + $0xe8] sm:$0xff] %vm561_vm2, %v1415_v38  ;;  %v1535_v55 = vsel %vm561_vm2, %v1477_v42, 0.0 }
 0x150   : > { %v1633_v47 = vadd.f32 %v1632_v41, %v1631_v40  ;;  %v1532_v48 = vadd.f32 %v1531_v45, %v1530_v39  ;;  %v1638_v59 = vsel %vm561_vm2, %v1580_v50, 0.0 }
 0x151   : > { %v1634_v51 = vsel %vm561_vm2, %v1578_v46, 0.0 }
 0x152   : > { %v1534_v52 = vadd.f32 %v1533_v49, %v1532_v48  ;;  %v1635_v53 = vadd.f32 %v1634_v51, %v1633_v47 }
 0x153   : > { %v1480_v58 = vld [vmem:[%s2322_s29 + $0xf0] sm:$0xff] }
 0x154   : > { %v1478_v56 = vld [vmem:[%s2322_s29 + $0xe0] sm:$0xff]  ;;  %v1637_v57 = vadd.f32 %v1636_v54, %v1635_v53  ;;  %v1536_v60 = vadd.f32 %v1535_v55, %v1534_v52  ;;  %v1583_v4 = vmul.f32 %v1480_v58, %v1480_v58  ;;  %v1541_v9 = vsel %vm561_vm2, %v1480_v58, 0.0 }
 0x155   : > { %v1537_v61 = vsel %vm561_vm2, %v1478_v56, 0.0  ;;  %v1581_v62 = vmul.f32 %v1478_v56, %v1478_v56  ;;  %v1481_v2 = vld [vmem:[%s2322_s29 + $0xf8] sm:$0xff] }
 0x156   : > { %v1538_v63 = vadd.f32 %v1537_v61, %v1536_v60  ;;  %v1639_v0 = vadd.f32 %v1638_v59, %v1637_v57  ;;  %v1479_v3 = vld [vmem:[%s2322_s29 + $0xe8] sm:$0xff]  ;;  %v1584_v10 = vmul.f32 %v1481_v2, %v1481_v2  ;;  %v1644_v14 = vsel %vm561_vm2, %v1583_v4, 0.0 }
 0x157   : > { %v1640_v1 = vsel %vm561_vm2, %v1581_v62, 0.0  ;;  %v1539_v5 = vsel %vm561_vm2, %v1479_v3, 0.0  ;;  %v1582_v6 = vmul.f32 %v1479_v3, %v1479_v3  ;;  %v1543_v16 = vsel %vm561_vm2, %v1481_v2, 0.0 }
 0x158   : > { %v1641_v7 = vadd.f32 %v1640_v1, %v1639_v0  ;;  %v1540_v8 = vadd.f32 %v1539_v5, %v1538_v63  ;;  %v1646_v18 = vsel %vm561_vm2, %v1584_v10, 0.0 }
 0x159   : > { %v1642_v11 = vsel %vm561_vm2, %v1582_v6, 0.0 }
 0x15a   : > { %v1542_v12 = vadd.f32 %v1541_v9, %v1540_v8  ;;  %v1643_v13 = vadd.f32 %v1642_v11, %v1641_v7 }
 0x15c   : > { %v1544_v17 = vadd.f32 %v1543_v16, %v1542_v12  ;;  %v1645_v15 = vadd.f32 %v1644_v14, %v1643_v13 }
 0x15e   : > { %v1545_v19 = vrot.slane %v1544_v17, 4  ;;  %v1647_v20 = vadd.f32 %v1646_v18, %v1645_v15 }
 0x160   : > { %v1546_v21 = vadd.f32 %v1545_v19, %v1544_v17  ;;  %v1648_v22 = vrot.slane %v1647_v20, 4 }
 0x162   : > { %v1547_v23 = vrot.slane %v1546_v21, 2  ;;  %v1649_v24 = vadd.f32 %v1648_v22, %v1647_v20 }
 0x164   : > { %v1548_v25 = vadd.f32 %v1547_v23, %v1546_v21  ;;  %v1650_v26 = vrot.slane %v1649_v24, 2 }
 0x166   : > { %v1549_v27 = vrot.slane %v1548_v25, 1  ;;  %v1651_v28 = vadd.f32 %v1650_v26, %v1649_v24 }
 0x168   : > { %v1550_v29 = vadd.f32 %v1549_v27, %v1548_v25  ;;  %v1652_v30 = vrot.slane %v1651_v28, 1 }
 0x16a   : > { %1552 = vst.msk [vmem:[%s226_s6] sm:$0x1] %vm1551_vm3, %v1550_v29  ;;  %v1653_v31 = vadd.f32 %v1652_v30, %v1651_v28 }
 0x16c   : > { %1654 = vst.msk [vmem:[%s226_s6 + $0x1] sm:$0x1] %vm1551_vm3, %v1653_v31 }
 0x16d PF: > { %s14_s14 = sadd.s32 1, %s2158_s14   ;;  %s2705_s12 = smov %s2154_s13 }
 0x16e   : > { %p11_p5 = scmp.ge.s32.totalorder %s14_s14, 4   ;;  %s2706_s13 = smov %s2708_s15 }
 0x170   :  { %13 = sbr.rel (!%p11_p5) target bundleno = 2 (0x2), region = 72 }

// kernel: vae_cnn_forward.9
= control target key start
LH: loop header
LB: loop body
LE: loop exit
PB: predicated region body
PF: predicated region fallthrough
CT: control target
= control target key end

     0   :  { %s554_s12 = smov 0   ;;  %s556_s13 = smov 0   ;;  %s729_s0 = inlined_call_operand.vmem [shape: f32[2,256,128], index: 0, kind: input, shape index: {}]   ;;  %s730_s1 = inlined_call_operand.vmem [shape: f32[1,128], index: 1, kind: input, shape index: {}]   ;;  %s731_s2 = inlined_call_operand.vmem [shape: f32[1,128], index: 2, kind: input, shape index: {}]   ;;  %s732_s3 = inlined_call_operand.vmem [shape: f32[2,256,128], index: 3, kind: output, shape index: {}]  }
   0x1   :  { %s558_s14 = smov 0  }
   0x2 LB: > { %s25_s15 = sadd.s32 1, %s528_s13  ;;  %p475_p0 = scmp.ge.s32.totalorder %s532_s14, 1  ;;  %s532_s14 = sphi %s558_s14, %s13_s14   ;;  %s528_s13 = sphi %s556_s13, %s734_s13   ;;  %s524_s12 = sphi %s554_s12, %s733_s12  }
   0x3   : > { %p27_p1 = scmp.ge.s32.totalorder %s25_s15, 2  ;;  %p158_p2 = scmp.lt.s32.totalorder %s532_s14, 3 }
   0x5   : > { %s736_s15 = smov (%p27_p1, %s25_s15), 0  ;;  %p159_p3 = pnand %p475_p0, %p158_p2 }
   0x6   : > { %p191_p4 = scmp.lt.s32.totalorder (!%p159_p3), %s524_s12, 1  ;;  %v575_v0 = vld [vmem:[%s730_s1] ss:$0 sm:$0xff] (!%p159_p3) }
   0x7   : > { %162 = sbr.rel (%p159_p3) target bundleno = 47 (0x2f), region = 32  ;;  %v585_v1 = vld [vmem:[%s731_s2] ss:$0 sm:$0xff] (!%p159_p3) }
   0xe   : > { %s738_s12 = smov (!%p191_p4, %s524_s12), 1 }
   0xf   : > { %s484_s16 = sshll.u32 %s738_s12, 8 }
  0x10   : > { %s580_s21 = scalar_lea.vmem %s729_s0, %s484_s16  ;;  %s608_s26 = scalar_lea.vmem %s732_s3, %s484_s16 }
  0x11   : > { %v210_v2 = vld [vmem:[%s580_s21] sm:$0xff]  ;;  %v211_v3 = vld [vmem:[%s580_s21 + $0x8] sm:$0xff]  ;;  %v212_v4 = vld [vmem:[%s580_s21 + $0x10] sm:$0xff] }
  0x12   : > { %v249_v5 = vmul.f32 %v575_v0, %v210_v2  ;;  %v250_v6 = vmul.f32 %v575_v0, %v211_v3  ;;  %v251_v7 = vmul.f32 %v575_v0, %v212_v4  ;;  %v213_v8 = vld [vmem:[%s580_s21 + $0x18] sm:$0xff]  ;;  %v214_v9 = vld [vmem:[%s580_s21 + $0x20] sm:$0xff]  ;;  %v215_v10 = vld [vmem:[%s580_s21 + $0x28] sm:$0xff] }
  0x13   : > { %v252_v11 = vmul.f32 %v575_v0, %v213_v8  ;;  %v253_v12 = vmul.f32 %v575_v0, %v214_v9  ;;  %v254_v13 = vmul.f32 %v575_v0, %v215_v10  ;;  %v216_v14 = vld [vmem:[%s580_s21 + $0x30] sm:$0xff]  ;;  %v217_v15 = vld [vmem:[%s580_s21 + $0x38] sm:$0xff]  ;;  %v218_v24 = vld [vmem:[%s580_s21 + $0x40] sm:$0xff] }
  0x14   : > { %v288_v16 = vadd.f32 %v585_v1, %v249_v5  ;;  %v289_v17 = vadd.f32 %v585_v1, %v250_v6  ;;  %v290_v18 = vadd.f32 %v585_v1, %v251_v7  ;;  %v255_v19 = vmul.f32 %v575_v0, %v216_v14  ;;  %v219_v25 = vld [vmem:[%s580_s21 + $0x48] sm:$0xff]  ;;  %v220_v26 = vld [vmem:[%s580_s21 + $0x50] sm:$0xff]  ;;  %v221_v31 = vld [vmem:[%s580_s21 + $0x58] sm:$0xff] }
  0x15   : > { %v291_v20 = vadd.f32 %v585_v1, %v252_v11  ;;  %v292_v21 = vadd.f32 %v585_v1, %v253_v12  ;;  %v293_v22 = vadd.f32 %v585_v1, %v254_v13  ;;  %v256_v23 = vmul.f32 %v575_v0, %v217_v15  ;;  %v222_v32 = vld [vmem:[%s580_s21 + $0x60] sm:$0xff]  ;;  %v223_v33 = vld [vmem:[%s580_s21 + $0x68] sm:$0xff]  ;;  %v224_v38 = vld [vmem:[%s580_s21 + $0x70] sm:$0xff] }
  0x16   : > { %v320_v27 = vmax.f32 %v288_v16, 0.0  ;;  %v321_v28 = vmax.f32 %v289_v17, 0.0  ;;  %v322_v29 = vmax.f32 %v290_v18, 0.0  ;;  %v294_v30 = vadd.f32 %v585_v1, %v255_v19  ;;  %v225_v43 = vld [vmem:[%s580_s21 + $0x78] sm:$0xff]  ;;  %v226_v56 = vld [vmem:[%s580_s21 + $0x80] sm:$0xff]  ;;  %v227_v57 = vld [vmem:[%s580_s21 + $0x88] sm:$0xff] }
  0x17   : > { %v323_v34 = vmax.f32 %v291_v20, 0.0  ;;  %v324_v35 = vmax.f32 %v292_v21, 0.0  ;;  %v325_v36 = vmax.f32 %v293_v22, 0.0  ;;  %v295_v37 = vadd.f32 %v585_v1, %v256_v23  ;;  %v228_v58 = vld [vmem:[%s580_s21 + $0x90] sm:$0xff]  ;;  %v229_v63 = vld [vmem:[%s580_s21 + $0x98] sm:$0xff]  ;;  %v230_v2 = vld [vmem:[%s580_s21 + $0xa0] sm:$0xff] }
  0x18   : > { %352 = vst [vmem:[%s608_s26] sm:$0xff] %v320_v27  ;;  %353 = vst [vmem:[%s608_s26 + $0x8] sm:$0xff] %v321_v28  ;;  %v326_v39 = vmax.f32 %v294_v30, 0.0  ;;  %v257_v40 = vmul.f32 %v575_v0, %v218_v24  ;;  %v258_v41 = vmul.f32 %v575_v0, %v219_v25  ;;  %v259_v42 = vmul.f32 %v575_v0, %v220_v26  ;;  %v231_v3 = vld [vmem:[%s580_s21 + $0xa8] sm:$0xff]  ;;  %v232_v8 = vld [vmem:[%s580_s21 + $0xb0] sm:$0xff] }
  0x19   : > { %354 = vst [vmem:[%s608_s26 + $0x10] sm:$0xff] %v322_v29  ;;  %355 = vst [vmem:[%s608_s26 + $0x18] sm:$0xff] %v323_v34  ;;  %v327_v44 = vmax.f32 %v295_v37, 0.0  ;;  %v260_v45 = vmul.f32 %v575_v0, %v221_v31  ;;  %v261_v46 = vmul.f32 %v575_v0, %v222_v32  ;;  %v262_v47 = vmul.f32 %v575_v0, %v223_v33  ;;  %v233_v13 = vld [vmem:[%s580_s21 + $0xb8] sm:$0xff]  ;;  %v234_v26 = vld [vmem:[%s580_s21 + $0xc0] sm:$0xff] }
  0x1a   : > { %356 = vst [vmem:[%s608_s26 + $0x20] sm:$0xff] %v324_v35  ;;  %357 = vst [vmem:[%s608_s26 + $0x28] sm:$0xff] %v325_v36  ;;  %v296_v48 = vadd.f32 %v585_v1, %v257_v40  ;;  %v297_v49 = vadd.f32 %v585_v1, %v258_v41  ;;  %v298_v50 = vadd.f32 %v585_v1, %v259_v42  ;;  %v235_v27 = vld [vmem:[%s580_s21 + $0xc8] sm:$0xff]  ;;  %v236_v28 = vld [vmem:[%s580_s21 + $0xd0] sm:$0xff] }
  0x1b   : > { %358 = vst [vmem:[%s608_s26 + $0x30] sm:$0xff] %v326_v39  ;;  %v263_v51 = vmul.f32 %v575_v0, %v224_v38  ;;  %359 = vst [vmem:[%s608_s26 + $0x38] sm:$0xff] %v327_v44  ;;  %v299_v52 = vadd.f32 %v585_v1, %v260_v45  ;;  %v300_v53 = vadd.f32 %v585_v1, %v261_v46  ;;  %v237_v33 = vld [vmem:[%s580_s21 + $0xd8] sm:$0xff]  ;;  %v238_v34 = vld [vmem:[%s580_s21 + $0xe0] sm:$0xff] }
  0x1c   : > { %v301_v54 = vadd.f32 %v585_v1, %v262_v47  ;;  %v264_v55 = vmul.f32 %v575_v0, %v225_v43  ;;  %v328_v59 = vmax.f32 %v296_v48, 0.0  ;;  %v329_v60 = vmax.f32 %v297_v49, 0.0  ;;  %v239_v35 = vld [vmem:[%s580_s21 + $0xe8] sm:$0xff]  ;;  %v240_v40 = vld [vmem:[%s580_s21 + $0xf0] sm:$0xff]  ;;  %v241_v45 = vld [vmem:[%s580_s21 + $0xf8] sm:$0xff] }
  0x1d   : > { %v330_v61 = vmax.f32 %v298_v50, 0.0  ;;  %v302_v62 = vadd.f32 %v585_v1, %v263_v51  ;;  %v331_v4 = vmax.f32 %v299_v52, 0.0  ;;  %v332_v5 = vmax.f32 %v300_v53, 0.0 }
  0x1e   : > { %v333_v6 = vmax.f32 %v301_v54, 0.0  ;;  %v303_v7 = vadd.f32 %v585_v1, %v264_v55  ;;  %360 = vst [vmem:[%s608_s26 + $0x40] sm:$0xff] %v328_v59  ;;  %361 = vst [vmem:[%s608_s26 + $0x48] sm:$0xff] %v329_v60  ;;  %v265_v10 = vmul.f32 %v575_v0, %v226_v56  ;;  %v266_v11 = vmul.f32 %v575_v0, %v227_v57 }
  0x1f   : > { %362 = vst [vmem:[%s608_s26 + $0x50] sm:$0xff] %v330_v61  ;;  %v334_v9 = vmax.f32 %v302_v62, 0.0  ;;  %v267_v12 = vmul.f32 %v575_v0, %v228_v58  ;;  %363 = vst [vmem:[%s608_s26 + $0x58] sm:$0xff] %v331_v4  ;;  %v268_v15 = vmul.f32 %v575_v0, %v229_v63  ;;  %v269_v16 = vmul.f32 %v575_v0, %v230_v2 }
  0x20   : > { %364 = vst [vmem:[%s608_s26 + $0x60] sm:$0xff] %v332_v5  ;;  %365 = vst [vmem:[%s608_s26 + $0x68] sm:$0xff] %v333_v6  ;;  %v335_v14 = vmax.f32 %v303_v7, 0.0  ;;  %v270_v17 = vmul.f32 %v575_v0, %v231_v3  ;;  %v304_v18 = vadd.f32 %v585_v1, %v265_v10  ;;  %v305_v19 = vadd.f32 %v585_v1, %v266_v11 }
  0x21   : > { %366 = vst [vmem:[%s608_s26 + $0x70] sm:$0xff] %v334_v9  ;;  %v306_v20 = vadd.f32 %v585_v1, %v267_v12  ;;  %v271_v21 = vmul.f32 %v575_v0, %v232_v8  ;;  %v307_v22 = vadd.f32 %v585_v1, %v268_v15  ;;  %v308_v23 = vadd.f32 %v585_v1, %v269_v16 }
  0x22   : > { %367 = vst [vmem:[%s608_s26 + $0x78] sm:$0xff] %v335_v14  ;;  %v309_v24 = vadd.f32 %v585_v1, %v270_v17  ;;  %v272_v25 = vmul.f32 %v575_v0, %v233_v13  ;;  %v336_v29 = vmax.f32 %v304_v18, 0.0  ;;  %v337_v30 = vmax.f32 %v305_v19, 0.0 }
  0x23   : > { %v338_v31 = vmax.f32 %v306_v20, 0.0  ;;  %v310_v32 = vadd.f32 %v585_v1, %v271_v21  ;;  %v339_v36 = vmax.f32 %v307_v22, 0.0  ;;  %v340_v37 = vmax.f32 %v308_v23, 0.0 }
  0x24   : > { %v341_v38 = vmax.f32 %v309_v24, 0.0  ;;  %v311_v39 = vadd.f32 %v585_v1, %v272_v25  ;;  %368 = vst [vmem:[%s608_s26 + $0x80] sm:$0xff] %v336_v29  ;;  %369 = vst [vmem:[%s608_s26 + $0x88] sm:$0xff] %v337_v30  ;;  %v273_v42 = vmul.f32 %v575_v0, %v234_v26  ;;  %v274_v43 = vmul.f32 %v575_v0, %v235_v27 }
  0x25   : > { %370 = vst [vmem:[%s608_s26 + $0x90] sm:$0xff] %v338_v31  ;;  %v342_v41 = vmax.f32 %v310_v32, 0.0  ;;  %v275_v44 = vmul.f32 %v575_v0, %v236_v28  ;;  %371 = vst [vmem:[%s608_s26 + $0x98] sm:$0xff] %v339_v36  ;;  %v276_v47 = vmul.f32 %v575_v0, %v237_v33  ;;  %v277_v48 = vmul.f32 %v575_v0, %v238_v34 }
  0x26   : > { %372 = vst [vmem:[%s608_s26 + $0xa0] sm:$0xff] %v340_v37  ;;  %373 = vst [vmem:[%s608_s26 + $0xa8] sm:$0xff] %v341_v38  ;;  %v343_v46 = vmax.f32 %v311_v39, 0.0  ;;  %v278_v49 = vmul.f32 %v575_v0, %v239_v35  ;;  %v312_v50 = vadd.f32 %v585_v1, %v273_v42  ;;  %v313_v51 = vadd.f32 %v585_v1, %v274_v43 }
  0x27   : > { %374 = vst [vmem:[%s608_s26 + $0xb0] sm:$0xff] %v342_v41  ;;  %v314_v52 = vadd.f32 %v585_v1, %v275_v44  ;;  %v279_v53 = vmul.f32 %v575_v0, %v240_v40  ;;  %v315_v54 = vadd.f32 %v585_v1, %v276_v47  ;;  %v316_v55 = vadd.f32 %v585_v1, %v277_v48 }
  0x28   : > { %375 = vst [vmem:[%s608_s26 + $0xb8] sm:$0xff] %v343_v46  ;;  %v317_v56 = vadd.f32 %v585_v1, %v278_v49  ;;  %v280_v57 = vmul.f32 %v575_v0, %v241_v45  ;;  %v344_v58 = vmax.f32 %v312_v50, 0.0  ;;  %v345_v59 = vmax.f32 %v313_v51, 0.0 }
  0x29   : > { %v346_v60 = vmax.f32 %v314_v52, 0.0  ;;  %v318_v61 = vadd.f32 %v585_v1, %v279_v53  ;;  %v347_v62 = vmax.f32 %v315_v54, 0.0  ;;  %v348_v63 = vmax.f32 %v316_v55, 0.0 }
  0x2a   : > { %v349_v2 = vmax.f32 %v317_v56, 0.0  ;;  %v319_v3 = vadd.f32 %v585_v1, %v280_v57  ;;  %376 = vst [vmem:[%s608_s26 + $0xc0] sm:$0xff] %v344_v58  ;;  %377 = vst [vmem:[%s608_s26 + $0xc8] sm:$0xff] %v345_v59 }
  0x2b   : > { %378 = vst [vmem:[%s608_s26 + $0xd0] sm:$0xff] %v346_v60  ;;  %v350_v4 = vmax.f32 %v318_v61, 0.0  ;;  %379 = vst [vmem:[%s608_s26 + $0xd8] sm:$0xff] %v347_v62 }
  0x2c   : > { %380 = vst [vmem:[%s608_s26 + $0xe0] sm:$0xff] %v348_v63  ;;  %381 = vst [vmem:[%s608_s26 + $0xe8] sm:$0xff] %v349_v2  ;;  %v351_v0 = vmax.f32 %v319_v3, 0.0 }
  0x2d   : > { %382 = vst [vmem:[%s608_s26 + $0xf0] sm:$0xff] %v350_v4 }
  0x2e   : > { %383 = vst [vmem:[%s608_s26 + $0xf8] sm:$0xff] %v351_v0 }
  0x2f PF: > { %s13_s14 = sadd.s32 1, %s532_s14   ;;  %s733_s12 = smov %s528_s13 }
  0x30   : > { %p10_p5 = scmp.ge.s32.totalorder %s13_s14, 4   ;;  %s734_s13 = smov %s736_s15 }
  0x32   :  { %12 = sbr.rel (!%p10_p5) target bundleno = 2 (0x2), region = 62 }

// kernel: vae_cnn_forward.8
= control target key start
LH: loop header
LB: loop body
LE: loop exit
PB: predicated region body
PF: predicated region fallthrough
CT: control target
= control target key end

     0   :  { %s2754_s12 = smov 0   ;;  %s2756_s13 = smov 0   ;;  %s3198_s0 = inlined_call_operand.vmem [shape: bf16[2,1,288,192], index: 0, kind: input, shape index: {}]   ;;  %s3199_s1 = inlined_call_operand.vmem [shape: bf16[3,192,128], index: 1, kind: input, shape index: {}]   ;;  %s3200_s2 = inlined_call_operand.vmem [shape: f32[2,256,128], index: 2, kind: output, shape index: {0}]   ;;  %s3201_s3 = inlined_call_operand.vmem [shape: f32[2,1,2,128], index: 3, kind: output, shape index: {1}]  }
   0x1   :  { %s2758_s14 = smov 0  }
   0x2 LB: > { %s26_s15 = sadd.s32 1, %s2727_s13  ;;  %p2173_p0 = scmp.ge.s32.totalorder %s2731_s14, 1  ;;  %s2731_s14 = sphi %s2758_s14, %s14_s14   ;;  %s2727_s13 = sphi %s2756_s13, %s3203_s13   ;;  %s2723_s12 = sphi %s2754_s12, %s3202_s12  }
   0x3   : > { %p28_p1 = scmp.ge.s32.totalorder %s26_s15, 2  ;;  %p162_p2 = scmp.lt.s32.totalorder %s2731_s14, 3 }
   0x5   : > { %s3205_s15 = smov (%p28_p1, %s26_s15), 0  ;;  %p163_p3 = pnand %p2173_p0, %p162_p2 }
   0x6   : > { %v2619_v0 = vld [vmem:[%s3199_s1] sm:$0xff] (!%p163_p3)   ;;  %v2733_v1 = vmov (!%p163_p3), 0   ;;  %v2621_v3 = vld [vmem:[%s3199_s1 + $0x8] sm:$0xff] (!%p163_p3)   ;;  %v2623_v5 = vld [vmem:[%s3199_s1 + $0x10] sm:$0xff] (!%p163_p3)   ;;  %p201_p4 = scmp.lt.s32.totalorder (!%p163_p3), %s2723_s12, 1  ;;  %vm500_vm0 = vcmask (!%p163_p3), 523264  }
   0x7   : > { %166 = sbr.rel (%p163_p3) target bundleno = 472 (0x1d8), region = 28  ;;  %549 = vmatprep.subr.bf16.mxu1 (!%p163_p3), %v2733_v1  ;;  %1095 = vmatprep.subr.bf16.mxu0 (!%p163_p3), %v2733_v1  ;;  %v2782_v2 = vld [vmem:[%s3199_s1 + $0x60] sm:$0xff] (!%p163_p3)   ;;  %v2792_v4 = vld [vmem:[%s3199_s1 + $0x68] sm:$0xff] (!%p163_p3)   ;;  %v2803_v6 = vld [vmem:[%s3199_s1 + $0x70] sm:$0xff] (!%p163_p3)  }
   0x8   : > { %550 = vmatpush1.bf16.msra.mxu1 (!%p163_p3), %v2619_v0  ;;  %1096 = vmatpush1.bf16.msra.mxu0 (!%p163_p3), %v2782_v2  ;;  %v2625_v7 = vld [vmem:[%s3199_s1 + $0x18] sm:$0xff] (!%p163_p3)   ;;  %v2627_v9 = vld [vmem:[%s3199_s1 + $0x20] sm:$0xff] (!%p163_p3)   ;;  %v2629_v11 = vld [vmem:[%s3199_s1 + $0x28] sm:$0xff] (!%p163_p3)  }
   0x9   : > { %551 = vmatprep.subr.bf16.mxu1 (!%p163_p3), %v2733_v1  ;;  %1097 = vmatprep.subr.bf16.mxu0 (!%p163_p3), %v2733_v1  ;;  %v2815_v8 = vld [vmem:[%s3199_s1 + $0x78] sm:$0xff] (!%p163_p3)   ;;  %v2829_v10 = vld [vmem:[%s3199_s1 + $0x80] sm:$0xff] (!%p163_p3)   ;;  %v2841_v12 = vld [vmem:[%s3199_s1 + $0x88] sm:$0xff] (!%p163_p3)  }
   0xa   : > { %v2631_v13 = vld [vmem:[%s3199_s1 + $0x30] sm:$0xff] (!%p163_p3)   ;;  %v2633_v16 = vld [vmem:[%s3199_s1 + $0x38] sm:$0xff] (!%p163_p3)   ;;  %v2635_v19 = vld [vmem:[%s3199_s1 + $0x40] sm:$0xff] (!%p163_p3)  }
   0xb   : > { %v2857_v14 = vld [vmem:[%s3199_s1 + $0x90] sm:$0xff] (!%p163_p3)   ;;  %v2870_v18 = vld [vmem:[%s3199_s1 + $0x98] sm:$0xff] (!%p163_p3)   ;;  %v2883_v20 = vld [vmem:[%s3199_s1 + $0xa0] sm:$0xff] (!%p163_p3)  }
   0xc   : > { %552 = vmatpush1.bf16.msra.mxu1 (!%p163_p3), %v2621_v3  ;;  %1098 = vmatpush1.bf16.msra.mxu0 (!%p163_p3), %v2792_v4  ;;  %v2637_v21 = vld [vmem:[%s3199_s1 + $0x48] sm:$0xff] (!%p163_p3)   ;;  %v2639_v23 = vld [vmem:[%s3199_s1 + $0x50] sm:$0xff] (!%p163_p3)   ;;  %v2641_v25 = vld [vmem:[%s3199_s1 + $0x58] sm:$0xff] (!%p163_p3)  }
   0xd   : > { %553 = vmatprep.subr.bf16.mxu1 (!%p163_p3), %v2733_v1  ;;  %1099 = vmatprep.subr.bf16.mxu0 (!%p163_p3), %v2733_v1  ;;  %v2894_v22 = vld [vmem:[%s3199_s1 + $0xa8] sm:$0xff] (!%p163_p3)   ;;  %v2905_v24 = vld [vmem:[%s3199_s1 + $0xb0] sm:$0xff] (!%p163_p3)   ;;  %v2916_v26 = vld [vmem:[%s3199_s1 + $0xb8] sm:$0xff] (!%p163_p3)  }
   0xe   : > { %s3207_s12 = smov (!%p201_p4, %s2723_s12), 1  ;;  %v2652_v30 = vld [vmem:[%s3199_s1 + $0xc0] sm:$0xff]   ;;  %v2655_v31 = vld [vmem:[%s3199_s1 + $0xc8] sm:$0xff]   ;;  %v2657_v34 = vld [vmem:[%s3199_s1 + $0xd0] sm:$0xff]  }
   0xf   : > { %s2593_s11 = smul.u32 288, %s3207_s12  ;;  %v2661_v35 = vld [vmem:[%s3199_s1 + $0xd8] sm:$0xff]   ;;  %v2664_v38 = vld [vmem:[%s3199_s1 + $0xe0] sm:$0xff]   ;;  %v2666_v39 = vld [vmem:[%s3199_s1 + $0xe8] sm:$0xff]   ;;  %s2177_s28 = sshll.u32 %s3207_s12, 1 }
  0x10   : > { %554 = vmatpush1.bf16.msra.mxu1 %v2623_v5  ;;  %1100 = vmatpush1.bf16.msra.mxu0 %v2803_v6  ;;  %v2670_v42 = vld [vmem:[%s3199_s1 + $0xf0] sm:$0xff]   ;;  %v2671_v43 = vld [vmem:[%s3199_s1 + $0xf8] sm:$0xff]   ;;  %v2675_v46 = vld [vmem:[%s3199_s1 + $0x100] sm:$0xff]   ;;  %s226_s4 = scalar_lea.vmem %s3201_s3, %s2177_s28 }
  0x11   : > { %555 = vmatprep.subr.bf16.mxu1 %v2733_v1  ;;  %1101 = vmatprep.subr.bf16.mxu0 %v2733_v1  ;;  %s2850_s22 = scalar_lea.vmem %s3198_s0, %s2593_s11  ;;  %v2676_v47 = vld [vmem:[%s3199_s1 + $0x108] sm:$0xff]   ;;  %v2680_v50 = vld [vmem:[%s3199_s1 + $0x110] sm:$0xff]   ;;  %v2681_v51 = vld [vmem:[%s3199_s1 + $0x118] sm:$0xff]  }
  0x12   : > { %v2645_v15 = vld [vmem:[%s2850_s22 + $0x4] ss:$8 sps:$4 sm:$0xff]   ;;  %v2648_v17 = vld [vmem:[%s2850_s22 + $0x14] ss:$8 sps:$4 sm:$0xff]   ;;  %v2643_v27 = vld [vmem:[%s2850_s22] ss:$8 sps:$4 sm:$0xff]  }
  0x13   : > { %2222 = vmatprep.mubr.msk.bf16.mxu1 %vm500_vm0, %v2645_v15  ;;  %2306 = vmatprep.mubr.msk.bf16.mxu0 %vm500_vm0, %v2648_v17  ;;  %v2646_v28 = vld [vmem:[%s2850_s22 + $0x10] ss:$8 sps:$4 sm:$0xff]   ;;  %v2924_v29 = vld [vmem:[%s2850_s22 + $0x24] ss:$8 sps:$4 sm:$0xff]   ;;  %v2940_v32 = vld [vmem:[%s2850_s22 + $0x20] ss:$8 sps:$4 sm:$0xff]  }
  0x14   : > { %556 = vmatpush1.bf16.msra.mxu1 %v2625_v7  ;;  %1102 = vmatpush1.bf16.msra.mxu0 %v2815_v8  ;;  %v2944_v33 = vld [vmem:[%s2850_s22 + $0x34] ss:$8 sps:$4 sm:$0xff]   ;;  %v2963_v36 = vld [vmem:[%s2850_s22 + $0x30] ss:$8 sps:$4 sm:$0xff]   ;;  %v2966_v37 = vld [vmem:[%s2850_s22 + $0x44] ss:$8 sps:$4 sm:$0xff]  }
  0x15   : > { %557 = vmatprep.subr.bf16.mxu1 %v2733_v1  ;;  %1103 = vmatprep.subr.bf16.mxu0 %v2733_v1  ;;  %v2987_v40 = vld [vmem:[%s2850_s22 + $0x40] ss:$8 sps:$4 sm:$0xff]   ;;  %v2990_v41 = vld [vmem:[%s2850_s22 + $0x54] ss:$8 sps:$4 sm:$0xff]   ;;  %v3011_v44 = vld [vmem:[%s2850_s22 + $0x50] ss:$8 sps:$4 sm:$0xff]  }
  0x16   : > { %v3014_v45 = vld [vmem:[%s2850_s22 + $0x64] ss:$8 sps:$4 sm:$0xff]   ;;  %v2669_v48 = vld [vmem:[%s2850_s22 + $0x60] ss:$8 sps:$4 sm:$0xff]   ;;  %v2672_v49 = vld [vmem:[%s2850_s22 + $0x74] ss:$8 sps:$4 sm:$0xff]  }
  0x17   : > { %v2674_v52 = vld [vmem:[%s2850_s22 + $0x70] ss:$8 sps:$4 sm:$0xff]   ;;  %v2677_v53 = vld [vmem:[%s2850_s22 + $0x84] ss:$8 sps:$4 sm:$0xff]   ;;  %v2679_v54 = vld [vmem:[%s2850_s22 + $0x80] ss:$8 sps:$4 sm:$0xff]  }
  0x18   : > { %558 = vmatpush1.bf16.msra.mxu1 %v2627_v9  ;;  %1104 = vmatpush1.bf16.msra.mxu0 %v2829_v10  ;;  %v2682_v55 = vld [vmem:[%s2850_s22 + $0x94] ss:$8 sps:$4 sm:$0xff]   ;;  %v2684_v56 = vld [vmem:[%s2850_s22 + $0x90] ss:$8 sps:$4 sm:$0xff]   ;;  %v2685_v57 = vld [vmem:[%s2850_s22 + $0xa4] ss:$8 sps:$4 sm:$0xff]  }
  0x19   : > { %559 = vmatprep.subr.bf16.mxu1 %v2733_v1  ;;  %1105 = vmatprep.subr.bf16.mxu0 %v2733_v1  ;;  %v2687_v58 = vld [vmem:[%s2850_s22 + $0xa0] ss:$8 sps:$4 sm:$0xff]   ;;  %v2688_v59 = vld [vmem:[%s2850_s22 + $0xb4] ss:$8 sps:$4 sm:$0xff]   ;;  %v2690_v60 = vld [vmem:[%s2850_s22 + $0xb0] ss:$8 sps:$4 sm:$0xff]  }
  0x1a   : > { %v2691_v61 = vld [vmem:[%s2850_s22 + $0xc4] ss:$8 sps:$4 sm:$0xff]   ;;  %v2693_v62 = vld [vmem:[%s2850_s22 + $0xc0] ss:$8 sps:$4 sm:$0xff]   ;;  %v2694_v63 = vld [vmem:[%s2850_s22 + $0xd4] ss:$8 sps:$4 sm:$0xff]  }
  0x1b   : > { %v2696_v0 = vld [vmem:[%s2850_s22 + $0xd0] ss:$8 sps:$4 sm:$0xff]   ;;  %v2700_v3 = vld [vmem:[%s2850_s22 + $0xf4] ss:$8 sps:$4 sm:$0xff]   ;;  %v2703_v5 = vld [vmem:[%s2850_s22 + $0x104] ss:$8 sps:$4 sm:$0xff]  }
  0x1c   : > { %560 = vmatpush1.bf16.msra.mxu1 %v2629_v11  ;;  %1106 = vmatpush1.bf16.msra.mxu0 %v2841_v12  ;;  %v2706_v7 = vld [vmem:[%s2850_s22 + $0x114] ss:$8 sps:$4 sm:$0xff]  }
  0x1d   : > { %561 = vmatprep.subr.bf16.mxu1 %v2733_v1  ;;  %1107 = vmatprep.subr.bf16.mxu0 %v2733_v1 }
  0x20   : > { %562 = vmatpush1.bf16.msra.mxu1 %v2631_v13  ;;  %1108 = vmatpush1.bf16.msra.mxu0 %v2857_v14 }
  0x21   : > { %563 = vmatprep.subr.bf16.mxu1 %v2733_v1  ;;  %1109 = vmatprep.subr.bf16.mxu0 %v2733_v1 }
  0x24   : > { %564 = vmatpush1.bf16.msra.mxu1 %v2633_v16  ;;  %1110 = vmatpush1.bf16.msra.mxu0 %v2870_v18 }
  0x25   : > { %565 = vmatprep.subr.bf16.mxu1 %v2733_v1  ;;  %1111 = vmatprep.subr.bf16.mxu0 %v2733_v1 }
  0x28   : > { %566 = vmatpush1.bf16.msra.mxu1 %v2635_v19  ;;  %1112 = vmatpush1.bf16.msra.mxu0 %v2883_v20 }
  0x29   : > { %567 = vmatprep.subr.bf16.mxu1 %v2733_v1  ;;  %1113 = vmatprep.subr.bf16.mxu0 %v2733_v1 }
  0x2c   : > { %568 = vmatpush1.bf16.msra.mxu1 %v2637_v21  ;;  %1114 = vmatpush1.bf16.msra.mxu0 %v2894_v22 }
  0x2d   : > { %569 = vmatprep.subr.bf16.mxu1 %v2733_v1  ;;  %1115 = vmatprep.subr.bf16.mxu0 %v2733_v1 }
  0x30   : > { %570 = vmatpush1.bf16.msra.mxu1 %v2639_v23  ;;  %1116 = vmatpush1.bf16.msra.mxu0 %v2905_v24 }
  0x31   : > { %571 = vmatprep.subr.bf16.mxu1 %v2733_v1  ;;  %1117 = vmatprep.subr.bf16.mxu0 %v2733_v1 }
  0x34   : > { %572 = vmatpush1.bf16.msra.mxu1 %v2641_v25  ;;  %1118 = vmatpush1.bf16.msra.mxu0 %v2916_v26 }
  0x35   : > { %2409 = vmatprep.subr.bf16.mxu1 %v2733_v1  ;;  %1673 = vmatprep.subr.bf16.mxu0 %v2733_v1 }
  0x37   : > { %582 = vmatmul.mubr.bf16.vlgmr.msra.gmra.mrb[0].mxu1 %v2643_v27  ;;  %1128 = vmatmul.mubr.bf16.vlgmr.msra.gmra.mrb[0].mxu0 %v2646_v28 }
  0x38   : > { %2421 = vmatpush1.bf16.msra.mxu1 %v2782_v2  ;;  %2223 = vmatprep.mubr.msk.bf16.mxu1 %vm500_vm0, %v2648_v17  ;;  %v2699_v2 = vld [vmem:[%s2850_s22 + $0xe0] ss:$8 sps:$4 sm:$0xff]  }
  0x39   : > { %2307 = vmatprep.mubr.msk.bf16.mxu0 %vm500_vm0, %v2924_v29  ;;  %1674 = vmatpush1.bf16.msra.mxu0 %v2652_v30 }
  0x3a   : > { %2410 = vmatprep.subr.bf16.mxu1 %v2733_v1  ;;  %1675 = vmatprep.subr.bf16.mxu0 %v2733_v1 }
  0x3c   : > { %2422 = vmatpush1.bf16.msra.mxu1 %v2792_v4  ;;  %v2702_v4 = vld [vmem:[%s2850_s22 + $0xf0] ss:$8 sps:$4 sm:$0xff]  }
  0x3d   : > { %2411 = vmatprep.subr.bf16.mxu1 %v2733_v1  ;;  %1676 = vmatpush1.bf16.msra.mxu0 %v2655_v31 }
  0x3e   : > { %1677 = vmatprep.subr.bf16.mxu0 %v2733_v1 }
  0x3f   : > { %590 = vmatmul.mubr.bf16.gmra.mrb[4].mxu1 %v2646_v28  ;;  %1136 = vmatmul.mubr.bf16.gmra.mrb[4].mxu0 %v2940_v32 }
  0x40   : > { %2224 = vmatprep.mubr.msk.bf16.mxu1 %vm500_vm0, %v2924_v29  ;;  %2308 = vmatprep.mubr.msk.bf16.mxu0 %vm500_vm0, %v2944_v33 }
  0x41   : > { %2423 = vmatpush1.bf16.msra.mxu1 %v2803_v6  ;;  %1678 = vmatpush1.bf16.msra.mxu0 %v2657_v34  ;;  %v2705_v6 = vld [vmem:[%s2850_s22 + $0x100] ss:$8 sps:$4 sm:$0xff]  }
  0x42   : > { %2412 = vmatprep.subr.bf16.mxu1 %v2733_v1  ;;  %1679 = vmatprep.subr.bf16.mxu0 %v2733_v1 }
  0x45   : > { %2424 = vmatpush1.bf16.msra.mxu1 %v2815_v8  ;;  %1680 = vmatpush1.bf16.msra.mxu0 %v2661_v35  ;;  %v2708_v8 = vld [vmem:[%s2850_s22 + $0x110] ss:$8 sps:$4 sm:$0xff]  }
  0x46   : > { %2413 = vmatprep.subr.bf16.mxu1 %v2733_v1  ;;  %1681 = vmatprep.subr.bf16.mxu0 %v2733_v1 }
  0x47   : > { %598 = vmatmul.mubr.bf16.gmra.mrb[8].mxu1 %v2940_v32  ;;  %1144 = vmatmul.mubr.bf16.gmra.mrb[8].mxu0 %v2963_v36 }
  0x48   : > { %2225 = vmatprep.mubr.msk.bf16.mxu1 %vm500_vm0, %v2944_v33  ;;  %2309 = vmatprep.mubr.msk.bf16.mxu0 %vm500_vm0, %v2966_v37 }
  0x49   : > { %2425 = vmatpush1.bf16.msra.mxu1 %v2829_v10  ;;  %1682 = vmatpush1.bf16.msra.mxu0 %v2664_v38 }
  0x4a   : > { %2414 = vmatprep.subr.bf16.mxu1 %v2733_v1  ;;  %1683 = vmatprep.subr.bf16.mxu0 %v2733_v1 }
  0x4d   : > { %2426 = vmatpush1.bf16.msra.mxu1 %v2841_v12  ;;  %1684 = vmatpush1.bf16.msra.mxu0 %v2666_v39 }
  0x4e   : > { %2415 = vmatprep.subr.bf16.mxu1 %v2733_v1  ;;  %1685 = vmatprep.subr.bf16.mxu0 %v2733_v1 }
  0x4f   : > { %606 = vmatmul.mubr.bf16.gmra.mrb[12].mxu1 %v2963_v36  ;;  %1152 = vmatmul.mubr.bf16.gmra.mrb[12].mxu0 %v2987_v40 }
  0x50   : > { %2226 = vmatprep.mubr.msk.bf16.mxu1 %vm500_vm0, %v2966_v37  ;;  %2310 = vmatprep.mubr.msk.bf16.mxu0 %vm500_vm0, %v2990_v41 }
  0x51   : > { %2427 = vmatpush1.bf16.msra.mxu1 %v2857_v14  ;;  %1686 = vmatpush1.bf16.msra.mxu0 %v2670_v42 }
  0x52   : > { %2416 = vmatprep.subr.bf16.mxu1 %v2733_v1  ;;  %1687 = vmatprep.subr.bf16.mxu0 %v2733_v1 }
  0x55   : > { %2428 = vmatpush1.bf16.msra.mxu1 %v2870_v18  ;;  %1688 = vmatpush1.bf16.msra.mxu0 %v2671_v43 }
  0x56   : > { %2417 = vmatprep.subr.bf16.mxu1 %v2733_v1  ;;  %1689 = vmatprep.subr.bf16.mxu0 %v2733_v1 }
  0x57   : > { %614 = vmatmul.mubr.bf16.gmra.mrb[16].mxu1 %v2987_v40  ;;  %1160 = vmatmul.mubr.bf16.gmra.mrb[16].mxu0 %v3011_v44 }
  0x58   : > { %2227 = vmatprep.mubr.msk.bf16.mxu1 %vm500_vm0, %v2990_v41  ;;  %2311 = vmatprep.mubr.msk.bf16.mxu0 %vm500_vm0, %v3014_v45 }
  0x59   : > { %2429 = vmatpush1.bf16.msra.mxu1 %v2883_v20  ;;  %1690 = vmatpush1.bf16.msra.mxu0 %v2675_v46 }
  0x5a   : > { %2418 = vmatprep.subr.bf16.mxu1 %v2733_v1  ;;  %1691 = vmatprep.subr.bf16.mxu0 %v2733_v1 }
  0x5d   : > { %2430 = vmatpush1.bf16.msra.mxu1 %v2894_v22  ;;  %1692 = vmatpush1.bf16.msra.mxu0 %v2676_v47 }
  0x5e   : > { %2419 = vmatprep.subr.bf16.mxu1 %v2733_v1  ;;  %1693 = vmatprep.subr.bf16.mxu0 %v2733_v1 }
  0x5f   : > { %622 = vmatmul.mubr.bf16.gmra.mrb[20].mxu1 %v3011_v44  ;;  %1168 = vmatmul.mubr.bf16.gmra.mrb[20].mxu0 %v2669_v48 }
  0x60   : > { %2228 = vmatprep.mubr.msk.bf16.mxu1 %vm500_vm0, %v3014_v45  ;;  %2312 = vmatprep.mubr.msk.bf16.mxu0 %vm500_vm0, %v2672_v49 }
  0x61   : > { %2431 = vmatpush1.bf16.msra.mxu1 %v2905_v24  ;;  %1694 = vmatpush1.bf16.msra.mxu0 %v2680_v50 }
  0x62   : > { %2420 = vmatprep.subr.bf16.mxu1 %v2733_v1  ;;  %1695 = vmatprep.subr.bf16.mxu0 %v2733_v1  ;;  %v2697_v1 = vld [vmem:[%s2850_s22 + $0xe4] ss:$8 sps:$4 sm:$0xff]   ;;  %s2408_s22 = sshll.u32 %s3207_s12, 8 }
  0x63   : > { %s3141_s27 = scalar_lea.vmem %s3200_s2, %s2408_s22 }
  0x65   : > { %2432 = vmatpush1.bf16.msra.mxu1 %v2916_v26  ;;  %1696 = vmatpush1.bf16.msra.mxu0 %v2681_v51 }
  0x67   : > { %630 = vmatmul.mubr.bf16.gmra.mrb[24].mxu1 %v2669_v48  ;;  %1176 = vmatmul.mubr.bf16.gmra.mrb[24].mxu0 %v2674_v52 }
  0x68   : > { %2229 = vmatprep.mubr.msk.bf16.mxu1 %vm500_vm0, %v2672_v49  ;;  %2313 = vmatprep.mubr.msk.bf16.mxu0 %vm500_vm0, %v2677_v53 }
  0x6f   : > { %638 = vmatmul.mubr.bf16.gmra.mrb[28].mxu1 %v2674_v52  ;;  %1184 = vmatmul.mubr.bf16.gmra.mrb[28].mxu0 %v2679_v54 }
  0x70   : > { %2230 = vmatprep.mubr.msk.bf16.mxu1 %vm500_vm0, %v2677_v53  ;;  %2390 = vmatprep.mubr.msk.bf16.mxu0 %vm500_vm0, %v2924_v29 }
  0x77   : > { %646 = vmatmul.mubr.bf16.gmra.mrb[32].mxu1 %v2679_v54  ;;  %1706 = vmatmul.mubr.bf16.vlgmr.msra.gmra.mrb[0].mxu0 %v2940_v32 }
  0x78   : > { %2231 = vmatprep.mubr.msk.bf16.mxu1 %vm500_vm0, %v2682_v55  ;;  %2391 = vmatprep.mubr.msk.bf16.mxu0 %vm500_vm0, %v2944_v33 }
  0x7f   : > { %654 = vmatmul.mubr.bf16.gmra.mrb[36].mxu1 %v2684_v56  ;;  %1714 = vmatmul.mubr.bf16.gmra.mrb[4].mxu0 %v2963_v36 }
  0x80   : > { %2232 = vmatprep.mubr.msk.bf16.mxu1 %vm500_vm0, %v2685_v57  ;;  %2392 = vmatprep.mubr.msk.bf16.mxu0 %vm500_vm0, %v2966_v37 }
  0x87   : > { %662 = vmatmul.mubr.bf16.gmra.mrb[40].mxu1 %v2687_v58  ;;  %1722 = vmatmul.mubr.bf16.gmra.mrb[8].mxu0 %v2987_v40 }
  0x88   : > { %2233 = vmatprep.mubr.msk.bf16.mxu1 %vm500_vm0, %v2688_v59  ;;  %2393 = vmatprep.mubr.msk.bf16.mxu0 %vm500_vm0, %v2990_v41 }
  0x8f   : > { %670 = vmatmul.mubr.bf16.gmra.mrb[44].mxu1 %v2690_v60  ;;  %1730 = vmatmul.mubr.bf16.gmra.mrb[12].mxu0 %v3011_v44 }
  0x90   : > { %2234 = vmatprep.mubr.msk.bf16.mxu1 %vm500_vm0, %v2691_v61  ;;  %2394 = vmatprep.mubr.msk.bf16.mxu0 %vm500_vm0, %v3014_v45 }
  0x97   : > { %678 = vmatmul.mubr.bf16.gmra.mrb[48].mxu1 %v2693_v62  ;;  %1738 = vmatmul.mubr.bf16.gmra.mrb[16].mxu0 %v2669_v48 }
  0x98   : > { %2235 = vmatprep.mubr.msk.bf16.mxu1 %vm500_vm0, %v2694_v63  ;;  %2395 = vmatprep.mubr.msk.bf16.mxu0 %vm500_vm0, %v2672_v49 }
  0x9f   : > { %686 = vmatmul.mubr.bf16.gmra.mrb[52].mxu1 %v2696_v0  ;;  %1746 = vmatmul.mubr.bf16.gmra.mrb[20].mxu0 %v2674_v52 }
  0xa0   : > { %2236 = vmatprep.mubr.msk.bf16.mxu1 %vm500_vm0, %v2697_v1  ;;  %2396 = vmatprep.mubr.msk.bf16.mxu0 %vm500_vm0, %v2677_v53 }
  0xa7   : > { %694 = vmatmul.mubr.bf16.gmra.mrb[56].mxu1 %v2699_v2  ;;  %1754 = vmatmul.mubr.bf16.gmra.mrb[24].mxu0 %v2679_v54 }
  0xa8   : > { %2237 = vmatprep.mubr.msk.bf16.mxu1 %vm500_vm0, %v2700_v3  ;;  %2397 = vmatprep.mubr.msk.bf16.mxu0 %vm500_vm0, %v2682_v55 }
  0xaf   : > { %702 = vmatmul.mubr.bf16.gmra.mrb[60].mxu1 %v2702_v4  ;;  %1762 = vmatmul.mubr.bf16.gmra.mrb[28].mxu0 %v2684_v56 }
  0xb0   : > { %2314 = vmatprep.mubr.msk.bf16.mxu1 %vm500_vm0, %v2682_v55  ;;  %2398 = vmatprep.mubr.msk.bf16.mxu0 %vm500_vm0, %v2685_v57 }
  0xb7   : > { %1192 = vmatmul.mubr.bf16.vlgmr.msra.gmra.mrb[32].mxu1 %v2684_v56  ;;  %1770 = vmatmul.mubr.bf16.gmra.mrb[32].mxu0 %v2687_v58 }
  0xb8   : > { %2315 = vmatprep.mubr.msk.bf16.mxu1 %vm500_vm0, %v2685_v57  ;;  %2399 = vmatprep.mubr.msk.bf16.mxu0 %vm500_vm0, %v2688_v59 }
  0xbf   : > { %1200 = vmatmul.mubr.bf16.gmra.mrb[36].mxu1 %v2687_v58  ;;  %1778 = vmatmul.mubr.bf16.gmra.mrb[36].mxu0 %v2690_v60 }
  0xc0   : > { %2316 = vmatprep.mubr.msk.bf16.mxu1 %vm500_vm0, %v2688_v59  ;;  %2400 = vmatprep.mubr.msk.bf16.mxu0 %vm500_vm0, %v2691_v61 }
  0xc7   : > { %1208 = vmatmul.mubr.bf16.gmra.mrb[40].mxu1 %v2690_v60  ;;  %1786 = vmatmul.mubr.bf16.gmra.mrb[40].mxu0 %v2693_v62 }
  0xc8   : > { %2317 = vmatprep.mubr.msk.bf16.mxu1 %vm500_vm0, %v2691_v61  ;;  %2401 = vmatprep.mubr.msk.bf16.mxu0 %vm500_vm0, %v2694_v63 }
  0xcf   : > { %1216 = vmatmul.mubr.bf16.gmra.mrb[44].mxu1 %v2693_v62  ;;  %1794 = vmatmul.mubr.bf16.gmra.mrb[44].mxu0 %v2696_v0 }
  0xd0   : > { %2318 = vmatprep.mubr.msk.bf16.mxu1 %vm500_vm0, %v2694_v63  ;;  %2402 = vmatprep.mubr.msk.bf16.mxu0 %vm500_vm0, %v2697_v1 }
  0xd7   : > { %1224 = vmatmul.mubr.bf16.gmra.mrb[48].mxu1 %v2696_v0  ;;  %1802 = vmatmul.mubr.bf16.gmra.mrb[48].mxu0 %v2699_v2 }
  0xd8   : > { %2319 = vmatprep.mubr.msk.bf16.mxu1 %vm500_vm0, %v2697_v1  ;;  %2403 = vmatprep.mubr.msk.bf16.mxu0 %vm500_vm0, %v2700_v3 }
  0xdf   : > { %1232 = vmatmul.mubr.bf16.gmra.mrb[52].mxu1 %v2699_v2  ;;  %1810 = vmatmul.mubr.bf16.gmra.mrb[52].mxu0 %v2702_v4 }
  0xe0   : > { %2320 = vmatprep.mubr.msk.bf16.mxu1 %vm500_vm0, %v2700_v3  ;;  %2404 = vmatprep.mubr.msk.bf16.mxu0 %vm500_vm0, %v2703_v5 }
  0xe7   : > { %1240 = vmatmul.mubr.bf16.gmra.mrb[56].mxu1 %v2702_v4  ;;  %1818 = vmatmul.mubr.bf16.gmra.mrb[56].mxu0 %v2705_v6 }
  0xe8   : > { %2321 = vmatprep.mubr.msk.bf16.mxu1 %vm500_vm0, %v2703_v5  ;;  %2405 = vmatprep.mubr.msk.bf16.mxu0 %vm500_vm0, %v2706_v7 }
  0xef   : > { %1248 = vmatmul.mubr.bf16.gmra.mrb[60].mxu1 %v2705_v6  ;;  %1826 = vmatmul.mubr.bf16.gmra.mrb[60].mxu0 %v2708_v8 }
 0x10a   : > { %v583_v9 = vpop.f32.mrb[0].mxu1 }
 0x10b   : > { %v585_v10 = vpop.f32.mrb[1].mxu1 }
 0x10c   : > { %v586_v11 = vpop.f32.mrb[2].mxu1 }
 0x10d   : > { %v588_v12 = vpop.f32.mrb[3].mxu1 }
 0x112   : > { %v591_v13 = vpop.f32.mrb[4].mxu1 }
 0x113   : > { %v593_v14 = vpop.f32.mrb[5].mxu1 }
 0x114   : > { %v594_v15 = vpop.f32.mrb[6].mxu1 }
 0x115   : > { %v596_v16 = vpop.f32.mrb[7].mxu1 }
 0x11a   : > { %v599_v17 = vpop.f32.mrb[8].mxu1 }
 0x11b   : > { %v601_v18 = vpop.f32.mrb[9].mxu1 }
 0x11c   : > { %v602_v19 = vpop.f32.mrb[10].mxu1 }
 0x11d   : > { %v604_v20 = vpop.f32.mrb[11].mxu1 }
 0x122   : > { %v3117_v21 = vpop.f32.mrb[12].mxu1 }
 0x123   : > { %v609_v22 = vpop.f32.mrb[13].mxu1 }
 0x124   : > { %v3119_v23 = vpop.f32.mrb[14].mxu1 }
 0x125   : > { %v612_v24 = vpop.f32.mrb[15].mxu1 }
 0x12a   : > { %v3121_v25 = vpop.f32.mrb[16].mxu1 }
 0x12b   : > { %v617_v26 = vpop.f32.mrb[17].mxu1 }
 0x12c   : > { %v3123_v27 = vpop.f32.mrb[18].mxu1 }
 0x12d   : > { %v620_v28 = vpop.f32.mrb[19].mxu1 }
 0x132   : > { %v3125_v29 = vpop.f32.mrb[20].mxu1 }
 0x133   : > { %v625_v30 = vpop.f32.mrb[21].mxu1 }
 0x134   : > { %v3127_v31 = vpop.f32.mrb[22].mxu1 }
 0x135   : > { %v628_v32 = vpop.f32.mrb[23].mxu1 }
 0x13a   : > { %v3129_v33 = vpop.f32.mrb[24].mxu1 }
 0x13b   : > { %v633_v34 = vpop.f32.mrb[25].mxu1 }
 0x13c   : > { %v3131_v35 = vpop.f32.mrb[26].mxu1 }
 0x13d   : > { %v636_v36 = vpop.f32.mrb[27].mxu1 }
 0x142   : > { %v3133_v37 = vpop.f32.mrb[28].mxu1 }
 0x143   : > { %v641_v38 = vpop.f32.mrb[29].mxu1 }
 0x144   : > { %v3135_v39 = vpop.f32.mrb[30].mxu1 }
 0x145   : > { %v644_v40 = vpop.f32.mrb[31].mxu1 }
 0x14a   : > { %v1707_v41 = vpop.f32.mrb[0].mxu0 }
 0x14b   : > { %v2435_v42 = vadd.f32 %v1707_v41, %v583_v9  ;;  %v1709_v43 = vpop.f32.mrb[1].mxu0 }
 0x14c   : > { %v1710_v44 = vpop.f32.mrb[2].mxu0 }
 0x14d   : > { %1866 = vst [vmem:[%s3141_s27] sm:$0xff] %v2435_v42  ;;  %v2438_v45 = vadd.f32 %v1710_v44, %v586_v11  ;;  %v1712_v46 = vpop.f32.mrb[3].mxu0  ;;  %v1968_v47 = vmul.f32 %v2435_v42, %v2435_v42 }
 0x14f   : > { %1867 = vst [vmem:[%s3141_s27 + $0x8] sm:$0xff] %v2438_v45  ;;  %v1930_v48 = vadd.f32 %v2438_v45, %v2435_v42  ;;  %v1969_v49 = vmul.f32 %v2438_v45, %v2438_v45 }
 0x151   : > { %v2000_v50 = vadd.f32 %v1969_v49, %v1968_v47 }
 0x152   : > { %v1715_v51 = vpop.f32.mrb[4].mxu0 }
 0x153   : > { %v2441_v52 = vadd.f32 %v1715_v51, %v591_v13  ;;  %v1717_v53 = vpop.f32.mrb[5].mxu0 }
 0x154   : > { %v1718_v54 = vpop.f32.mrb[6].mxu0 }
 0x155   : > { %1868 = vst [vmem:[%s3141_s27 + $0x10] sm:$0xff] %v2441_v52  ;;  %v1931_v55 = vadd.f32 %v2441_v52, %v1930_v48  ;;  %v1970_v56 = vmul.f32 %v2441_v52, %v2441_v52  ;;  %v2444_v57 = vadd.f32 %v1718_v54, %v594_v15  ;;  %v1720_v58 = vpop.f32.mrb[7].mxu0 }
 0x157   : > { %v2001_v59 = vadd.f32 %v2000_v50, %v1970_v56  ;;  %1869 = vst [vmem:[%s3141_s27 + $0x18] sm:$0xff] %v2444_v57  ;;  %v1932_v60 = vadd.f32 %v2444_v57, %v1931_v55  ;;  %v1971_v61 = vmul.f32 %v2444_v57, %v2444_v57 }
 0x159   : > { %v2002_v62 = vadd.f32 %v2001_v59, %v1971_v61 }
 0x15a   : > { %v1723_v63 = vpop.f32.mrb[8].mxu0 }
 0x15b   : > { %v2447_v0 = vadd.f32 %v1723_v63, %v599_v17  ;;  %v1725_v1 = vpop.f32.mrb[9].mxu0 }
 0x15c   : > { %v1726_v2 = vpop.f32.mrb[10].mxu0 }
 0x15d   : > { %1870 = vst [vmem:[%s3141_s27 + $0x20] sm:$0xff] %v2447_v0  ;;  %v1933_v3 = vadd.f32 %v2447_v0, %v1932_v60  ;;  %v1972_v4 = vmul.f32 %v2447_v0, %v2447_v0  ;;  %v2450_v5 = vadd.f32 %v1726_v2, %v602_v19  ;;  %v1728_v6 = vpop.f32.mrb[11].mxu0 }
 0x15f   : > { %v2003_v7 = vadd.f32 %v2002_v62, %v1972_v4  ;;  %1871 = vst [vmem:[%s3141_s27 + $0x28] sm:$0xff] %v2450_v5  ;;  %v1934_v8 = vadd.f32 %v2450_v5, %v1933_v3  ;;  %v1973_v9 = vmul.f32 %v2450_v5, %v2450_v5 }
 0x161   : > { %v2004_v10 = vadd.f32 %v2003_v7, %v1973_v9 }
 0x162   : > { %v1731_v11 = vpop.f32.mrb[12].mxu0 }
 0x163   : > { %v2453_v12 = vadd.f32 %v1731_v11, %v3117_v21  ;;  %v1733_v13 = vpop.f32.mrb[13].mxu0 }
 0x164   : > { %v1734_v14 = vpop.f32.mrb[14].mxu0 }
 0x165   : > { %1872 = vst [vmem:[%s3141_s27 + $0x30] sm:$0xff] %v2453_v12  ;;  %v1935_v15 = vadd.f32 %v2453_v12, %v1934_v8  ;;  %v1974_v16 = vmul.f32 %v2453_v12, %v2453_v12  ;;  %v2456_v17 = vadd.f32 %v1734_v14, %v3119_v23  ;;  %v1736_v18 = vpop.f32.mrb[15].mxu0 }
 0x167   : > { %v2005_v19 = vadd.f32 %v2004_v10, %v1974_v16  ;;  %1873 = vst [vmem:[%s3141_s27 + $0x38] sm:$0xff] %v2456_v17  ;;  %v1936_v20 = vadd.f32 %v2456_v17, %v1935_v15  ;;  %v1975_v22 = vmul.f32 %v2456_v17, %v2456_v17 }
 0x169   : > { %v2006_v24 = vadd.f32 %v2005_v19, %v1975_v22 }
 0x16a   : > { %v1739_v26 = vpop.f32.mrb[16].mxu0 }
 0x16b   : > { %v2459_v28 = vadd.f32 %v1739_v26, %v3121_v25  ;;  %v1741_v30 = vpop.f32.mrb[17].mxu0 }
 0x16c   : > { %v1742_v21 = vpop.f32.mrb[18].mxu0 }
 0x16d   : > { %1874 = vst [vmem:[%s3141_s27 + $0x40] sm:$0xff] %v2459_v28  ;;  %v1937_v32 = vadd.f32 %v2459_v28, %v1936_v20  ;;  %v1976_v34 = vmul.f32 %v2459_v28, %v2459_v28  ;;  %v2462_v36 = vadd.f32 %v1742_v21, %v3123_v27  ;;  %v1744_v38 = vpop.f32.mrb[19].mxu0 }
 0x16f   : > { %v2007_v23 = vadd.f32 %v2006_v24, %v1976_v34  ;;  %1875 = vst [vmem:[%s3141_s27 + $0x48] sm:$0xff] %v2462_v36  ;;  %v1938_v40 = vadd.f32 %v2462_v36, %v1937_v32  ;;  %v1977_v41 = vmul.f32 %v2462_v36, %v2462_v36 }
 0x171   : > { %v2008_v42 = vadd.f32 %v2007_v23, %v1977_v41 }
 0x172   : > { %v1747_v43 = vpop.f32.mrb[20].mxu0 }
 0x173   : > { %v2465_v44 = vadd.f32 %v1747_v43, %v3125_v29  ;;  %v1749_v45 = vpop.f32.mrb[21].mxu0 }
 0x174   : > { %v1750_v25 = vpop.f32.mrb[22].mxu0 }
 0x175   : > { %1876 = vst [vmem:[%s3141_s27 + $0x50] sm:$0xff] %v2465_v44  ;;  %v1939_v46 = vadd.f32 %v2465_v44, %v1938_v40  ;;  %v1978_v47 = vmul.f32 %v2465_v44, %v2465_v44  ;;  %v2468_v48 = vadd.f32 %v1750_v25, %v3127_v31  ;;  %v1752_v49 = vpop.f32.mrb[23].mxu0 }
 0x177   : > { %v2009_v27 = vadd.f32 %v2008_v42, %v1978_v47  ;;  %1877 = vst [vmem:[%s3141_s27 + $0x58] sm:$0xff] %v2468_v48  ;;  %v1940_v50 = vadd.f32 %v2468_v48, %v1939_v46  ;;  %v1979_v51 = vmul.f32 %v2468_v48, %v2468_v48 }
 0x179   : > { %v2010_v52 = vadd.f32 %v2009_v27, %v1979_v51 }
 0x17a   : > { %v1755_v53 = vpop.f32.mrb[24].mxu0 }
 0x17b   : > { %v2471_v54 = vadd.f32 %v1755_v53, %v3129_v33  ;;  %v1757_v55 = vpop.f32.mrb[25].mxu0 }
 0x17c   : > { %v1758_v29 = vpop.f32.mrb[26].mxu0 }
 0x17d   : > { %1878 = vst [vmem:[%s3141_s27 + $0x60] sm:$0xff] %v2471_v54  ;;  %v1941_v56 = vadd.f32 %v2471_v54, %v1940_v50  ;;  %v1980_v57 = vmul.f32 %v2471_v54, %v2471_v54  ;;  %v2474_v58 = vadd.f32 %v1758_v29, %v3131_v35  ;;  %v1760_v59 = vpop.f32.mrb[27].mxu0 }
 0x17f   : > { %v2011_v31 = vadd.f32 %v2010_v52, %v1980_v57  ;;  %1879 = vst [vmem:[%s3141_s27 + $0x68] sm:$0xff] %v2474_v58  ;;  %v1942_v60 = vadd.f32 %v2474_v58, %v1941_v56  ;;  %v1981_v61 = vmul.f32 %v2474_v58, %v2474_v58 }
 0x181   : > { %v2012_v62 = vadd.f32 %v2011_v31, %v1981_v61 }
 0x182   : > { %v1763_v63 = vpop.f32.mrb[28].mxu0 }
 0x183   : > { %v2477_v0 = vadd.f32 %v1763_v63, %v3133_v37  ;;  %v1765_v1 = vpop.f32.mrb[29].mxu0 }
 0x184   : > { %v1766_v33 = vpop.f32.mrb[30].mxu0 }
 0x185   : > { %1880 = vst [vmem:[%s3141_s27 + $0x70] sm:$0xff] %v2477_v0  ;;  %v1943_v2 = vadd.f32 %v2477_v0, %v1942_v60  ;;  %v1982_v3 = vmul.f32 %v2477_v0, %v2477_v0  ;;  %v2480_v4 = vadd.f32 %v1766_v33, %v3135_v39  ;;  %v1768_v5 = vpop.f32.mrb[31].mxu0 }
 0x187   : > { %v2013_v35 = vadd.f32 %v2012_v62, %v1982_v3  ;;  %1881 = vst [vmem:[%s3141_s27 + $0x78] sm:$0xff] %v2480_v4  ;;  %v1944_v6 = vadd.f32 %v2480_v4, %v1943_v2  ;;  %v1983_v7 = vmul.f32 %v2480_v4, %v2480_v4 }
 0x189   : > { %v2014_v8 = vadd.f32 %v2013_v35, %v1983_v7 }
 0x18a   : > { %v1193_v9 = vpop.f32.mrb[32].mxu1  ;;  %v1771_v11 = vpop.f32.mrb[32].mxu0 }
 0x18b   : > { %v1195_v10 = vpop.f32.mrb[33].mxu1  ;;  %v2483_v37 = vadd.f32 %v1771_v11, %v1193_v9  ;;  %v1773_v13 = vpop.f32.mrb[33].mxu0 }
 0x18c   : > { %v1196_v12 = vpop.f32.mrb[34].mxu1  ;;  %v1774_v15 = vpop.f32.mrb[34].mxu0 }
 0x18d   : > { %v1198_v14 = vpop.f32.mrb[35].mxu1  ;;  %1882 = vst [vmem:[%s3141_s27 + $0x80] sm:$0xff] %v2483_v37  ;;  %v1945_v16 = vadd.f32 %v2483_v37, %v1944_v6  ;;  %v1984_v17 = vmul.f32 %v2483_v37, %v2483_v37  ;;  %v2486_v39 = vadd.f32 %v1774_v15, %v1196_v12  ;;  %v1776_v18 = vpop.f32.mrb[35].mxu0 }
 0x18f   : > { %v2015_v19 = vadd.f32 %v2014_v8, %v1984_v17  ;;  %1883 = vst [vmem:[%s3141_s27 + $0x88] sm:$0xff] %v2486_v39  ;;  %v1946_v20 = vadd.f32 %v2486_v39, %v1945_v16  ;;  %v1985_v22 = vmul.f32 %v2486_v39, %v2486_v39 }
 0x191   : > { %v2016_v26 = vadd.f32 %v2015_v19, %v1985_v22 }
 0x192   : > { %v1201_v24 = vpop.f32.mrb[36].mxu1  ;;  %v1779_v30 = vpop.f32.mrb[36].mxu0 }
 0x193   : > { %v1203_v28 = vpop.f32.mrb[37].mxu1  ;;  %v2489_v32 = vadd.f32 %v1779_v30, %v1201_v24  ;;  %v1781_v34 = vpop.f32.mrb[37].mxu0 }
 0x194   : > { %v1204_v21 = vpop.f32.mrb[38].mxu1  ;;  %v1782_v38 = vpop.f32.mrb[38].mxu0 }
 0x195   : > { %v1206_v36 = vpop.f32.mrb[39].mxu1  ;;  %1884 = vst [vmem:[%s3141_s27 + $0x90] sm:$0xff] %v2489_v32  ;;  %v1947_v23 = vadd.f32 %v2489_v32, %v1946_v20  ;;  %v1986_v40 = vmul.f32 %v2489_v32, %v2489_v32  ;;  %v2492_v41 = vadd.f32 %v1782_v38, %v1204_v21  ;;  %v1784_v42 = vpop.f32.mrb[39].mxu0 }
 0x197   : > { %v2017_v43 = vadd.f32 %v2016_v26, %v1986_v40  ;;  %1885 = vst [vmem:[%s3141_s27 + $0x98] sm:$0xff] %v2492_v41  ;;  %v1948_v44 = vadd.f32 %v2492_v41, %v1947_v23  ;;  %v1987_v45 = vmul.f32 %v2492_v41, %v2492_v41 }
 0x199   : > { %v2018_v46 = vadd.f32 %v2017_v43, %v1987_v45 }
 0x19a   : > { %v1209_v25 = vpop.f32.mrb[40].mxu1  ;;  %v1787_v48 = vpop.f32.mrb[40].mxu0 }
 0x19b   : > { %v1211_v47 = vpop.f32.mrb[41].mxu1  ;;  %v2495_v27 = vadd.f32 %v1787_v48, %v1209_v25  ;;  %v1789_v50 = vpop.f32.mrb[41].mxu0 }
 0x19c   : > { %v1212_v49 = vpop.f32.mrb[42].mxu1  ;;  %v1790_v52 = vpop.f32.mrb[42].mxu0 }
 0x19d   : > { %v1214_v51 = vpop.f32.mrb[43].mxu1  ;;  %1886 = vst [vmem:[%s3141_s27 + $0xa0] sm:$0xff] %v2495_v27  ;;  %v1949_v53 = vadd.f32 %v2495_v27, %v1948_v44  ;;  %v1988_v54 = vmul.f32 %v2495_v27, %v2495_v27  ;;  %v2498_v55 = vadd.f32 %v1790_v52, %v1212_v49  ;;  %v1792_v29 = vpop.f32.mrb[43].mxu0 }
 0x19f   : > { %v2019_v56 = vadd.f32 %v2018_v46, %v1988_v54  ;;  %1887 = vst [vmem:[%s3141_s27 + $0xa8] sm:$0xff] %v2498_v55  ;;  %v1950_v57 = vadd.f32 %v2498_v55, %v1949_v53  ;;  %v1989_v58 = vmul.f32 %v2498_v55, %v2498_v55 }
 0x1a1   : > { %v2020_v31 = vadd.f32 %v2019_v56, %v1989_v58 }
 0x1a2   : > { %v1217_v59 = vpop.f32.mrb[44].mxu1  ;;  %v1795_v61 = vpop.f32.mrb[44].mxu0 }
 0x1a3   : > { %v1219_v60 = vpop.f32.mrb[45].mxu1  ;;  %v2501_v63 = vadd.f32 %v1795_v61, %v1217_v59  ;;  %v1797_v0 = vpop.f32.mrb[45].mxu0 }
 0x1a4   : > { %v1220_v62 = vpop.f32.mrb[46].mxu1  ;;  %v1798_v33 = vpop.f32.mrb[46].mxu0 }
 0x1a5   : > { %v1222_v1 = vpop.f32.mrb[47].mxu1  ;;  %1888 = vst [vmem:[%s3141_s27 + $0xb0] sm:$0xff] %v2501_v63  ;;  %v1951_v2 = vadd.f32 %v2501_v63, %v1950_v57  ;;  %v1990_v3 = vmul.f32 %v2501_v63, %v2501_v63  ;;  %v2504_v4 = vadd.f32 %v1798_v33, %v1220_v62  ;;  %v1800_v5 = vpop.f32.mrb[47].mxu0 }
 0x1a7   : > { %v2021_v35 = vadd.f32 %v2020_v31, %v1990_v3  ;;  %1889 = vst [vmem:[%s3141_s27 + $0xb8] sm:$0xff] %v2504_v4  ;;  %v1952_v6 = vadd.f32 %v2504_v4, %v1951_v2  ;;  %v1991_v7 = vmul.f32 %v2504_v4, %v2504_v4 }
 0x1a9   : > { %v2022_v9 = vadd.f32 %v2021_v35, %v1991_v7 }
 0x1aa   : > { %v1225_v8 = vpop.f32.mrb[48].mxu1  ;;  %v1803_v11 = vpop.f32.mrb[48].mxu0 }
 0x1ab   : > { %v1227_v10 = vpop.f32.mrb[49].mxu1  ;;  %v2507_v37 = vadd.f32 %v1803_v11, %v1225_v8  ;;  %v1805_v13 = vpop.f32.mrb[49].mxu0 }
 0x1ac   : > { %v1228_v12 = vpop.f32.mrb[50].mxu1  ;;  %v1806_v15 = vpop.f32.mrb[50].mxu0 }
 0x1ad   : > { %v1230_v14 = vpop.f32.mrb[51].mxu1  ;;  %1890 = vst [vmem:[%s3141_s27 + $0xc0] sm:$0xff] %v2507_v37  ;;  %v1953_v16 = vadd.f32 %v2507_v37, %v1952_v6  ;;  %v1992_v17 = vmul.f32 %v2507_v37, %v2507_v37  ;;  %v2510_v39 = vadd.f32 %v1806_v15, %v1228_v12  ;;  %v1808_v18 = vpop.f32.mrb[51].mxu0 }
 0x1af   : > { %v2023_v19 = vadd.f32 %v2022_v9, %v1992_v17  ;;  %1891 = vst [vmem:[%s3141_s27 + $0xc8] sm:$0xff] %v2510_v39  ;;  %v1954_v20 = vadd.f32 %v2510_v39, %v1953_v16  ;;  %v1993_v22 = vmul.f32 %v2510_v39, %v2510_v39 }
 0x1b1   : > { %v2024_v26 = vadd.f32 %v2023_v19, %v1993_v22 }
 0x1b2   : > { %v1233_v24 = vpop.f32.mrb[52].mxu1  ;;  %v1811_v30 = vpop.f32.mrb[52].mxu0 }
 0x1b3   : > { %v1235_v28 = vpop.f32.mrb[53].mxu1  ;;  %v2513_v32 = vadd.f32 %v1811_v30, %v1233_v24  ;;  %v1813_v34 = vpop.f32.mrb[53].mxu0 }
 0x1b4   : > { %v1236_v21 = vpop.f32.mrb[54].mxu1  ;;  %v1814_v38 = vpop.f32.mrb[54].mxu0 }
 0x1b5   : > { %v1238_v36 = vpop.f32.mrb[55].mxu1  ;;  %1892 = vst [vmem:[%s3141_s27 + $0xd0] sm:$0xff] %v2513_v32  ;;  %v1955_v23 = vadd.f32 %v2513_v32, %v1954_v20  ;;  %v1994_v40 = vmul.f32 %v2513_v32, %v2513_v32  ;;  %v2516_v41 = vadd.f32 %v1814_v38, %v1236_v21  ;;  %v1816_v42 = vpop.f32.mrb[55].mxu0 }
 0x1b7   : > { %v2025_v43 = vadd.f32 %v2024_v26, %v1994_v40  ;;  %1893 = vst [vmem:[%s3141_s27 + $0xd8] sm:$0xff] %v2516_v41  ;;  %v1956_v44 = vadd.f32 %v2516_v41, %v1955_v23  ;;  %v1995_v45 = vmul.f32 %v2516_v41, %v2516_v41 }
 0x1b9   : > { %v2026_v46 = vadd.f32 %v2025_v43, %v1995_v45 }
 0x1ba   : > { %v1241_v25 = vpop.f32.mrb[56].mxu1  ;;  %v1819_v48 = vpop.f32.mrb[56].mxu0 }
 0x1bb   : > { %v1243_v47 = vpop.f32.mrb[57].mxu1  ;;  %v2519_v27 = vadd.f32 %v1819_v48, %v1241_v25  ;;  %v1821_v50 = vpop.f32.mrb[57].mxu0 }
 0x1bc   : > { %v1244_v49 = vpop.f32.mrb[58].mxu1  ;;  %v1822_v52 = vpop.f32.mrb[58].mxu0 }
 0x1bd   : > { %v1246_v51 = vpop.f32.mrb[59].mxu1  ;;  %1894 = vst [vmem:[%s3141_s27 + $0xe0] sm:$0xff] %v2519_v27  ;;  %v1957_v53 = vadd.f32 %v2519_v27, %v1956_v44  ;;  %v1996_v54 = vmul.f32 %v2519_v27, %v2519_v27  ;;  %v2522_v55 = vadd.f32 %v1822_v52, %v1244_v49  ;;  %v1824_v29 = vpop.f32.mrb[59].mxu0 }
 0x1bf   : > { %v2027_v56 = vadd.f32 %v2026_v46, %v1996_v54  ;;  %1895 = vst [vmem:[%s3141_s27 + $0xe8] sm:$0xff] %v2522_v55  ;;  %v1958_v57 = vadd.f32 %v2522_v55, %v1957_v53  ;;  %v1997_v58 = vmul.f32 %v2522_v55, %v2522_v55 }
 0x1c1   : > { %v2028_v31 = vadd.f32 %v2027_v56, %v1997_v58 }
 0x1c2   : > { %v1249_v59 = vpop.f32.mrb[60].mxu1  ;;  %v1827_v61 = vpop.f32.mrb[60].mxu0 }
 0x1c3   : > { %v1251_v60 = vpop.f32.mrb[61].mxu1  ;;  %v2525_v63 = vadd.f32 %v1827_v61, %v1249_v59  ;;  %v1829_v0 = vpop.f32.mrb[61].mxu0 }
 0x1c4   : > { %v1252_v62 = vpop.f32.mrb[62].mxu1  ;;  %v1830_v33 = vpop.f32.mrb[62].mxu0 }
 0x1c5   : > { %v1254_v1 = vpop.f32.mrb[63].mxu1  ;;  %1896 = vst [vmem:[%s3141_s27 + $0xf0] sm:$0xff] %v2525_v63  ;;  %v1959_v2 = vadd.f32 %v2525_v63, %v1958_v57  ;;  %v1998_v3 = vmul.f32 %v2525_v63, %v2525_v63  ;;  %v2528_v4 = vadd.f32 %v1830_v33, %v1252_v62  ;;  %v1832_v5 = vpop.f32.mrb[63].mxu0 }
 0x1c7   : > { %v2029_v35 = vadd.f32 %v2028_v31, %v1998_v3  ;;  %1897 = vst [vmem:[%s3141_s27 + $0xf8] sm:$0xff] %v2528_v4  ;;  %v1960_v6 = vadd.f32 %v2528_v4, %v1959_v2  ;;  %v1999_v7 = vmul.f32 %v2528_v4, %v2528_v4 }
 0x1c9   : > { %v1961_v8 = vrot.slane %v1960_v6, 4  ;;  %v2030_v9 = vadd.f32 %v2029_v35, %v1999_v7 }
 0x1cb   : > { %v1962_v10 = vadd.f32 %v1961_v8, %v1960_v6  ;;  %v2031_v11 = vrot.slane %v2030_v9, 4 }
 0x1cd   : > { %v1963_v12 = vrot.slane %v1962_v10, 2  ;;  %v2032_v37 = vadd.f32 %v2031_v11, %v2030_v9 }
 0x1cf   : > { %v1964_v13 = vadd.f32 %v1963_v12, %v1962_v10  ;;  %v2033_v14 = vrot.slane %v2032_v37, 2 }
 0x1d1   : > { %v1965_v15 = vrot.slane %v1964_v13, 1  ;;  %v2034_v16 = vadd.f32 %v2033_v14, %v2032_v37 }
 0x1d3   : > { %v1966_v17 = vadd.f32 %v1965_v15, %v1964_v13  ;;  %v2035_v39 = vrot.slane %v2034_v16, 1 }
 0x1d5   : > { %1967 = vst [vmem:[%s226_s4] sm:$0x1] %v1966_v17  ;;  %v2036_v18 = vadd.f32 %v2035_v39, %v2034_v16 }
 0x1d7   : > { %2037 = vst [vmem:[%s226_s4 + $0x1] sm:$0x1] %v2036_v18 }
 0x1d8 PF: > { %s14_s14 = sadd.s32 1, %s2731_s14   ;;  %s3202_s12 = smov %s2727_s13 }
 0x1d9   : > { %p11_p5 = scmp.ge.s32.totalorder %s14_s14, 4   ;;  %s3203_s13 = smov %s3205_s15 }
 0x1db   :  { %13 = sbr.rel (!%p11_p5) target bundleno = 2 (0x2), region = 72 }

// kernel: vae_cnn_forward.11
= control target key start
LH: loop header
LB: loop body
LE: loop exit
PB: predicated region body
PF: predicated region fallthrough
CT: control target
= control target key end

     0   :  { %8 = vsyncpa [#allocation3], 0  ;;  %s1459_s0 = inlined_call_operand.vmem [shape: f32[2,256,256], index: 0, kind: input, shape index: {}]   ;;  %s1460_s1 = inlined_call_operand.vmem [shape: f32[1,256], index: 1, kind: input, shape index: {}]   ;;  %s1461_s2 = inlined_call_operand.vmem [shape: f32[1,256], index: 2, kind: input, shape index: {}]   ;;  %s1462_s3 = inlined_call_operand.hbm [shape: f32[2,16,256], index: 3, kind: output, shape index: {}]  }
   0x1   :  { %10 = vsyncpa [#allocation3 + $0x1], 0  ;;  %s832_s12 = smov 0   ;;  %s834_s13 = smov 0  }
   0x2   :  { %s836_s14 = smov 0   ;;  %s838_s15 = smov 0  }
   0x3   :  { %s840_s16 = smov 0   ;;  %s842_s17 = smov 0  }
   0x4 LB: > { %s657_s18 = sadd.s32 4294967295, %s807_s17   ;;  %s658_s19 = sadd.s32 4294967294, %s807_s17   ;;  %s807_s17 = sphi %s842_s17, %s16_s17   ;;  %s803_s16 = sphi %s840_s16, %s1521_s16   ;;  %s799_s15 = sphi %s838_s15, %s1520_s15   ;;  %s795_s14 = sphi %s836_s14, %s1519_s14   ;;  %s791_s13 = sphi %s834_s13, %s1518_s13   ;;  %s787_s12 = sphi %s832_s12, %s1517_s12  }
   0x5   : > { %s28_s20 = sadd.s32 1, %s803_s16  ;;  %s105_s21 = sadd.s32 1, %s795_s14 }
   0x6   : > { %p30_p0 = scmp.ge.s32.totalorder %s28_s20, 2  ;;  %p115_p1 = scmp.ne.s32.totalorder %s795_s14, %s791_s13 }
   0x7   : > { %p116_p2 = scmp.eq.s32.totalorder %s657_s18, 1  ;;  %p121_p3 = scmp.ne.s32.totalorder %s791_s13, %s787_s12 }
   0x8   : > { %s1523_s20 = smov (%p30_p0, %s28_s20), 0  ;;  %p122_p5 = scmp.eq.s32.totalorder %s658_s19, 1 }
   0x9   : > { %p872_p4 = por %p116_p2, %p115_p1  ;;  %s102_s23 = ssub.s32 %s803_s16, %s1523_s20 }
   0xa   : > { %p661_p6 = scmp.ge.s32.totalorder %s807_s17, 1  ;;  %p103_p7 = scmp.eq.s32.totalorder %s102_s23, 0 }
   0xb   : > { %p879_p8 = por %p122_p5, %p121_p3  ;;  %p160_p9 = scmp.lt.s32.totalorder %s807_s17, 3 }
   0xc   : > { %s885_s25 = scalar_select %p103_p7, %s795_s14, %s105_s21  }
   0xd   : > { %p161_p10 = pnand %p661_p6, %p160_p9 }
   0xf   : > { %164 = sbr.rel (%p161_p10) target bundleno = 112 (0x70), region = 32 }
  0x16   : > { %p190_p11 = scmp.lt.s32.totalorder %s799_s15, 1  ;;  %v266_v0 = vlaneseq  ;;  %v264_v3 = vld [vmem:[%s1460_s1] sm:$0x3]  ;;  %s186_s8 = sand.u32 1, %s791_s13  }
  0x17   : > { %v340_v8 = vld [vmem:[%s1461_s2] sm:$0x3]  ;;  %s1386_s9 = sshll.u32 %s186_s8, 5  ;;  %s671_s10 = sshll.u32 %s799_s15, 9 }
  0x18   : > { %s191_s26 = scalar_select %p190_p11, %s799_s15, 1  ;;  %v267_v1 = vshrl.u32 %v266_v0, 7 }
  0x19   : > { %s188_s11 = scalar_lea.vmem [#allocation2], %s1386_s9  ;;  %s1407_s23 = scalar_lea.hbm %s1462_s3, %s671_s10 }
  0x1a   : > { %s670_s27 = sshll.u32 %s191_s26, 9  ;;  %v268_v2 = vsub.s32 0, %v267_v1  ;;  %v272_v4 = vsub.s32 1, %v267_v1  ;;  %s578_s18 = sshll.u32 %s188_s11, 4  ;;  %s1409_s18 = int_to_ptr.vmem [resolvable:$true] %s578_s18 }
  0x1b   : > { %s895_s5 = scalar_lea.vmem %s1459_s0, %s670_s27  ;;  %s1413_s15 = scalar_lea.sflag [#allocation3], %s186_s8 }
  0x1c   : > { %v897_v5 = vrot.slane %v264_v3, %v268_v2  ;;  %v200_v6 = vld [vmem:[%s895_s5] sm:$0xff]  ;;  %v900_v7 = vrot.slane %v264_v3, %v272_v4  ;;  %v201_v9 = vld [vmem:[%s895_s5 + $0x8] sm:$0xff]  ;;  %v202_v10 = vld [vmem:[%s895_s5 + $0x10] sm:$0xff]  ;;  %v913_v17 = vrot.slane %v340_v8, %v268_v2  ;;  %v919_v22 = vrot.slane %v340_v8, %v272_v4  ;;  %s729_s26 = scalar_lea.vmem %s1409_s18, 512  ;;  %s809_s27 = smov [#allocation2]  }
  0x1d   : > { %v203_v11 = vld [vmem:[%s895_s5 + $0x18] sm:$0xff]  ;;  %v204_v12 = vld [vmem:[%s895_s5 + $0x20] sm:$0xff]  ;;  %v205_v13 = vld [vmem:[%s895_s5 + $0x28] sm:$0xff]  ;;  %p730_p12 = scmp.ne.s32.totalorder %s1409_s18, %s729_s26  ;;  %s733_s28 = sshll.u32 %s809_s27, 4  ;;  %s734_s28 = int_to_ptr.vmem [resolvable:$false] %s733_s28 }
  0x1e   : > { %v206_v14 = vld [vmem:[%s895_s5 + $0x30] sm:$0xff]  ;;  %v207_v15 = vld [vmem:[%s895_s5 + $0x38] sm:$0xff]  ;;  %v276_v16 = vmul.f32 %v897_v5, %v200_v6  ;;  %v208_v18 = vld [vmem:[%s895_s5 + $0x40] sm:$0xff]  ;;  %v277_v21 = vmul.f32 %v900_v7, %v201_v9  ;;  %v278_v26 = vmul.f32 %v897_v5, %v202_v10  ;;  %v279_v27 = vmul.f32 %v900_v7, %v203_v11  ;;  %s735_s29 = scalar_lea.vmem %s734_s28, 1024  ;;  %p736_p1 = scmp.lt.s32.totalorder %s1409_s18, %s734_s28 }
  0x1f   : > { %v209_v19 = vld [vmem:[%s895_s5 + $0x48] sm:$0xff]  ;;  %v210_v20 = vld [vmem:[%s895_s5 + $0x50] sm:$0xff]  ;;  %v211_v23 = vld [vmem:[%s895_s5 + $0x58] sm:$0xff]  ;;  %v280_v31 = vmul.f32 %v897_v5, %v204_v12  ;;  %v281_v32 = vmul.f32 %v900_v7, %v205_v13  ;;  %v282_v33 = vmul.f32 %v897_v5, %v206_v14  ;;  %v283_v34 = vmul.f32 %v900_v7, %v207_v15  ;;  %p731_p13 = pnand %p730_p12, %p872_p4  ;;  %p737_p2 = scmp.lt.s32.totalorder %s735_s29, %s729_s26 }
  0x20   : > { %v212_v24 = vld [vmem:[%s895_s5 + $0x60] sm:$0xff]  ;;  %v213_v25 = vld [vmem:[%s895_s5 + $0x68] sm:$0xff]  ;;  %v214_v28 = vld [vmem:[%s895_s5 + $0x70] sm:$0xff]  ;;  %v284_v38 = vmul.f32 %v897_v5, %v208_v18  ;;  %v938_v39 = vmul.f32 %v900_v7, %v209_v19  ;;  %v941_v40 = vmul.f32 %v897_v5, %v210_v20  ;;  %v944_v41 = vadd.f32 %v913_v17, %v276_v16 }
  0x21   : > { %v215_v29 = vld [vmem:[%s895_s5 + $0x78] sm:$0xff]  ;;  %v216_v30 = vld [vmem:[%s895_s5 + $0x80] sm:$0xff]  ;;  %v217_v35 = vld [vmem:[%s895_s5 + $0x88] sm:$0xff]  ;;  %v950_v45 = vmul.f32 %v900_v7, %v211_v23  ;;  %v953_v46 = vmul.f32 %v897_v5, %v212_v24  ;;  %v956_v47 = vmul.f32 %v900_v7, %v213_v25  ;;  %v959_v48 = vadd.f32 %v919_v22, %v277_v21  ;;  %p732_p0 = pneg %p731_p13  ;;  %p738_p3 = por %p737_p2, %p736_p1 }
  0x22   : > { %v218_v36 = vld [vmem:[%s895_s5 + $0x90] sm:$0xff]  ;;  %v219_v37 = vld [vmem:[%s895_s5 + $0x98] sm:$0xff]  ;;  %v220_v42 = vld [vmem:[%s895_s5 + $0xa0] sm:$0xff]  ;;  %v965_v52 = vmul.f32 %v897_v5, %v214_v28  ;;  %v968_v53 = vmul.f32 %v900_v7, %v215_v29  ;;  %v971_v54 = vmul.f32 %v897_v5, %v216_v30  ;;  %v974_v55 = vadd.f32 %v913_v17, %v278_v26 }
  0x23   : > { %v221_v43 = vld [vmem:[%s895_s5 + $0xa8] sm:$0xff]  ;;  %v222_v44 = vld [vmem:[%s895_s5 + $0xb0] sm:$0xff]  ;;  %v223_v49 = vld [vmem:[%s895_s5 + $0xb8] sm:$0xff]  ;;  %v980_v59 = vmul.f32 %v900_v7, %v217_v35  ;;  %v983_v60 = vmul.f32 %v897_v5, %v218_v36  ;;  %v986_v61 = vmul.f32 %v900_v7, %v219_v37  ;;  %v989_v62 = vadd.f32 %v919_v22, %v279_v27  ;;  %p739_p5 = pnand %p738_p3, %p732_p0 }
  0x24   : > { %v224_v50 = vld [vmem:[%s895_s5 + $0xc0] sm:$0xff]  ;;  %v225_v51 = vld [vmem:[%s895_s5 + $0xc8] sm:$0xff]  ;;  %1465 = vst [vmem:[#allocation5_spill] sm:$0xff] %v974_v55  ;;  %v226_v56 = vld [vmem:[%s895_s5 + $0xd0] sm:$0xff]  ;;  %v995_v2 = vmul.f32 %v897_v5, %v220_v42  ;;  %v998_v3 = vmul.f32 %v900_v7, %v221_v43  ;;  %v1001_v4 = vmul.f32 %v897_v5, %v222_v44  ;;  %v1004_v6 = vadd.f32 %v913_v17, %v280_v31 }
  0x25   : > { %v227_v57 = vld [vmem:[%s895_s5 + $0xd8] sm:$0xff]  ;;  %v228_v58 = vld [vmem:[%s895_s5 + $0xe0] sm:$0xff]  ;;  %1466 = vst [vmem:[#allocation6_spill] sm:$0xff] %v989_v62  ;;  %v229_v63 = vld [vmem:[%s895_s5 + $0xe8] sm:$0xff]  ;;  %v1010_v11 = vmul.f32 %v900_v7, %v223_v49  ;;  %v1013_v12 = vmul.f32 %v897_v5, %v224_v50  ;;  %v1016_v13 = vmul.f32 %v900_v7, %v225_v51  ;;  %v1019_v14 = vadd.f32 %v919_v22, %v281_v32 }
  0x26   : > { %v230_v0 = vld [vmem:[%s895_s5 + $0xf0] sm:$0xff]  ;;  %v231_v1 = vld [vmem:[%s895_s5 + $0xf8] sm:$0xff]  ;;  %1467 = vst [vmem:[#allocation7_spill] sm:$0xff] %v1004_v6  ;;  %v232_v8 = vld [vmem:[%s895_s5 + $0x100] sm:$0xff]  ;;  %v1025_v19 = vmul.f32 %v897_v5, %v226_v56  ;;  %v1028_v20 = vmul.f32 %v900_v7, %v227_v57  ;;  %v1031_v21 = vmul.f32 %v897_v5, %v228_v58  ;;  %v1034_v23 = vadd.f32 %v913_v17, %v282_v33 }
  0x27   : > { %v233_v9 = vld [vmem:[%s895_s5 + $0x108] sm:$0xff]  ;;  %v234_v10 = vld [vmem:[%s895_s5 + $0x110] sm:$0xff]  ;;  %1468 = vst [vmem:[#allocation8_spill] sm:$0xff] %v1019_v14  ;;  %v235_v15 = vld [vmem:[%s895_s5 + $0x118] sm:$0xff]  ;;  %v1040_v27 = vmul.f32 %v900_v7, %v229_v63  ;;  %v1043_v28 = vmul.f32 %v897_v5, %v230_v0  ;;  %v1046_v29 = vmul.f32 %v900_v7, %v231_v1  ;;  %v1049_v30 = vadd.f32 %v919_v22, %v283_v34 }
  0x28   : > { %v236_v16 = vld [vmem:[%s895_s5 + $0x120] sm:$0xff]  ;;  %v237_v18 = vld [vmem:[%s895_s5 + $0x128] sm:$0xff]  ;;  %1469 = vst [vmem:[#allocation9_spill] sm:$0xff] %v1034_v23  ;;  %v238_v24 = vld [vmem:[%s895_s5 + $0x130] sm:$0xff]  ;;  %v1055_v35 = vmul.f32 %v897_v5, %v232_v8  ;;  %v1058_v36 = vmul.f32 %v900_v7, %v233_v9  ;;  %v1061_v37 = vmul.f32 %v897_v5, %v234_v10  ;;  %v1064_v42 = vadd.f32 %v913_v17, %v284_v38 }
  0x29   : > { %v239_v25 = vld [vmem:[%s895_s5 + $0x138] sm:$0xff]  ;;  %v240_v26 = vld [vmem:[%s895_s5 + $0x140] sm:$0xff]  ;;  %1470 = vst [vmem:[#allocation10_spill] sm:$0xff] %v1049_v30  ;;  %v241_v31 = vld [vmem:[%s895_s5 + $0x148] sm:$0xff]  ;;  %v1070_v49 = vmul.f32 %v900_v7, %v235_v15  ;;  %v1073_v50 = vmul.f32 %v897_v5, %v236_v16  ;;  %v1076_v51 = vmul.f32 %v900_v7, %v237_v18  ;;  %v1080_v56 = vadd.f32 %v919_v22, %v938_v39 }
  0x2a   : > { %v242_v32 = vld [vmem:[%s895_s5 + $0x150] sm:$0xff]  ;;  %v243_v33 = vld [vmem:[%s895_s5 + $0x158] sm:$0xff]  ;;  %1471 = vst [vmem:[#allocation11_spill] sm:$0xff] %v1064_v42  ;;  %v244_v34 = vld [vmem:[%s895_s5 + $0x160] sm:$0xff]  ;;  %v1086_v63 = vmul.f32 %v897_v5, %v238_v24  ;;  %v1089_v0 = vmul.f32 %v900_v7, %v239_v25  ;;  %v1092_v1 = vmul.f32 %v897_v5, %v240_v26  ;;  %v1096_v8 = vadd.f32 %v913_v17, %v941_v40 }
  0x2b   : > { %v245_v43 = vld [vmem:[%s895_s5 + $0x168] sm:$0xff]  ;;  %v246_v44 = vld [vmem:[%s895_s5 + $0x170] sm:$0xff]  ;;  %1472 = vst [vmem:[#allocation12_spill] sm:$0xff] %v1080_v56  ;;  %v247_v38 = vld [vmem:[%s895_s5 + $0x178] sm:$0xff]  ;;  %v1102_v15 = vmul.f32 %v900_v7, %v241_v31  ;;  %v1105_v16 = vmul.f32 %v897_v5, %v242_v32  ;;  %v1108_v18 = vmul.f32 %v900_v7, %v243_v33  ;;  %v1112_v24 = vadd.f32 %v919_v22, %v950_v45 }
  0x2c   : > { %v248_v57 = vld [vmem:[%s895_s5 + $0x180] sm:$0xff]  ;;  %v249_v58 = vld [vmem:[%s895_s5 + $0x188] sm:$0xff]  ;;  %1473 = vst [vmem:[#allocation13_spill] sm:$0xff] %v1096_v8  ;;  %v250_v39 = vld [vmem:[%s895_s5 + $0x190] sm:$0xff]  ;;  %v320_v8 = vmul.f32 %v897_v5, %v244_v34  ;;  %v321_v31 = vmul.f32 %v900_v7, %v245_v43  ;;  %v322_v32 = vmul.f32 %v897_v5, %v246_v44  ;;  %v1122_v33 = vadd.f32 %v913_v17, %v953_v46 }
  0x2d   : > { %v251_v9 = vld [vmem:[%s895_s5 + $0x198] sm:$0xff]  ;;  %v252_v10 = vld [vmem:[%s895_s5 + $0x1a0] sm:$0xff]  ;;  %1474 = vst [vmem:[#allocation14_spill] sm:$0xff] %v1112_v24  ;;  %v253_v40 = vld [vmem:[%s895_s5 + $0x1a8] sm:$0xff]  ;;  %v323_v42 = vmul.f32 %v900_v7, %v247_v38  ;;  %v324_v30 = vmul.f32 %v897_v5, %v248_v57  ;;  %v325_v23 = vmul.f32 %v900_v7, %v249_v58  ;;  %v1132_v34 = vadd.f32 %v919_v22, %v956_v47 }
  0x2e   : > { %v254_v25 = vld [vmem:[%s895_s5 + $0x1b0] sm:$0xff]  ;;  %v255_v26 = vld [vmem:[%s895_s5 + $0x1b8] sm:$0xff]  ;;  %1475 = vst [vmem:[#allocation15_spill] sm:$0xff] %v1122_v33  ;;  %v256_v56 = vld [vmem:[%s895_s5 + $0x1c0] sm:$0xff]  ;;  %v326_v46 = vmul.f32 %v897_v5, %v250_v39  ;;  %v327_v33 = vmul.f32 %v900_v7, %v251_v9  ;;  %v328_v55 = vmul.f32 %v897_v5, %v252_v10  ;;  %v1142_v38 = vadd.f32 %v913_v17, %v965_v52 }
  0x2f   : > { %v257_v45 = vld [vmem:[%s895_s5 + $0x1c8] sm:$0xff]  ;;  %v258_v24 = vld [vmem:[%s895_s5 + $0x1d0] sm:$0xff]  ;;  %1476 = vst [vmem:[#allocation16_spill] sm:$0xff] %v1132_v34  ;;  %v259_v43 = vld [vmem:[%s895_s5 + $0x1d8] sm:$0xff]  ;;  %v329_v58 = vmul.f32 %v900_v7, %v253_v40  ;;  %v330_v47 = vmul.f32 %v897_v5, %v254_v25  ;;  %v331_v34 = vmul.f32 %v900_v7, %v255_v26  ;;  %v1151_v6 = vadd.f32 %v919_v22, %v968_v53 }
  0x30   : > { %v260_v44 = vld [vmem:[%s895_s5 + $0x1e0] sm:$0xff]  ;;  %v261_v62 = vld [vmem:[%s895_s5 + $0x1e8] sm:$0xff]  ;;  %v262_v57 = vld [vmem:[%s895_s5 + $0x1f0] sm:$0xff]  ;;  %v332_v39 = vmul.f32 %v897_v5, %v256_v56  ;;  %v333_v9 = vmul.f32 %v900_v7, %v257_v45  ;;  %v334_v10 = vmul.f32 %v897_v5, %v258_v24  ;;  %v1158_v52 = vadd.f32 %v913_v17, %v971_v54 }
  0x31   : > { %v263_v14 = vld [vmem:[%s895_s5 + $0x1f8] sm:$0xff]  ;;  %v335_v40 = vmul.f32 %v900_v7, %v259_v43  ;;  %v336_v25 = vmul.f32 %v897_v5, %v260_v44  ;;  %v337_v26 = vmul.f32 %v900_v7, %v261_v62  ;;  %v1165_v53 = vadd.f32 %v919_v22, %v980_v59 }
  0x32   : > { %v338_v56 = vmul.f32 %v897_v5, %v262_v57  ;;  %v339_v45 = vmul.f32 %v900_v7, %v263_v14  ;;  %v1171_v24 = vadd.f32 %v913_v17, %v983_v60  ;;  %v1175_v54 = vadd.f32 %v919_v22, %v986_v61  ;;  %v1488_v57 = vld [vmem:[#allocation7_spill] sm:$0xff] }
  0x33   : > { %v1179_v43 = vadd.f32 %v913_v17, %v995_v2  ;;  %v1183_v59 = vadd.f32 %v919_v22, %v998_v3  ;;  %v1187_v5 = vadd.f32 %v913_v17, %v1001_v4  ;;  %v1191_v7 = vadd.f32 %v919_v22, %v1010_v11 }
  0x34   : > { %v1195_v60 = vadd.f32 %v913_v17, %v1013_v12  ;;  %v1199_v61 = vadd.f32 %v919_v22, %v1016_v13  ;;  %v1203_v62 = vadd.f32 %v913_v17, %v1025_v19  ;;  %v1207_v2 = vadd.f32 %v919_v22, %v1028_v20 }
  0x35   : > { %v1211_v3 = vadd.f32 %v913_v17, %v1031_v21  ;;  %v1215_v4 = vadd.f32 %v919_v22, %v1040_v27  ;;  %v1219_v11 = vadd.f32 %v913_v17, %v1043_v28  ;;  %v1223_v12 = vadd.f32 %v919_v22, %v1046_v29 }
  0x36   : > { %v1227_v13 = vadd.f32 %v913_v17, %v1055_v35  ;;  %v1231_v14 = vadd.f32 %v919_v22, %v1058_v36  ;;  %v1235_v19 = vadd.f32 %v913_v17, %v1061_v37  ;;  %v1239_v20 = vadd.f32 %v919_v22, %v1070_v49 }
  0x37   : > { %v1243_v21 = vadd.f32 %v913_v17, %v1073_v50  ;;  %v1247_v27 = vadd.f32 %v919_v22, %v1076_v51  ;;  %v1251_v28 = vadd.f32 %v913_v17, %v1086_v63  ;;  %v1255_v29 = vadd.f32 %v919_v22, %v1089_v0 }
  0x38   : > { %v1259_v35 = vadd.f32 %v913_v17, %v1092_v1  ;;  %v1263_v36 = vadd.f32 %v919_v22, %v1102_v15  ;;  %v1267_v37 = vadd.f32 %v913_v17, %v1105_v16  ;;  %v1271_v49 = vadd.f32 %v919_v22, %v1108_v18 }
  0x39   : > { %v1274_v50 = vadd.f32 %v913_v17, %v320_v8  ;;  %v1277_v51 = vadd.f32 %v919_v22, %v321_v31  ;;  %v1280_v63 = vadd.f32 %v913_v17, %v322_v32  ;;  %v1283_v0 = vadd.f32 %v919_v22, %v323_v42 }
  0x3a   : > { %v1286_v1 = vadd.f32 %v913_v17, %v324_v30  ;;  %v1289_v15 = vadd.f32 %v919_v22, %v325_v23  ;;  %v1292_v16 = vadd.f32 %v913_v17, %v326_v46  ;;  %v1295_v8 = vadd.f32 %v919_v22, %v327_v33 }
  0x3b   : > { %v1298_v18 = vadd.f32 %v913_v17, %v328_v55  ;;  %v1301_v31 = vadd.f32 %v919_v22, %v329_v58  ;;  %v1304_v42 = vadd.f32 %v913_v17, %v330_v47  ;;  %v1307_v30 = vadd.f32 %v919_v22, %v331_v34  ;;  %v1489_v34 = vld [vmem:[#allocation8_spill] sm:$0xff] }
  0x3c   : > { %1477 = vst [vmem:[#allocation17_spill] sm:$0xff] %v1289_v15  ;;  %1478 = vst [vmem:[#allocation18_spill] sm:$0xff] %v1292_v16  ;;  %v1310_v23 = vadd.f32 %v913_v17, %v332_v39  ;;  %v1313_v32 = vadd.f32 %v919_v22, %v333_v9  ;;  %v1316_v33 = vadd.f32 %v913_v17, %v334_v10  ;;  %v416_v44 = vmax.f32 %v944_v41, 0.0  ;;  %v1492_v9 = vld [vmem:[#allocation9_spill] sm:$0xff]  ;;  %v1496_v41 = vld [vmem:[#allocation11_spill] sm:$0xff] }
  0x3d   : > { %1479 = vst [vmem:[#allocation19_spill] sm:$0xff] %v1295_v8  ;;  %1480 = vst [vmem:[#allocation20_spill] sm:$0xff] %v1298_v18  ;;  %v1319_v55 = vadd.f32 %v919_v22, %v335_v40  ;;  %v417_v46 = vmax.f32 %v959_v48, 0.0  ;;  %v420_v58 = vmax.f32 %v1488_v57, 0.0  ;;  %v421_v47 = vmax.f32 %v1489_v34, 0.0  ;;  %v1500_v18 = vld [vmem:[#allocation14_spill] sm:$0xff] }
  0x3e   : > { %1481 = vst [vmem:[#allocation21_spill] sm:$0xff] %v1301_v31  ;;  %1482 = vst [vmem:[#allocation22_spill] sm:$0xff] %v1304_v42  ;;  %v1493_v31 = vld [vmem:[#allocation10_spill] sm:$0xff]  ;;  %v1333_v40 = vadd.f32 %v919_v22, %v337_v26  ;;  %v424_v48 = vmax.f32 %v1496_v41, 0.0  ;;  %v1338_v34 = vadd.f32 %v913_v17, %v338_v56  ;;  %v1501_v8 = vld [vmem:[#allocation15_spill] sm:$0xff]  ;;  %v430_v41 = vmax.f32 %v1142_v38, 0.0 }
  0x3f   : > { %1483 = vst [vmem:[#allocation23_spill] sm:$0xff] %v1307_v30  ;;  %1484 = vst [vmem:[#allocation24_spill] sm:$0xff] %v1310_v23  ;;  %v1490_v30 = vld [vmem:[#allocation5_spill] sm:$0xff]  ;;  %v1491_v23 = vld [vmem:[#allocation6_spill] sm:$0xff]  ;;  %v423_v10 = vmax.f32 %v1493_v31, 0.0  ;;  %v427_v31 = vmax.f32 %v1500_v18, 0.0  ;;  %v480_v26 = vmax.f32 %v416_v44, %v420_v58 }
  0x40   : > { %1485 = vst [vmem:[#allocation25_spill] sm:$0xff] %v1313_v32  ;;  %1486 = vst [vmem:[#allocation26_spill] sm:$0xff] %v1316_v33  ;;  %v418_v39 = vmax.f32 %v1490_v30, 0.0  ;;  %v419_v42 = vmax.f32 %v1491_v23, 0.0  ;;  %v422_v32 = vmax.f32 %v1492_v9, 0.0  ;;  %v1330_v33 = vadd.f32 %v913_v17, %v336_v25  ;;  %v1499_v23 = vld [vmem:[#allocation13_spill] sm:$0xff] }
  0x41   : > { %1487 = vst [vmem:[#allocation27_spill] sm:$0xff] %v1319_v55  ;;  %1495 = vst [vmem:[#allocation8_spill] sm:$0xff] %v1333_v40  ;;  %v1497_v55 = vld [vmem:[#allocation12_spill] sm:$0xff]  ;;  %v1341_v30 = vadd.f32 %v919_v22, %v339_v45  ;;  %v426_v9 = vmax.f32 %v1499_v23, 0.0  ;;  %v428_v25 = vmax.f32 %v1501_v8, 0.0  ;;  %v481_v40 = vmax.f32 %v417_v46, %v421_v47 }
  0x42   : > { %1494 = vst [vmem:[#allocation7_spill] sm:$0xff] %v1330_v33  ;;  %v425_v57 = vmax.f32 %v1497_v55, 0.0  ;;  %v1502_v33 = vld [vmem:[#allocation16_spill] sm:$0xff]  ;;  %v431_v55 = vmax.f32 %v1151_v6, 0.0  ;;  %v482_v15 = vmax.f32 %v418_v39, %v422_v32  ;;  %v483_v17 = vmax.f32 %v419_v42, %v423_v10 }
  0x43   : > { %1498 = vst [vmem:[#allocation5_spill] sm:$0xff] %v1341_v30  ;;  %v429_v16 = vmax.f32 %v1502_v33, 0.0  ;;  %v432_v56 = vmax.f32 %v1158_v52, 0.0  ;;  %v433_v22 = vmax.f32 %v1165_v53, 0.0  ;;  %v484_v45 = vmax.f32 %v480_v26, %v424_v48 }
  0x44   : > { %v485_v23 = vmax.f32 %v481_v40, %v425_v57  ;;  %v434_v18 = vmax.f32 %v1171_v24, 0.0  ;;  %v435_v8 = vmax.f32 %v1175_v54, 0.0  ;;  %v486_v30 = vmax.f32 %v482_v15, %v426_v9 }
  0x45   : > { %v487_v33 = vmax.f32 %v483_v17, %v427_v31  ;;  %v436_v44 = vmax.f32 %v1179_v43, 0.0  ;;  %v437_v38 = vmax.f32 %v1183_v59, 0.0  ;;  %v488_v46 = vmax.f32 %v484_v45, %v428_v25 }
  0x46   : > { %v489_v6 = vmax.f32 %v485_v23, %v429_v16  ;;  %v438_v42 = vmax.f32 %v1187_v5, 0.0  ;;  %v439_v52 = vmax.f32 %v1191_v7, 0.0  ;;  %v490_v32 = vmax.f32 %v486_v30, %v430_v41 }
  0x47   : > { %v491_v53 = vmax.f32 %v487_v33, %v431_v55  ;;  %v440_v58 = vmax.f32 %v1195_v60, 0.0  ;;  %v441_v24 = vmax.f32 %v1199_v61, 0.0  ;;  %v492_v47 = vmax.f32 %v488_v46, %v432_v56 }
  0x48   : > { %v493_v54 = vmax.f32 %v489_v6, %v433_v22  ;;  %v442_v15 = vmax.f32 %v1203_v62, 0.0  ;;  %v443_v43 = vmax.f32 %v1207_v2, 0.0  ;;  %v494_v39 = vmax.f32 %v490_v32, %v434_v18 }
  0x49   : > { %v495_v59 = vmax.f32 %v491_v53, %v435_v8  ;;  %v444_v16 = vmax.f32 %v1211_v3, 0.0  ;;  %v445_v5 = vmax.f32 %v1215_v4, 0.0  ;;  %v496_v10 = vmax.f32 %v492_v47, %v436_v44  ;;  %v1503_v44 = vld [vmem:[#allocation17_spill] sm:$0xff] }
  0x4a   : > { %v497_v7 = vmax.f32 %v493_v54, %v437_v38  ;;  %v446_v40 = vmax.f32 %v1219_v11, 0.0  ;;  %v447_v60 = vmax.f32 %v1223_v12, 0.0  ;;  %v498_v48 = vmax.f32 %v494_v39, %v438_v42 }
  0x4b   : > { %v499_v61 = vmax.f32 %v495_v59, %v439_v52  ;;  %v448_v57 = vmax.f32 %v1227_v13, 0.0  ;;  %v449_v62 = vmax.f32 %v1231_v14, 0.0  ;;  %v500_v30 = vmax.f32 %v496_v10, %v440_v58  ;;  %v1511_v10 = vld [vmem:[#allocation25_spill] sm:$0xff] }
  0x4c   : > { %v501_v2 = vmax.f32 %v497_v7, %v441_v24  ;;  %v450_v9 = vmax.f32 %v1235_v19, 0.0  ;;  %v451_v3 = vmax.f32 %v1239_v20, 0.0  ;;  %v502_v31 = vmax.f32 %v498_v48, %v442_v15  ;;  %v1509_v15 = vld [vmem:[#allocation23_spill] sm:$0xff]  ;;  %v1512_v48 = vld [vmem:[#allocation26_spill] sm:$0xff] }
  0x4d   : > { %v503_v4 = vmax.f32 %v499_v61, %v443_v43  ;;  %v452_v25 = vmax.f32 %v1243_v21, 0.0  ;;  %v453_v11 = vmax.f32 %v1247_v27, 0.0  ;;  %v504_v12 = vmax.f32 %v500_v30, %v444_v16  ;;  %v1510_v16 = vld [vmem:[#allocation24_spill] sm:$0xff] }
  0x4e   : > { %v505_v26 = vmax.f32 %v501_v2, %v445_v5  ;;  %v454_v41 = vmax.f32 %v1251_v28, 0.0  ;;  %v455_v13 = vmax.f32 %v1255_v29, 0.0  ;;  %v506_v14 = vmax.f32 %v502_v31, %v446_v40  ;;  %v1515_v31 = vld [vmem:[#allocation8_spill] sm:$0xff] }
  0x4f   : > { %v507_v55 = vmax.f32 %v503_v4, %v447_v60  ;;  %v456_v17 = vmax.f32 %v1259_v35, 0.0  ;;  %v457_v19 = vmax.f32 %v1263_v36, 0.0  ;;  %v508_v20 = vmax.f32 %v504_v12, %v448_v57  ;;  %v1513_v57 = vld [vmem:[#allocation27_spill] sm:$0xff] }
  0x50   : > { %v509_v56 = vmax.f32 %v505_v26, %v449_v62  ;;  %v458_v22 = vmax.f32 %v1267_v37, 0.0  ;;  %v459_v21 = vmax.f32 %v1271_v49, 0.0  ;;  %v510_v27 = vmax.f32 %v506_v14, %v450_v9  ;;  %v1514_v9 = vld [vmem:[#allocation7_spill] sm:$0xff]  ;;  %v1516_v26 = vld [vmem:[#allocation5_spill] sm:$0xff] }
  0x51   : > { %v511_v45 = vmax.f32 %v507_v55, %v451_v3  ;;  %v460_v28 = vmax.f32 %v1274_v50, 0.0  ;;  %v461_v29 = vmax.f32 %v1277_v51, 0.0  ;;  %v512_v23 = vmax.f32 %v508_v20, %v452_v25  ;;  %v1504_v50 = vld [vmem:[#allocation18_spill] sm:$0xff]  ;;  %v1505_v51 = vld [vmem:[#allocation19_spill] sm:$0xff] }
  0x52   : > { %v513_v18 = vmax.f32 %v509_v56, %v453_v11  ;;  %v462_v35 = vmax.f32 %v1280_v63, 0.0  ;;  %v463_v36 = vmax.f32 %v1283_v0, 0.0  ;;  %v514_v8 = vmax.f32 %v510_v27, %v454_v41  ;;  %v1506_v63 = vld [vmem:[#allocation20_spill] sm:$0xff]  ;;  %v1507_v0 = vld [vmem:[#allocation21_spill] sm:$0xff] }
  0x53   : > { %v515_v33 = vmax.f32 %v511_v45, %v455_v13  ;;  %v464_v37 = vmax.f32 %v1286_v1, 0.0  ;;  %v465_v49 = vmax.f32 %v1503_v44, 0.0  ;;  %v516_v38 = vmax.f32 %v512_v23, %v456_v17  ;;  %v1508_v1 = vld [vmem:[#allocation22_spill] sm:$0xff] }
  0x54   : > { %v517_v46 = vmax.f32 %v513_v18, %v457_v19  ;;  %v466_v6 = vmax.f32 %v1504_v50, 0.0  ;;  %v467_v42 = vmax.f32 %v1505_v51, 0.0  ;;  %v518_v52 = vmax.f32 %v514_v8, %v458_v22 }
  0x55   : > { %v519_v32 = vmax.f32 %v515_v33, %v459_v21  ;;  %v468_v53 = vmax.f32 %v1506_v63, 0.0  ;;  %v469_v58 = vmax.f32 %v1507_v0, 0.0  ;;  %v520_v24 = vmax.f32 %v516_v38, %v460_v28 }
  0x56   : > { %v521_v47 = vmax.f32 %v517_v46, %v461_v29  ;;  %v470_v54 = vmax.f32 %v1508_v1, 0.0  ;;  %v471_v43 = vmax.f32 %v1509_v15, 0.0  ;;  %v522_v39 = vmax.f32 %v518_v52, %v462_v35 }
  0x57   : > { %v523_v59 = vmax.f32 %v519_v32, %v463_v36  ;;  %v472_v5 = vmax.f32 %v1510_v16, 0.0  ;;  %v473_v7 = vmax.f32 %v1511_v10, 0.0  ;;  %v524_v40 = vmax.f32 %v520_v24, %v464_v37 }
  0x58   : > { %v525_v60 = vmax.f32 %v521_v47, %v465_v49  ;;  %v474_v61 = vmax.f32 %v1512_v48, 0.0  ;;  %v475_v62 = vmax.f32 %v1513_v57, 0.0  ;;  %v526_v30 = vmax.f32 %v522_v39, %v466_v6 }
  0x59   : > { %v527_v2 = vmax.f32 %v523_v59, %v467_v42  ;;  %v476_v3 = vmax.f32 %v1514_v9, 0.0  ;;  %v477_v4 = vmax.f32 %v1515_v31, 0.0  ;;  %v528_v25 = vmax.f32 %v524_v40, %v468_v53 }
  0x5a   : > { %v529_v11 = vmax.f32 %v525_v60, %v469_v58  ;;  %v478_v12 = vmax.f32 %v1338_v34, 0.0  ;;  %v479_v41 = vmax.f32 %v1516_v26, 0.0  ;;  %v530_v13 = vmax.f32 %v526_v30, %v470_v54 }
  0x5b   : > { %v531_v14 = vmax.f32 %v527_v2, %v471_v43  ;;  %v532_v55 = vmax.f32 %v528_v25, %v472_v5 }
  0x5c   : > { %v533_v17 = vmax.f32 %v529_v11, %v473_v7  ;;  %v534_v19 = vmax.f32 %v530_v13, %v474_v61 }
  0x5d   : > { %v535_v20 = vmax.f32 %v531_v14, %v475_v62  ;;  %v536_v56 = vmax.f32 %v532_v55, %v476_v3 }
  0x5e   : > { %v537_v22 = vmax.f32 %v533_v17, %v477_v4  ;;  %v538_v34 = vmax.f32 %v534_v19, %v478_v12 }
  0x5f   : > { %v539_v21 = vmax.f32 %v535_v20, %v479_v41  ;;  %544 = vst [vmem:[%s188_s11] sm:$0xff] %v536_v56 }
  0x60   : > { %545 = vst [vmem:[%s188_s11 + $0x8] sm:$0xff] %v537_v22  ;;  %546 = vst [vmem:[%s188_s11 + $0x10] sm:$0xff] %v538_v34 }
  0x61   : > { %547 = vst [vmem:[%s188_s11 + $0x18] sm:$0xff] %v539_v21 }
  0x62   : > { %742 = shalt.err (!%p739_p5)
}
  0x63   : > { %s743_s30 = scalar_lea.hbm %s1407_s23, 512  ;;  %s747_s6 = scalar_lea.hbm %s1462_s3, 1024 }
  0x64   : > { %p744_p6 = scmp.ne.s32.totalorder %s1407_s23, %s743_s30  ;;  %p748_p10 = scmp.lt.u32.totalorder %s1407_s23, %s1462_s3 }
  0x65   : > { %p749_p11 = scmp.lt.u32.totalorder %s747_s6, %s743_s30  ;;  %p751_p13 = scmp.lt.u32.totalorder %s743_s30, %s1407_s23 }
  0x66   : > { %p745_p7 = pnand %p744_p6, %p872_p4 }
  0x67   : > { %p750_p12 = por %p749_p11, %p748_p10 }
  0x68   : > { %p746_p9 = pneg %p745_p7 }
  0x69   : > { %p752_p0 = por %p751_p13, %p750_p12 }
  0x6b   : > { %p753_p1 = pnand %p752_p0, %p746_p9 }
  0x6d   : > { %756 = shalt.err (!%p753_p1)
}
  0x6e   : > { %s810_s9 = smov 256   ;;  %s811_s10 = smov 16  }
  0x6f   : > { %672 = dma.vmem_to_hbm [thread:$0]  (%p872_p4), %s1409_s18, 512, %s1407_s23, %s1413_s15, %s810_s9, %s810_s9, %s811_s10  }
  0x70 PF: > { %p678_p2 = scmp.ge.s32.totalorder %s807_s17, 2  ;;  %s593_s11 = sand.u32 1, %s787_s12  }
  0x71   : > { %s594_s19 = scalar_lea.sflag [#allocation3], %s593_s11 }
  0x72   : > { %p675_p3 = pnand %p678_p2, %p879_p8 }
  0x74   : > { %782 = dma.done.wait (!%p675_p3), %s594_s19, 512  }
  0x75   : > { %784 = vsyncadd (!%p675_p3), %s594_s19, 4294966784  ;;  %s16_s17 = sadd.s32 1, %s807_s17   ;;  %s1517_s12 = smov %s791_s13 }
  0x76   : > { %p13_p5 = scmp.ge.s32.totalorder %s16_s17, 4   ;;  %s1518_s13 = smov %s795_s14 }
  0x77   : > { %s1519_s14 = smov %s885_s25  ;;  %s1520_s15 = smov %s803_s16 }
  0x78   : > { %s1521_s16 = smov %s1523_s20  ;;  %15 = sbr.rel (!%p13_p5) target bundleno = 4 (0x4), region = 75 }
  0x7f   :  { %599 = vsyncpa [#allocation3], 1 }
  0x80   :  { %601 = vsyncpa [#allocation3 + $0x1], 1 }

// kernel: vae_cnn_forward.10
= control target key start
LH: loop header
LB: loop body
LE: loop exit
PB: predicated region body
PF: predicated region fallthrough
CT: control target
= control target key end

     0   :  { %s5670_s12 = smov 0   ;;  %s5672_s13 = smov 0   ;;  %s7441_s0 = inlined_call_operand.vmem [shape: bf16[2,1,288,384], index: 0, kind: input, shape index: {}]   ;;  %s7442_s1 = inlined_call_operand.vmem [shape: bf16[3,384,256], index: 1, kind: input, shape index: {}]   ;;  %s7443_s2 = inlined_call_operand.vmem [shape: f32[2,256,256], index: 2, kind: output, shape index: {0}]   ;;  %s7444_s3 = inlined_call_operand.vmem [shape: f32[2,1,2,256], index: 3, kind: output, shape index: {1}]  }
   0x1   :  { %s5674_s14 = smov 0  }
   0x2 LB: > { %s26_s15 = sadd.s32 1, %s5642_s13  ;;  %p4138_p0 = scmp.ge.s32.totalorder %s5646_s14, 1  ;;  %s5646_s14 = sphi %s5674_s14, %s14_s14   ;;  %s5642_s13 = sphi %s5672_s13, %s7539_s13   ;;  %s5638_s12 = sphi %s5670_s12, %s7538_s12  }
   0x3   : > { %p28_p1 = scmp.ge.s32.totalorder %s26_s15, 2  ;;  %p162_p2 = scmp.lt.s32.totalorder %s5646_s14, 3 }
   0x5   : > { %s7541_s15 = smov (%p28_p1, %s26_s15), 0  ;;  %p163_p3 = pnand %p4138_p0, %p162_p2 }
   0x7   : > { %166 = sbr.rel (%p163_p3) target bundleno = 736 (0x2e0), region = 28 }
   0xe   : > { %v5264_v0 = vld [vmem:[%s7442_s1 + $0x4] ss:$8 sps:$4 sm:$0xff]   ;;  %v7445_v2 = vmov 0   ;;  %v5268_v3 = vld [vmem:[%s7442_s1] ss:$8 sps:$4 sm:$0xff]   ;;  %p204_p4 = scmp.lt.s32.totalorder %s5638_s12, 1 }
   0xf   : > { %v5266_v1 = vld [vmem:[%s7442_s1 + $0x104] ss:$8 sps:$4 sm:$0xff]   ;;  %1067 = vmatprep.mubr.bf16.mxu0 %v7445_v2  ;;  %842 = vmatprep.subr.bf16.mxu1 %v5264_v0  ;;  %v5269_v4 = vld [vmem:[%s7442_s1 + $0x100] ss:$8 sps:$4 sm:$0xff]   ;;  %v5270_v5 = vld [vmem:[%s7442_s1 + $0x14] ss:$8 sps:$4 sm:$0xff]  }
  0x10   : > { %1035 = vmatprep.subr.bf16.mxu0 %v5266_v1  ;;  %843 = vmatpush1.bf16.msra.mxu1 %v5268_v3  ;;  %v5272_v6 = vld [vmem:[%s7442_s1 + $0x114] ss:$8 sps:$4 sm:$0xff]   ;;  %v5274_v7 = vld [vmem:[%s7442_s1 + $0x10] ss:$8 sps:$4 sm:$0xff]   ;;  %v5276_v9 = vld [vmem:[%s7442_s1 + $0x24] ss:$8 sps:$4 sm:$0xff]  }
  0x11   : > { %1036 = vmatpush1.bf16.msra.mxu0 %v5269_v4  ;;  %844 = vmatprep.subr.bf16.mxu1 %v5270_v5  ;;  %v5275_v8 = vld [vmem:[%s7442_s1 + $0x110] ss:$8 sps:$4 sm:$0xff]   ;;  %v5278_v10 = vld [vmem:[%s7442_s1 + $0x124] ss:$8 sps:$4 sm:$0xff]   ;;  %v5280_v11 = vld [vmem:[%s7442_s1 + $0x20] ss:$8 sps:$4 sm:$0xff]  }
  0x12   : > { %1037 = vmatprep.subr.bf16.mxu0 %v5272_v6  ;;  %v5281_v12 = vld [vmem:[%s7442_s1 + $0x120] ss:$8 sps:$4 sm:$0xff]   ;;  %v5282_v13 = vld [vmem:[%s7442_s1 + $0x34] ss:$8 sps:$4 sm:$0xff]   ;;  %v5286_v15 = vld [vmem:[%s7442_s1 + $0x30] ss:$8 sps:$4 sm:$0xff]  }
  0x13   : > { %v5284_v14 = vld [vmem:[%s7442_s1 + $0x134] ss:$8 sps:$4 sm:$0xff]   ;;  %v5287_v16 = vld [vmem:[%s7442_s1 + $0x130] ss:$8 sps:$4 sm:$0xff]   ;;  %v5288_v17 = vld [vmem:[%s7442_s1 + $0x44] ss:$8 sps:$4 sm:$0xff]  }
  0x14   : > { %845 = vmatpush1.bf16.msra.mxu1 %v5274_v7  ;;  %v5290_v18 = vld [vmem:[%s7442_s1 + $0x144] ss:$8 sps:$4 sm:$0xff]   ;;  %s7543_s12 = smov (!%p204_p4, %s5638_s12), 1  ;;  %v5292_v19 = vld [vmem:[%s7442_s1 + $0x40] ss:$8 sps:$4 sm:$0xff]  }
  0x15   : > { %1038 = vmatpush1.bf16.msra.mxu0 %v5275_v8  ;;  %846 = vmatprep.subr.bf16.mxu1 %v5276_v9  ;;  %v5293_v20 = vld [vmem:[%s7442_s1 + $0x140] ss:$8 sps:$4 sm:$0xff]   ;;  %v5294_v21 = vld [vmem:[%s7442_s1 + $0x54] ss:$8 sps:$4 sm:$0xff]   ;;  %s5237_s10 = smul.u32 432, %s7543_s12  ;;  %s4531_s19 = sshll.u32 %s7543_s12, 9 }
  0x16   : > { %1039 = vmatprep.subr.bf16.mxu0 %v5278_v10  ;;  %v5296_v22 = vld [vmem:[%s7442_s1 + $0x154] ss:$8 sps:$4 sm:$0xff]   ;;  %v5298_v23 = vld [vmem:[%s7442_s1 + $0x50] ss:$8 sps:$4 sm:$0xff]   ;;  %v5300_v25 = vld [vmem:[%s7442_s1 + $0x64] ss:$8 sps:$4 sm:$0xff]   ;;  %s6762_s22 = scalar_lea.vmem %s7443_s2, %s4531_s19 }
  0x17   : > { %v5299_v24 = vld [vmem:[%s7442_s1 + $0x150] ss:$8 sps:$4 sm:$0xff]   ;;  %v5302_v26 = vld [vmem:[%s7442_s1 + $0x164] ss:$8 sps:$4 sm:$0xff]   ;;  %s5777_s25 = scalar_lea.vmem %s7441_s0, %s5237_s10  ;;  %v5304_v27 = vld [vmem:[%s7442_s1 + $0x60] ss:$8 sps:$4 sm:$0xff]  }
  0x18   : > { %847 = vmatpush1.bf16.msra.mxu1 %v5280_v11  ;;  %v5305_v28 = vld [vmem:[%s7442_s1 + $0x160] ss:$8 sps:$4 sm:$0xff]   ;;  %v5306_v29 = vld [vmem:[%s7442_s1 + $0x74] ss:$8 sps:$4 sm:$0xff]   ;;  %v5310_v31 = vld [vmem:[%s7442_s1 + $0x70] ss:$8 sps:$4 sm:$0xff]  }
  0x19   : > { %1040 = vmatpush1.bf16.msra.mxu0 %v5281_v12  ;;  %848 = vmatprep.subr.bf16.mxu1 %v5282_v13  ;;  %v5308_v30 = vld [vmem:[%s7442_s1 + $0x174] ss:$8 sps:$4 sm:$0xff]   ;;  %v5311_v32 = vld [vmem:[%s7442_s1 + $0x170] ss:$8 sps:$4 sm:$0xff]   ;;  %v5312_v33 = vld [vmem:[%s7442_s1 + $0x84] ss:$8 sps:$4 sm:$0xff]  }
  0x1a   : > { %1041 = vmatprep.subr.bf16.mxu0 %v5284_v14  ;;  %v5317_v34 = vld [vmem:[%s7442_s1 + $0x284] ss:$8 sps:$4 sm:$0xff]   ;;  %v5314_v35 = vld [vmem:[%s5777_s25 + $0x8] ss:$12 sps:$4 sm:$0xff]   ;;  %v5321_v40 = vld [vmem:[%s7442_s1 + $0x90] ss:$8 sps:$4 sm:$0xff]  }
  0x1b   : > { %v5315_v36 = vld [vmem:[%s7442_s1 + $0x280] ss:$8 sps:$4 sm:$0xff]   ;;  %v5319_v38 = vld [vmem:[%s7442_s1 + $0x94] ss:$8 sps:$4 sm:$0xff]   ;;  %v5332_v41 = vld [vmem:[%s7442_s1 + $0x290] ss:$8 sps:$4 sm:$0xff]  }
  0x1c   : > { %849 = vmatpush1.bf16.msra.mxu1 %v5286_v15  ;;  %v5318_v37 = vld [vmem:[%s7442_s1 + $0x80] ss:$8 sps:$4 sm:$0xff]   ;;  %v5334_v39 = vld [vmem:[%s7442_s1 + $0x294] ss:$8 sps:$4 sm:$0xff]   ;;  %v5322_v42 = vld [vmem:[%s7442_s1 + $0xa4] ss:$8 sps:$4 sm:$0xff]  }
  0x1d   : > { %1042 = vmatpush1.bf16.msra.mxu0 %v5287_v16  ;;  %850 = vmatprep.subr.bf16.mxu1 %v5288_v17  ;;  %v5324_v43 = vld [vmem:[%s5777_s25 + $0x20] ss:$12 sps:$4 sm:$0xff]   ;;  %v5348_v45 = vld [vmem:[%s5777_s25 + $0x4] ss:$12 sps:$4 sm:$0xff]   ;;  %v5326_v46 = vld [vmem:[%s7442_s1 + $0xb4] ss:$8 sps:$4 sm:$0xff]  }
  0x1e   : > { %1043 = vmatprep.subr.bf16.mxu0 %v5290_v18  ;;  %v5325_v44 = vld [vmem:[%s7442_s1 + $0xa0] ss:$8 sps:$4 sm:$0xff]   ;;  %874 = vmatprep.mubr.bf16.mxu1 %v5348_v45  ;;  %v5352_v48 = vld [vmem:[%s7442_s1 + $0x2a4] ss:$8 sps:$4 sm:$0xff]   ;;  %v5328_v49 = vld [vmem:[%s7442_s1 + $0xb0] ss:$8 sps:$4 sm:$0xff]  }
  0x1f   : > { %v5350_v47 = vld [vmem:[%s7442_s1 + $0x2a0] ss:$8 sps:$4 sm:$0xff]   ;;  %v5329_v50 = vld [vmem:[%s7442_s1 + $0xc4] ss:$8 sps:$4 sm:$0xff]   ;;  %v5363_v53 = vld [vmem:[%s7442_s1 + $0x2b4] ss:$8 sps:$4 sm:$0xff]  }
  0x20   : > { %851 = vmatpush1.bf16.msra.mxu1 %v5292_v19  ;;  %v5331_v51 = vld [vmem:[%s5777_s25 + $0x38] ss:$12 sps:$4 sm:$0xff]   ;;  %v5335_v52 = vld [vmem:[%s7442_s1 + $0xc0] ss:$8 sps:$4 sm:$0xff]   ;;  %v5336_v54 = vld [vmem:[%s7442_s1 + $0xd4] ss:$8 sps:$4 sm:$0xff]  }
  0x21   : > { %1044 = vmatpush1.bf16.msra.mxu0 %v5293_v20  ;;  %852 = vmatprep.subr.bf16.mxu1 %v5294_v21  ;;  %v5361_v55 = vld [vmem:[%s7442_s1 + $0x2b0] ss:$8 sps:$4 sm:$0xff]   ;;  %v5339_v57 = vld [vmem:[%s7442_s1 + $0xe4] ss:$8 sps:$4 sm:$0xff]   ;;  %v5372_v58 = vld [vmem:[%s7442_s1 + $0x2c0] ss:$8 sps:$4 sm:$0xff]  }
  0x22   : > { %1045 = vmatprep.subr.bf16.mxu0 %v5296_v22  ;;  %v5338_v56 = vld [vmem:[%s7442_s1 + $0xd0] ss:$8 sps:$4 sm:$0xff]   ;;  %v5374_v59 = vld [vmem:[%s7442_s1 + $0x2c4] ss:$8 sps:$4 sm:$0xff]   ;;  %v5342_v61 = vld [vmem:[%s7442_s1 + $0xe0] ss:$8 sps:$4 sm:$0xff]  }
  0x23   : > { %v5341_v60 = vld [vmem:[%s5777_s25 + $0x50] ss:$12 sps:$4 sm:$0xff]   ;;  %v5346_v3 = vld [vmem:[%s5777_s25] ss:$12 sps:$4 sm:$0xff]   ;;  %v5349_v4 = vld [vmem:[%s5777_s25 + $0x68] ss:$12 sps:$4 sm:$0xff]  }
  0x24   : > { %853 = vmatpush1.bf16.msra.mxu1 %v5298_v23  ;;  %v5343_v62 = vld [vmem:[%s7442_s1 + $0xf4] ss:$8 sps:$4 sm:$0xff]   ;;  %v5345_v63 = vld [vmem:[%s7442_s1 + $0xf0] ss:$8 sps:$4 sm:$0xff]   ;;  %v5392_v5 = vld [vmem:[%s7442_s1 + $0x184] ss:$8 sps:$4 sm:$0xff]  }
  0x25   : > { %1046 = vmatpush1.bf16.msra.mxu0 %v5299_v24  ;;  %854 = vmatprep.subr.bf16.mxu1 %v5300_v25  ;;  %v5383_v0 = vld [vmem:[%s7442_s1 + $0x2d0] ss:$8 sps:$4 sm:$0xff]   ;;  %v5385_v1 = vld [vmem:[%s7442_s1 + $0x2d4] ss:$8 sps:$4 sm:$0xff]   ;;  %v5390_v7 = vld [vmem:[%s7442_s1 + $0x180] ss:$8 sps:$4 sm:$0xff]  }
  0x26   : > { %1047 = vmatprep.subr.bf16.mxu0 %v5302_v26  ;;  %v5896_v6 = vld [vmem:[%s5777_s25 + $0x1c] ss:$12 sps:$4 sm:$0xff]   ;;  %v5402_v10 = vld [vmem:[%s7442_s1 + $0x2e4] ss:$8 sps:$4 sm:$0xff]   ;;  %v5397_v11 = vld [vmem:[%s7442_s1 + $0x190] ss:$8 sps:$4 sm:$0xff]  }
  0x27   : > { %v5399_v8 = vld [vmem:[%s7442_s1 + $0x194] ss:$8 sps:$4 sm:$0xff]   ;;  %v5400_v9 = vld [vmem:[%s7442_s1 + $0x2e0] ss:$8 sps:$4 sm:$0xff]   ;;  %v5916_v12 = vld [vmem:[%s5777_s25 + $0x18] ss:$12 sps:$4 sm:$0xff]  }
  0x28   : > { %855 = vmatpush1.bf16.msra.mxu1 %v5304_v27  ;;  %v5356_v13 = vld [vmem:[%s5777_s25 + $0x80] ss:$12 sps:$4 sm:$0xff]   ;;  %v5412_v17 = vld [vmem:[%s7442_s1 + $0x1b4] ss:$8 sps:$4 sm:$0xff]   ;;  %v5410_v19 = vld [vmem:[%s7442_s1 + $0x1b0] ss:$8 sps:$4 sm:$0xff]  }
  0x29   : > { %1048 = vmatpush1.bf16.msra.mxu0 %v5305_v28  ;;  %856 = vmatprep.subr.bf16.mxu1 %v5306_v29  ;;  %v5920_v14 = vld [vmem:[%s5777_s25 + $0x34] ss:$12 sps:$4 sm:$0xff]   ;;  %v5409_v15 = vld [vmem:[%s7442_s1 + $0x1a4] ss:$8 sps:$4 sm:$0xff]   ;;  %v5935_v18 = vld [vmem:[%s5777_s25 + $0x30] ss:$12 sps:$4 sm:$0xff]  }
  0x2a   : > { %1049 = vmatprep.subr.bf16.mxu0 %v5308_v30  ;;  %v5407_v16 = vld [vmem:[%s7442_s1 + $0x1a0] ss:$8 sps:$4 sm:$0xff]   ;;  %v5419_v20 = vld [vmem:[%s7442_s1 + $0x1c4] ss:$8 sps:$4 sm:$0xff]   ;;  %v5420_v21 = vld [vmem:[%s7442_s1 + $0x2f0] ss:$8 sps:$4 sm:$0xff]  }
  0x2b   : > { %v5422_v22 = vld [vmem:[%s7442_s1 + $0x2f4] ss:$8 sps:$4 sm:$0xff]   ;;  %v5360_v23 = vld [vmem:[%s5777_s25 + $0x98] ss:$12 sps:$4 sm:$0xff]   ;;  %v5417_v25 = vld [vmem:[%s7442_s1 + $0x1c0] ss:$8 sps:$4 sm:$0xff]  }
  0x2c   : > { %857 = vmatpush1.bf16.msra.mxu1 %v5310_v31  ;;  %v5951_v24 = vld [vmem:[%s5777_s25 + $0x4c] ss:$12 sps:$4 sm:$0xff]   ;;  %v5425_v26 = vld [vmem:[%s7442_s1 + $0x1d4] ss:$8 sps:$4 sm:$0xff]   ;;  %v5973_v31 = vld [vmem:[%s5777_s25 + $0x64] ss:$12 sps:$4 sm:$0xff]  }
  0x2d   : > { %1050 = vmatpush1.bf16.msra.mxu0 %v5311_v32  ;;  %858 = vmatprep.subr.bf16.mxu1 %v5312_v33  ;;  %v5423_v27 = vld [vmem:[%s7442_s1 + $0x1d0] ss:$8 sps:$4 sm:$0xff]   ;;  %v5966_v28 = vld [vmem:[%s5777_s25 + $0x48] ss:$12 sps:$4 sm:$0xff]   ;;  %v5432_v29 = vld [vmem:[%s7442_s1 + $0x1e4] ss:$8 sps:$4 sm:$0xff]  }
  0x2e   : > { %2158 = vmatprep.subr.bf16.mxu0 %v5317_v34  ;;  %v5367_v30 = vld [vmem:[%s5777_s25 + $0xb0] ss:$12 sps:$4 sm:$0xff]   ;;  %v5430_v32 = vld [vmem:[%s7442_s1 + $0x1e0] ss:$8 sps:$4 sm:$0xff]   ;;  %v5445_v34 = vld [vmem:[%s7442_s1 + $0x304] ss:$8 sps:$4 sm:$0xff]  }
  0x2f   : > { %v5435_v33 = vld [vmem:[%s7442_s1 + $0x1f4] ss:$8 sps:$4 sm:$0xff]   ;;  %v5378_v45 = vld [vmem:[%s5777_s25 + $0xe0] ss:$12 sps:$4 sm:$0xff]  }
  0x30   : > { %1068 = vmatmul.mubr.bf16.vlgmr.msra.gmra.mrb[0].mxu0 %v5314_v35  ;;  %859 = vmatpush1.bf16.msra.mxu1 %v5318_v37  ;;  %v5988_v35 = vld [vmem:[%s5777_s25 + $0x60] ss:$12 sps:$4 sm:$0xff]  }
  0x31   : > { %2159 = vmatpush1.bf16.msra.mxu0 %v5315_v36  ;;  %860 = vmatprep.subr.bf16.mxu1 %v5319_v38  ;;  %v5433_v36 = vld [vmem:[%s7442_s1 + $0x1f0] ss:$8 sps:$4 sm:$0xff]   ;;  %v5441_v37 = vld [vmem:[%s7442_s1 + $0x204] ss:$8 sps:$4 sm:$0xff]   ;;  %v5371_v38 = vld [vmem:[%s5777_s25 + $0xc8] ss:$12 sps:$4 sm:$0xff]  }
  0x32   : > { %1077 = vmatprep.mubr.bf16.mxu0 %v7445_v2  ;;  %2160 = vmatprep.subr.bf16.mxu0 %v5334_v39  ;;  %v5998_v39 = vld [vmem:[%s5777_s25 + $0x7c] ss:$12 sps:$4 sm:$0xff]  }
  0x34   : > { %861 = vmatpush1.bf16.msra.mxu1 %v5321_v40  ;;  %v5439_v40 = vld [vmem:[%s7442_s1 + $0x200] ss:$8 sps:$4 sm:$0xff]  }
  0x35   : > { %2161 = vmatpush1.bf16.msra.mxu0 %v5332_v41  ;;  %862 = vmatprep.subr.bf16.mxu1 %v5322_v42  ;;  %v5448_v41 = vld [vmem:[%s7442_s1 + $0x214] ss:$8 sps:$4 sm:$0xff]   ;;  %v5446_v42 = vld [vmem:[%s7442_s1 + $0x210] ss:$8 sps:$4 sm:$0xff]  }
  0x36   : > { %2162 = vmatprep.subr.bf16.mxu0 %v5352_v48  ;;  %v5461_v48 = vld [vmem:[%s7442_s1 + $0x234] ss:$8 sps:$4 sm:$0xff]  }
  0x38   : > { %1078 = vmatmul.mubr.bf16.gmra.mrb[4].mxu0 %v5324_v43  ;;  %863 = vmatpush1.bf16.msra.mxu1 %v5325_v44  ;;  %v6013_v43 = vld [vmem:[%s5777_s25 + $0x78] ss:$12 sps:$4 sm:$0xff]  }
  0x39   : > { %1087 = vmatprep.mubr.bf16.mxu0 %v7445_v2  ;;  %864 = vmatprep.subr.bf16.mxu1 %v5326_v46  ;;  %v5454_v44 = vld [vmem:[%s7442_s1 + $0x224] ss:$8 sps:$4 sm:$0xff]   ;;  %v6020_v46 = vld [vmem:[%s5777_s25 + $0x94] ss:$12 sps:$4 sm:$0xff]  }
  0x3a   : > { %2163 = vmatpush1.bf16.msra.mxu0 %v5350_v47  ;;  %v5452_v47 = vld [vmem:[%s7442_s1 + $0x220] ss:$8 sps:$4 sm:$0xff]  }
  0x3b   : > { %2164 = vmatprep.subr.bf16.mxu0 %v5363_v53  ;;  %v6042_v53 = vld [vmem:[%s5777_s25 + $0xac] ss:$12 sps:$4 sm:$0xff]  }
  0x3c   : > { %865 = vmatpush1.bf16.msra.mxu1 %v5328_v49  ;;  %v5459_v49 = vld [vmem:[%s7442_s1 + $0x230] ss:$8 sps:$4 sm:$0xff]  }
  0x3d   : > { %866 = vmatprep.subr.bf16.mxu1 %v5329_v50  ;;  %v6035_v50 = vld [vmem:[%s5777_s25 + $0x90] ss:$12 sps:$4 sm:$0xff]  }
  0x3e   : > { %2165 = vmatpush1.bf16.msra.mxu0 %v5361_v55  ;;  %v5474_v55 = vld [vmem:[%s7442_s1 + $0x254] ss:$8 sps:$4 sm:$0xff]  }
  0x3f   : > { %2166 = vmatprep.subr.bf16.mxu0 %v5374_v59  ;;  %v5389_v59 = vld [vmem:[%s5777_s25 + $0x110] ss:$12 sps:$4 sm:$0xff]  }
  0x40   : > { %1088 = vmatmul.mubr.bf16.gmra.mrb[8].mxu0 %v5331_v51  ;;  %867 = vmatpush1.bf16.msra.mxu1 %v5335_v52  ;;  %v5467_v51 = vld [vmem:[%s7442_s1 + $0x244] ss:$8 sps:$4 sm:$0xff]  }
  0x41   : > { %1097 = vmatprep.mubr.bf16.mxu0 %v7445_v2  ;;  %868 = vmatprep.subr.bf16.mxu1 %v5336_v54  ;;  %v5382_v52 = vld [vmem:[%s5777_s25 + $0xf8] ss:$12 sps:$4 sm:$0xff]   ;;  %v5465_v54 = vld [vmem:[%s7442_s1 + $0x240] ss:$8 sps:$4 sm:$0xff]  }
  0x42   : > { %2167 = vmatpush1.bf16.msra.mxu0 %v5372_v58  ;;  %v6060_v58 = vld [vmem:[%s5777_s25 + $0xa8] ss:$12 sps:$4 sm:$0xff]  }
  0x43   : > { %2168 = vmatprep.subr.bf16.mxu0 %v5385_v1  ;;  %v5396_v1 = vld [vmem:[%s5777_s25 + $0x128] ss:$12 sps:$4 sm:$0xff]  }
  0x44   : > { %869 = vmatpush1.bf16.msra.mxu1 %v5338_v56  ;;  %v5472_v56 = vld [vmem:[%s7442_s1 + $0x250] ss:$8 sps:$4 sm:$0xff]  }
  0x45   : > { %870 = vmatprep.subr.bf16.mxu1 %v5339_v57  ;;  %v5480_v57 = vld [vmem:[%s7442_s1 + $0x264] ss:$8 sps:$4 sm:$0xff]  }
  0x46   : > { %2169 = vmatpush1.bf16.msra.mxu0 %v5383_v0  ;;  %v6079_v0 = vld [vmem:[%s5777_s25 + $0xc0] ss:$12 sps:$4 sm:$0xff]  }
  0x47   : > { %2170 = vmatprep.subr.bf16.mxu0 %v5402_v10  ;;  %v5416_v10 = vld [vmem:[%s5777_s25 + $0x158] ss:$12 sps:$4 sm:$0xff]  }
  0x48   : > { %1098 = vmatmul.mubr.bf16.gmra.mrb[12].mxu0 %v5341_v60  ;;  %871 = vmatpush1.bf16.msra.mxu1 %v5342_v61  ;;  %v6064_v60 = vld [vmem:[%s5777_s25 + $0xc4] ss:$12 sps:$4 sm:$0xff]   ;;  %v5478_v61 = vld [vmem:[%s7442_s1 + $0x260] ss:$8 sps:$4 sm:$0xff]  }
  0x49   : > { %1107 = vmatprep.mubr.bf16.mxu0 %v7445_v2  ;;  %872 = vmatprep.subr.bf16.mxu1 %v5343_v62  ;;  %v5487_v62 = vld [vmem:[%s7442_s1 + $0x274] ss:$8 sps:$4 sm:$0xff]  }
  0x4a   : > { %2171 = vmatpush1.bf16.msra.mxu0 %v5400_v9  ;;  %v6105_v9 = vld [vmem:[%s5777_s25 + $0xf0] ss:$12 sps:$4 sm:$0xff]  }
  0x4b   : > { %2172 = vmatprep.subr.bf16.mxu0 %v5422_v22  ;;  %v5458_v22 = vld [vmem:[%s7442_s1 + $0x314] ss:$8 sps:$4 sm:$0xff]  }
  0x4c   : > { %873 = vmatpush1.bf16.msra.mxu1 %v5345_v63  ;;  %v5485_v63 = vld [vmem:[%s7442_s1 + $0x270] ss:$8 sps:$4 sm:$0xff]  }
  0x4d   : > { %1965 = vmatprep.subr.bf16.mxu1 %v5392_v5  ;;  %v6094_v5 = vld [vmem:[%s5777_s25 + $0xd8] ss:$12 sps:$4 sm:$0xff]  }
  0x4e   : > { %2173 = vmatpush1.bf16.msra.mxu0 %v5420_v21  ;;  %v6132_v21 = vld [vmem:[%s5777_s25 + $0x13c] ss:$12 sps:$4 sm:$0xff]  }
  0x4f   : > { %875 = vmatmul.mubr.bf16.vlgmr.msra.gmra.mrb[0].mxu1 %v5346_v3  ;;  %3152 = vmatprep.subr.bf16.mxu0 %v5445_v34  ;;  %v6083_v3 = vld [vmem:[%s5777_s25 + $0xdc] ss:$12 sps:$4 sm:$0xff]   ;;  %v5491_v34 = vld [vmem:[%s7442_s1 + $0x344] ss:$8 sps:$4 sm:$0xff]  }
  0x50   : > { %1108 = vmatmul.mubr.bf16.gmra.mrb[16].mxu0 %v5349_v4  ;;  %884 = vmatprep.mubr.bf16.mxu1 %v5896_v6  ;;  %v6088_v4 = vld [vmem:[%s7442_s1 + $0x404] ss:$8 sps:$4 sm:$0xff]  }
  0x51   : > { %1117 = vmatprep.mubr.bf16.mxu0 %v7445_v2  ;;  %1966 = vmatpush1.bf16.msra.mxu1 %v5390_v7  ;;  %v5406_v7 = vld [vmem:[%s5777_s25 + $0x140] ss:$12 sps:$4 sm:$0xff]  }
  0x52   : > { %1967 = vmatprep.subr.bf16.mxu1 %v5399_v8  ;;  %v6099_v8 = vld [vmem:[%s5777_s25 + $0xf4] ss:$12 sps:$4 sm:$0xff]  }
  0x55   : > { %1968 = vmatpush1.bf16.msra.mxu1 %v5397_v11  ;;  %v6109_v11 = vld [vmem:[%s5777_s25 + $0x10c] ss:$12 sps:$4 sm:$0xff]  }
  0x56   : > { %1969 = vmatprep.subr.bf16.mxu1 %v5409_v15  ;;  %v5429_v15 = vld [vmem:[%s5777_s25 + $0x170] ss:$12 sps:$4 sm:$0xff]  }
  0x57   : > { %885 = vmatmul.mubr.bf16.gmra.mrb[4].mxu1 %v5916_v12 }
  0x58   : > { %1118 = vmatmul.mubr.bf16.gmra.mrb[20].mxu0 %v5356_v13  ;;  %894 = vmatprep.mubr.bf16.mxu1 %v5920_v14  ;;  %v6115_v13 = vld [vmem:[%s5777_s25 + $0x108] ss:$12 sps:$4 sm:$0xff]  }
  0x59   : > { %1127 = vmatprep.mubr.bf16.mxu0 %v7445_v2  ;;  %1970 = vmatpush1.bf16.msra.mxu1 %v5407_v16  ;;  %v6119_v16 = vld [vmem:[%s5777_s25 + $0x124] ss:$12 sps:$4 sm:$0xff]  }
  0x5a   : > { %1971 = vmatprep.subr.bf16.mxu1 %v5412_v17  ;;  %v6125_v17 = vld [vmem:[%s5777_s25 + $0x120] ss:$12 sps:$4 sm:$0xff]  }
  0x5d   : > { %1972 = vmatpush1.bf16.msra.mxu1 %v5410_v19  ;;  %v5442_v19 = vld [vmem:[%s5777_s25 + $0x20] ss:$12 sps:$4 sm:$0xff]  }
  0x5e   : > { %1973 = vmatprep.subr.bf16.mxu1 %v5419_v20  ;;  %v5443_v20 = vld [vmem:[%s7442_s1 + $0x300] ss:$8 sps:$4 sm:$0xff]  }
  0x5f   : > { %895 = vmatmul.mubr.bf16.gmra.mrb[8].mxu1 %v5935_v18 }
  0x60   : > { %1128 = vmatmul.mubr.bf16.gmra.mrb[24].mxu0 %v5360_v23  ;;  %904 = vmatprep.mubr.bf16.mxu1 %v5951_v24  ;;  %v5456_v23 = vld [vmem:[%s7442_s1 + $0x310] ss:$8 sps:$4 sm:$0xff]  }
  0x61   : > { %1137 = vmatprep.mubr.bf16.mxu0 %v7445_v2  ;;  %1974 = vmatpush1.bf16.msra.mxu1 %v5417_v25  ;;  %v5471_v25 = vld [vmem:[%s7442_s1 + $0x324] ss:$8 sps:$4 sm:$0xff]  }
  0x62   : > { %1975 = vmatprep.subr.bf16.mxu1 %v5425_v26  ;;  %v6147_v26 = vld [vmem:[%s5777_s25 + $0x138] ss:$12 sps:$4 sm:$0xff]  }
  0x65   : > { %1976 = vmatpush1.bf16.msra.mxu1 %v5423_v27  ;;  %v5455_v27 = vld [vmem:[%s5777_s25 + $0x38] ss:$12 sps:$4 sm:$0xff]  }
  0x66   : > { %1977 = vmatprep.subr.bf16.mxu1 %v5432_v29  ;;  %v6151_v29 = vld [vmem:[%s5777_s25 + $0x154] ss:$12 sps:$4 sm:$0xff]  }
  0x67   : > { %905 = vmatmul.mubr.bf16.gmra.mrb[12].mxu1 %v5966_v28 }
  0x68   : > { %1138 = vmatmul.mubr.bf16.gmra.mrb[28].mxu0 %v5367_v30  ;;  %914 = vmatprep.mubr.bf16.mxu1 %v5973_v31  ;;  %v5469_v30 = vld [vmem:[%s7442_s1 + $0x320] ss:$8 sps:$4 sm:$0xff]  }
  0x69   : > { %1147 = vmatprep.mubr.bf16.mxu0 %v7445_v2  ;;  %1978 = vmatpush1.bf16.msra.mxu1 %v5430_v32  ;;  %v5484_v32 = vld [vmem:[%s7442_s1 + $0x334] ss:$8 sps:$4 sm:$0xff]  }
  0x6a   : > { %1979 = vmatprep.subr.bf16.mxu1 %v5435_v33  ;;  %v5482_v33 = vld [vmem:[%s7442_s1 + $0x330] ss:$8 sps:$4 sm:$0xff]  }
  0x6d   : > { %1980 = vmatpush1.bf16.msra.mxu1 %v5433_v36  ;;  %v6169_v36 = vld [vmem:[%s5777_s25 + $0x150] ss:$12 sps:$4 sm:$0xff]  }
  0x6e   : > { %1981 = vmatprep.subr.bf16.mxu1 %v5441_v37  ;;  %v5468_v37 = vld [vmem:[%s5777_s25 + $0x50] ss:$12 sps:$4 sm:$0xff]  }
  0x6f   : > { %915 = vmatmul.mubr.bf16.gmra.mrb[16].mxu1 %v5988_v35 }
  0x70   : > { %1148 = vmatmul.mubr.bf16.gmra.mrb[32].mxu0 %v5371_v38  ;;  %924 = vmatprep.mubr.bf16.mxu1 %v5998_v39  ;;  %v6173_v38 = vld [vmem:[%s5777_s25 + $0x16c] ss:$12 sps:$4 sm:$0xff]  }
  0x71   : > { %1157 = vmatprep.mubr.bf16.mxu0 %v7445_v2  ;;  %1982 = vmatpush1.bf16.msra.mxu1 %v5439_v40  ;;  %v5489_v40 = vld [vmem:[%s7442_s1 + $0x340] ss:$8 sps:$4 sm:$0xff]  }
  0x72   : > { %1983 = vmatprep.subr.bf16.mxu1 %v5448_v41  ;;  %v5495_v41 = vld [vmem:[%s7442_s1 + $0x354] ss:$8 sps:$4 sm:$0xff]  }
  0x75   : > { %1984 = vmatpush1.bf16.msra.mxu1 %v5446_v42  ;;  %v5493_v42 = vld [vmem:[%s7442_s1 + $0x350] ss:$8 sps:$4 sm:$0xff]  }
  0x76   : > { %1985 = vmatprep.subr.bf16.mxu1 %v5454_v44  ;;  %v5499_v44 = vld [vmem:[%s7442_s1 + $0x364] ss:$8 sps:$4 sm:$0xff]  }
  0x77   : > { %925 = vmatmul.mubr.bf16.gmra.mrb[20].mxu1 %v6013_v43 }
  0x78   : > { %1158 = vmatmul.mubr.bf16.gmra.mrb[36].mxu0 %v5378_v45  ;;  %934 = vmatprep.mubr.bf16.mxu1 %v6020_v46  ;;  %v6191_v45 = vld [vmem:[%s5777_s25 + $0x168] ss:$12 sps:$4 sm:$0xff]  }
  0x79   : > { %1167 = vmatprep.mubr.bf16.mxu0 %v7445_v2  ;;  %1986 = vmatpush1.bf16.msra.mxu1 %v5452_v47  ;;  %v5481_v47 = vld [vmem:[%s5777_s25 + $0x68] ss:$12 sps:$4 sm:$0xff]  }
  0x7a   : > { %1987 = vmatprep.subr.bf16.mxu1 %v5461_v48  ;;  %v5497_v48 = vld [vmem:[%s7442_s1 + $0x360] ss:$8 sps:$4 sm:$0xff]  }
  0x7d   : > { %1988 = vmatpush1.bf16.msra.mxu1 %v5459_v49  ;;  %v5503_v49 = vld [vmem:[%s7442_s1 + $0x374] ss:$8 sps:$4 sm:$0xff]  }
  0x7e   : > { %1989 = vmatprep.subr.bf16.mxu1 %v5467_v51  ;;  %v5501_v51 = vld [vmem:[%s7442_s1 + $0x370] ss:$8 sps:$4 sm:$0xff]  }
  0x7f   : > { %935 = vmatmul.mubr.bf16.gmra.mrb[24].mxu1 %v6035_v50 }
  0x80   : > { %1168 = vmatmul.mubr.bf16.gmra.mrb[40].mxu0 %v5382_v52  ;;  %944 = vmatprep.mubr.bf16.mxu1 %v6042_v53  ;;  %v5507_v52 = vld [vmem:[%s7442_s1 + $0x384] ss:$8 sps:$4 sm:$0xff]  }
  0x81   : > { %1177 = vmatprep.mubr.bf16.mxu0 %v7445_v2  ;;  %1990 = vmatpush1.bf16.msra.mxu1 %v5465_v54  ;;  %v5488_v54 = vld [vmem:[%s5777_s25 + $0x80] ss:$12 sps:$4 sm:$0xff]  }
  0x82   : > { %1991 = vmatprep.subr.bf16.mxu1 %v5474_v55  ;;  %v5505_v55 = vld [vmem:[%s7442_s1 + $0x380] ss:$8 sps:$4 sm:$0xff]  }
  0x85   : > { %1992 = vmatpush1.bf16.msra.mxu1 %v5472_v56  ;;  %v5511_v56 = vld [vmem:[%s7442_s1 + $0x394] ss:$8 sps:$4 sm:$0xff]  }
  0x86   : > { %1993 = vmatprep.subr.bf16.mxu1 %v5480_v57  ;;  %v6224_v57 = vld [vmem:[%s7442_s1 + $0x414] ss:$8 sps:$4 sm:$0xff]  }
  0x87   : > { %945 = vmatmul.mubr.bf16.gmra.mrb[28].mxu1 %v6060_v58 }
  0x88   : > { %1178 = vmatmul.mubr.bf16.gmra.mrb[44].mxu0 %v5389_v59  ;;  %954 = vmatprep.mubr.bf16.mxu1 %v6064_v60  ;;  %v5509_v59 = vld [vmem:[%s7442_s1 + $0x390] ss:$8 sps:$4 sm:$0xff]  }
  0x89   : > { %1187 = vmatprep.mubr.bf16.mxu0 %v7445_v2  ;;  %1994 = vmatpush1.bf16.msra.mxu1 %v5478_v61  ;;  %v6236_v61 = vld [vmem:[%s7442_s1 + $0x410] ss:$8 sps:$4 sm:$0xff]  }
  0x8a   : > { %1995 = vmatprep.subr.bf16.mxu1 %v5487_v62  ;;  %v5492_v62 = vld [vmem:[%s5777_s25 + $0x98] ss:$12 sps:$4 sm:$0xff]  }
  0x8d   : > { %1996 = vmatpush1.bf16.msra.mxu1 %v5485_v63  ;;  %v5513_v63 = vld [vmem:[%s7442_s1 + $0x3a0] ss:$8 sps:$4 sm:$0xff]  }
  0x8e   : > { %4533 = vmatprep.subr.bf16.mxu1 %v6088_v4 }
  0x8f   : > { %955 = vmatmul.mubr.bf16.gmra.mrb[32].mxu1 %v6079_v0 }
  0x90   : > { %1188 = vmatmul.mubr.bf16.gmra.mrb[48].mxu0 %v5396_v1  ;;  %964 = vmatprep.mubr.bf16.mxu1 %v6083_v3  ;;  %v6255_v1 = vld [vmem:[%s7442_s1 + $0x420] ss:$8 sps:$4 sm:$0xff]  }
  0x91   : > { %1197 = vmatprep.mubr.bf16.mxu0 %v7445_v2 }
  0x97   : > { %965 = vmatmul.mubr.bf16.gmra.mrb[36].mxu1 %v6094_v5 }
  0x98   : > { %1198 = vmatmul.mubr.bf16.gmra.mrb[52].mxu0 %v5406_v7  ;;  %974 = vmatprep.mubr.bf16.mxu1 %v6099_v8  ;;  %v5519_v7 = vld [vmem:[%s7442_s1 + $0x3b4] ss:$8 sps:$4 sm:$0xff]  }
  0x99   : > { %1207 = vmatprep.mubr.bf16.mxu0 %v7445_v2 }
  0x9f   : > { %975 = vmatmul.mubr.bf16.gmra.mrb[40].mxu1 %v6105_v9 }
  0xa0   : > { %1208 = vmatmul.mubr.bf16.gmra.mrb[56].mxu0 %v5416_v10  ;;  %984 = vmatprep.mubr.bf16.mxu1 %v6109_v11  ;;  %v6264_v10 = vld [vmem:[%s7442_s1 + $0x434] ss:$8 sps:$4 sm:$0xff]  }
  0xa1   : > { %1217 = vmatprep.mubr.bf16.mxu0 %v7445_v2 }
  0xa7   : > { %985 = vmatmul.mubr.bf16.gmra.mrb[44].mxu1 %v6115_v13 }
  0xa8   : > { %1218 = vmatmul.mubr.bf16.gmra.mrb[60].mxu0 %v5429_v15  ;;  %994 = vmatprep.mubr.bf16.mxu1 %v6119_v16  ;;  %v5517_v15 = vld [vmem:[%s7442_s1 + $0x3b0] ss:$8 sps:$4 sm:$0xff]  }
  0xa9   : > { %2190 = vmatprep.mubr.bf16.mxu0 %v7445_v2 }
  0xaf   : > { %995 = vmatmul.mubr.bf16.gmra.mrb[48].mxu1 %v6125_v17 }
  0xb0   : > { %2191 = vmatmul.mubr.bf16.vlgmr.msra.gmra.mrb[64].mxu0 %v5442_v19  ;;  %1004 = vmatprep.mubr.bf16.mxu1 %v6132_v21  ;;  %v6276_v19 = vld [vmem:[%s7442_s1 + $0x430] ss:$8 sps:$4 sm:$0xff]  }
  0xb1   : > { %3153 = vmatpush1.bf16.msra.mxu0 %v5443_v20  ;;  %2200 = vmatprep.mubr.bf16.mxu0 %v7445_v2  ;;  %v5496_v20 = vld [vmem:[%s5777_s25 + $0xb0] ss:$12 sps:$4 sm:$0xff]  }
  0xb2   : > { %3154 = vmatprep.subr.bf16.mxu0 %v5458_v22  ;;  %v5524_v22 = vld [vmem:[%s7442_s1 + $0x3c0] ss:$8 sps:$4 sm:$0xff]  }
  0xb5   : > { %3155 = vmatpush1.bf16.msra.mxu0 %v5456_v23  ;;  %v6295_v23 = vld [vmem:[%s7442_s1 + $0x440] ss:$8 sps:$4 sm:$0xff]  }
  0xb6   : > { %3156 = vmatprep.subr.bf16.mxu0 %v5471_v25  ;;  %v5530_v25 = vld [vmem:[%s7442_s1 + $0x3d4] ss:$8 sps:$4 sm:$0xff]  }
  0xb7   : > { %1005 = vmatmul.mubr.bf16.gmra.mrb[52].mxu1 %v6147_v26 }
  0xb8   : > { %2201 = vmatmul.mubr.bf16.gmra.mrb[68].mxu0 %v5455_v27  ;;  %1014 = vmatprep.mubr.bf16.mxu1 %v6151_v29  ;;  %v6304_v27 = vld [vmem:[%s7442_s1 + $0x454] ss:$8 sps:$4 sm:$0xff]  }
  0xb9   : > { %2210 = vmatprep.mubr.bf16.mxu0 %v7445_v2  ;;  %3157 = vmatpush1.bf16.msra.mxu0 %v5469_v30  ;;  %v5528_v30 = vld [vmem:[%s7442_s1 + $0x3d0] ss:$8 sps:$4 sm:$0xff]  }
  0xba   : > { %3158 = vmatprep.subr.bf16.mxu0 %v5484_v32  ;;  %v6316_v32 = vld [vmem:[%s7442_s1 + $0x450] ss:$8 sps:$4 sm:$0xff]  }
  0xbd   : > { %3159 = vmatpush1.bf16.msra.mxu0 %v5482_v33  ;;  %v5500_v33 = vld [vmem:[%s5777_s25 + $0xc8] ss:$12 sps:$4 sm:$0xff]  }
  0xbe   : > { %3160 = vmatprep.subr.bf16.mxu0 %v5491_v34  ;;  %v5535_v34 = vld [vmem:[%s7442_s1 + $0x3e0] ss:$8 sps:$4 sm:$0xff]  }
  0xbf   : > { %1015 = vmatmul.mubr.bf16.gmra.mrb[56].mxu1 %v6169_v36 }
  0xc0   : > { %2211 = vmatmul.mubr.bf16.gmra.mrb[72].mxu0 %v5468_v37  ;;  %1024 = vmatprep.mubr.bf16.mxu1 %v6173_v38  ;;  %v6335_v37 = vld [vmem:[%s7442_s1 + $0x460] ss:$8 sps:$4 sm:$0xff]  }
  0xc1   : > { %2220 = vmatprep.mubr.bf16.mxu0 %v7445_v2  ;;  %3161 = vmatpush1.bf16.msra.mxu0 %v5489_v40  ;;  %v5541_v40 = vld [vmem:[%s7442_s1 + $0x3f4] ss:$8 sps:$4 sm:$0xff]  }
  0xc2   : > { %3162 = vmatprep.subr.bf16.mxu0 %v5495_v41  ;;  %v6344_v41 = vld [vmem:[%s7442_s1 + $0x474] ss:$8 sps:$4 sm:$0xff]  }
  0xc5   : > { %3163 = vmatpush1.bf16.msra.mxu0 %v5493_v42  ;;  %v5539_v42 = vld [vmem:[%s7442_s1 + $0x3f0] ss:$8 sps:$4 sm:$0xff]  }
  0xc6   : > { %3164 = vmatprep.subr.bf16.mxu0 %v5499_v44  ;;  %v6356_v44 = vld [vmem:[%s7442_s1 + $0x470] ss:$8 sps:$4 sm:$0xff]  }
  0xc7   : > { %1025 = vmatmul.mubr.bf16.gmra.mrb[60].mxu1 %v6191_v45 }
  0xc8   : > { %2221 = vmatmul.mubr.bf16.gmra.mrb[76].mxu0 %v5481_v47  ;;  %1997 = vmatprep.mubr.bf16.mxu1 %v5896_v6  ;;  %v6216_v6 = vld [vmem:[%s7442_s1 + $0x400] ss:$8 sps:$4 sm:$0xff]   ;;  %v5512_v47 = vld [vmem:[%s5777_s25 + $0x110] ss:$12 sps:$4 sm:$0xff]  }
  0xc9   : > { %2230 = vmatprep.mubr.bf16.mxu0 %v7445_v2  ;;  %3165 = vmatpush1.bf16.msra.mxu0 %v5497_v48 }
  0xca   : > { %3166 = vmatprep.subr.bf16.mxu0 %v5503_v49 }
  0xcd   : > { %3167 = vmatpush1.bf16.msra.mxu0 %v5501_v51 }
  0xce   : > { %3168 = vmatprep.subr.bf16.mxu0 %v5507_v52 }
  0xcf   : > { %1998 = vmatmul.mubr.bf16.vlgmr.msra.gmra.mrb[64].mxu1 %v5916_v12  ;;  %v5515_v12 = vld [vmem:[%s7442_s1 + $0x3a4] ss:$8 sps:$4 sm:$0xff]  }
  0xd0   : > { %2231 = vmatmul.mubr.bf16.gmra.mrb[80].mxu0 %v5488_v54  ;;  %2007 = vmatprep.mubr.bf16.mxu1 %v5920_v14  ;;  %v6245_v14 = vld [vmem:[%s7442_s1 + $0x424] ss:$8 sps:$4 sm:$0xff]  }
  0xd1   : > { %2240 = vmatprep.mubr.bf16.mxu0 %v7445_v2  ;;  %3169 = vmatpush1.bf16.msra.mxu0 %v5505_v55  ;;  %v5527_v54 = vld [vmem:[%s5777_s25 + $0x158] ss:$12 sps:$4 sm:$0xff]  }
  0xd2   : > { %4541 = vmatpush1.bf16.msra.mxu1 %v6216_v6  ;;  %3170 = vmatprep.subr.bf16.mxu0 %v5511_v56  ;;  %v5534_v56 = vld [vmem:[%s5777_s25 + $0x170] ss:$12 sps:$4 sm:$0xff]  }
  0xd3   : > { %4534 = vmatprep.subr.bf16.mxu1 %v6224_v57 }
  0xd5   : > { %3171 = vmatpush1.bf16.msra.mxu0 %v5509_v59 }
  0xd6   : > { %4542 = vmatpush1.bf16.msra.mxu1 %v6236_v61  ;;  %3172 = vmatprep.subr.bf16.mxu0 %v5515_v12 }
  0xd7   : > { %4535 = vmatprep.subr.bf16.mxu1 %v6245_v14  ;;  %2008 = vmatmul.mubr.bf16.gmra.mrb[68].mxu1 %v5935_v18  ;;  %v5526_v18 = vld [vmem:[%s7442_s1 + $0x3c4] ss:$8 sps:$4 sm:$0xff]  }
  0xd8   : > { %2241 = vmatmul.mubr.bf16.gmra.mrb[84].mxu0 %v5492_v62  ;;  %2017 = vmatprep.mubr.bf16.mxu1 %v5951_v24  ;;  %v6285_v24 = vld [vmem:[%s7442_s1 + $0x444] ss:$8 sps:$4 sm:$0xff]  }
  0xd9   : > { %2250 = vmatprep.mubr.bf16.mxu0 %v7445_v2  ;;  %3173 = vmatpush1.bf16.msra.mxu0 %v5513_v63 }
  0xda   : > { %4543 = vmatpush1.bf16.msra.mxu1 %v6255_v1  ;;  %3174 = vmatprep.subr.bf16.mxu0 %v5519_v7 }
  0xdb   : > { %4536 = vmatprep.subr.bf16.mxu1 %v6264_v10 }
  0xdd   : > { %3175 = vmatpush1.bf16.msra.mxu0 %v5517_v15  ;;  %v5538_v15 = vld [vmem:[%s5777_s25 + $0x188] ss:$12 sps:$4 sm:$0xff]  }
  0xde   : > { %4544 = vmatpush1.bf16.msra.mxu1 %v6276_v19  ;;  %3176 = vmatprep.subr.bf16.mxu0 %v5526_v18 }
  0xdf   : > { %4537 = vmatprep.subr.bf16.mxu1 %v6285_v24  ;;  %2018 = vmatmul.mubr.bf16.gmra.mrb[72].mxu1 %v5966_v28  ;;  %v5537_v28 = vld [vmem:[%s7442_s1 + $0x3e4] ss:$8 sps:$4 sm:$0xff]  }
  0xe0   : > { %2251 = vmatmul.mubr.bf16.gmra.mrb[88].mxu0 %v5496_v20  ;;  %2027 = vmatprep.mubr.bf16.mxu1 %v5973_v31  ;;  %v6325_v31 = vld [vmem:[%s7442_s1 + $0x464] ss:$8 sps:$4 sm:$0xff]  }
  0xe1   : > { %2260 = vmatprep.mubr.bf16.mxu0 %v7445_v2  ;;  %3177 = vmatpush1.bf16.msra.mxu0 %v5524_v22 }
  0xe2   : > { %4545 = vmatpush1.bf16.msra.mxu1 %v6295_v23  ;;  %3178 = vmatprep.subr.bf16.mxu0 %v5530_v25 }
  0xe3   : > { %4538 = vmatprep.subr.bf16.mxu1 %v6304_v27 }
  0xe5   : > { %3179 = vmatpush1.bf16.msra.mxu0 %v5528_v30 }
  0xe6   : > { %4546 = vmatpush1.bf16.msra.mxu1 %v6316_v32  ;;  %3180 = vmatprep.subr.bf16.mxu0 %v5537_v28 }
  0xe7   : > { %4539 = vmatprep.subr.bf16.mxu1 %v6325_v31  ;;  %2028 = vmatmul.mubr.bf16.gmra.mrb[76].mxu1 %v5988_v35  ;;  %v5504_v35 = vld [vmem:[%s5777_s25 + $0xe0] ss:$12 sps:$4 sm:$0xff]  }
  0xe8   : > { %2261 = vmatmul.mubr.bf16.gmra.mrb[92].mxu0 %v5500_v33  ;;  %2037 = vmatprep.mubr.bf16.mxu1 %v5998_v39  ;;  %v5508_v39 = vld [vmem:[%s5777_s25 + $0xf8] ss:$12 sps:$4 sm:$0xff]  }
  0xe9   : > { %2270 = vmatprep.mubr.bf16.mxu0 %v7445_v2  ;;  %3181 = vmatpush1.bf16.msra.mxu0 %v5535_v34 }
  0xea   : > { %4547 = vmatpush1.bf16.msra.mxu1 %v6335_v37  ;;  %3182 = vmatprep.subr.bf16.mxu0 %v5541_v40 }
  0xeb   : > { %4540 = vmatprep.subr.bf16.mxu1 %v6344_v41 }
  0xed   : > { %3183 = vmatpush1.bf16.msra.mxu0 %v5539_v42 }
  0xee   : > { %4548 = vmatpush1.bf16.msra.mxu1 %v6356_v44  ;;  %3345 = vmatprep.subr.bf16.mxu0 %v6088_v4  ;;  %v5516_v4 = vld [vmem:[%s5777_s25 + $0x128] ss:$12 sps:$4 sm:$0xff]  }
  0xef   : > { %2038 = vmatmul.mubr.bf16.gmra.mrb[80].mxu1 %v6013_v43 }
  0xf0   : > { %2271 = vmatmul.mubr.bf16.gmra.mrb[96].mxu0 %v5504_v35  ;;  %2047 = vmatprep.mubr.bf16.mxu1 %v6020_v46 }
  0xf1   : > { %2280 = vmatprep.mubr.bf16.mxu0 %v7445_v2 }
  0xf7   : > { %2048 = vmatmul.mubr.bf16.gmra.mrb[84].mxu1 %v6035_v50 }
  0xf8   : > { %2281 = vmatmul.mubr.bf16.gmra.mrb[100].mxu0 %v5508_v39  ;;  %2057 = vmatprep.mubr.bf16.mxu1 %v6042_v53  ;;  %v5545_v39 = vld [vmem:[%s5777_s25 + $0x30] ss:$12 sps:$4 sm:$0xff]  }
  0xf9   : > { %2290 = vmatprep.mubr.bf16.mxu0 %v7445_v2 }
  0xff   : > { %2058 = vmatmul.mubr.bf16.gmra.mrb[88].mxu1 %v6060_v58  ;;  %v5523_v58 = vld [vmem:[%s5777_s25 + $0x140] ss:$12 sps:$4 sm:$0xff]  }
 0x100   : > { %2291 = vmatmul.mubr.bf16.gmra.mrb[104].mxu0 %v5512_v47  ;;  %2067 = vmatprep.mubr.bf16.mxu1 %v6064_v60 }
 0x101   : > { %2300 = vmatprep.mubr.bf16.mxu0 %v7445_v2 }
 0x103   : > { %v1069_v43 = vpop.f32.mrb[0].mxu0 }
 0x104   : > { %v1071_v46 = vpop.f32.mrb[1].mxu0 }
 0x105   : > { %v1073_v48 = vpop.f32.mrb[2].mxu0 }
 0x106   : > { %v1075_v49 = vpop.f32.mrb[3].mxu0 }
 0x107   : > { %2068 = vmatmul.mubr.bf16.gmra.mrb[92].mxu1 %v6079_v0 }
 0x108   : > { %2301 = vmatmul.mubr.bf16.gmra.mrb[108].mxu0 %v5516_v4  ;;  %2077 = vmatprep.mubr.bf16.mxu1 %v6083_v3 }
 0x109   : > { %2310 = vmatprep.mubr.bf16.mxu0 %v7445_v2 }
 0x10b   : > { %v1079_v50 = vpop.f32.mrb[4].mxu0 }
 0x10c   : > { %v1081_v53 = vpop.f32.mrb[5].mxu0 }
 0x10d   : > { %v1083_v51 = vpop.f32.mrb[6].mxu0 }
 0x10e   : > { %v1085_v60 = vpop.f32.mrb[7].mxu0 }
 0x10f   : > { %2078 = vmatmul.mubr.bf16.gmra.mrb[96].mxu1 %v6094_v5 }
 0x110   : > { %2311 = vmatmul.mubr.bf16.gmra.mrb[112].mxu0 %v5523_v58  ;;  %2087 = vmatprep.mubr.bf16.mxu1 %v6099_v8 }
 0x111   : > { %2320 = vmatprep.mubr.bf16.mxu0 %v7445_v2 }
 0x113   : > { %v1089_v52 = vpop.f32.mrb[8].mxu0 }
 0x114   : > { %v1091_v0 = vpop.f32.mrb[9].mxu0 }
 0x115   : > { %v6382_v55 = vpop.f32.mrb[10].mxu0 }
 0x116   : > { %v6384_v3 = vpop.f32.mrb[11].mxu0 }
 0x117   : > { %2088 = vmatmul.mubr.bf16.gmra.mrb[100].mxu1 %v6105_v9 }
 0x118   : > { %2321 = vmatmul.mubr.bf16.gmra.mrb[116].mxu0 %v5527_v54  ;;  %2097 = vmatprep.mubr.bf16.mxu1 %v6109_v11 }
 0x119   : > { %2330 = vmatprep.mubr.bf16.mxu0 %v7445_v2 }
 0x11b   : > { %v6389_v5 = vpop.f32.mrb[12].mxu0 }
 0x11c   : > { %v6391_v8 = vpop.f32.mrb[13].mxu0 }
 0x11d   : > { %v6394_v59 = vpop.f32.mrb[14].mxu0 }
 0x11e   : > { %v6396_v12 = vpop.f32.mrb[15].mxu0 }
 0x11f   : > { %2098 = vmatmul.mubr.bf16.gmra.mrb[104].mxu1 %v6115_v13  ;;  %v5547_v13 = vld [vmem:[%s5777_s25 + $0x34] ss:$12 sps:$4 sm:$0xff]  }
 0x120   : > { %2331 = vmatmul.mubr.bf16.gmra.mrb[120].mxu0 %v5534_v56  ;;  %2107 = vmatprep.mubr.bf16.mxu1 %v6119_v16 }
 0x121   : > { %2340 = vmatprep.mubr.bf16.mxu0 %v7445_v2 }
 0x122   : > { %v876_v9 = vpop.f32.mrb[0].mxu1 }
 0x123   : > { %v6401_v11 = vpop.f32.mrb[16].mxu0  ;;  %v6403_v62 = vadd.f32 %v1069_v43, %v876_v9  ;;  %v878_v63 = vpop.f32.mrb[1].mxu1 }
 0x124   : > { %v6405_v7 = vpop.f32.mrb[17].mxu0  ;;  %v6408_v18 = vadd.f32 %v1071_v46, %v878_v63  ;;  %v880_v20 = vpop.f32.mrb[2].mxu1 }
 0x125   : > { %v6410_v22 = vpop.f32.mrb[18].mxu0  ;;  %v6413_v25 = vadd.f32 %v1073_v48, %v880_v20  ;;  %v882_v16 = vpop.f32.mrb[3].mxu1  ;;  %v5548_v48 = vld [vmem:[%s5777_s25 + $0x4c] ss:$12 sps:$4 sm:$0xff]  }
 0x126   : > { %v6415_v30 = vpop.f32.mrb[19].mxu0  ;;  %v6417_v28 = vadd.f32 %v1075_v49, %v882_v16 }
 0x127   : > { %2108 = vmatmul.mubr.bf16.gmra.mrb[108].mxu1 %v6125_v17 }
 0x128   : > { %2341 = vmatmul.mubr.bf16.gmra.mrb[124].mxu0 %v5538_v15  ;;  %2117 = vmatprep.mubr.bf16.mxu1 %v6132_v21  ;;  %v5556_v15 = vld [vmem:[%s5777_s25 + $0x60] ss:$12 sps:$4 sm:$0xff]  }
 0x129   : > { %3184 = vmatprep.mubr.bf16.mxu0 %v5547_v13  ;;  %v6483_v13 = vld [vmem:[%s5777_s25 + $0x184] ss:$12 sps:$4 sm:$0xff]  }
 0x12a   : > { %v886_v33 = vpop.f32.mrb[4].mxu1 }
 0x12b   : > { %v6421_v34 = vpop.f32.mrb[20].mxu0  ;;  %v6423_v40 = vadd.f32 %v1079_v50, %v886_v33  ;;  %v888_v42 = vpop.f32.mrb[5].mxu1 }
 0x12c   : > { %v6425_v35 = vpop.f32.mrb[21].mxu0  ;;  %v6428_v47 = vadd.f32 %v1081_v53, %v888_v42  ;;  %v890_v43 = vpop.f32.mrb[6].mxu1 }
 0x12d   : > { %v6430_v46 = vpop.f32.mrb[22].mxu0  ;;  %v6432_v17 = vadd.f32 %v1083_v51, %v890_v43  ;;  %v892_v4 = vpop.f32.mrb[7].mxu1 }
 0x12e   : > { %v6434_v21 = vpop.f32.mrb[23].mxu0  ;;  %v6437_v49 = vadd.f32 %v1085_v60, %v892_v4  ;;  %v5550_v60 = vld [vmem:[%s5777_s25 + $0x48] ss:$12 sps:$4 sm:$0xff]  }
 0x12f   : > { %2118 = vmatmul.mubr.bf16.gmra.mrb[112].mxu1 %v6147_v26 }
 0x130   : > { %3185 = vmatmul.mubr.bf16.vlgmr.msra.gmra.mrb[64].mxu0 %v5545_v39  ;;  %2127 = vmatprep.mubr.bf16.mxu1 %v6151_v29 }
 0x131   : > { %3346 = vmatpush1.bf16.msra.mxu0 %v6216_v6  ;;  %3194 = vmatprep.mubr.bf16.mxu0 %v5548_v48  ;;  %v5554_v6 = vld [vmem:[%s5777_s25 + $0x64] ss:$12 sps:$4 sm:$0xff]  }
 0x132   : > { %3347 = vmatprep.subr.bf16.mxu0 %v6224_v57  ;;  %v896_v50 = vpop.f32.mrb[8].mxu1 }
 0x133   : > { %v6443_v53 = vpop.f32.mrb[24].mxu0  ;;  %v6445_v58 = vadd.f32 %v1089_v52, %v896_v50  ;;  %v898_v51 = vpop.f32.mrb[9].mxu1 }
 0x134   : > { %v6447_v54 = vpop.f32.mrb[25].mxu0  ;;  %v6450_v56 = vadd.f32 %v1091_v0, %v898_v51  ;;  %v900_v26 = vpop.f32.mrb[10].mxu1 }
 0x135   : > { %v6452_v9 = vpop.f32.mrb[26].mxu0  ;;  %3348 = vmatpush1.bf16.msra.mxu0 %v6236_v61  ;;  %v6457_v29 = vadd.f32 %v6382_v55, %v900_v26  ;;  %v902_v57 = vpop.f32.mrb[11].mxu1 }
 0x136   : > { %v6459_v63 = vpop.f32.mrb[27].mxu0  ;;  %3349 = vmatprep.subr.bf16.mxu0 %v6245_v14  ;;  %v6463_v52 = vadd.f32 %v6384_v3, %v902_v57 }
 0x137   : > { %2128 = vmatmul.mubr.bf16.gmra.mrb[116].mxu1 %v6169_v36 }
 0x138   : > { %3195 = vmatmul.mubr.bf16.gmra.mrb[68].mxu0 %v5550_v60  ;;  %2137 = vmatprep.mubr.bf16.mxu1 %v6173_v38  ;;  %v5578_v60 = vld [vmem:[%s5777_s25 + $0x68] ss:$12 sps:$4 sm:$0xff]  }
 0x139   : > { %3204 = vmatprep.mubr.bf16.mxu0 %v5554_v6  ;;  %3350 = vmatpush1.bf16.msra.mxu0 %v6255_v1  ;;  %v5565_v1 = vld [vmem:[%s5777_s25 + $0x7c] ss:$12 sps:$4 sm:$0xff]  }
 0x13a   : > { %v906_v61 = vpop.f32.mrb[12].mxu1  ;;  %3351 = vmatprep.subr.bf16.mxu0 %v6264_v10 }
 0x13b   : > { %v6468_v0 = vpop.f32.mrb[28].mxu0  ;;  %v6472_v14 = vadd.f32 %v6389_v5, %v906_v61  ;;  %v908_v55 = vpop.f32.mrb[13].mxu1 }
 0x13c   : > { %v6474_v3 = vpop.f32.mrb[29].mxu0  ;;  %v6478_v36 = vadd.f32 %v6391_v8, %v908_v55  ;;  %v910_v20 = vpop.f32.mrb[14].mxu1 }
 0x13d   : > { %v6480_v38 = vpop.f32.mrb[30].mxu0  ;;  %v6487_v16 = vadd.f32 %v6394_v59, %v910_v20  ;;  %v912_v10 = vpop.f32.mrb[15].mxu1  ;;  %3352 = vmatpush1.bf16.msra.mxu0 %v6276_v19 }
 0x13e   : > { %v6489_v5 = vpop.f32.mrb[31].mxu0  ;;  %v6493_v33 = vadd.f32 %v6396_v12, %v912_v10  ;;  %3353 = vmatprep.subr.bf16.mxu0 %v6285_v24  ;;  %v6508_v24 = vld [vmem:[%s5777_s25 + $0x180] ss:$12 sps:$4 sm:$0xff]   ;;  %v5581_v10 = vld [vmem:[%s5777_s25 + $0xa8] ss:$12 sps:$4 sm:$0xff]  }
 0x13f   : > { %2138 = vmatmul.mubr.bf16.gmra.mrb[120].mxu1 %v6191_v45  ;;  %v5568_v45 = vld [vmem:[%s5777_s25 + $0x78] ss:$12 sps:$4 sm:$0xff]  }
 0x140   : > { %3205 = vmatmul.mubr.bf16.gmra.mrb[72].mxu0 %v5556_v15  ;;  %2147 = vmatprep.mubr.bf16.mxu1 %v6483_v13 }
 0x141   : > { %3214 = vmatprep.mubr.bf16.mxu0 %v5565_v1  ;;  %3354 = vmatpush1.bf16.msra.mxu0 %v6295_v23  ;;  %v5575_v23 = vld [vmem:[%s5777_s25 + $0x94] ss:$12 sps:$4 sm:$0xff]  }
 0x142   : > { %v916_v8 = vpop.f32.mrb[16].mxu1  ;;  %3355 = vmatprep.subr.bf16.mxu0 %v6304_v27 }
 0x143   : > { %v6499_v59 = vpop.f32.mrb[32].mxu0  ;;  %v6503_v19 = vadd.f32 %v6401_v11, %v916_v8  ;;  %v918_v12 = vpop.f32.mrb[17].mxu1 }
 0x144   : > { %v6505_v42 = vpop.f32.mrb[33].mxu0  ;;  %v6512_v39 = vadd.f32 %v6405_v7, %v918_v12  ;;  %v920_v43 = vpop.f32.mrb[18].mxu1 }
 0x145   : > { %v6514_v4 = vpop.f32.mrb[34].mxu0  ;;  %v6518_v48 = vadd.f32 %v6410_v22, %v920_v43  ;;  %v922_v27 = vpop.f32.mrb[19].mxu1  ;;  %3356 = vmatpush1.bf16.msra.mxu0 %v6316_v32 }
 0x146   : > { %v6520_v11 = vpop.f32.mrb[35].mxu0  ;;  %v6524_v50 = vadd.f32 %v6415_v30, %v922_v27  ;;  %3357 = vmatprep.subr.bf16.mxu0 %v6325_v31  ;;  %v5577_v31 = vld [vmem:[%s5777_s25 + $0x90] ss:$12 sps:$4 sm:$0xff]  }
 0x147   : > { %2148 = vmatmul.mubr.bf16.gmra.mrb[124].mxu1 %v6508_v24 }
 0x148   : > { %3215 = vmatmul.mubr.bf16.gmra.mrb[76].mxu0 %v5568_v45  ;;  %3397 = vmatprep.mubr.bf16.mxu1 %v7445_v2  ;;  %v5583_v45 = vld [vmem:[%s5777_s25 + $0xc4] ss:$12 sps:$4 sm:$0xff]  }
 0x149   : > { %3224 = vmatprep.mubr.bf16.mxu0 %v5575_v23  ;;  %3358 = vmatpush1.bf16.msra.mxu0 %v6335_v37  ;;  %v5579_v37 = vld [vmem:[%s5777_s25 + $0xac] ss:$12 sps:$4 sm:$0xff]  }
 0x14a   : > { %v926_v7 = vpop.f32.mrb[20].mxu1  ;;  %3359 = vmatprep.subr.bf16.mxu0 %v6344_v41 }
 0x14b   : > { %v6530_v22 = vpop.f32.mrb[36].mxu0  ;;  %v6534_v32 = vadd.f32 %v6421_v34, %v926_v7  ;;  %v928_v30 = vpop.f32.mrb[21].mxu1 }
 0x14c   : > { %v6536_v51 = vpop.f32.mrb[37].mxu0  ;;  %v6541_v26 = vadd.f32 %v6425_v35, %v928_v30  ;;  %v930_v6 = vpop.f32.mrb[22].mxu1 }
 0x14d   : > { %v6543_v57 = vpop.f32.mrb[38].mxu0  ;;  %v6547_v61 = vadd.f32 %v6430_v46, %v930_v6  ;;  %v932_v41 = vpop.f32.mrb[23].mxu1  ;;  %3360 = vmatpush1.bf16.msra.mxu0 %v6356_v44  ;;  %v5582_v44 = vld [vmem:[%s5777_s25 + $0x80] ss:$12 sps:$4 sm:$0xff]   ;;  %v5586_v6 = vld [vmem:[%s5777_s25 + $0x98] ss:$12 sps:$4 sm:$0xff]  }
 0x14e   : > { %v6549_v34 = vpop.f32.mrb[39].mxu0  ;;  %v6553_v55 = vadd.f32 %v6434_v21, %v932_v41 }
 0x14f   : > { %3398 = vmatmul.mubr.bf16.vlgmr.msra.gmra.mrb[128].mxu1 %v5578_v60  ;;  %v5585_v60 = vld [vmem:[%s5777_s25 + $0xc0] ss:$12 sps:$4 sm:$0xff]  }
 0x150   : > { %3225 = vmatmul.mubr.bf16.gmra.mrb[80].mxu0 %v5577_v31  ;;  %3407 = vmatprep.mubr.bf16.mxu1 %v7445_v2 }
 0x151   : > { %3234 = vmatprep.mubr.bf16.mxu0 %v5579_v37 }
 0x152   : > { %v936_v35 = vpop.f32.mrb[24].mxu1 }
 0x153   : > { %v6556_v15 = vpop.f32.mrb[40].mxu0  ;;  %v6559_v46 = vadd.f32 %v6443_v53, %v936_v35  ;;  %v938_v20 = vpop.f32.mrb[25].mxu1  ;;  %v5587_v35 = vld [vmem:[%s5777_s25 + $0xdc] ss:$12 sps:$4 sm:$0xff]  }
 0x154   : > { %v6561_v1 = vpop.f32.mrb[41].mxu0  ;;  %v6566_v8 = vadd.f32 %v6447_v54, %v938_v20  ;;  %v940_v21 = vpop.f32.mrb[26].mxu1 }
 0x155   : > { %v6568_v12 = vpop.f32.mrb[42].mxu0  ;;  %v6572_v43 = vadd.f32 %v6452_v9, %v940_v21  ;;  %v942_v23 = vpop.f32.mrb[27].mxu1 }
 0x156   : > { %v6574_v53 = vpop.f32.mrb[43].mxu0  ;;  %v6577_v27 = vadd.f32 %v6459_v63, %v942_v23 }
 0x157   : > { %3408 = vmatmul.mubr.bf16.gmra.mrb[132].mxu1 %v5582_v44 }
 0x158   : > { %3235 = vmatmul.mubr.bf16.gmra.mrb[84].mxu0 %v5581_v10  ;;  %3417 = vmatprep.mubr.bf16.mxu1 %v7445_v2 }
 0x159   : > { %3244 = vmatprep.mubr.bf16.mxu0 %v5583_v45 }
 0x15a   : > { %v946_v54 = vpop.f32.mrb[28].mxu1 }
 0x15b   : > { %v6580_v7 = vpop.f32.mrb[44].mxu0  ;;  %v6583_v30 = vadd.f32 %v6468_v0, %v946_v54  ;;  %v948_v9 = vpop.f32.mrb[29].mxu1  ;;  %v5589_v54 = vld [vmem:[%s5777_s25 + $0xd8] ss:$12 sps:$4 sm:$0xff]  }
 0x15c   : > { %v6585_v31 = vpop.f32.mrb[45].mxu0  ;;  %v6590_v37 = vadd.f32 %v6474_v3, %v948_v9  ;;  %v950_v63 = vpop.f32.mrb[30].mxu1  ;;  %v5590_v9 = vld [vmem:[%s5777_s25 + $0xb0] ss:$12 sps:$4 sm:$0xff]  }
 0x15d   : > { %v6592_v41 = vpop.f32.mrb[46].mxu0  ;;  %v6596_v20 = vadd.f32 %v6480_v38, %v950_v63  ;;  %v952_v10 = vpop.f32.mrb[31].mxu1 }
 0x15e   : > { %v6598_v0 = vpop.f32.mrb[47].mxu0  ;;  %v6601_v44 = vadd.f32 %v6489_v5, %v952_v10 }
 0x15f   : > { %3418 = vmatmul.mubr.bf16.gmra.mrb[136].mxu1 %v5586_v6  ;;  %v5591_v6 = vld [vmem:[%s5777_s25 + $0xf4] ss:$12 sps:$4 sm:$0xff]  }
 0x160   : > { %7471 = vst [vmem:[#allocation2_spill] sm:$0xff] %v6601_v44  ;;  %3245 = vmatmul.mubr.bf16.gmra.mrb[88].mxu0 %v5585_v60  ;;  %3427 = vmatprep.mubr.bf16.mxu1 %v7445_v2 }
 0x161   : > { %3254 = vmatprep.mubr.bf16.mxu0 %v5587_v35 }
 0x162   : > { %v956_v3 = vpop.f32.mrb[32].mxu1 }
 0x163   : > { %v6604_v21 = vpop.f32.mrb[48].mxu0  ;;  %v6607_v45 = vadd.f32 %v6499_v59, %v956_v3  ;;  %v958_v38 = vpop.f32.mrb[33].mxu1 }
 0x164   : > { %v6609_v23 = vpop.f32.mrb[49].mxu0  ;;  %v6614_v63 = vadd.f32 %v6505_v42, %v958_v38  ;;  %v960_v5 = vpop.f32.mrb[34].mxu1 }
 0x165   : > { %7472 = vst [vmem:[#allocation3_spill] sm:$0xff] %v6607_v45  ;;  %v6616_v60 = vpop.f32.mrb[50].mxu0  ;;  %v6620_v35 = vadd.f32 %v6514_v4, %v960_v5  ;;  %v962_v10 = vpop.f32.mrb[35].mxu1  ;;  %v5594_v45 = vld [vmem:[%s5777_s25 + $0xc8] ss:$12 sps:$4 sm:$0xff]  }
 0x166   : > { %7473 = vst [vmem:[#allocation4_spill] sm:$0xff] %v6614_v63  ;;  %v6622_v59 = vpop.f32.mrb[51].mxu0  ;;  %v6625_v3 = vadd.f32 %v6520_v11, %v962_v10 }
 0x167   : > { %7474 = vst [vmem:[#allocation5_spill] sm:$0xff] %v6620_v35  ;;  %3428 = vmatmul.mubr.bf16.gmra.mrb[140].mxu1 %v5590_v9  ;;  %v5593_v35 = vld [vmem:[%s5777_s25 + $0xf0] ss:$12 sps:$4 sm:$0xff]   ;;  %v5595_v9 = vld [vmem:[%s5777_s25 + $0x10c] ss:$12 sps:$4 sm:$0xff]  }
 0x168   : > { %7475 = vst [vmem:[#allocation6_spill] sm:$0xff] %v6625_v3  ;;  %3255 = vmatmul.mubr.bf16.gmra.mrb[92].mxu0 %v5589_v54  ;;  %3437 = vmatprep.mubr.bf16.mxu1 %v7445_v2 }
 0x169   : > { %3264 = vmatprep.mubr.bf16.mxu0 %v5591_v6 }
 0x16a   : > { %v966_v42 = vpop.f32.mrb[36].mxu1 }
 0x16b   : > { %v6628_v38 = vpop.f32.mrb[52].mxu0  ;;  %v6631_v63 = vadd.f32 %v6530_v22, %v966_v42  ;;  %v968_v4 = vpop.f32.mrb[37].mxu1 }
 0x16c   : > { %v6633_v5 = vpop.f32.mrb[53].mxu0  ;;  %v6638_v44 = vadd.f32 %v6536_v51, %v968_v4  ;;  %v970_v11 = vpop.f32.mrb[38].mxu1 }
 0x16d   : > { %7476 = vst [vmem:[#allocation7_spill] sm:$0xff] %v6631_v63  ;;  %v6640_v54 = vpop.f32.mrb[54].mxu0  ;;  %v6644_v6 = vadd.f32 %v6543_v57, %v970_v11  ;;  %v972_v10 = vpop.f32.mrb[39].mxu1  ;;  %v5598_v63 = vld [vmem:[%s5777_s25 + $0xe0] ss:$12 sps:$4 sm:$0xff]  }
 0x16e   : > { %7477 = vst [vmem:[#allocation8_spill] sm:$0xff] %v6638_v44  ;;  %v6646_v22 = vpop.f32.mrb[55].mxu0  ;;  %v6649_v42 = vadd.f32 %v6549_v34, %v972_v10 }
 0x16f   : > { %7478 = vst [vmem:[#allocation9_spill] sm:$0xff] %v6644_v6  ;;  %3438 = vmatmul.mubr.bf16.gmra.mrb[144].mxu1 %v5594_v45  ;;  %v5597_v6 = vld [vmem:[%s5777_s25 + $0x108] ss:$12 sps:$4 sm:$0xff]  }
 0x170   : > { %3265 = vmatmul.mubr.bf16.gmra.mrb[96].mxu0 %v5593_v35  ;;  %3447 = vmatprep.mubr.bf16.mxu1 %v7445_v2  ;;  %v5599_v35 = vld [vmem:[%s5777_s25 + $0x124] ss:$12 sps:$4 sm:$0xff]  }
 0x171   : > { %3274 = vmatprep.mubr.bf16.mxu0 %v5595_v9 }
 0x172   : > { %v976_v51 = vpop.f32.mrb[40].mxu1 }
 0x173   : > { %v6652_v4 = vpop.f32.mrb[56].mxu0  ;;  %v6655_v44 = vadd.f32 %v6556_v15, %v976_v51  ;;  %v978_v57 = vpop.f32.mrb[41].mxu1 }
 0x174   : > { %v6657_v11 = vpop.f32.mrb[57].mxu0  ;;  %v6662_v3 = vadd.f32 %v6561_v1, %v978_v57  ;;  %v980_v34 = vpop.f32.mrb[42].mxu1 }
 0x175   : > { %7479 = vst [vmem:[#allocation10_spill] sm:$0xff] %v6655_v44  ;;  %v6664_v45 = vpop.f32.mrb[58].mxu0  ;;  %v6668_v9 = vadd.f32 %v6568_v12, %v980_v34  ;;  %v982_v10 = vpop.f32.mrb[43].mxu1  ;;  %v5602_v44 = vld [vmem:[%s5777_s25 + $0xf8] ss:$12 sps:$4 sm:$0xff]  }
 0x176   : > { %7480 = vst [vmem:[#allocation11_spill] sm:$0xff] %v6662_v3  ;;  %v6670_v15 = vpop.f32.mrb[59].mxu0  ;;  %v6673_v51 = vadd.f32 %v6574_v53, %v982_v10 }
 0x177   : > { %7481 = vst [vmem:[#allocation12_spill] sm:$0xff] %v6668_v9  ;;  %3448 = vmatmul.mubr.bf16.gmra.mrb[148].mxu1 %v5598_v63  ;;  %v5601_v9 = vld [vmem:[%s5777_s25 + $0x120] ss:$12 sps:$4 sm:$0xff]  }
 0x178   : > { %7482 = vst [vmem:[#allocation13_spill] sm:$0xff] %v6673_v51  ;;  %3275 = vmatmul.mubr.bf16.gmra.mrb[100].mxu0 %v5597_v6  ;;  %3457 = vmatprep.mubr.bf16.mxu1 %v7445_v2  ;;  %v5605_v51 = vld [vmem:[%s5777_s25 + $0x138] ss:$12 sps:$4 sm:$0xff]  }
 0x179   : > { %3284 = vmatprep.mubr.bf16.mxu0 %v5599_v35  ;;  %v5603_v35 = vld [vmem:[%s5777_s25 + $0x13c] ss:$12 sps:$4 sm:$0xff]  }
 0x17a   : > { %v986_v1 = vpop.f32.mrb[44].mxu1 }
 0x17b   : > { %v6676_v57 = vpop.f32.mrb[60].mxu0  ;;  %v6679_v3 = vadd.f32 %v6580_v7, %v986_v1  ;;  %v988_v12 = vpop.f32.mrb[45].mxu1 }
 0x17c   : > { %v6681_v34 = vpop.f32.mrb[61].mxu0  ;;  %v6686_v53 = vadd.f32 %v6585_v31, %v988_v12  ;;  %v990_v63 = vpop.f32.mrb[46].mxu1 }
 0x17d   : > { %7483 = vst [vmem:[#allocation14_spill] sm:$0xff] %v6679_v3  ;;  %v1223_v6 = vpop.f32.mrb[62].mxu0  ;;  %v6690_v10 = vadd.f32 %v6592_v41, %v990_v63  ;;  %v992_v2 = vpop.f32.mrb[47].mxu1  ;;  %v7486_v3 = vmov 0   ;;  %v5606_v41 = vld [vmem:[%s5777_s25 + $0x110] ss:$12 sps:$4 sm:$0xff]  }
 0x17e   : > { %7484 = vst [vmem:[#allocation15_spill] sm:$0xff] %v6686_v53  ;;  %v1225_v7 = vpop.f32.mrb[63].mxu0  ;;  %v6693_v1 = vadd.f32 %v6598_v0, %v992_v2  ;;  %v5607_v2 = vld [vmem:[%s5777_s25 + $0x154] ss:$12 sps:$4 sm:$0xff]  }
 0x17f   : > { %7485 = vst [vmem:[#allocation16_spill] sm:$0xff] %v6690_v10  ;;  %3458 = vmatmul.mubr.bf16.gmra.mrb[152].mxu1 %v5602_v44 }
 0x180   : > { %3285 = vmatmul.mubr.bf16.gmra.mrb[104].mxu0 %v5601_v9  ;;  %3467 = vmatprep.mubr.bf16.mxu1 %v7486_v3 }
 0x181   : > { %3294 = vmatprep.mubr.bf16.mxu0 %v5603_v35 }
 0x182   : > { %v996_v31 = vpop.f32.mrb[48].mxu1 }
 0x183   : > { %v6697_v12 = vadd.f32 %v6604_v21, %v996_v31  ;;  %v998_v53 = vpop.f32.mrb[49].mxu1  ;;  %v5610_v31 = vld [vmem:[%s5777_s25 + $0x128] ss:$12 sps:$4 sm:$0xff]  }
 0x184   : > { %v6702_v63 = vadd.f32 %v6609_v23, %v998_v53  ;;  %v1000_v10 = vpop.f32.mrb[50].mxu1  ;;  %v5609_v53 = vld [vmem:[%s5777_s25 + $0x150] ss:$12 sps:$4 sm:$0xff]  }
 0x185   : > { %v6706_v0 = vadd.f32 %v6616_v60, %v1000_v10  ;;  %v1002_v44 = vpop.f32.mrb[51].mxu1 }
 0x186   : > { %v6709_v9 = vadd.f32 %v6622_v59, %v1002_v44  ;;  %v5611_v59 = vld [vmem:[%s5777_s25 + $0x16c] ss:$12 sps:$4 sm:$0xff]  }
 0x187   : > { %3468 = vmatmul.mubr.bf16.gmra.mrb[156].mxu1 %v5606_v41 }
 0x188   : > { %3295 = vmatmul.mubr.bf16.gmra.mrb[108].mxu0 %v5605_v51  ;;  %3477 = vmatprep.mubr.bf16.mxu1 %v7486_v3 }
 0x189   : > { %3304 = vmatprep.mubr.bf16.mxu0 %v5607_v2 }
 0x18a   : > { %v1006_v21 = vpop.f32.mrb[52].mxu1 }
 0x18b   : > { %v6713_v35 = vadd.f32 %v6628_v38, %v1006_v21  ;;  %v1008_v23 = vpop.f32.mrb[53].mxu1  ;;  %v5613_v21 = vld [vmem:[%s5777_s25 + $0x168] ss:$12 sps:$4 sm:$0xff]  }
 0x18c   : > { %v6718_v60 = vadd.f32 %v6633_v5, %v1008_v23  ;;  %v1010_v10 = vpop.f32.mrb[54].mxu1  ;;  %v5614_v23 = vld [vmem:[%s5777_s25 + $0x140] ss:$12 sps:$4 sm:$0xff]  }
 0x18d   : > { %v6722_v51 = vadd.f32 %v6640_v54, %v1010_v10  ;;  %v1012_v41 = vpop.f32.mrb[55].mxu1 }
 0x18e   : > { %v6725_v2 = vadd.f32 %v6646_v22, %v1012_v41  ;;  %v5615_v41 = vld [vmem:[%s5777_s25 + $0x158] ss:$12 sps:$4 sm:$0xff]  }
 0x18f   : > { %3478 = vmatmul.mubr.bf16.gmra.mrb[160].mxu1 %v5610_v31 }
 0x190   : > { %3305 = vmatmul.mubr.bf16.gmra.mrb[112].mxu0 %v5609_v53  ;;  %3487 = vmatprep.mubr.bf16.mxu1 %v7486_v3 }
 0x191   : > { %3314 = vmatprep.mubr.bf16.mxu0 %v5611_v59 }
 0x192   : > { %v1016_v38 = vpop.f32.mrb[56].mxu1 }
 0x193   : > { %v6729_v44 = vadd.f32 %v6652_v4, %v1016_v38  ;;  %v1018_v5 = vpop.f32.mrb[57].mxu1 }
 0x194   : > { %v6734_v54 = vadd.f32 %v6657_v11, %v1018_v5  ;;  %v1020_v10 = vpop.f32.mrb[58].mxu1 }
 0x195   : > { %v6737_v22 = vadd.f32 %v6664_v45, %v1020_v10  ;;  %v1022_v53 = vpop.f32.mrb[59].mxu1 }
 0x196   : > { %v6740_v31 = vadd.f32 %v6670_v15, %v1022_v53  ;;  %v5616_v15 = vld [vmem:[%s5777_s25 + $0x19c] ss:$12 sps:$4 sm:$0xff]  }
 0x197   : > { %3488 = vmatmul.mubr.bf16.gmra.mrb[164].mxu1 %v5614_v23 }
 0x198   : > { %3315 = vmatmul.mubr.bf16.gmra.mrb[116].mxu0 %v5613_v21  ;;  %3497 = vmatprep.mubr.bf16.mxu1 %v7486_v3 }
 0x199   : > { %3324 = vmatprep.mubr.bf16.mxu0 %v6483_v13 }
 0x19a   : > { %v1026_v4 = vpop.f32.mrb[60].mxu1 }
 0x19b   : > { %v6745_v59 = vadd.f32 %v6676_v57, %v1026_v4  ;;  %v1028_v11 = vpop.f32.mrb[61].mxu1 }
 0x19c   : > { %v6749_v45 = vadd.f32 %v6681_v34, %v1028_v11  ;;  %v1030_v38 = vpop.f32.mrb[62].mxu1 }
 0x19d   : > { %v6752_v5 = vadd.f32 %v1223_v6, %v1030_v38  ;;  %v1032_v21 = vpop.f32.mrb[63].mxu1  ;;  %v5618_v6 = vld [vmem:[%s5777_s25 + $0x198] ss:$12 sps:$4 sm:$0xff]   ;;  %v5621_v38 = vld [vmem:[%s5777_s25 + $0x188] ss:$12 sps:$4 sm:$0xff]  }
 0x19e   : > { %v6754_v23 = vadd.f32 %v1225_v7, %v1032_v21  ;;  %v5619_v7 = vld [vmem:[%s5777_s25 + $0x170] ss:$12 sps:$4 sm:$0xff]  }
 0x19f   : > { %3498 = vmatmul.mubr.bf16.gmra.mrb[168].mxu1 %v5615_v41  ;;  %v5620_v41 = vld [vmem:[%s5777_s25 + $0x38] ss:$12 sps:$4 sm:$0xff]  }
 0x1a0   : > { %3325 = vmatmul.mubr.bf16.gmra.mrb[120].mxu0 %v6508_v24  ;;  %3507 = vmatprep.mubr.bf16.mxu1 %v7486_v3 }
 0x1a1   : > { %3334 = vmatprep.mubr.bf16.mxu0 %v5616_v15 }
 0x1a2   : > { %v1999_v13 = vpop.f32.mrb[64].mxu1 }
 0x1a3   : > { %v4552_v57 = vadd.f32 %v1999_v13, %v6403_v62  ;;  %v2001_v34 = vpop.f32.mrb[65].mxu1 }
 0x1a4   : > { %v4559_v24 = vadd.f32 %v2001_v34, %v6408_v18  ;;  %v2003_v10 = vpop.f32.mrb[66].mxu1 }
 0x1a5   : > { %4553 = vst [vmem:[%s6762_s22] sm:$0xff] %v4552_v57  ;;  %v4566_v53 = vadd.f32 %v2003_v10, %v6413_v25  ;;  %v2005_v4 = vpop.f32.mrb[67].mxu1 }
 0x1a6   : > { %4560 = vst [vmem:[%s6762_s22 + $0x8] sm:$0xff] %v4559_v24  ;;  %v4573_v11 = vadd.f32 %v2005_v4, %v6417_v28 }
 0x1a7   : > { %4567 = vst [vmem:[%s6762_s22 + $0x10] sm:$0xff] %v4566_v53  ;;  %3508 = vmatmul.mubr.bf16.gmra.mrb[172].mxu1 %v5619_v7  ;;  %v5623_v7 = vld [vmem:[%s5777_s25 + $0x1a0] ss:$12 sps:$4 sm:$0xff]  }
 0x1a8   : > { %3335 = vmatmul.mubr.bf16.gmra.mrb[124].mxu0 %v5618_v6  ;;  %4574 = vst [vmem:[%s6762_s22 + $0x18] sm:$0xff] %v4573_v11  ;;  %3517 = vmatprep.mubr.bf16.mxu1 %v7486_v3  ;;  %v5622_v6 = vld [vmem:[%s5777_s25 + $0x50] ss:$12 sps:$4 sm:$0xff]   ;;  %s4532_s25 = sshll.u32 %s7543_s12, 2 }
 0x1a9   : > { %3377 = vmatprep.mubr.bf16.mxu0 %v7486_v3  ;;  %s232_s26 = scalar_lea.vmem %s7444_s3, %s4532_s25 }
 0x1aa   : > { %v2009_v62 = vpop.f32.mrb[68].mxu1 }
 0x1ab   : > { %v4580_v18 = vadd.f32 %v2009_v62, %v6423_v40  ;;  %v2011_v25 = vpop.f32.mrb[69].mxu1 }
 0x1ac   : > { %v4587_v15 = vadd.f32 %v2011_v25, %v6428_v47  ;;  %v2013_v28 = vpop.f32.mrb[70].mxu1 }
 0x1ad   : > { %4581 = vst [vmem:[%s6762_s22 + $0x20] sm:$0xff] %v4580_v18  ;;  %v4594_v21 = vadd.f32 %v2013_v28, %v6432_v17  ;;  %v2015_v13 = vpop.f32.mrb[71].mxu1 }
 0x1ae   : > { %4588 = vst [vmem:[%s6762_s22 + $0x28] sm:$0xff] %v4587_v15  ;;  %v4601_v57 = vadd.f32 %v2015_v13, %v6437_v49 }
 0x1af   : > { %4595 = vst [vmem:[%s6762_s22 + $0x30] sm:$0xff] %v4594_v21  ;;  %3518 = vmatmul.mubr.bf16.gmra.mrb[176].mxu1 %v5621_v38 }
 0x1b0   : > { %3378 = vmatmul.mubr.bf16.vlgmr.msra.gmra.mrb[64].mxu0 %v5620_v41  ;;  %4602 = vst [vmem:[%s6762_s22 + $0x38] sm:$0xff] %v4601_v57  ;;  %3527 = vmatprep.mubr.bf16.mxu1 %v7486_v3 }
 0x1b1   : > { %3387 = vmatprep.mubr.bf16.mxu0 %v7486_v3 }
 0x1b2   : > { %v2019_v40 = vpop.f32.mrb[72].mxu1 }
 0x1b3   : > { %v6789_v47 = vadd.f32 %v2019_v40, %v6445_v58  ;;  %v2021_v34 = vpop.f32.mrb[73].mxu1 }
 0x1b4   : > { %v6794_v17 = vadd.f32 %v2021_v34, %v6450_v56  ;;  %v2023_v24 = vpop.f32.mrb[74].mxu1 }
 0x1b5   : > { %v6797_v49 = vadd.f32 %v2023_v24, %v6457_v29  ;;  %v2025_v10 = vpop.f32.mrb[75].mxu1 }
 0x1b6   : > { %v6800_v53 = vadd.f32 %v2025_v10, %v6463_v52 }
 0x1b7   : > { %3528 = vmatmul.mubr.bf16.gmra.mrb[180].mxu1 %v5623_v7 }
 0x1b8   : > { %3388 = vmatmul.mubr.bf16.gmra.mrb[68].mxu0 %v5622_v6 }
 0x1ba   : > { %v2029_v3 = vpop.f32.mrb[76].mxu1 }
 0x1bb   : > { %v6803_v58 = vadd.f32 %v2029_v3, %v6472_v14  ;;  %v2031_v4 = vpop.f32.mrb[77].mxu1 }
 0x1bc   : > { %v6806_v11 = vadd.f32 %v2031_v4, %v6478_v36  ;;  %v2033_v56 = vpop.f32.mrb[78].mxu1 }
 0x1bd   : > { %v6809_v62 = vadd.f32 %v2033_v56, %v6487_v16  ;;  %v2035_v29 = vpop.f32.mrb[79].mxu1  ;;  %v7487_v56 = vld [vmem:[#allocation2_spill] sm:$0xff] }
 0x1be   : > { %v6812_v18 = vadd.f32 %v2035_v29, %v6493_v33 }
 0x1c2   : > { %v2039_v52 = vpop.f32.mrb[80].mxu1 }
 0x1c3   : > { %v6815_v25 = vadd.f32 %v2039_v52, %v6503_v19  ;;  %v2041_v41 = vpop.f32.mrb[81].mxu1  ;;  %v7488_v52 = vld [vmem:[#allocation3_spill] sm:$0xff] }
 0x1c4   : > { %v6818_v14 = vadd.f32 %v2041_v41, %v6512_v39  ;;  %v2043_v38 = vpop.f32.mrb[82].mxu1 }
 0x1c5   : > { %v6821_v36 = vadd.f32 %v2043_v38, %v6518_v48  ;;  %v2045_v15 = vpop.f32.mrb[83].mxu1  ;;  %v7489_v38 = vld [vmem:[#allocation4_spill] sm:$0xff] }
 0x1c6   : > { %v6824_v16 = vadd.f32 %v2045_v15, %v6524_v50 }
 0x1ca   : > { %v2049_v28 = vpop.f32.mrb[84].mxu1 }
 0x1cb   : > { %v6827_v33 = vadd.f32 %v2049_v28, %v6534_v32  ;;  %v2051_v21 = vpop.f32.mrb[85].mxu1  ;;  %v7490_v28 = vld [vmem:[#allocation5_spill] sm:$0xff] }
 0x1cc   : > { %v6830_v19 = vadd.f32 %v2051_v21, %v6541_v26  ;;  %v2053_v13 = vpop.f32.mrb[86].mxu1 }
 0x1cd   : > { %v6833_v39 = vadd.f32 %v2053_v13, %v6547_v61  ;;  %v2055_v57 = vpop.f32.mrb[87].mxu1  ;;  %v7491_v13 = vld [vmem:[#allocation6_spill] sm:$0xff] }
 0x1ce   : > { %v6836_v48 = vadd.f32 %v2055_v57, %v6553_v55 }
 0x1d2   : > { %v2059_v40 = vpop.f32.mrb[88].mxu1 }
 0x1d3   : > { %v6839_v50 = vadd.f32 %v2059_v40, %v6559_v46  ;;  %v2061_v34 = vpop.f32.mrb[89].mxu1  ;;  %v7492_v40 = vld [vmem:[#allocation7_spill] sm:$0xff] }
 0x1d4   : > { %v6842_v32 = vadd.f32 %v2061_v34, %v6566_v8  ;;  %v2063_v6 = vpop.f32.mrb[90].mxu1 }
 0x1d5   : > { %v6845_v26 = vadd.f32 %v2063_v6, %v6572_v43  ;;  %v2065_v7 = vpop.f32.mrb[91].mxu1 }
 0x1d6   : > { %v6848_v61 = vadd.f32 %v2065_v7, %v6577_v27  ;;  %v7493_v7 = vld [vmem:[#allocation8_spill] sm:$0xff] }
 0x1da   : > { %v2069_v24 = vpop.f32.mrb[92].mxu1 }
 0x1db   : > { %v6851_v55 = vadd.f32 %v2069_v24, %v6583_v30  ;;  %v2071_v10 = vpop.f32.mrb[93].mxu1 }
 0x1dc   : > { %v6854_v46 = vadd.f32 %v2071_v10, %v6590_v37  ;;  %v2073_v3 = vpop.f32.mrb[94].mxu1 }
 0x1dd   : > { %v6857_v8 = vadd.f32 %v2073_v3, %v6596_v20  ;;  %v2075_v4 = vpop.f32.mrb[95].mxu1  ;;  %v7494_v3 = vld [vmem:[#allocation9_spill] sm:$0xff] }
 0x1de   : > { %v6860_v43 = vadd.f32 %v2075_v4, %v7487_v56 }
 0x1e2   : > { %v2079_v29 = vpop.f32.mrb[96].mxu1 }
 0x1e3   : > { %v6863_v27 = vadd.f32 %v2079_v29, %v7488_v52  ;;  %v2081_v41 = vpop.f32.mrb[97].mxu1 }
 0x1e4   : > { %v6866_v30 = vadd.f32 %v2081_v41, %v7489_v38  ;;  %v2083_v15 = vpop.f32.mrb[98].mxu1  ;;  %v7497_v41 = vld [vmem:[#allocation10_spill] sm:$0xff] }
 0x1e5   : > { %v6869_v37 = vadd.f32 %v2083_v15, %v7490_v28  ;;  %v2085_v21 = vpop.f32.mrb[99].mxu1  ;;  %v7499_v28 = vld [vmem:[#allocation11_spill] sm:$0xff] }
 0x1e6   : > { %v6872_v20 = vadd.f32 %v2085_v21, %v7491_v13 }
 0x1ea   : > { %v2089_v57 = vpop.f32.mrb[100].mxu1 }
 0x1eb   : > { %v6875_v34 = vadd.f32 %v2089_v57, %v7492_v40  ;;  %v2091_v6 = vpop.f32.mrb[101].mxu1  ;;  %v7500_v57 = vld [vmem:[#allocation12_spill] sm:$0xff] }
 0x1ec   : > { %v6878_v24 = vadd.f32 %v2091_v6, %v7493_v7  ;;  %v2093_v10 = vpop.f32.mrb[102].mxu1  ;;  %v7501_v7 = vld [vmem:[#allocation13_spill] sm:$0xff] }
 0x1ed   : > { %v6881_v4 = vadd.f32 %v2093_v10, %v7494_v3  ;;  %v2095_v56 = vpop.f32.mrb[103].mxu1 }
 0x1ee   : > { %v6884_v29 = vadd.f32 %v2095_v56, %v6649_v42 }
 0x1ef   : > { %7495 = vst [vmem:[#allocation2_spill] sm:$0xff] %v6881_v4  ;;  %v7502_v4 = vld [vmem:[#allocation14_spill] sm:$0xff] }
 0x1f0   : > { %7496 = vst [vmem:[#allocation3_spill] sm:$0xff] %v6884_v29  ;;  %v7503_v29 = vld [vmem:[#allocation15_spill] sm:$0xff] }
 0x1f2   : > { %v2099_v52 = vpop.f32.mrb[104].mxu1 }
 0x1f3   : > { %v6887_v38 = vadd.f32 %v2099_v52, %v7497_v41  ;;  %v2101_v15 = vpop.f32.mrb[105].mxu1 }
 0x1f4   : > { %v6890_v21 = vadd.f32 %v2101_v15, %v7499_v28  ;;  %v2103_v13 = vpop.f32.mrb[106].mxu1 }
 0x1f5   : > { %7498 = vst [vmem:[#allocation4_spill] sm:$0xff] %v6887_v38  ;;  %v6893_v40 = vadd.f32 %v2103_v13, %v7500_v57  ;;  %v2105_v6 = vpop.f32.mrb[107].mxu1  ;;  %v7504_v38 = vld [vmem:[#allocation16_spill] sm:$0xff] }
 0x1f6   : > { %v6896_v10 = vadd.f32 %v2105_v6, %v7501_v7 }
 0x1fa   : > { %v2109_v3 = vpop.f32.mrb[108].mxu1 }
 0x1fb   : > { %v6899_v42 = vadd.f32 %v2109_v3, %v7502_v4  ;;  %v2111_v56 = vpop.f32.mrb[109].mxu1 }
 0x1fc   : > { %v6902_v52 = vadd.f32 %v2111_v56, %v7503_v29  ;;  %v2113_v41 = vpop.f32.mrb[110].mxu1 }
 0x1fd   : > { %v6905_v15 = vadd.f32 %v2113_v41, %v7504_v38  ;;  %v2115_v28 = vpop.f32.mrb[111].mxu1 }
 0x1fe   : > { %v6908_v13 = vadd.f32 %v2115_v28, %v6693_v1 }
 0x202   : > { %v2119_v57 = vpop.f32.mrb[112].mxu1 }
 0x203   : > { %v6911_v6 = vadd.f32 %v2119_v57, %v6697_v12  ;;  %v2121_v7 = vpop.f32.mrb[113].mxu1 }
 0x204   : > { %v6914_v4 = vadd.f32 %v2121_v7, %v6702_v63  ;;  %v2123_v3 = vpop.f32.mrb[114].mxu1 }
 0x205   : > { %v6917_v29 = vadd.f32 %v2123_v3, %v6706_v0  ;;  %v2125_v56 = vpop.f32.mrb[115].mxu1 }
 0x206   : > { %v6920_v38 = vadd.f32 %v2125_v56, %v6709_v9 }
 0x207   : > { %7505 = vst [vmem:[#allocation5_spill] sm:$0xff] %v6917_v29 }
 0x20a   : > { %v2129_v41 = vpop.f32.mrb[116].mxu1 }
 0x20b   : > { %v6923_v1 = vadd.f32 %v2129_v41, %v6713_v35  ;;  %v2131_v28 = vpop.f32.mrb[117].mxu1 }
 0x20c   : > { %v6926_v12 = vadd.f32 %v2131_v28, %v6718_v60  ;;  %v2133_v57 = vpop.f32.mrb[118].mxu1 }
 0x20d   : > { %v6929_v63 = vadd.f32 %v2133_v57, %v6722_v51  ;;  %v2135_v7 = vpop.f32.mrb[119].mxu1 }
 0x20e   : > { %v6932_v0 = vadd.f32 %v2135_v7, %v6725_v2 }
 0x20f   : > { %7506 = vst [vmem:[#allocation6_spill] sm:$0xff] %v6929_v63 }
 0x210   : > { %7507 = vst [vmem:[#allocation7_spill] sm:$0xff] %v6932_v0 }
 0x212   : > { %v2139_v3 = vpop.f32.mrb[120].mxu1 }
 0x213   : > { %v3206_v29 = vpop.f32.mrb[72].mxu0  ;;  %v6935_v9 = vadd.f32 %v2139_v3, %v6729_v44  ;;  %v2141_v56 = vpop.f32.mrb[121].mxu1 }
 0x214   : > { %v4611_v35 = vadd.f32 %v6789_v47, %v3206_v29  ;;  %v3208_v41 = vpop.f32.mrb[73].mxu0  ;;  %v6939_v60 = vadd.f32 %v2141_v56, %v6734_v54  ;;  %v2143_v51 = vpop.f32.mrb[122].mxu1 }
 0x215   : > { %v4621_v28 = vadd.f32 %v6794_v17, %v3208_v41  ;;  %v3210_v57 = vpop.f32.mrb[74].mxu0  ;;  %v6943_v63 = vadd.f32 %v2143_v51, %v6737_v22  ;;  %v2145_v7 = vpop.f32.mrb[123].mxu1 }
 0x216   : > { %v4631_v2 = vadd.f32 %v6797_v49, %v3210_v57  ;;  %v3212_v0 = vpop.f32.mrb[75].mxu0  ;;  %v6947_v44 = vadd.f32 %v2145_v7, %v6740_v31 }
 0x217   : > { %v4641_v47 = vadd.f32 %v6800_v53, %v3212_v0 }
 0x21a   : > { %v2149_v29 = vpop.f32.mrb[124].mxu1 }
 0x21b   : > { %v3216_v3 = vpop.f32.mrb[76].mxu0  ;;  %v6951_v54 = vadd.f32 %v2149_v29, %v6745_v59  ;;  %v2151_v56 = vpop.f32.mrb[125].mxu1 }
 0x21c   : > { %v4651_v17 = vadd.f32 %v6803_v58, %v3216_v3  ;;  %v3218_v41 = vpop.f32.mrb[77].mxu0  ;;  %v6955_v22 = vadd.f32 %v2151_v56, %v6749_v45  ;;  %v2153_v51 = vpop.f32.mrb[126].mxu1 }
 0x21d   : > { %v4661_v49 = vadd.f32 %v6806_v11, %v3218_v41  ;;  %v3220_v57 = vpop.f32.mrb[78].mxu0  ;;  %v6959_v31 = vadd.f32 %v2153_v51, %v6752_v5  ;;  %v2155_v0 = vpop.f32.mrb[127].mxu1 }
 0x21e   : > { %v4671_v53 = vadd.f32 %v6809_v62, %v3220_v57  ;;  %v3222_v59 = vpop.f32.mrb[79].mxu0  ;;  %v6963_v7 = vadd.f32 %v2155_v0, %v6754_v23 }
 0x21f   : > { %v4681_v58 = vadd.f32 %v6812_v18, %v3222_v59 }
 0x222   : > { %v3399_v29 = vpop.f32.mrb[128].mxu1 }
 0x223   : > { %v3226_v45 = vpop.f32.mrb[80].mxu0  ;;  %v6967_v3 = vadd.f32 %v4611_v35, %v3399_v29  ;;  %v3401_v56 = vpop.f32.mrb[129].mxu1 }
 0x224   : > { %v4691_v11 = vadd.f32 %v6815_v25, %v3226_v45  ;;  %v3228_v5 = vpop.f32.mrb[81].mxu0  ;;  %v6970_v41 = vadd.f32 %v4621_v28, %v3401_v56  ;;  %v3403_v23 = vpop.f32.mrb[130].mxu1 }
 0x225   : > { %v4701_v62 = vadd.f32 %v6818_v14, %v3228_v5  ;;  %v3230_v51 = vpop.f32.mrb[82].mxu0  ;;  %3610 = vst [vmem:[%s6762_s22 + $0x40] sm:$0xff] %v6967_v3  ;;  %v6975_v57 = vadd.f32 %v4631_v2, %v3403_v23  ;;  %v3405_v25 = vpop.f32.mrb[131].mxu1 }
 0x226   : > { %v4711_v18 = vadd.f32 %v6821_v36, %v3230_v51  ;;  %v3232_v0 = vpop.f32.mrb[83].mxu0  ;;  %3611 = vst [vmem:[%s6762_s22 + $0x48] sm:$0xff] %v6970_v41  ;;  %v6980_v59 = vadd.f32 %v4641_v47, %v3405_v25 }
 0x227   : > { %v4721_v35 = vadd.f32 %v6824_v16, %v3232_v0  ;;  %3612 = vst [vmem:[%s6762_s22 + $0x50] sm:$0xff] %v6975_v57 }
 0x228   : > { %3613 = vst [vmem:[%s6762_s22 + $0x58] sm:$0xff] %v6980_v59 }
 0x22a   : > { %v3409_v28 = vpop.f32.mrb[132].mxu1 }
 0x22b   : > { %v3236_v14 = vpop.f32.mrb[84].mxu0  ;;  %v6987_v2 = vadd.f32 %v4651_v17, %v3409_v28  ;;  %v3411_v29 = vpop.f32.mrb[133].mxu1 }
 0x22c   : > { %v4731_v36 = vadd.f32 %v6827_v33, %v3236_v14  ;;  %v3238_v45 = vpop.f32.mrb[85].mxu0  ;;  %v6990_v16 = vadd.f32 %v4661_v49, %v3411_v29  ;;  %v3413_v56 = vpop.f32.mrb[134].mxu1 }
 0x22d   : > { %v4741_v5 = vadd.f32 %v6830_v19, %v3238_v45  ;;  %v3240_v47 = vpop.f32.mrb[86].mxu0  ;;  %3614 = vst [vmem:[%s6762_s22 + $0x60] sm:$0xff] %v6987_v2  ;;  %v6995_v23 = vadd.f32 %v4671_v53, %v3413_v56  ;;  %v3415_v33 = vpop.f32.mrb[135].mxu1 }
 0x22e   : > { %v4751_v51 = vadd.f32 %v6833_v39, %v3240_v47  ;;  %v3242_v0 = vpop.f32.mrb[87].mxu0  ;;  %3615 = vst [vmem:[%s6762_s22 + $0x68] sm:$0xff] %v6990_v16  ;;  %v7000_v25 = vadd.f32 %v4681_v58, %v3415_v33 }
 0x22f   : > { %v4761_v17 = vadd.f32 %v6836_v48, %v3242_v0  ;;  %3616 = vst [vmem:[%s6762_s22 + $0x70] sm:$0xff] %v6995_v23 }
 0x230   : > { %3617 = vst [vmem:[%s6762_s22 + $0x78] sm:$0xff] %v7000_v25 }
 0x232   : > { %v3419_v49 = vpop.f32.mrb[136].mxu1 }
 0x233   : > { %v3246_v19 = vpop.f32.mrb[88].mxu0  ;;  %v7007_v53 = vadd.f32 %v4691_v11, %v3419_v49  ;;  %v3421_v28 = vpop.f32.mrb[137].mxu1 }
 0x234   : > { %v4771_v39 = vadd.f32 %v6839_v50, %v3246_v19  ;;  %v3248_v14 = vpop.f32.mrb[89].mxu0  ;;  %v7010_v48 = vadd.f32 %v4701_v62, %v3421_v28  ;;  %v3423_v29 = vpop.f32.mrb[138].mxu1 }
 0x235   : > { %v4781_v45 = vadd.f32 %v6842_v32, %v3248_v14  ;;  %v3250_v58 = vpop.f32.mrb[90].mxu0  ;;  %3618 = vst [vmem:[%s6762_s22 + $0x80] sm:$0xff] %v7007_v53  ;;  %v7015_v56 = vadd.f32 %v4711_v18, %v3423_v29  ;;  %v3425_v50 = vpop.f32.mrb[139].mxu1 }
 0x236   : > { %v4791_v47 = vadd.f32 %v6845_v26, %v3250_v58  ;;  %v3252_v0 = vpop.f32.mrb[91].mxu0  ;;  %3619 = vst [vmem:[%s6762_s22 + $0x88] sm:$0xff] %v7010_v48  ;;  %v7020_v33 = vadd.f32 %v4721_v35, %v3425_v50 }
 0x237   : > { %v4801_v11 = vadd.f32 %v6848_v61, %v3252_v0  ;;  %3620 = vst [vmem:[%s6762_s22 + $0x90] sm:$0xff] %v7015_v56 }
 0x238   : > { %3621 = vst [vmem:[%s6762_s22 + $0x98] sm:$0xff] %v7020_v33 }
 0x23a   : > { %v3429_v62 = vpop.f32.mrb[140].mxu1 }
 0x23b   : > { %v3256_v32 = vpop.f32.mrb[92].mxu0  ;;  %v7027_v18 = vadd.f32 %v4731_v36, %v3429_v62  ;;  %v3431_v49 = vpop.f32.mrb[141].mxu1 }
 0x23c   : > { %v4811_v26 = vadd.f32 %v6851_v55, %v3256_v32  ;;  %v3258_v19 = vpop.f32.mrb[93].mxu0  ;;  %v7030_v61 = vadd.f32 %v4741_v5, %v3431_v49  ;;  %v3433_v28 = vpop.f32.mrb[142].mxu1 }
 0x23d   : > { %v4821_v14 = vadd.f32 %v6854_v46, %v3258_v19  ;;  %v3260_v35 = vpop.f32.mrb[94].mxu0  ;;  %3622 = vst [vmem:[%s6762_s22 + $0xa0] sm:$0xff] %v7027_v18  ;;  %v7035_v29 = vadd.f32 %v4751_v51, %v3433_v28  ;;  %v3435_v55 = vpop.f32.mrb[143].mxu1 }
 0x23e   : > { %v4831_v58 = vadd.f32 %v6857_v8, %v3260_v35  ;;  %v3262_v0 = vpop.f32.mrb[95].mxu0  ;;  %3623 = vst [vmem:[%s6762_s22 + $0xa8] sm:$0xff] %v7030_v61  ;;  %v7040_v50 = vadd.f32 %v4761_v17, %v3435_v55 }
 0x23f   : > { %v4841_v36 = vadd.f32 %v6860_v43, %v3262_v0  ;;  %3624 = vst [vmem:[%s6762_s22 + $0xb0] sm:$0xff] %v7035_v29 }
 0x240   : > { %3625 = vst [vmem:[%s6762_s22 + $0xb8] sm:$0xff] %v7040_v50 }
 0x242   : > { %v3439_v5 = vpop.f32.mrb[144].mxu1 }
 0x243   : > { %v3266_v46 = vpop.f32.mrb[96].mxu0  ;;  %v7047_v51 = vadd.f32 %v4771_v39, %v3439_v5  ;;  %v3441_v62 = vpop.f32.mrb[145].mxu1 }
 0x244   : > { %v4851_v8 = vadd.f32 %v6863_v27, %v3266_v46  ;;  %v3268_v32 = vpop.f32.mrb[97].mxu0  ;;  %v7050_v43 = vadd.f32 %v4781_v45, %v3441_v62  ;;  %v3443_v49 = vpop.f32.mrb[146].mxu1 }
 0x245   : > { %v4861_v19 = vadd.f32 %v6866_v30, %v3268_v32  ;;  %v3270_v17 = vpop.f32.mrb[98].mxu0  ;;  %3626 = vst [vmem:[%s6762_s22 + $0xc0] sm:$0xff] %v7047_v51  ;;  %v7055_v28 = vadd.f32 %v4791_v47, %v3443_v49  ;;  %v3445_v27 = vpop.f32.mrb[147].mxu1 }
 0x246   : > { %v4871_v35 = vadd.f32 %v6869_v37, %v3270_v17  ;;  %v3272_v0 = vpop.f32.mrb[99].mxu0  ;;  %3627 = vst [vmem:[%s6762_s22 + $0xc8] sm:$0xff] %v7050_v43  ;;  %v7060_v55 = vadd.f32 %v4801_v11, %v3445_v27  ;;  %v7508_v17 = vld [vmem:[#allocation2_spill] sm:$0xff] }
 0x247   : > { %v4881_v39 = vadd.f32 %v6872_v20, %v3272_v0  ;;  %3628 = vst [vmem:[%s6762_s22 + $0xd0] sm:$0xff] %v7055_v28 }
 0x248   : > { %3629 = vst [vmem:[%s6762_s22 + $0xd8] sm:$0xff] %v7060_v55 }
 0x24a   : > { %v3449_v45 = vpop.f32.mrb[148].mxu1 }
 0x24b   : > { %v3276_v30 = vpop.f32.mrb[100].mxu0  ;;  %v7067_v47 = vadd.f32 %v4811_v26, %v3449_v45  ;;  %v3451_v5 = vpop.f32.mrb[149].mxu1  ;;  %v7510_v26 = vld [vmem:[#allocation3_spill] sm:$0xff] }
 0x24c   : > { %v4891_v37 = vadd.f32 %v6875_v34, %v3276_v30  ;;  %v3278_v46 = vpop.f32.mrb[101].mxu0  ;;  %v7070_v20 = vadd.f32 %v4821_v14, %v3451_v5  ;;  %v3453_v62 = vpop.f32.mrb[150].mxu1 }
 0x24d   : > { %v4901_v32 = vadd.f32 %v6878_v24, %v3278_v46  ;;  %v3280_v11 = vpop.f32.mrb[102].mxu0  ;;  %3630 = vst [vmem:[%s6762_s22 + $0xe0] sm:$0xff] %v7067_v47  ;;  %v7075_v0 = vadd.f32 %v4831_v58, %v3453_v62  ;;  %v3455_v34 = vpop.f32.mrb[151].mxu1  ;;  %v7512_v46 = vld [vmem:[#allocation4_spill] sm:$0xff] }
 0x24e   : > { %v4911_v49 = vadd.f32 %v7508_v17, %v3280_v11  ;;  %v3282_v27 = vpop.f32.mrb[103].mxu0  ;;  %3631 = vst [vmem:[%s6762_s22 + $0xe8] sm:$0xff] %v7070_v20  ;;  %v7080_v45 = vadd.f32 %v4841_v36, %v3455_v34 }
 0x24f   : > { %7509 = vst [vmem:[#allocation8_spill] sm:$0xff] %v7075_v0  ;;  %v4921_v30 = vadd.f32 %v7510_v26, %v3282_v27  ;;  %3632 = vst [vmem:[%s6762_s22 + $0xf0] sm:$0xff] %v7075_v0 }
 0x250   : > { %7511 = vst [vmem:[#allocation9_spill] sm:$0xff] %v7080_v45  ;;  %3633 = vst [vmem:[%s6762_s22 + $0xf8] sm:$0xff] %v7080_v45 }
 0x252   : > { %v3459_v14 = vpop.f32.mrb[152].mxu1 }
 0x253   : > { %v3286_v24 = vpop.f32.mrb[104].mxu0  ;;  %v7087_v58 = vadd.f32 %v4851_v8, %v3459_v14  ;;  %v3461_v62 = vpop.f32.mrb[153].mxu1 }
 0x254   : > { %v4931_v5 = vadd.f32 %v7512_v46, %v3286_v24  ;;  %v3288_v11 = vpop.f32.mrb[105].mxu0  ;;  %v7090_v27 = vadd.f32 %v4861_v19, %v3461_v62  ;;  %v3463_v34 = vpop.f32.mrb[154].mxu1 }
 0x255   : > { %v4941_v17 = vadd.f32 %v6890_v21, %v3288_v11  ;;  %v3290_v36 = vpop.f32.mrb[106].mxu0  ;;  %3634 = vst [vmem:[%s6762_s22 + $0x100] sm:$0xff] %v7087_v58  ;;  %v7095_v45 = vadd.f32 %v4871_v35, %v3463_v34  ;;  %v3465_v24 = vpop.f32.mrb[155].mxu1 }
 0x256   : > { %v4951_v26 = vadd.f32 %v6893_v40, %v3290_v36  ;;  %v3292_v0 = vpop.f32.mrb[107].mxu0  ;;  %3635 = vst [vmem:[%s6762_s22 + $0x108] sm:$0xff] %v7090_v27  ;;  %v7100_v14 = vadd.f32 %v4881_v39, %v3465_v24 }
 0x257   : > { %v4961_v8 = vadd.f32 %v6896_v10, %v3292_v0  ;;  %3636 = vst [vmem:[%s6762_s22 + $0x110] sm:$0xff] %v7095_v45 }
 0x258   : > { %3637 = vst [vmem:[%s6762_s22 + $0x118] sm:$0xff] %v7100_v14 }
 0x25a   : > { %v3469_v19 = vpop.f32.mrb[156].mxu1 }
 0x25b   : > { %v3296_v21 = vpop.f32.mrb[108].mxu0  ;;  %v7107_v35 = vadd.f32 %v4891_v37, %v3469_v19  ;;  %v3471_v11 = vpop.f32.mrb[157].mxu1 }
 0x25c   : > { %v4971_v40 = vadd.f32 %v6899_v42, %v3296_v21  ;;  %v3298_v46 = vpop.f32.mrb[109].mxu0  ;;  %v7110_v10 = vadd.f32 %v4901_v32, %v3471_v11  ;;  %v3473_v0 = vpop.f32.mrb[158].mxu1 }
 0x25d   : > { %v4981_v62 = vadd.f32 %v6902_v52, %v3298_v46  ;;  %v3300_v39 = vpop.f32.mrb[110].mxu0  ;;  %3638 = vst [vmem:[%s6762_s22 + $0x120] sm:$0xff] %v7107_v35  ;;  %v7115_v34 = vadd.f32 %v4911_v49, %v3473_v0  ;;  %v3475_v42 = vpop.f32.mrb[159].mxu1  ;;  %v7514_v0 = vld [vmem:[#allocation5_spill] sm:$0xff] }
 0x25e   : > { %v4991_v36 = vadd.f32 %v6905_v15, %v3300_v39  ;;  %v3302_v24 = vpop.f32.mrb[111].mxu0  ;;  %3639 = vst [vmem:[%s6762_s22 + $0x128] sm:$0xff] %v7110_v10  ;;  %v7120_v21 = vadd.f32 %v4921_v30, %v3475_v42 }
 0x25f   : > { %v5001_v37 = vadd.f32 %v6908_v13, %v3302_v24  ;;  %3640 = vst [vmem:[%s6762_s22 + $0x130] sm:$0xff] %v7115_v34 }
 0x260   : > { %7513 = vst [vmem:[#allocation10_spill] sm:$0xff] %v7120_v21  ;;  %3641 = vst [vmem:[%s6762_s22 + $0x138] sm:$0xff] %v7120_v21 }
 0x262   : > { %v3479_v32 = vpop.f32.mrb[160].mxu1 }
 0x263   : > { %v3306_v52 = vpop.f32.mrb[112].mxu0  ;;  %v7127_v49 = vadd.f32 %v4931_v5, %v3479_v32  ;;  %v3481_v46 = vpop.f32.mrb[161].mxu1 }
 0x264   : > { %v5011_v15 = vadd.f32 %v6911_v6, %v3306_v52  ;;  %v3308_v19 = vpop.f32.mrb[113].mxu0  ;;  %v7130_v13 = vadd.f32 %v4941_v17, %v3481_v46  ;;  %v3483_v39 = vpop.f32.mrb[162].mxu1 }
 0x265   : > { %v5021_v11 = vadd.f32 %v6914_v4, %v3308_v19  ;;  %v3310_v30 = vpop.f32.mrb[114].mxu0  ;;  %3642 = vst [vmem:[%s6762_s22 + $0x140] sm:$0xff] %v7127_v49  ;;  %v7135_v42 = vadd.f32 %v4951_v26, %v3483_v39  ;;  %v3485_v6 = vpop.f32.mrb[163].mxu1  ;;  %v7516_v39 = vld [vmem:[#allocation6_spill] sm:$0xff] }
 0x266   : > { %v5031_v24 = vadd.f32 %v7514_v0, %v3310_v30  ;;  %v3312_v21 = vpop.f32.mrb[115].mxu0  ;;  %3643 = vst [vmem:[%s6762_s22 + $0x148] sm:$0xff] %v7130_v13  ;;  %v7140_v52 = vadd.f32 %v4961_v8, %v3485_v6 }
 0x267   : > { %v5041_v5 = vadd.f32 %v6920_v38, %v3312_v21  ;;  %3644 = vst [vmem:[%s6762_s22 + $0x150] sm:$0xff] %v7135_v42 }
 0x268   : > { %7515 = vst [vmem:[#allocation11_spill] sm:$0xff] %v7140_v52  ;;  %3645 = vst [vmem:[%s6762_s22 + $0x158] sm:$0xff] %v7140_v52 }
 0x26a   : > { %v3489_v17 = vpop.f32.mrb[164].mxu1 }
 0x26b   : > { %v3316_v4 = vpop.f32.mrb[116].mxu0  ;;  %v7147_v26 = vadd.f32 %v4971_v40, %v3489_v17  ;;  %v3491_v46 = vpop.f32.mrb[165].mxu1  ;;  %v7517_v40 = vld [vmem:[#allocation7_spill] sm:$0xff] }
 0x26c   : > { %v5051_v32 = vadd.f32 %v6923_v1, %v3316_v4  ;;  %v3318_v19 = vpop.f32.mrb[117].mxu0  ;;  %v7150_v38 = vadd.f32 %v4981_v62, %v3491_v46  ;;  %v3493_v21 = vpop.f32.mrb[166].mxu1 }
 0x26d   : > { %v5061_v30 = vadd.f32 %v6926_v12, %v3318_v19  ;;  %v3320_v8 = vpop.f32.mrb[118].mxu0  ;;  %3646 = vst [vmem:[%s6762_s22 + $0x160] sm:$0xff] %v7147_v26  ;;  %v7155_v6 = vadd.f32 %v4991_v36, %v3493_v21  ;;  %v3495_v1 = vpop.f32.mrb[167].mxu1 }
 0x26e   : > { %v5071_v0 = vadd.f32 %v7516_v39, %v3320_v8  ;;  %v3322_v52 = vpop.f32.mrb[119].mxu0  ;;  %3647 = vst [vmem:[%s6762_s22 + $0x168] sm:$0xff] %v7150_v38  ;;  %v7160_v17 = vadd.f32 %v5001_v37, %v3495_v1 }
 0x26f   : > { %v5081_v4 = vadd.f32 %v7517_v40, %v3322_v52  ;;  %3648 = vst [vmem:[%s6762_s22 + $0x170] sm:$0xff] %v7155_v6 }
 0x270   : > { %7518 = vst [vmem:[#allocation12_spill] sm:$0xff] %v7160_v17  ;;  %3649 = vst [vmem:[%s6762_s22 + $0x178] sm:$0xff] %v7160_v17 }
 0x272   : > { %v3499_v62 = vpop.f32.mrb[168].mxu1 }
 0x273   : > { %v3326_v12 = vpop.f32.mrb[120].mxu0  ;;  %v7167_v36 = vadd.f32 %v5011_v15, %v3499_v62  ;;  %v3501_v8 = vpop.f32.mrb[169].mxu1 }
 0x274   : > { %v5091_v19 = vadd.f32 %v6935_v9, %v3326_v12  ;;  %v3328_v46 = vpop.f32.mrb[121].mxu0  ;;  %v7170_v52 = vadd.f32 %v5021_v11, %v3501_v8  ;;  %v3503_v39 = vpop.f32.mrb[170].mxu1 }
 0x275   : > { %v5101_v21 = vadd.f32 %v6939_v60, %v3328_v46  ;;  %v3330_v37 = vpop.f32.mrb[122].mxu0  ;;  %3650 = vst [vmem:[%s6762_s22 + $0x180] sm:$0xff] %v7167_v36  ;;  %v7175_v40 = vadd.f32 %v5031_v24, %v3503_v39  ;;  %v3505_v9 = vpop.f32.mrb[171].mxu1 }
 0x276   : > { %v5111_v1 = vadd.f32 %v6943_v63, %v3330_v37  ;;  %v3332_v17 = vpop.f32.mrb[123].mxu0  ;;  %3651 = vst [vmem:[%s6762_s22 + $0x188] sm:$0xff] %v7170_v52  ;;  %v7180_v12 = vadd.f32 %v5041_v5, %v3505_v9 }
 0x277   : > { %v5121_v15 = vadd.f32 %v6947_v44, %v3332_v17  ;;  %3652 = vst [vmem:[%s6762_s22 + $0x190] sm:$0xff] %v7175_v40 }
 0x278   : > { %3653 = vst [vmem:[%s6762_s22 + $0x198] sm:$0xff] %v7180_v12 }
 0x27a   : > { %v3509_v11 = vpop.f32.mrb[172].mxu1 }
 0x27b   : > { %v3336_v60 = vpop.f32.mrb[124].mxu0  ;;  %v7187_v24 = vadd.f32 %v5051_v32, %v3509_v11  ;;  %v3511_v46 = vpop.f32.mrb[173].mxu1 }
 0x27c   : > { %v5131_v63 = vadd.f32 %v6951_v54, %v3336_v60  ;;  %v3338_v62 = vpop.f32.mrb[125].mxu0  ;;  %v7190_v5 = vadd.f32 %v5061_v30, %v3511_v46  ;;  %v3513_v8 = vpop.f32.mrb[174].mxu1  ;;  %v4554_v30 = vld [vmem:[%s6762_s22] sm:$0xff] }
 0x27d   : > { %v5141_v44 = vadd.f32 %v6955_v22, %v3338_v62  ;;  %v3340_v17 = vpop.f32.mrb[126].mxu0  ;;  %3654 = vst [vmem:[%s6762_s22 + $0x1a0] sm:$0xff] %v7187_v24  ;;  %v7197_v54 = vadd.f32 %v5071_v0, %v3513_v8  ;;  %v3515_v39 = vpop.f32.mrb[175].mxu1 }
 0x27e   : > { %7519 = vst [vmem:[#allocation13_spill] sm:$0xff] %v7190_v5  ;;  %v7195_v37 = vadd.f32 %v6959_v31, %v3340_v17  ;;  %v3342_v32 = vpop.f32.mrb[127].mxu0  ;;  %3655 = vst [vmem:[%s6762_s22 + $0x1a8] sm:$0xff] %v7190_v5  ;;  %v7204_v22 = vadd.f32 %v5081_v4, %v3515_v39 }
 0x27f   : > { %7520 = vst [vmem:[#allocation14_spill] sm:$0xff] %v7197_v54  ;;  %v7202_v9 = vadd.f32 %v6963_v7, %v3342_v32  ;;  %3656 = vst [vmem:[%s6762_s22 + $0x1b0] sm:$0xff] %v7197_v54  ;;  %v4561_v7 = vld [vmem:[%s6762_s22 + $0x8] sm:$0xff]  ;;  %v4568_v32 = vld [vmem:[%s6762_s22 + $0x10] sm:$0xff] }
 0x280   : > { %7521 = vst [vmem:[#allocation15_spill] sm:$0xff] %v7204_v22  ;;  %3657 = vst [vmem:[%s6762_s22 + $0x1b8] sm:$0xff] %v7204_v22 }
 0x282   : > { %v3519_v0 = vpop.f32.mrb[176].mxu1 }
 0x283   : > { %v3379_v31 = vpop.f32.mrb[64].mxu0  ;;  %v7211_v11 = vadd.f32 %v5091_v19, %v3519_v0  ;;  %v3521_v46 = vpop.f32.mrb[177].mxu1  ;;  %v4575_v0 = vld [vmem:[%s6762_s22 + $0x18] sm:$0xff] }
 0x284   : > { %v4555_v60 = vadd.f32 %v4554_v30, %v3379_v31  ;;  %v3381_v62 = vpop.f32.mrb[65].mxu0  ;;  %v7214_v17 = vadd.f32 %v5101_v21, %v3521_v46  ;;  %v3523_v39 = vpop.f32.mrb[178].mxu1 }
 0x285   : > { %7522 = vst [vmem:[#allocation16_spill] sm:$0xff] %v7211_v11  ;;  %v4562_v4 = vadd.f32 %v4561_v7, %v3381_v62  ;;  %v3383_v8 = vpop.f32.mrb[66].mxu0  ;;  %3658 = vst [vmem:[%s6762_s22 + $0x1c0] sm:$0xff] %v7211_v11  ;;  %v7220_v19 = vadd.f32 %v5111_v1, %v3523_v39  ;;  %v3525_v22 = vpop.f32.mrb[179].mxu1 }
 0x286   : > { %7523 = vst [vmem:[#allocation2_spill] sm:$0xff] %v7214_v17  ;;  %3602 = vst [vmem:[%s6762_s22] sm:$0xff] %v4555_v60  ;;  %v4569_v31 = vadd.f32 %v4568_v32, %v3383_v8  ;;  %v3385_v30 = vpop.f32.mrb[67].mxu0  ;;  %v7226_v62 = vadd.f32 %v5121_v15, %v3525_v22  ;;  %v3827_v7 = vmul.f32 %v4555_v60, %v4555_v60  ;;  %v4582_v15 = vld [vmem:[%s6762_s22 + $0x20] sm:$0xff] }
 0x287   : > { %7524 = vst [vmem:[#allocation3_spill] sm:$0xff] %v7220_v19  ;;  %3603 = vst [vmem:[%s6762_s22 + $0x8] sm:$0xff] %v4562_v4  ;;  %v4576_v21 = vadd.f32 %v4575_v0, %v3385_v30  ;;  %v3828_v1 = vmul.f32 %v4562_v4, %v4562_v4 }
 0x288   : > { %3659 = vst [vmem:[%s6762_s22 + $0x1c8] sm:$0xff] %v7214_v17  ;;  %7525 = vst [vmem:[#allocation4_spill] sm:$0xff] %v7226_v62  ;;  %v3730_v46 = vadd.f32 %v4569_v31, %v4555_v60  ;;  %v3829_v11 = vmul.f32 %v4569_v31, %v4569_v31 }
 0x289   : > { %3604 = vst [vmem:[%s6762_s22 + $0x10] sm:$0xff] %v4569_v31  ;;  %3660 = vst [vmem:[%s6762_s22 + $0x1d0] sm:$0xff] %v7220_v19  ;;  %v3767_v8 = vadd.f32 %v4576_v21, %v4562_v4  ;;  %v3830_v32 = vmul.f32 %v4576_v21, %v4576_v21  ;;  %v4589_v19 = vld [vmem:[%s6762_s22 + $0x28] sm:$0xff] }
 0x28a   : > { %3605 = vst [vmem:[%s6762_s22 + $0x18] sm:$0xff] %v4576_v21  ;;  %3661 = vst [vmem:[%s6762_s22 + $0x1d8] sm:$0xff] %v7226_v62  ;;  %v3891_v39 = vadd.f32 %v3829_v11, %v3827_v7  ;;  %v3529_v22 = vpop.f32.mrb[180].mxu1  ;;  %v4596_v62 = vld [vmem:[%s6762_s22 + $0x30] sm:$0xff] }
 0x28b   : > { %v3928_v17 = vadd.f32 %v3830_v32, %v3828_v1  ;;  %v3389_v30 = vpop.f32.mrb[68].mxu0  ;;  %v7235_v60 = vadd.f32 %v5131_v63, %v3529_v22  ;;  %v3531_v54 = vpop.f32.mrb[181].mxu1 }
 0x28c   : > { %v4583_v0 = vadd.f32 %v4582_v15, %v3389_v30  ;;  %v3391_v31 = vpop.f32.mrb[69].mxu0  ;;  %v7238_v5 = vadd.f32 %v5141_v44, %v3531_v54  ;;  %v3533_v11 = vpop.f32.mrb[182].mxu1  ;;  %v4603_v54 = vld [vmem:[%s6762_s22 + $0x38] sm:$0xff] }
 0x28d   : > { %v4590_v4 = vadd.f32 %v4589_v19, %v3391_v31  ;;  %v3393_v21 = vpop.f32.mrb[70].mxu0  ;;  %3662 = vst [vmem:[%s6762_s22 + $0x1e0] sm:$0xff] %v7235_v60  ;;  %v3535_v30 = vpop.f32.mrb[183].mxu1  ;;  %v7248_v44 = vadd.f32 %v7195_v37, %v3533_v11 }
 0x28e   : > { %3606 = vst [vmem:[%s6762_s22 + $0x20] sm:$0xff] %v4583_v0  ;;  %v3731_v7 = vadd.f32 %v4583_v0, %v3730_v46  ;;  %v3831_v1 = vmul.f32 %v4583_v0, %v4583_v0  ;;  %v4597_v63 = vadd.f32 %v4596_v62, %v3393_v21  ;;  %v3395_v32 = vpop.f32.mrb[71].mxu0  ;;  %3663 = vst [vmem:[%s6762_s22 + $0x1e8] sm:$0xff] %v7238_v5 }
 0x28f   : > { %3607 = vst [vmem:[%s6762_s22 + $0x28] sm:$0xff] %v4590_v4  ;;  %v3768_v15 = vadd.f32 %v4590_v4, %v3767_v8  ;;  %v3832_v19 = vmul.f32 %v4590_v4, %v4590_v4  ;;  %v4604_v31 = vadd.f32 %v4603_v54, %v3395_v32  ;;  %v3835_v62 = vmul.f32 %v6967_v3, %v6967_v3 }
 0x290   : > { %v3892_v22 = vadd.f32 %v3891_v39, %v3831_v1  ;;  %3608 = vst [vmem:[%s6762_s22 + $0x30] sm:$0xff] %v4597_v63  ;;  %v3732_v46 = vadd.f32 %v4597_v63, %v3731_v7  ;;  %v3833_v0 = vmul.f32 %v4597_v63, %v4597_v63  ;;  %3664 = vst [vmem:[%s6762_s22 + $0x1f0] sm:$0xff] %v7248_v44 }
 0x291   : > { %v3929_v21 = vadd.f32 %v3928_v17, %v3832_v19  ;;  %v7257_v8 = vadd.f32 %v7202_v9, %v3535_v30  ;;  %3609 = vst [vmem:[%s6762_s22 + $0x38] sm:$0xff] %v4604_v31  ;;  %v3769_v11 = vadd.f32 %v4604_v31, %v3768_v15  ;;  %v3834_v39 = vmul.f32 %v4604_v31, %v4604_v31 }
 0x292   : > { %v3733_v4 = vadd.f32 %v6967_v3, %v3732_v46  ;;  %v3893_v37 = vadd.f32 %v3892_v22, %v3833_v0  ;;  %v3836_v7 = vmul.f32 %v6970_v41, %v6970_v41  ;;  %v3837_v1 = vmul.f32 %v6975_v57, %v6975_v57 }
 0x293   : > { %3665 = vst [vmem:[%s6762_s22 + $0x1f8] sm:$0xff] %v7257_v8  ;;  %v3770_v9 = vadd.f32 %v6970_v41, %v3769_v11  ;;  %v3930_v32 = vadd.f32 %v3929_v21, %v3834_v39  ;;  %v3838_v3 = vmul.f32 %v6980_v59, %v6980_v59  ;;  %v3839_v30 = vmul.f32 %v6987_v2, %v6987_v2 }
 0x294   : > { %v3734_v17 = vadd.f32 %v6975_v57, %v3733_v4  ;;  %v3894_v63 = vadd.f32 %v3893_v37, %v3835_v62  ;;  %v3840_v46 = vmul.f32 %v6990_v16, %v6990_v16  ;;  %v3841_v57 = vmul.f32 %v6995_v23, %v6995_v23 }
 0x295   : > { %v3771_v54 = vadd.f32 %v6980_v59, %v3770_v9  ;;  %v3931_v22 = vadd.f32 %v3930_v32, %v3836_v7  ;;  %v3842_v21 = vmul.f32 %v7000_v25, %v7000_v25  ;;  %v3844_v39 = vmul.f32 %v7010_v48, %v7010_v48 }
 0x296   : > { %v3735_v15 = vadd.f32 %v6987_v2, %v3734_v17  ;;  %v3895_v19 = vadd.f32 %v3894_v63, %v3837_v1  ;;  %v3843_v2 = vmul.f32 %v7007_v53, %v7007_v53  ;;  %v3846_v63 = vmul.f32 %v7020_v33, %v7020_v33 }
 0x297   : > { %v3772_v31 = vadd.f32 %v6990_v16, %v3771_v54  ;;  %v3932_v62 = vadd.f32 %v3931_v22, %v3838_v3  ;;  %v3850_v22 = vmul.f32 %v7040_v50, %v7040_v50 }
 0x298   : > { %v3736_v41 = vadd.f32 %v6995_v23, %v3735_v15  ;;  %v3896_v0 = vadd.f32 %v3895_v19, %v3839_v30  ;;  %v3845_v23 = vmul.f32 %v7015_v56, %v7015_v56  ;;  %v3848_v30 = vmul.f32 %v7030_v61, %v7030_v61 }
 0x299   : > { %v3773_v37 = vadd.f32 %v7000_v25, %v3772_v31  ;;  %v3933_v11 = vadd.f32 %v3932_v62, %v3840_v46 }
 0x29a   : > { %v3737_v59 = vadd.f32 %v7007_v53, %v3736_v41  ;;  %v3897_v4 = vadd.f32 %v3896_v0, %v3841_v57  ;;  %v3847_v53 = vmul.f32 %v7027_v18, %v7027_v18  ;;  %v3852_v0 = vmul.f32 %v7050_v43, %v7050_v43 }
 0x29b   : > { %v3774_v1 = vadd.f32 %v7010_v48, %v3773_v37  ;;  %v3934_v17 = vadd.f32 %v3933_v11, %v3842_v21  ;;  %v3856_v11 = vmul.f32 %v7070_v20, %v7070_v20 }
 0x29c   : > { %v3738_v16 = vadd.f32 %v7015_v56, %v3737_v59  ;;  %v3898_v7 = vadd.f32 %v3897_v4, %v3843_v2  ;;  %v3849_v56 = vmul.f32 %v7035_v29, %v7035_v29  ;;  %v3854_v2 = vmul.f32 %v7060_v55, %v7060_v55 }
 0x29d   : > { %v3775_v32 = vadd.f32 %v7020_v33, %v3774_v1  ;;  %v3935_v3 = vadd.f32 %v3934_v17, %v3844_v39  ;;  %v7527_v1 = vld [vmem:[#allocation9_spill] sm:$0xff] }
 0x29e   : > { %v3739_v25 = vadd.f32 %v7027_v18, %v3738_v16  ;;  %v3899_v9 = vadd.f32 %v3898_v7, %v3845_v23  ;;  %v3851_v18 = vmul.f32 %v7047_v51, %v7047_v51  ;;  %v3858_v17 = vmul.f32 %v7527_v1, %v7527_v1 }
 0x29f   : > { %v3776_v19 = vadd.f32 %v7030_v61, %v3775_v32  ;;  %v3936_v54 = vadd.f32 %v3935_v3, %v3846_v63  ;;  %v3861_v32 = vmul.f32 %v7095_v45, %v7095_v45 }
 0x2a0   : > { %v3740_v48 = vadd.f32 %v7035_v29, %v3739_v25  ;;  %v3900_v15 = vadd.f32 %v3899_v9, %v3847_v53  ;;  %v3853_v29 = vmul.f32 %v7055_v28, %v7055_v28  ;;  %v3860_v9 = vmul.f32 %v7090_v27, %v7090_v27 }
 0x2a1   : > { %v3777_v57 = vadd.f32 %v7040_v50, %v3776_v19  ;;  %v3937_v41 = vadd.f32 %v3936_v54, %v3848_v30 }
 0x2a2   : > { %v3741_v33 = vadd.f32 %v7047_v51, %v3740_v48  ;;  %v3901_v46 = vadd.f32 %v3900_v15, %v3849_v56  ;;  %v3855_v51 = vmul.f32 %v7067_v47, %v7067_v47  ;;  %v3862_v48 = vmul.f32 %v7100_v14, %v7100_v14 }
 0x2a3   : > { %v3778_v62 = vadd.f32 %v7050_v43, %v3777_v57  ;;  %v3938_v21 = vadd.f32 %v3937_v41, %v3850_v22  ;;  %v7528_v41 = vld [vmem:[#allocation10_spill] sm:$0xff] }
 0x2a4   : > { %v3742_v61 = vadd.f32 %v7055_v28, %v3741_v33  ;;  %v3902_v31 = vadd.f32 %v3901_v46, %v3851_v18  ;;  %v7526_v28 = vld [vmem:[#allocation8_spill] sm:$0xff]  ;;  %v3864_v18 = vmul.f32 %v7110_v10, %v7110_v10 }
 0x2a5   : > { %v3779_v4 = vadd.f32 %v7060_v55, %v3778_v62  ;;  %v3939_v37 = vadd.f32 %v3938_v21, %v3852_v0  ;;  %v3857_v39 = vmul.f32 %v7526_v28, %v7526_v28  ;;  %v3866_v0 = vmul.f32 %v7528_v41, %v7528_v41 }
 0x2a6   : > { %v3743_v50 = vadd.f32 %v7067_v47, %v3742_v61  ;;  %v3903_v59 = vadd.f32 %v3902_v31, %v3853_v29  ;;  %v3859_v47 = vmul.f32 %v7087_v58, %v7087_v58  ;;  %v3868_v62 = vmul.f32 %v7130_v13, %v7130_v13 }
 0x2a7   : > { %v3780_v16 = vadd.f32 %v7070_v20, %v3779_v4  ;;  %v3940_v7 = vadd.f32 %v3939_v37, %v3854_v2 }
 0x2a8   : > { %v3744_v43 = vadd.f32 %v7526_v28, %v3743_v50  ;;  %v3904_v23 = vadd.f32 %v3903_v59, %v3855_v51  ;;  %v7529_v50 = vld [vmem:[#allocation11_spill] sm:$0xff] }
 0x2a9   : > { %v3781_v53 = vadd.f32 %v7527_v1, %v3780_v16  ;;  %v3941_v25 = vadd.f32 %v3940_v7, %v3856_v11  ;;  %v3870_v59 = vmul.f32 %v7529_v50, %v7529_v50  ;;  %v7530_v7 = vld [vmem:[#allocation12_spill] sm:$0xff] }
 0x2aa   : > { %v3745_v55 = vadd.f32 %v7087_v58, %v3744_v43  ;;  %v3905_v63 = vadd.f32 %v3904_v23, %v3857_v39  ;;  %v3863_v58 = vmul.f32 %v7107_v35, %v7107_v35  ;;  %v3872_v39 = vmul.f32 %v7150_v38, %v7150_v38 }
 0x2ab   : > { %v3782_v30 = vadd.f32 %v7090_v27, %v3781_v53  ;;  %v3942_v56 = vadd.f32 %v3941_v25, %v3858_v17  ;;  %v3874_v1 = vmul.f32 %v7530_v7, %v7530_v7  ;;  %v3876_v53 = vmul.f32 %v7170_v52, %v7170_v52 }
 0x2ac   : > { %v3906_v20 = vadd.f32 %v3905_v63, %v3859_v47  ;;  %v3746_v3 = vadd.f32 %v7095_v45, %v3745_v55  ;;  %v3865_v45 = vmul.f32 %v7115_v34, %v7115_v34 }
 0x2ad   : > { %v3943_v54 = vadd.f32 %v3942_v56, %v3860_v9  ;;  %v3783_v22 = vadd.f32 %v7100_v14, %v3782_v30 }
 0x2ae   : > { %v3747_v15 = vadd.f32 %v7107_v35, %v3746_v3  ;;  %v3907_v19 = vadd.f32 %v3906_v20, %v3861_v32  ;;  %v3867_v35 = vmul.f32 %v7127_v49, %v7127_v49  ;;  %v3878_v20 = vmul.f32 %v7180_v12, %v7180_v12 }
 0x2af   : > { %v3784_v46 = vadd.f32 %v7110_v10, %v3783_v22  ;;  %v3944_v57 = vadd.f32 %v3943_v54, %v3862_v48 }
 0x2b0   : > { %v3748_v27 = vadd.f32 %v7115_v34, %v3747_v15  ;;  %v3908_v33 = vadd.f32 %v3907_v19, %v3863_v58  ;;  %v3869_v34 = vmul.f32 %v7135_v42, %v7135_v42  ;;  %v7531_v58 = vld [vmem:[#allocation13_spill] sm:$0xff] }
 0x2b1   : > { %v3785_v61 = vadd.f32 %v7528_v41, %v3784_v46  ;;  %v3945_v31 = vadd.f32 %v3944_v57, %v3864_v18  ;;  %v3880_v15 = vmul.f32 %v7531_v58, %v7531_v58 }
 0x2b2   : > { %v3749_v14 = vadd.f32 %v7127_v49, %v3748_v27  ;;  %v3909_v29 = vadd.f32 %v3908_v33, %v3865_v45  ;;  %v3871_v49 = vmul.f32 %v7147_v26, %v7147_v26  ;;  %v7533_v45 = vld [vmem:[#allocation15_spill] sm:$0xff] }
 0x2b3   : > { %v3786_v2 = vadd.f32 %v7130_v13, %v3785_v61  ;;  %v3946_v51 = vadd.f32 %v3945_v31, %v3866_v0  ;;  %v3882_v27 = vmul.f32 %v7533_v45, %v7533_v45  ;;  %v7535_v0 = vld [vmem:[#allocation2_spill] sm:$0xff] }
 0x2b4   : > { %v3750_v10 = vadd.f32 %v7135_v42, %v3749_v14  ;;  %v3910_v21 = vadd.f32 %v3909_v29, %v3867_v35  ;;  %v3873_v42 = vmul.f32 %v7155_v6, %v7155_v6  ;;  %v3884_v35 = vmul.f32 %v7535_v0, %v7535_v0  ;;  %v7536_v14 = vld [vmem:[#allocation3_spill] sm:$0xff] }
 0x2b5   : > { %v3787_v11 = vadd.f32 %v7529_v50, %v3786_v2  ;;  %v3947_v28 = vadd.f32 %v3946_v51, %v3868_v62  ;;  %v3885_v29 = vmul.f32 %v7536_v14, %v7536_v14  ;;  %v3887_v2 = vmul.f32 %v7235_v60, %v7235_v60 }
 0x2b6   : > { %v3751_v4 = vadd.f32 %v7147_v26, %v3750_v10  ;;  %v3911_v37 = vadd.f32 %v3910_v21, %v3869_v34  ;;  %v3875_v26 = vmul.f32 %v7167_v36, %v7167_v36  ;;  %v7537_v10 = vld [vmem:[#allocation4_spill] sm:$0xff] }
 0x2b7   : > { %v3788_v23 = vadd.f32 %v7150_v38, %v3787_v11  ;;  %v3948_v16 = vadd.f32 %v3947_v28, %v3870_v59  ;;  %v3886_v21 = vmul.f32 %v7537_v10, %v7537_v10 }
 0x2b8   : > { %v3752_v13 = vadd.f32 %v7155_v6, %v3751_v4  ;;  %v3912_v43 = vadd.f32 %v3911_v37, %v3871_v49  ;;  %v3877_v6 = vmul.f32 %v7175_v40, %v7175_v40  ;;  %v3888_v4 = vmul.f32 %v7238_v5, %v7238_v5 }
 0x2b9   : > { %v3789_v55 = vadd.f32 %v7530_v7, %v3788_v23  ;;  %v3949_v63 = vadd.f32 %v3948_v16, %v3872_v39  ;;  %v3889_v37 = vmul.f32 %v7248_v44, %v7248_v44 }
 0x2ba   : > { %v3753_v17 = vadd.f32 %v7167_v36, %v3752_v13  ;;  %v3913_v47 = vadd.f32 %v3912_v43, %v3873_v42  ;;  %v3879_v36 = vmul.f32 %v7187_v24, %v7187_v24  ;;  %v3890_v13 = vmul.f32 %v7257_v8, %v7257_v8 }
 0x2bb   : > { %v3790_v9 = vadd.f32 %v7170_v52, %v3789_v55  ;;  %v3950_v32 = vadd.f32 %v3949_v63, %v3874_v1  ;;  %v3810_v63 = vlaneseq }
 0x2bc   : > { %v3754_v38 = vadd.f32 %v7175_v40, %v3753_v17  ;;  %v3914_v25 = vadd.f32 %v3913_v47, %v3875_v26  ;;  %v7532_v40 = vld [vmem:[#allocation14_spill] sm:$0xff]  ;;  %v5649_v47 = vmov 1966171168  }
 0x2bd   : > { %v3791_v56 = vadd.f32 %v7180_v12, %v3790_v9  ;;  %v3951_v48 = vadd.f32 %v3950_v32, %v3876_v53  ;;  %v3881_v19 = vmul.f32 %v7532_v40, %v7532_v40  ;;  %v3808_v55 = vunpack.c.l.s4 %v5649_v47 }
 0x2be   : > { %v3755_v3 = vadd.f32 %v7187_v24, %v3754_v38  ;;  %v3915_v30 = vadd.f32 %v3914_v25, %v3877_v6  ;;  %v7534_v24 = vld [vmem:[#allocation16_spill] sm:$0xff]  ;;  %vm3824_vm0 = vcmp.lt.s32.totalorder %v3810_v63, 256 }
 0x2bf   : > { %v3792_v22 = vadd.f32 %v7531_v58, %v3791_v56  ;;  %v3952_v18 = vadd.f32 %v3951_v48, %v3878_v20  ;;  %v3883_v33 = vmul.f32 %v7534_v24, %v7534_v24  ;;  %v3809_v20 = vunpack.c.0.s8 %v3808_v55 }
 0x2c0   : > { %v3756_v52 = vadd.f32 %v7532_v40, %v3755_v3  ;;  %v3916_v54 = vadd.f32 %v3915_v30, %v3879_v36  ;;  %v3811_v36 = vshrl.u32 %v3810_v63, 7 }
 0x2c1   : > { %v3793_v57 = vadd.f32 %v7533_v45, %v3792_v22  ;;  %v3953_v41 = vadd.f32 %v3952_v18, %v3880_v15 }
 0x2c2   : > { %v3757_v12 = vadd.f32 %v7534_v24, %v3756_v52  ;;  %v3917_v46 = vadd.f32 %v3916_v54, %v3881_v19  ;;  %v3812_v54 = vsub.s32 %v3809_v20, %v3811_v36 }
 0x2c3   : > { %v3794_v62 = vadd.f32 %v7535_v0, %v3793_v57  ;;  %v3954_v34 = vadd.f32 %v3953_v41, %v3882_v27 }
 0x2c4   : > { %v3758_v61 = vadd.f32 %v7536_v14, %v3757_v12  ;;  %v3918_v31 = vadd.f32 %v3917_v46, %v3883_v33 }
 0x2c5   : > { %v3795_v59 = vadd.f32 %v7537_v10, %v3794_v62  ;;  %v3955_v49 = vadd.f32 %v3954_v34, %v3884_v35 }
 0x2c6   : > { %v3759_v51 = vadd.f32 %v7235_v60, %v3758_v61  ;;  %v3919_v50 = vadd.f32 %v3918_v31, %v3885_v29 }
 0x2c7   : > { %v3796_v39 = vadd.f32 %v7238_v5, %v3795_v59  ;;  %v3956_v42 = vadd.f32 %v3955_v49, %v3886_v21 }
 0x2c8   : > { %v3760_v11 = vadd.f32 %v7248_v44, %v3759_v51  ;;  %v3920_v28 = vadd.f32 %v3919_v50, %v3887_v2 }
 0x2c9   : > { %v3797_v23 = vadd.f32 %v7257_v8, %v3796_v39  ;;  %v3957_v16 = vadd.f32 %v3956_v42, %v3888_v4 }
 0x2ca   : > { %v3761_v60 = vrot.slane %v3760_v11, 4  ;;  %v3921_v43 = vadd.f32 %v3920_v28, %v3889_v37 }
 0x2cb   : > { %v3798_v26 = vrot.slane %v3797_v23, 4  ;;  %v3958_v17 = vadd.f32 %v3957_v16, %v3890_v13 }
 0x2cc   : > { %v3762_v7 = vadd.f32 %v3761_v60, %v3760_v11  ;;  %v3922_v1 = vrot.slane %v3921_v43, 4 }
 0x2cd   : > { %v3799_v6 = vadd.f32 %v3798_v26, %v3797_v23  ;;  %v3959_v5 = vrot.slane %v3958_v17, 4 }
 0x2ce   : > { %v3763_v44 = vrot.slane %v3762_v7, 2  ;;  %v3923_v53 = vadd.f32 %v3922_v1, %v3921_v43 }
 0x2cf   : > { %v3800_v9 = vrot.slane %v3799_v6, 2  ;;  %v3960_v32 = vadd.f32 %v3959_v5, %v3958_v17 }
 0x2d0   : > { %v3764_v38 = vadd.f32 %v3763_v44, %v3762_v7  ;;  %v3924_v25 = vrot.slane %v3923_v53, 2 }
 0x2d1   : > { %v3801_v30 = vadd.f32 %v3800_v9, %v3799_v6  ;;  %v3961_v56 = vrot.slane %v3960_v32, 2 }
 0x2d2   : > { %v3765_v8 = vrot.slane %v3764_v38, 1  ;;  %v3925_v3 = vadd.f32 %v3924_v25, %v3923_v53 }
 0x2d3   : > { %v3802_v15 = vrot.slane %v3801_v30, 1  ;;  %v3962_v40 = vadd.f32 %v3961_v56, %v3960_v32 }
 0x2d4   : > { %v3766_v48 = vadd.f32 %v3765_v8, %v3764_v38  ;;  %v3926_v58 = vrot.slane %v3925_v3, 1 }
 0x2d5   : > { %v3803_v52 = vadd.f32 %v3802_v15, %v3801_v30  ;;  %v3963_v22 = vrot.slane %v3962_v40, 1 }
 0x2d6   : > { %v3927_v19 = vadd.f32 %v3926_v58, %v3925_v3 }
 0x2d7   : > { %v3806_v18 = vcombine.low %v3766_v48, %v3803_v52  ;;  %v3964_v45 = vadd.f32 %v3963_v22, %v3962_v40 }
 0x2d9   : > { %v3813_v27 = vrot.slane %v3806_v18, %v3812_v54  ;;  %v3967_v24 = vcombine.low %v3927_v19, %v3964_v45 }
 0x2db   : > { %v3820_v33 = vrot.slane %v3813_v27, %v3812_v54  ;;  %v3974_v12 = vrot.slane %v3967_v24, %v3812_v54 }
 0x2dd   : > { %3826 = vst.msk [vmem:[%s232_s26] ss:$2 sm:$0x3] %vm3824_vm0, %v3820_v33  ;;  %v3981_v46 = vrot.slane %v3974_v12, %v3812_v54 }
 0x2df   : > { %4528 = vst.msk [vmem:[%s232_s26 + $0x1] ss:$2 sm:$0x3] %vm3824_vm0, %v3981_v46 }
 0x2e0 PF: > { %s14_s14 = sadd.s32 1, %s5646_s14   ;;  %s7538_s12 = smov %s5642_s13 }
 0x2e1   : > { %p11_p5 = scmp.ge.s32.totalorder %s14_s14, 4   ;;  %s7539_s13 = smov %s7541_s15 }
 0x2e3   :  { %13 = sbr.rel (!%p11_p5) target bundleno = 2 (0x2), region = 73 }

</bundles_post_ra>
